<compile_context>
chip_gen: v6e
topology: v6e:2x2x1
jax: 0.10.0
libtpu: 0.0.40
codegen_flags: <defaults>
</compile_context>

<pallas_src>
import functools
from collections import namedtuple

import jax
import jax.numpy as jnp
from jax.experimental import pallas as pl
from jax.experimental.pallas import tpu as pltpu

Config = namedtuple("Config", ["expansion", "out_channels", "num_blocks", "stride"])

_VMEM_LIMIT = 32 * 1024 * 1024  # explicit scoped-VMEM limit (safe on v5e/v6e/v7x)


def _compiler_params():
    return pltpu.CompilerParams(
        dimension_semantics=("parallel",),
        vmem_limit_bytes=_VMEM_LIMIT,
    )


def _cpad(c):
    """Pad a channel count up to a multiple of 128 (lane-dense HBM layout)."""
    return ((c + 127) // 128) * 128


# --------------------------- fused matmul + BN ------------------------------

def _mm_bn_kernel(x_ref, w_ref, s_ref, b_ref, o_ref, *, relu6):
    acc = jnp.dot(x_ref[...].astype(jnp.bfloat16), w_ref[...],
                  preferred_element_type=jnp.float32)
    y = acc * s_ref[...] + b_ref[...]
    if relu6:
        y = jnp.clip(y, 0.0, 6.0)
    o_ref[...] = y.astype(o_ref.dtype)


def matmul_bn(x, w, scale, shift, *, relu6=False, out_dtype=None, tile_m=256):
    """Fused (x @ w) * scale + shift [relu6], tiled over the M axis."""
    M, K = x.shape
    Kw, N = w.shape
    assert K == Kw
    out_dtype = out_dtype or x.dtype
    if M % tile_m != 0:      # small / ragged M: single tile
        tile_m = M
    grid_m = M // tile_m
    kern = functools.partial(_mm_bn_kernel, relu6=relu6)
    return pl.pallas_call(
        kern,
        out_shape=jax.ShapeDtypeStruct((M, N), out_dtype),
        grid=(grid_m,),
        in_specs=[
            pl.BlockSpec((tile_m, K), lambda i: (i, 0)),
            pl.BlockSpec((K, N), lambda i: (0, 0)),
            pl.BlockSpec((1, N), lambda i: (0, 0)),
            pl.BlockSpec((1, N), lambda i: (0, 0)),
        ],
        out_specs=pl.BlockSpec((tile_m, N), lambda i: (i, 0)),
        compiler_params=_compiler_params(),
    )(x, w, scale, shift)


# ------------------- fused bottleneck (expand->dw->project) -----------------

def _phase_offset(stride, parity):
    # write offset inside the padded scratch so taps never index below 0
    return 1 if stride == 1 else parity


def _tap_location(stride, kh, kw):
    """(phase, row_start, col_start) of the (kh, kw) depthwise tap."""
    dr, dc = kh - 1, kw - 1
    qr, qc = dr % stride, dc % stride
    q = qr * stride + qc
    r0 = (dr - qr) // stride + _phase_offset(stride, qr)
    c0 = (dc - qc) // stride + _phase_offset(stride, qc)
    return q, r0, c0


def _scratch_hw(stride, ho, wo):
    pad = 2 if stride == 1 else 1
    return ho + pad, wo + pad


def _bottleneck_kernel(xq_ref, we_ref, se_ref, be_ref, wd_ref, sd_ref, bd_ref,
                       wp_ref, sp_ref, bp_ref, o_ref, scr_ref,
                       *, stride, use_residual):
    s = stride
    s2, hq, wq, cinp = xq_ref.shape          # phase-split input block
    chid = we_ref.shape[1]
    _, ho, wo, coutp = o_ref.shape

    we = we_ref[...]
    se, be = se_ref[...], be_ref[...]

    # zero-padded VMEM scratch that holds the expanded hidden activation
    scr_ref[...] = jnp.zeros_like(scr_ref)

    x0 = None
    for q in range(s2):                       # 1 phase (s=1) or 4 phases (s=2)
        qr, qc = q // s, q % s
        xph = xq_ref[q].reshape(hq * wq, cinp)
        if q == 0:
            x0 = xph                          # kept for the residual path
        # 1x1 expand + BN + ReLU6 (MXU in bf16, f32 accumulate/epilogue)
        h = jnp.dot(xph.astype(jnp.bfloat16), we,
                    preferred_element_type=jnp.float32)
        h = jnp.clip(h * se + be, 0.0, 6.0)
        ro = _phase_offset(s, qr)
        co = _phase_offset(s, qc)
        scr_ref[q, ro:ro + hq, co:co + wq, :] = h.reshape(hq, wq, chid)

    # depthwise 3x3 + BN + ReLU6: 9 static shifted slices of the scratch
    wd = wd_ref[...]                          # (9, 1, chid), loaded once
    acc = jnp.zeros((ho, wo, chid), jnp.float32)
    for kh in range(3):
        for kw in range(3):
            q, r0, c0 = _tap_location(s, kh, kw)
            tap = scr_ref[q, r0:r0 + ho, c0:c0 + wo, :]
            acc = acc + tap * wd[3 * kh + kw]
    d = jnp.clip(acc * sd_ref[...] + bd_ref[...], 0.0, 6.0)

    # 1x1 project + BN (+ residual), output stays lane-dense (coutp % 128 == 0)
    y = jnp.dot(d.reshape(ho * wo, chid).astype(jnp.bfloat16), wp_ref[...],
                preferred_element_type=jnp.float32)
    y = y * sp_ref[...] + bp_ref[...]
    if use_residual:
        y = y + x0.astype(jnp.float32)
    o_ref[0] = y.reshape(ho, wo, coutp).astype(o_ref.dtype)


def bottleneck_forward(p, x, stride, use_residual):
    B, H, W, cinp = x.shape
    s = stride
    if s == 1:
        xq = x                                # (B*1, H, W, Cp)
        hq, wq = H, W
    else:
        assert H % 2 == 0 and W % 2 == 0, "stride-2 blocks require even H, W"
        hq, wq = H // 2, W // 2
        # space-to-batch phase split (EE, EO, OE, OO) done in XLA
        xq = jnp.stack([x[:, r::2, c::2, :] for r in (0, 1) for c in (0, 1)],
                       axis=1).reshape(B * 4, hq, wq, cinp)
    ho = (H - 1) // s + 1
    wo = (W - 1) // s + 1
    chid = p["expand_w"].shape[1]
    coutp = p["proj_w"].shape[1]
    rs, cs = _scratch_hw(s, ho, wo)
    s2 = s * s

    kern = functools.partial(_bottleneck_kernel, stride=s,
                             use_residual=use_residual)
    return pl.pallas_call(
        kern,
        out_shape=jax.ShapeDtypeStruct((B, ho, wo, coutp), jnp.bfloat16),
        grid=(B,),
        in_specs=[
            pl.BlockSpec((s2, hq, wq, cinp), lambda b: (b, 0, 0, 0)),
            pl.BlockSpec(p["expand_w"].shape, lambda b: (0, 0)),
            pl.BlockSpec(p["bn_e_scale"].shape, lambda b: (0, 0)),
            pl.BlockSpec(p["bn_e_shift"].shape, lambda b: (0, 0)),
            pl.BlockSpec(p["dw_w"].shape, lambda b: (0, 0, 0)),
            pl.BlockSpec(p["bn_d_scale"].shape, lambda b: (0, 0)),
            pl.BlockSpec(p["bn_d_shift"].shape, lambda b: (0, 0)),
            pl.BlockSpec(p["proj_w"].shape, lambda b: (0, 0)),
            pl.BlockSpec(p["bn_p_scale"].shape, lambda b: (0, 0)),
            pl.BlockSpec(p["bn_p_shift"].shape, lambda b: (0, 0)),
        ],
        out_specs=pl.BlockSpec((1, ho, wo, coutp), lambda b: (b, 0, 0, 0)),
        scratch_shapes=[pltpu.VMEM((s2, rs, cs, chid), jnp.float32)],
        compiler_params=_compiler_params(),
    )(xq, p["expand_w"], p["bn_e_scale"], p["bn_e_shift"], p["dw_w"],
      p["bn_d_scale"], p["bn_d_shift"], p["proj_w"], p["bn_p_scale"],
      p["bn_p_shift"])


# ------------------- conv2 (1x1) + BN + ReLU6 + global avg pool -------------

def _conv2_pool_kernel(x_ref, w_ref, s_ref, b_ref, o_ref):
    y = jnp.dot(x_ref[0].astype(jnp.bfloat16), w_ref[...],
                preferred_element_type=jnp.float32)
    y = jnp.clip(y * s_ref[...] + b_ref[...], 0.0, 6.0)
    o_ref[0] = jnp.mean(y, axis=0, keepdims=True)


def conv2_bn_relu6_pool(x, w, scale, shift):
    """x: [B, HW, Cin_pad] -> [B, 1280]  (conv2 + bn2 + ReLU6 + avg pool)."""
    B, HW, C = x.shape
    K, N = w.shape
    out = pl.pallas_call(
        _conv2_pool_kernel,
        out_shape=jax.ShapeDtypeStruct((B, 1, N), jnp.float32),
        grid=(B,),
        in_specs=[
            pl.BlockSpec((1, HW, C), lambda b: (b, 0, 0)),
            pl.BlockSpec((K, N), lambda b: (0, 0)),
            pl.BlockSpec((1, N), lambda b: (0, 0)),
            pl.BlockSpec((1, N), lambda b: (0, 0)),
        ],
        out_specs=pl.BlockSpec((1, 1, N), lambda b: (b, 0, 0)),
        compiler_params=_compiler_params(),
    )(x, w, scale, shift)
    return out.reshape(B, N)


# ------------------------------ JAX glue ------------------------------------

def im2col_3x3(x):
    """x: [B, H, W, C] -> [B*H*W, 9*C] for a 3x3 / stride-1 / pad-1 conv."""
    B, H, W, C = x.shape
    xp = jnp.pad(x, ((0, 0), (1, 1), (1, 1), (0, 0)))
    cols = [xp[:, kh:kh + H, kw:kw + W, :].reshape(B * H * W, C)
            for kh in range(3) for kw in range(3)]
    return jnp.concatenate(cols, axis=1)


def bn_fold(gamma, beta, mean, var, eps=1e-5):
    scale = gamma / jnp.sqrt(var + eps)
    shift = beta - mean * scale
    return scale, shift


def _block_configs(architecture, cin=32):
    cfgs = []
    for cfg in architecture:
        strides = [cfg.stride] + [1] * (cfg.num_blocks - 1)
        for s in strides:
            cfgs.append((cin, cfg.out_channels, cfg.expansion, s))
            cin = cfg.out_channels
    return cfgs


def mobilenetv2_forward(params, x_nchw, architecture, num_classes, task=0):
    # PyTorch NCHW -> NHWC, bf16 activations in HBM
    x = jnp.transpose(x_nchw, (0, 2, 3, 1)).astype(jnp.bfloat16)
    B, H, W, Cin = x.shape

    # conv1 (3x3, s=1, p=1) + bn1 + ReLU6 via direct [M, 9*Cin] im2col matmul
    cols = im2col_3x3(x)
    y = matmul_bn(cols, params["conv1_w"], params["bn1_scale"],
                  params["bn1_shift"], relu6=True, out_dtype=jnp.bfloat16)
    x = y.reshape(B, H, W, -1)

    # fused bottlenecks (expand -> depthwise -> project per pallas_call)
    for blk_p, (cin, cout, _exp, stride) in zip(params["bottlenecks"],
                                                _block_configs(architecture)):
        use_residual = (stride == 1 and cin == cout)
        x = bottleneck_forward(blk_p, x, stride, use_residual)

    # conv2 (1x1) + bn2 + ReLU6 + AdaptiveAvgPool2d(1), fused
    B, Hc, Wc, Cp = x.shape
    pooled = conv2_bn_relu6_pool(x.reshape(B, Hc * Wc, Cp), params["conv2_w"],
                                 params["bn2_scale"], params["bn2_shift"])

    # Dropout(p=0.2) is the identity in inference mode.
    wfc, bfc = params["fc"][task]
    ones = jnp.ones((1, wfc.shape[1]), jnp.float32)
    logits = matmul_bn(pooled, wfc, ones, bfc, relu6=False,
                       out_dtype=jnp.float32)
    return logits[:, :num_classes[task]]


# --------------------------- parameter init ---------------------------------

def init_params(key, architecture, in_channels, num_classes):
    keys = iter(jax.random.split(key, 256))

    def conv(shape, fan_in):
        return (jax.random.normal(next(keys), shape, jnp.float32)
                / jnp.sqrt(jnp.float32(fan_in)))

    def bn(c):
        gamma = 1.0 + 0.1 * jax.random.normal(next(keys), (c,), jnp.float32)
        beta = 0.1 * jax.random.normal(next(keys), (c,), jnp.float32)
        mean = 0.1 * jax.random.normal(next(keys), (c,), jnp.float32)
        var = jnp.abs(1.0 + 0.1 * jax.random.normal(next(keys), (c,), jnp.float32))
        return bn_fold(gamma, beta, mean, var)

    def pad_n(w, n_pad):                     # zero-pad output channels
        return jnp.pad(w, ((0, 0), (0, n_pad - w.shape[1])))

    def pad_k(w, k_pad):                     # zero-pad input channels
        return jnp.pad(w, ((0, k_pad - w.shape[0]), (0, 0)))

    def pad_vec(v, n_pad, value):
        return jnp.pad(v, (0, n_pad - v.shape[0]),
                       constant_values=value).reshape(1, n_pad)

    params = {}

    # stem
    k_stem = 9 * in_channels
    w1 = conv((k_stem, 32), k_stem)
    s1, b1 = bn(32)
    params["conv1_w"] = pad_n(w1, _cpad(32)).astype(jnp.bfloat16)
    params["bn1_scale"] = pad_vec(s1, _cpad(32), 1.0)
    params["bn1_shift"] = pad_vec(b1, _cpad(32), 0.0)

    # bottlenecks
    blocks = []
    for cin, cout, expansion, _stride in _block_configs(architecture):
        hidden = expansion * cin
        we = conv((cin, hidden), cin)
        wd = conv((9, 1, hidden), 9)
        wp = conv((hidden, cout), hidden)
        es, eb = bn(hidden)
        dsc, dsh = bn(hidden)
        ps, pb = bn(cout)
        blocks.append({
            "expand_w": pad_k(we, _cpad(cin)).astype(jnp.bfloat16),
            "bn_e_scale": es.reshape(1, hidden),
            "bn_e_shift": eb.reshape(1, hidden),
            "dw_w": wd,                                   # (9, 1, hidden) f32
            "bn_d_scale": dsc.reshape(1, hidden),
            "bn_d_shift": dsh.reshape(1, hidden),
            "proj_w": pad_n(wp, _cpad(cout)).astype(jnp.bfloat16),
            "bn_p_scale": pad_vec(ps, _cpad(cout), 1.0),
            "bn_p_shift": pad_vec(pb, _cpad(cout), 0.0),
        })
    params["bottlenecks"] = blocks

    # conv2 / bn2
    cin_last = _block_configs(architecture)[-1][1]
    w2 = conv((cin_last, 1280), cin_last)
    s2, b2 = bn(1280)
    params["conv2_w"] = pad_k(w2, _cpad(cin_last)).astype(jnp.bfloat16)
    params["bn2_scale"] = s2.reshape(1, 1280)
    params["bn2_shift"] = b2.reshape(1, 1280)

    # per-task FC heads (padded to 128 output lanes, sliced after the kernel)
    fcs = []
    for nc in num_classes:
        wf = conv((1280, nc), 1280)
        bf = 0.01 * jax.random.normal(next(keys), (nc,), jnp.float32)
        fcs.append((pad_n(wf, _cpad(nc)).astype(jnp.bfloat16),
                    pad_vec(bf, _cpad(nc), 0.0)))
    params["fc"] = fcs
    return params


# --------------------------------- main --------------------------------------

if __name__ == "__main__":
    architecture = [
        Config(expansion=1, out_channels=16, num_blocks=1, stride=1),
        Config(expansion=6, out_channels=24, num_blocks=2, stride=2),
    ]
    in_channels = 4
    num_classes = [10, 5]

    key = jax.random.PRNGKey(0)
    kp, kx = jax.random.split(key)
    params = init_params(kp, architecture, in_channels, num_classes)

    # PyTorch-convention NCHW input.
    x = jax.random.normal(kx, (2, in_channels, 16, 16), jnp.float32)

    fwd = jax.jit(functools.partial(mobilenetv2_forward,
                                    architecture=architecture,
                                    num_classes=num_classes,
                                    task=0))
    out = fwd(params, x)
    jax.block_until_ready(out)
    assert out.shape == (2, num_classes[0]), out.shape
    print("KERNEL_OK")
</pallas_src>

<mosaic_0001>
module attributes {stable_mosaic.version = 11 : i64} {
  func.func @_mm_bn_kernel(%arg0: i32, %arg1: memref<256x36xbf16, #tpu.memory_space<vmem>>, %arg2: memref<36x128xbf16, #tpu.memory_space<vmem>>, %arg3: memref<1x128xf32, #tpu.memory_space<vmem>>, %arg4: memref<1x128xf32, #tpu.memory_space<vmem>>, %arg5: memref<256x128xbf16, #tpu.memory_space<vmem>>) attributes {dimension_semantics = [#tpu.dimension_semantics<parallel>], iteration_bounds = array<i64: 2>, scalar_prefetch = 0 : i64, scratch_operands = 0 : i64, tpu.core_type = #tpu.core_type<tc>, window_params = [{transform_indices = @transform_0, window_bounds = array<i64: 256, 36>}, {pipeline_mode = #tpu.pipeline_mode<synchronous>, transform_indices = @transform_1, window_bounds = array<i64: 36, 128>}, {pipeline_mode = #tpu.pipeline_mode<synchronous>, transform_indices = @transform_2, window_bounds = array<i64: 1, 128>}, {pipeline_mode = #tpu.pipeline_mode<synchronous>, transform_indices = @transform_3, window_bounds = array<i64: 1, 128>}, {transform_indices = @transform_4, window_bounds = array<i64: 256, 128>}]} {
    %c0 = arith.constant 0 : index
    %c0_0 = arith.constant 0 : index
    %0 = vector.load %arg1[%c0, %c0_0] : memref<256x36xbf16, #tpu.memory_space<vmem>>, vector<256x36xbf16>
    %c0_1 = arith.constant 0 : index
    %c0_2 = arith.constant 0 : index
    %1 = vector.load %arg2[%c0_1, %c0_2] : memref<36x128xbf16, #tpu.memory_space<vmem>>, vector<36x128xbf16>
    %cst = arith.constant dense<0.000000e+00> : vector<256x128xf32>
    %2 = tpu.matmul %0, %1, %cst {dimension_numbers = #tpu.dot_dimension_numbers<[1], [0], [0], [1], [0, 0, 1, 1], [], []>} : vector<256x36xbf16>, vector<36x128xbf16>, vector<256x128xf32> -> vector<256x128xf32>
    %c0_3 = arith.constant 0 : index
    %c0_4 = arith.constant 0 : index
    %3 = vector.load %arg3[%c0_3, %c0_4] : memref<1x128xf32, #tpu.memory_space<vmem>>, vector<1x128xf32>
    %4 = vector.broadcast %3 : vector<1x128xf32> to vector<256x128xf32>
    %5 = arith.mulf %2, %4 : vector<256x128xf32>
    %c0_5 = arith.constant 0 : index
    %c0_6 = arith.constant 0 : index
    %6 = vector.load %arg4[%c0_5, %c0_6] : memref<1x128xf32, #tpu.memory_space<vmem>>, vector<1x128xf32>
    %7 = vector.broadcast %6 : vector<1x128xf32> to vector<256x128xf32>
    %8 = arith.addf %5, %7 : vector<256x128xf32>
    %cst_7 = arith.constant 0.000000e+00 : f32
    %cst_8 = arith.constant 6.000000e+00 : f32
    %9 = vector.broadcast %cst_7 : f32 to vector<256x128xf32>
    %10 = arith.maximumf %9, %8 : vector<256x128xf32>
    %11 = vector.broadcast %cst_8 : f32 to vector<256x128xf32>
    %12 = arith.minimumf %11, %10 : vector<256x128xf32>
    %13 = arith.truncf %12 : vector<256x128xf32> to vector<256x128xbf16>
    %c0_9 = arith.constant 0 : index
    %c0_10 = arith.constant 0 : index
    %14 = vector.load %arg5[%c0_9, %c0_10] : memref<256x128xbf16, #tpu.memory_space<vmem>>, vector<256x128xbf16>
    tpu.vector_store %arg5[%c0_9, %c0_10], %13 {strides = array<i32>} : memref<256x128xbf16, #tpu.memory_space<vmem>>, vector<256x128xbf16>,
    return
  }
  func.func @transform_0(%arg0: i32) -> (i32, i32) {
    %c0_i32 = arith.constant 0 : i32
    %c0_i32_0 = arith.constant 0 : i32
    return %arg0, %c0_i32 : i32, i32
  }
  func.func @transform_1(%arg0: i32) -> (i32, i32) {
    %c0_i32 = arith.constant 0 : i32
    %c0_i32_0 = arith.constant 0 : i32
    %c0_i32_1 = arith.constant 0 : i32
    return %c0_i32, %c0_i32_0 : i32, i32
  }
  func.func @transform_2(%arg0: i32) -> (i32, i32) {
    %c0_i32 = arith.constant 0 : i32
    %c0_i32_0 = arith.constant 0 : i32
    %c0_i32_1 = arith.constant 0 : i32
    return %c0_i32, %c0_i32_0 : i32, i32
  }
  func.func @transform_3(%arg0: i32) -> (i32, i32) {
    %c0_i32 = arith.constant 0 : i32
    %c0_i32_0 = arith.constant 0 : i32
    %c0_i32_1 = arith.constant 0 : i32
    return %c0_i32, %c0_i32_0 : i32, i32
  }
  func.func @transform_4(%arg0: i32) -> (i32, i32) {
    %c0_i32 = arith.constant 0 : i32
    %c0_i32_0 = arith.constant 0 : i32
    return %arg0, %c0_i32 : i32, i32
  }
}

module attributes {stable_mosaic.version = 11 : i64} {
  func.func @_bottleneck_kernel(%arg0: i32, %arg1: memref<1x16x16x128xbf16, #tpu.memory_space<vmem>>, %arg2: memref<128x32xbf16, #tpu.memory_space<vmem>>, %arg3: memref<1x32xf32, #tpu.memory_space<vmem>>, %arg4: memref<1x32xf32, #tpu.memory_space<vmem>>, %arg5: memref<9x1x32xf32, #tpu.memory_space<vmem>>, %arg6: memref<1x32xf32, #tpu.memory_space<vmem>>, %arg7: memref<1x32xf32, #tpu.memory_space<vmem>>, %arg8: memref<32x128xbf16, #tpu.memory_space<vmem>>, %arg9: memref<1x128xf32, #tpu.memory_space<vmem>>, %arg10: memref<1x128xf32, #tpu.memory_space<vmem>>, %arg11: memref<1x16x16x128xbf16, #tpu.memory_space<vmem>>, %arg12: memref<1x18x18x32xf32, #tpu.memory_space<vmem>>) attributes {dimension_semantics = [#tpu.dimension_semantics<parallel>], iteration_bounds = array<i64: 2>, scalar_prefetch = 0 : i64, scratch_operands = 1 : i64, tpu.core_type = #tpu.core_type<tc>, window_params = [{transform_indices = @transform_0, window_bounds = array<i64: 1, 16, 16, 128>}, {pipeline_mode = #tpu.pipeline_mode<synchronous>, transform_indices = @transform_1, window_bounds = array<i64: 128, 32>}, {pipeline_mode = #tpu.pipeline_mode<synchronous>, transform_indices = @transform_2, window_bounds = array<i64: 1, 32>}, {pipeline_mode = #tpu.pipeline_mode<synchronous>, transform_indices = @transform_3, window_bounds = array<i64: 1, 32>}, {pipeline_mode = #tpu.pipeline_mode<synchronous>, transform_indices = @transform_4, window_bounds = array<i64: 9, 1, 32>}, {pipeline_mode = #tpu.pipeline_mode<synchronous>, transform_indices = @transform_5, window_bounds = array<i64: 1, 32>}, {pipeline_mode = #tpu.pipeline_mode<synchronous>, transform_indices = @transform_6, window_bounds = array<i64: 1, 32>}, {pipeline_mode = #tpu.pipeline_mode<synchronous>, transform_indices = @transform_7, window_bounds = array<i64: 32, 128>}, {pipeline_mode = #tpu.pipeline_mode<synchronous>, transform_indices = @transform_8, window_bounds = array<i64: 1, 128>}, {pipeline_mode = #tpu.pipeline_mode<synchronous>, transform_indices = @transform_9, window_bounds = array<i64: 1, 128>}, {transform_indices = @transform_10, window_bounds = array<i64: 1, 16, 16, 128>}]} {
    %c0 = arith.constant 0 : index
    %c0_0 = arith.constant 0 : index
    %0 = vector.load %arg2[%c0, %c0_0] : memref<128x32xbf16, #tpu.memory_space<vmem>>, vector<128x32xbf16>
    %c0_1 = arith.constant 0 : index
    %c0_2 = arith.constant 0 : index
    %1 = vector.load %arg3[%c0_1, %c0_2] : memref<1x32xf32, #tpu.memory_space<vmem>>, vector<1x32xf32>
    %c0_3 = arith.constant 0 : index
    %c0_4 = arith.constant 0 : index
    %2 = vector.load %arg4[%c0_3, %c0_4] : memref<1x32xf32, #tpu.memory_space<vmem>>, vector<1x32xf32>
    %cst = arith.constant 0.000000e+00 : f32
    %3 = vector.broadcast %cst : f32 to vector<1x18x18x32xf32>
    %c0_5 = arith.constant 0 : index
    %c0_6 = arith.constant 0 : index
    %c0_7 = arith.constant 0 : index
    %c0_8 = arith.constant 0 : index
    %4 = vector.load %arg12[%c0_5, %c0_6, %c0_7, %c0_8] : memref<1x18x18x32xf32, #tpu.memory_space<vmem>>, vector<1x18x18x32xf32>
    tpu.vector_store %arg12[%c0_5, %c0_6, %c0_7, %c0_8], %3 {strides = array<i32>} : memref<1x18x18x32xf32, #tpu.memory_space<vmem>>, vector<1x18x18x32xf32>,
    %c0_9 = arith.constant 0 : index
    %c0_10 = arith.constant 0 : index
    %c0_11 = arith.constant 0 : index
    %c0_12 = arith.constant 0 : index
    %5 = vector.load %arg1[%c0_9, %c0_10, %c0_11, %c0_12] : memref<1x16x16x128xbf16, #tpu.memory_space<vmem>>, vector<1x16x16x128xbf16>
    %6 = vector.shape_cast %5 : vector<1x16x16x128xbf16> to vector<16x16x128xbf16>
    %7 = vector.shape_cast %6 : vector<16x16x128xbf16> to vector<256x128xbf16>
    %cst_13 = arith.constant dense<0.000000e+00> : vector<256x32xf32>
    %8 = tpu.matmul %7, %0, %cst_13 {dimension_numbers = #tpu.dot_dimension_numbers<[1], [0], [0], [1], [0, 0, 1, 1], [], []>} : vector<256x128xbf16>, vector<128x32xbf16>, vector<256x32xf32> -> vector<256x32xf32>
    %9 = vector.broadcast %1 : vector<1x32xf32> to vector<256x32xf32>
    %10 = arith.mulf %8, %9 : vector<256x32xf32>
    %11 = vector.broadcast %2 : vector<1x32xf32> to vector<256x32xf32>
    %12 = arith.addf %10, %11 : vector<256x32xf32>
    %cst_14 = arith.constant 0.000000e+00 : f32
    %cst_15 = arith.constant 6.000000e+00 : f32
    %13 = vector.broadcast %cst_14 : f32 to vector<256x32xf32>
    %14 = arith.maximumf %13, %12 : vector<256x32xf32>
    %15 = vector.broadcast %cst_15 : f32 to vector<256x32xf32>
    %16 = arith.minimumf %15, %14 : vector<256x32xf32>
    %17 = vector.shape_cast %16 : vector<256x32xf32> to vector<16x16x32xf32>
    %c0_16 = arith.constant 0 : index
    %c1 = arith.constant 1 : index
    %c1_17 = arith.constant 1 : index
    %c0_18 = arith.constant 0 : index
    %18 = vector.load %arg12[%c0_16, %c1, %c1_17, %c0_18] : memref<1x18x18x32xf32, #tpu.memory_space<vmem>>, vector<1x16x16x32xf32>
    %19 = vector.shape_cast %18 : vector<1x16x16x32xf32> to vector<16x16x32xf32>
    %20 = vector.shape_cast %17 : vector<16x16x32xf32> to vector<1x16x16x32xf32>
    tpu.vector_store %arg12[%c0_16, %c1, %c1_17, %c0_18], %20 {strides = array<i32>} : memref<1x18x18x32xf32, #tpu.memory_space<vmem>>, vector<1x16x16x32xf32>,
    %c0_19 = arith.constant 0 : index
    %c0_20 = arith.constant 0 : index
    %c0_21 = arith.constant 0 : index
    %21 = vector.load %arg5[%c0_19, %c0_20, %c0_21] : memref<9x1x32xf32, #tpu.memory_space<vmem>>, vector<9x1x32xf32>
    %cst_22 = arith.constant 0.000000e+00 : f32
    %22 = vector.broadcast %cst_22 : f32 to vector<16x16x32xf32>
    %c0_23 = arith.constant 0 : index
    %c0_24 = arith.constant 0 : index
    %c0_25 = arith.constant 0 : index
    %c0_26 = arith.constant 0 : index
    %23 = vector.load %arg12[%c0_23, %c0_24, %c0_25, %c0_26] : memref<1x18x18x32xf32, #tpu.memory_space<vmem>>, vector<1x16x16x32xf32>
    %24 = vector.shape_cast %23 : vector<1x16x16x32xf32> to vector<16x16x32xf32>
    %25 = vector.extract_strided_slice %21 {offsets = [0, 0, 0], sizes = [1, 1, 32], strides = [1, 1, 1]} : vector<9x1x32xf32> to vector<1x1x32xf32>
    %26 = vector.shape_cast %25 : vector<1x1x32xf32> to vector<1x32xf32>
    %27 = vector.shape_cast %26 : vector<1x32xf32> to vector<1x1x32xf32>
    %28 = vector.broadcast %27 : vector<1x1x32xf32> to vector<16x16x32xf32>
    %29 = arith.mulf %24, %28 : vector<16x16x32xf32>
    %30 = arith.addf %22, %29 : vector<16x16x32xf32>
    %c0_27 = arith.constant 0 : index
    %c0_28 = arith.constant 0 : index
    %c1_29 = arith.constant 1 : index
    %c0_30 = arith.constant 0 : index
    %31 = vector.load %arg12[%c0_27, %c0_28, %c1_29, %c0_30] : memref<1x18x18x32xf32, #tpu.memory_space<vmem>>, vector<1x16x16x32xf32>
    %32 = vector.shape_cast %31 : vector<1x16x16x32xf32> to vector<16x16x32xf32>
    %33 = vector.extract_strided_slice %21 {offsets = [1, 0, 0], sizes = [1, 1, 32], strides = [1, 1, 1]} : vector<9x1x32xf32> to vector<1x1x32xf32>
    %34 = vector.shape_cast %33 : vector<1x1x32xf32> to vector<1x32xf32>
    %35 = vector.shape_cast %34 : vector<1x32xf32> to vector<1x1x32xf32>
    %36 = vector.broadcast %35 : vector<1x1x32xf32> to vector<16x16x32xf32>
    %37 = arith.mulf %32, %36 : vector<16x16x32xf32>
    %38 = arith.addf %30, %37 : vector<16x16x32xf32>
    %c0_31 = arith.constant 0 : index
    %c0_32 = arith.constant 0 : index
    %c2 = arith.constant 2 : index
    %c0_33 = arith.constant 0 : index
    %39 = vector.load %arg12[%c0_31, %c0_32, %c2, %c0_33] : memref<1x18x18x32xf32, #tpu.memory_space<vmem>>, vector<1x16x16x32xf32>
    %40 = vector.shape_cast %39 : vector<1x16x16x32xf32> to vector<16x16x32xf32>
    %41 = vector.extract_strided_slice %21 {offsets = [2, 0, 0], sizes = [1, 1, 32], strides = [1, 1, 1]} : vector<9x1x32xf32> to vector<1x1x32xf32>
    %42 = vector.shape_cast %41 : vector<1x1x32xf32> to vector<1x32xf32>
    %43 = vector.shape_cast %42 : vector<1x32xf32> to vector<1x1x32xf32>
    %44 = vector.broadcast %43 : vector<1x1x32xf32> to vector<16x16x32xf32>
    %45 = arith.mulf %40, %44 : vector<16x16x32xf32>
    %46 = arith.addf %38, %45 : vector<16x16x32xf32>
    %c0_34 = arith.constant 0 : index
    %c1_35 = arith.constant 1 : index
    %c0_36 = arith.constant 0 : index
    %c0_37 = arith.constant 0 : index
    %47 = vector.load %arg12[%c0_34, %c1_35, %c0_36, %c0_37] : memref<1x18x18x32xf32, #tpu.memory_space<vmem>>, vector<1x16x16x32xf32>
    %48 = vector.shape_cast %47 : vector<1x16x16x32xf32> to vector<16x16x32xf32>
    %49 = vector.extract_strided_slice %21 {offsets = [3, 0, 0], sizes = [1, 1, 32], strides = [1, 1, 1]} : vector<9x1x32xf32> to vector<1x1x32xf32>
    %50 = vector.shape_cast %49 : vector<1x1x32xf32> to vector<1x32xf32>
    %51 = vector.shape_cast %50 : vector<1x32xf32> to vector<1x1x32xf32>
    %52 = vector.broadcast %51 : vector<1x1x32xf32> to vector<16x16x32xf32>
    %53 = arith.mulf %48, %52 : vector<16x16x32xf32>
    %54 = arith.addf %46, %53 : vector<16x16x32xf32>
    %c0_38 = arith.constant 0 : index
    %c1_39 = arith.constant 1 : index
    %c1_40 = arith.constant 1 : index
    %c0_41 = arith.constant 0 : index
    %55 = vector.load %arg12[%c0_38, %c1_39, %c1_40, %c0_41] : memref<1x18x18x32xf32, #tpu.memory_space<vmem>>, vector<1x16x16x32xf32>
    %56 = vector.shape_cast %55 : vector<1x16x16x32xf32> to vector<16x16x32xf32>
    %57 = vector.extract_strided_slice %21 {offsets = [4, 0, 0], sizes = [1, 1, 32], strides = [1, 1, 1]} : vector<9x1x32xf32> to vector<1x1x32xf32>
    %58 = vector.shape_cast %57 : vector<1x1x32xf32> to vector<1x32xf32>
    %59 = vector.shape_cast %58 : vector<1x32xf32> to vector<1x1x32xf32>
    %60 = vector.broadcast %59 : vector<1x1x32xf32> to vector<16x16x32xf32>
    %61 = arith.mulf %56, %60 : vector<16x16x32xf32>
    %62 = arith.addf %54, %61 : vector<16x16x32xf32>
    %c0_42 = arith.constant 0 : index
    %c1_43 = arith.constant 1 : index
    %c2_44 = arith.constant 2 : index
    %c0_45 = arith.constant 0 : index
    %63 = vector.load %arg12[%c0_42, %c1_43, %c2_44, %c0_45] : memref<1x18x18x32xf32, #tpu.memory_space<vmem>>, vector<1x16x16x32xf32>
    %64 = vector.shape_cast %63 : vector<1x16x16x32xf32> to vector<16x16x32xf32>
    %65 = vector.extract_strided_slice %21 {offsets = [5, 0, 0], sizes = [1, 1, 32], strides = [1, 1, 1]} : vector<9x1x32xf32> to vector<1x1x32xf32>
    %66 = vector.shape_cast %65 : vector<1x1x32xf32> to vector<1x32xf32>
    %67 = vector.shape_cast %66 : vector<1x32xf32> to vector<1x1x32xf32>
    %68 = vector.broadcast %67 : vector<1x1x32xf32> to vector<16x16x32xf32>
    %69 = arith.mulf %64, %68 : vector<16x16x32xf32>
    %70 = arith.addf %62, %69 : vector<16x16x32xf32>
    %c0_46 = arith.constant 0 : index
    %c2_47 = arith.constant 2 : index
    %c0_48 = arith.constant 0 : index
    %c0_49 = arith.constant 0 : index
    %71 = vector.load %arg12[%c0_46, %c2_47, %c0_48, %c0_49] : memref<1x18x18x32xf32, #tpu.memory_space<vmem>>, vector<1x16x16x32xf32>
    %72 = vector.shape_cast %71 : vector<1x16x16x32xf32> to vector<16x16x32xf32>
    %73 = vector.extract_strided_slice %21 {offsets = [6, 0, 0], sizes = [1, 1, 32], strides = [1, 1, 1]} : vector<9x1x32xf32> to vector<1x1x32xf32>
    %74 = vector.shape_cast %73 : vector<1x1x32xf32> to vector<1x32xf32>
    %75 = vector.shape_cast %74 : vector<1x32xf32> to vector<1x1x32xf32>
    %76 = vector.broadcast %75 : vector<1x1x32xf32> to vector<16x16x32xf32>
    %77 = arith.mulf %72, %76 : vector<16x16x32xf32>
    %78 = arith.addf %70, %77 : vector<16x16x32xf32>
    %c0_50 = arith.constant 0 : index
    %c2_51 = arith.constant 2 : index
    %c1_52 = arith.constant 1 : index
    %c0_53 = arith.constant 0 : index
    %79 = vector.load %arg12[%c0_50, %c2_51, %c1_52, %c0_53] : memref<1x18x18x32xf32, #tpu.memory_space<vmem>>, vector<1x16x16x32xf32>
    %80 = vector.shape_cast %79 : vector<1x16x16x32xf32> to vector<16x16x32xf32>
    %81 = vector.extract_strided_slice %21 {offsets = [7, 0, 0], sizes = [1, 1, 32], strides = [1, 1, 1]} : vector<9x1x32xf32> to vector<1x1x32xf32>
    %82 = vector.shape_cast %81 : vector<1x1x32xf32> to vector<1x32xf32>
    %83 = vector.shape_cast %82 : vector<1x32xf32> to vector<1x1x32xf32>
    %84 = vector.broadcast %83 : vector<1x1x32xf32> to vector<16x16x32xf32>
    %85 = arith.mulf %80, %84 : vector<16x16x32xf32>
    %86 = arith.addf %78, %85 : vector<16x16x32xf32>
    %c0_54 = arith.constant 0 : index
    %c2_55 = arith.constant 2 : index
    %c2_56 = arith.constant 2 : index
    %c0_57 = arith.constant 0 : index
    %87 = vector.load %arg12[%c0_54, %c2_55, %c2_56, %c0_57] : memref<1x18x18x32xf32, #tpu.memory_space<vmem>>, vector<1x16x16x32xf32>
    %88 = vector.shape_cast %87 : vector<1x16x16x32xf32> to vector<16x16x32xf32>
    %89 = vector.extract_strided_slice %21 {offsets = [8, 0, 0], sizes = [1, 1, 32], strides = [1, 1, 1]} : vector<9x1x32xf32> to vector<1x1x32xf32>
    %90 = vector.shape_cast %89 : vector<1x1x32xf32> to vector<1x32xf32>
    %91 = vector.shape_cast %90 : vector<1x32xf32> to vector<1x1x32xf32>
    %92 = vector.broadcast %91 : vector<1x1x32xf32> to vector<16x16x32xf32>
    %93 = arith.mulf %88, %92 : vector<16x16x32xf32>
    %94 = arith.addf %86, %93 : vector<16x16x32xf32>
    %c0_58 = arith.constant 0 : index
    %c0_59 = arith.constant 0 : index
    %95 = vector.load %arg6[%c0_58, %c0_59] : memref<1x32xf32, #tpu.memory_space<vmem>>, vector<1x32xf32>
    %96 = vector.shape_cast %95 : vector<1x32xf32> to vector<1x1x32xf32>
    %97 = vector.broadcast %96 : vector<1x1x32xf32> to vector<16x16x32xf32>
    %98 = arith.mulf %94, %97 : vector<16x16x32xf32>
    %c0_60 = arith.constant 0 : index
    %c0_61 = arith.constant 0 : index
    %99 = vector.load %arg7[%c0_60, %c0_61] : memref<1x32xf32, #tpu.memory_space<vmem>>, vector<1x32xf32>
    %100 = vector.shape_cast %99 : vector<1x32xf32> to vector<1x1x32xf32>
    %101 = vector.broadcast %100 : vector<1x1x32xf32> to vector<16x16x32xf32>
    %102 = arith.addf %98, %101 : vector<16x16x32xf32>
    %cst_62 = arith.constant 0.000000e+00 : f32
    %cst_63 = arith.constant 6.000000e+00 : f32
    %103 = vector.broadcast %cst_62 : f32 to vector<16x16x32xf32>
    %104 = arith.maximumf %103, %102 : vector<16x16x32xf32>
    %105 = vector.broadcast %cst_63 : f32 to vector<16x16x32xf32>
    %106 = arith.minimumf %105, %104 : vector<16x16x32xf32>
    %107 = vector.shape_cast %106 : vector<16x16x32xf32> to vector<256x32xf32>
    %108 = arith.truncf %107 : vector<256x32xf32> to vector<256x32xbf16>
    %c0_64 = arith.constant 0 : index
    %c0_65 = arith.constant 0 : index
    %109 = vector.load %arg8[%c0_64, %c0_65] : memref<32x128xbf16, #tpu.memory_space<vmem>>, vector<32x128xbf16>
    %cst_66 = arith.constant dense<0.000000e+00> : vector<256x128xf32>
    %110 = tpu.matmul %108, %109, %cst_66 {dimension_numbers = #tpu.dot_dimension_numbers<[1], [0], [0], [1], [0, 0, 1, 1], [], []>} : vector<256x32xbf16>, vector<32x128xbf16>, vector<256x128xf32> -> vector<256x128xf32>
    %c0_67 = arith.constant 0 : index
    %c0_68 = arith.constant 0 : index
    %111 = vector.load %arg9[%c0_67, %c0_68] : memref<1x128xf32, #tpu.memory_space<vmem>>, vector<1x128xf32>
    %112 = vector.broadcast %111 : vector<1x128xf32> to vector<256x128xf32>
    %113 = arith.mulf %110, %112 : vector<256x128xf32>
    %c0_69 = arith.constant 0 : index
    %c0_70 = arith.constant 0 : index
    %114 = vector.load %arg10[%c0_69, %c0_70] : memref<1x128xf32, #tpu.memory_space<vmem>>, vector<1x128xf32>
    %115 = vector.broadcast %114 : vector<1x128xf32> to vector<256x128xf32>
    %116 = arith.addf %113, %115 : vector<256x128xf32>
    %117 = vector.shape_cast %116 : vector<256x128xf32> to vector<16x16x128xf32>
    %118 = arith.truncf %117 : vector<16x16x128xf32> to vector<16x16x128xbf16>
    %c0_71 = arith.constant 0 : index
    %c0_72 = arith.constant 0 : index
    %c0_73 = arith.constant 0 : index
    %c0_74 = arith.constant 0 : index
    %119 = vector.load %arg11[%c0_71, %c0_72, %c0_73, %c0_74] : memref<1x16x16x128xbf16, #tpu.memory_space<vmem>>, vector<1x16x16x128xbf16>
    %120 = vector.shape_cast %119 : vector<1x16x16x128xbf16> to vector<16x16x128xbf16>
    %121 = vector.shape_cast %118 : vector<16x16x128xbf16> to vector<1x16x16x128xbf16>
    tpu.vector_store %arg11[%c0_71, %c0_72, %c0_73, %c0_74], %121 {strides = array<i32>} : memref<1x16x16x128xbf16, #tpu.memory_space<vmem>>, vector<1x16x16x128xbf16>,
    return
  }
  func.func @transform_0(%arg0: i32) -> (i32, i32, i32, i32) {
    %c0_i32 = arith.constant 0 : i32
    %c0_i32_0 = arith.constant 0 : i32
    %c0_i32_1 = arith.constant 0 : i32
    %c0_i32_2 = arith.constant 0 : i32
    return %arg0, %c0_i32, %c0_i32_0, %c0_i32_1 : i32, i32, i32, i32
  }
  func.func @transform_1(%arg0: i32) -> (i32, i32) {
    %c0_i32 = arith.constant 0 : i32
    %c0_i32_0 = arith.constant 0 : i32
    %c0_i32_1 = arith.constant 0 : i32
    return %c0_i32, %c0_i32_0 : i32, i32
  }
  func.func @transform_2(%arg0: i32) -> (i32, i32) {
    %c0_i32 = arith.constant 0 : i32
    %c0_i32_0 = arith.constant 0 : i32
    %c0_i32_1 = arith.constant 0 : i32
    return %c0_i32, %c0_i32_0 : i32, i32
  }
  func.func @transform_3(%arg0: i32) -> (i32, i32) {
    %c0_i32 = arith.constant 0 : i32
    %c0_i32_0 = arith.constant 0 : i32
    %c0_i32_1 = arith.constant 0 : i32
    return %c0_i32, %c0_i32_0 : i32, i32
  }
  func.func @transform_4(%arg0: i32) -> (i32, i32, i32) {
    %c0_i32 = arith.constant 0 : i32
    %c0_i32_0 = arith.constant 0 : i32
    %c0_i32_1 = arith.constant 0 : i32
    %c0_i32_2 = arith.constant 0 : i32
    return %c0_i32, %c0_i32_0, %c0_i32_1 : i32, i32, i32
  }
  func.func @transform_5(%arg0: i32) -> (i32, i32) {
    %c0_i32 = arith.constant 0 : i32
    %c0_i32_0 = arith.constant 0 : i32
    %c0_i32_1 = arith.constant 0 : i32
    return %c0_i32, %c0_i32_0 : i32, i32
  }
  func.func @transform_6(%arg0: i32) -> (i32, i32) {
    %c0_i32 = arith.constant 0 : i32
    %c0_i32_0 = arith.constant 0 : i32
    %c0_i32_1 = arith.constant 0 : i32
    return %c0_i32, %c0_i32_0 : i32, i32
  }
  func.func @transform_7(%arg0: i32) -> (i32, i32) {
    %c0_i32 = arith.constant 0 : i32
    %c0_i32_0 = arith.constant 0 : i32
    %c0_i32_1 = arith.constant 0 : i32
    return %c0_i32, %c0_i32_0 : i32, i32
  }
  func.func @transform_8(%arg0: i32) -> (i32, i32) {
    %c0_i32 = arith.constant 0 : i32
    %c0_i32_0 = arith.constant 0 : i32
    %c0_i32_1 = arith.constant 0 : i32
    return %c0_i32, %c0_i32_0 : i32, i32
  }
  func.func @transform_9(%arg0: i32) -> (i32, i32) {
    %c0_i32 = arith.constant 0 : i32
    %c0_i32_0 = arith.constant 0 : i32
    %c0_i32_1 = arith.constant 0 : i32
    return %c0_i32, %c0_i32_0 : i32, i32
  }
  func.func @transform_10(%arg0: i32) -> (i32, i32, i32, i32) {
    %c0_i32 = arith.constant 0 : i32
    %c0_i32_0 = arith.constant 0 : i32
    %c0_i32_1 = arith.constant 0 : i32
    %c0_i32_2 = arith.constant 0 : i32
    return %arg0, %c0_i32, %c0_i32_0, %c0_i32_1 : i32, i32, i32, i32
  }
}

module attributes {stable_mosaic.version = 11 : i64} {
  func.func @_bottleneck_kernel(%arg0: i32, %arg1: memref<4x8x8x128xbf16, #tpu.memory_space<vmem>>, %arg2: memref<128x96xbf16, #tpu.memory_space<vmem>>, %arg3: memref<1x96xf32, #tpu.memory_space<vmem>>, %arg4: memref<1x96xf32, #tpu.memory_space<vmem>>, %arg5: memref<9x1x96xf32, #tpu.memory_space<vmem>>, %arg6: memref<1x96xf32, #tpu.memory_space<vmem>>, %arg7: memref<1x96xf32, #tpu.memory_space<vmem>>, %arg8: memref<96x128xbf16, #tpu.memory_space<vmem>>, %arg9: memref<1x128xf32, #tpu.memory_space<vmem>>, %arg10: memref<1x128xf32, #tpu.memory_space<vmem>>, %arg11: memref<1x8x8x128xbf16, #tpu.memory_space<vmem>>, %arg12: memref<4x9x9x96xf32, #tpu.memory_space<vmem>>) attributes {dimension_semantics = [#tpu.dimension_semantics<parallel>], iteration_bounds = array<i64: 2>, scalar_prefetch = 0 : i64, scratch_operands = 1 : i64, tpu.core_type = #tpu.core_type<tc>, window_params = [{transform_indices = @transform_0, window_bounds = array<i64: 4, 8, 8, 128>}, {pipeline_mode = #tpu.pipeline_mode<synchronous>, transform_indices = @transform_1, window_bounds = array<i64: 128, 96>}, {pipeline_mode = #tpu.pipeline_mode<synchronous>, transform_indices = @transform_2, window_bounds = array<i64: 1, 96>}, {pipeline_mode = #tpu.pipeline_mode<synchronous>, transform_indices = @transform_3, window_bounds = array<i64: 1, 96>}, {pipeline_mode = #tpu.pipeline_mode<synchronous>, transform_indices = @transform_4, window_bounds = array<i64: 9, 1, 96>}, {pipeline_mode = #tpu.pipeline_mode<synchronous>, transform_indices = @transform_5, window_bounds = array<i64: 1, 96>}, {pipeline_mode = #tpu.pipeline_mode<synchronous>, transform_indices = @transform_6, window_bounds = array<i64: 1, 96>}, {pipeline_mode = #tpu.pipeline_mode<synchronous>, transform_indices = @transform_7, window_bounds = array<i64: 96, 128>}, {pipeline_mode = #tpu.pipeline_mode<synchronous>, transform_indices = @transform_8, window_bounds = array<i64: 1, 128>}, {pipeline_mode = #tpu.pipeline_mode<synchronous>, transform_indices = @transform_9, window_bounds = array<i64: 1, 128>}, {transform_indices = @transform_10, window_bounds = array<i64: 1, 8, 8, 128>}]} {
    %c0 = arith.constant 0 : index
    %c0_0 = arith.constant 0 : index
    %0 = vector.load %arg2[%c0, %c0_0] : memref<128x96xbf16, #tpu.memory_space<vmem>>, vector<128x96xbf16>
    %c0_1 = arith.constant 0 : index
    %c0_2 = arith.constant 0 : index
    %1 = vector.load %arg3[%c0_1, %c0_2] : memref<1x96xf32, #tpu.memory_space<vmem>>, vector<1x96xf32>
    %c0_3 = arith.constant 0 : index
    %c0_4 = arith.constant 0 : index
    %2 = vector.load %arg4[%c0_3, %c0_4] : memref<1x96xf32, #tpu.memory_space<vmem>>, vector<1x96xf32>
    %cst = arith.constant 0.000000e+00 : f32
    %3 = vector.broadcast %cst : f32 to vector<4x9x9x96xf32>
    %c0_5 = arith.constant 0 : index
    %c0_6 = arith.constant 0 : index
    %c0_7 = arith.constant 0 : index
    %c0_8 = arith.constant 0 : index
    %4 = vector.load %arg12[%c0_5, %c0_6, %c0_7, %c0_8] : memref<4x9x9x96xf32, #tpu.memory_space<vmem>>, vector<4x9x9x96xf32>
    tpu.vector_store %arg12[%c0_5, %c0_6, %c0_7, %c0_8], %3 {strides = array<i32>} : memref<4x9x9x96xf32, #tpu.memory_space<vmem>>, vector<4x9x9x96xf32>,
    %c0_9 = arith.constant 0 : index
    %c0_10 = arith.constant 0 : index
    %c0_11 = arith.constant 0 : index
    %c0_12 = arith.constant 0 : index
    %5 = vector.load %arg1[%c0_9, %c0_10, %c0_11, %c0_12] : memref<4x8x8x128xbf16, #tpu.memory_space<vmem>>, vector<1x8x8x128xbf16>
    %6 = vector.shape_cast %5 : vector<1x8x8x128xbf16> to vector<8x8x128xbf16>
    %7 = vector.shape_cast %6 : vector<8x8x128xbf16> to vector<64x128xbf16>
    %cst_13 = arith.constant dense<0.000000e+00> : vector<64x96xf32>
    %8 = tpu.matmul %7, %0, %cst_13 {dimension_numbers = #tpu.dot_dimension_numbers<[1], [0], [0], [1], [0, 0, 1, 1], [], []>} : vector<64x128xbf16>, vector<128x96xbf16>, vector<64x96xf32> -> vector<64x96xf32>
    %9 = vector.broadcast %1 : vector<1x96xf32> to vector<64x96xf32>
    %10 = arith.mulf %8, %9 : vector<64x96xf32>
    %11 = vector.broadcast %2 : vector<1x96xf32> to vector<64x96xf32>
    %12 = arith.addf %10, %11 : vector<64x96xf32>
    %cst_14 = arith.constant 0.000000e+00 : f32
    %cst_15 = arith.constant 6.000000e+00 : f32
    %13 = vector.broadcast %cst_14 : f32 to vector<64x96xf32>
    %14 = arith.maximumf %13, %12 : vector<64x96xf32>
    %15 = vector.broadcast %cst_15 : f32 to vector<64x96xf32>
    %16 = arith.minimumf %15, %14 : vector<64x96xf32>
    %17 = vector.shape_cast %16 : vector<64x96xf32> to vector<8x8x96xf32>
    %c0_16 = arith.constant 0 : index
    %c0_17 = arith.constant 0 : index
    %c0_18 = arith.constant 0 : index
    %c0_19 = arith.constant 0 : index
    %18 = vector.load %arg12[%c0_16, %c0_17, %c0_18, %c0_19] : memref<4x9x9x96xf32, #tpu.memory_space<vmem>>, vector<1x8x8x96xf32>
    %19 = vector.shape_cast %18 : vector<1x8x8x96xf32> to vector<8x8x96xf32>
    %20 = vector.shape_cast %17 : vector<8x8x96xf32> to vector<1x8x8x96xf32>
    tpu.vector_store %arg12[%c0_16, %c0_17, %c0_18, %c0_19], %20 {strides = array<i32>} : memref<4x9x9x96xf32, #tpu.memory_space<vmem>>, vector<1x8x8x96xf32>,
    %c1 = arith.constant 1 : index
    %c0_20 = arith.constant 0 : index
    %c0_21 = arith.constant 0 : index
    %c0_22 = arith.constant 0 : index
    %21 = vector.load %arg1[%c1, %c0_20, %c0_21, %c0_22] : memref<4x8x8x128xbf16, #tpu.memory_space<vmem>>, vector<1x8x8x128xbf16>
    %22 = vector.shape_cast %21 : vector<1x8x8x128xbf16> to vector<8x8x128xbf16>
    %23 = vector.shape_cast %22 : vector<8x8x128xbf16> to vector<64x128xbf16>
    %cst_23 = arith.constant dense<0.000000e+00> : vector<64x96xf32>
    %24 = tpu.matmul %23, %0, %cst_23 {dimension_numbers = #tpu.dot_dimension_numbers<[1], [0], [0], [1], [0, 0, 1, 1], [], []>} : vector<64x128xbf16>, vector<128x96xbf16>, vector<64x96xf32> -> vector<64x96xf32>
    %25 = vector.broadcast %1 : vector<1x96xf32> to vector<64x96xf32>
    %26 = arith.mulf %24, %25 : vector<64x96xf32>
    %27 = vector.broadcast %2 : vector<1x96xf32> to vector<64x96xf32>
    %28 = arith.addf %26, %27 : vector<64x96xf32>
    %cst_24 = arith.constant 0.000000e+00 : f32
    %cst_25 = arith.constant 6.000000e+00 : f32
    %29 = vector.broadcast %cst_24 : f32 to vector<64x96xf32>
    %30 = arith.maximumf %29, %28 : vector<64x96xf32>
    %31 = vector.broadcast %cst_25 : f32 to vector<64x96xf32>
    %32 = arith.minimumf %31, %30 : vector<64x96xf32>
    %33 = vector.shape_cast %32 : vector<64x96xf32> to vector<8x8x96xf32>
    %c1_26 = arith.constant 1 : index
    %c0_27 = arith.constant 0 : index
    %c1_28 = arith.constant 1 : index
    %c0_29 = arith.constant 0 : index
    %34 = vector.load %arg12[%c1_26, %c0_27, %c1_28, %c0_29] : memref<4x9x9x96xf32, #tpu.memory_space<vmem>>, vector<1x8x8x96xf32>
    %35 = vector.shape_cast %34 : vector<1x8x8x96xf32> to vector<8x8x96xf32>
    %36 = vector.shape_cast %33 : vector<8x8x96xf32> to vector<1x8x8x96xf32>
    tpu.vector_store %arg12[%c1_26, %c0_27, %c1_28, %c0_29], %36 {strides = array<i32>} : memref<4x9x9x96xf32, #tpu.memory_space<vmem>>, vector<1x8x8x96xf32>,
    %c2 = arith.constant 2 : index
    %c0_30 = arith.constant 0 : index
    %c0_31 = arith.constant 0 : index
    %c0_32 = arith.constant 0 : index
    %37 = vector.load %arg1[%c2, %c0_30, %c0_31, %c0_32] : memref<4x8x8x128xbf16, #tpu.memory_space<vmem>>, vector<1x8x8x128xbf16>
    %38 = vector.shape_cast %37 : vector<1x8x8x128xbf16> to vector<8x8x128xbf16>
    %39 = vector.shape_cast %38 : vector<8x8x128xbf16> to vector<64x128xbf16>
    %cst_33 = arith.constant dense<0.000000e+00> : vector<64x96xf32>
    %40 = tpu.matmul %39, %0, %cst_33 {dimension_numbers = #tpu.dot_dimension_numbers<[1], [0], [0], [1], [0, 0, 1, 1], [], []>} : vector<64x128xbf16>, vector<128x96xbf16>, vector<64x96xf32> -> vector<64x96xf32>
    %41 = vector.broadcast %1 : vector<1x96xf32> to vector<64x96xf32>
    %42 = arith.mulf %40, %41 : vector<64x96xf32>
    %43 = vector.broadcast %2 : vector<1x96xf32> to vector<64x96xf32>
    %44 = arith.addf %42, %43 : vector<64x96xf32>
    %cst_34 = arith.constant 0.000000e+00 : f32
    %cst_35 = arith.constant 6.000000e+00 : f32
    %45 = vector.broadcast %cst_34 : f32 to vector<64x96xf32>
    %46 = arith.maximumf %45, %44 : vector<64x96xf32>
    %47 = vector.broadcast %cst_35 : f32 to vector<64x96xf32>
    %48 = arith.minimumf %47, %46 : vector<64x96xf32>
    %49 = vector.shape_cast %48 : vector<64x96xf32> to vector<8x8x96xf32>
    %c2_36 = arith.constant 2 : index
    %c1_37 = arith.constant 1 : index
    %c0_38 = arith.constant 0 : index
    %c0_39 = arith.constant 0 : index
    %50 = vector.load %arg12[%c2_36, %c1_37, %c0_38, %c0_39] : memref<4x9x9x96xf32, #tpu.memory_space<vmem>>, vector<1x8x8x96xf32>
    %51 = vector.shape_cast %50 : vector<1x8x8x96xf32> to vector<8x8x96xf32>
    %52 = vector.shape_cast %49 : vector<8x8x96xf32> to vector<1x8x8x96xf32>
    tpu.vector_store %arg12[%c2_36, %c1_37, %c0_38, %c0_39], %52 {strides = array<i32>} : memref<4x9x9x96xf32, #tpu.memory_space<vmem>>, vector<1x8x8x96xf32>,
    %c3 = arith.constant 3 : index
    %c0_40 = arith.constant 0 : index
    %c0_41 = arith.constant 0 : index
    %c0_42 = arith.constant 0 : index
    %53 = vector.load %arg1[%c3, %c0_40, %c0_41, %c0_42] : memref<4x8x8x128xbf16, #tpu.memory_space<vmem>>, vector<1x8x8x128xbf16>
    %54 = vector.shape_cast %53 : vector<1x8x8x128xbf16> to vector<8x8x128xbf16>
    %55 = vector.shape_cast %54 : vector<8x8x128xbf16> to vector<64x128xbf16>
    %cst_43 = arith.constant dense<0.000000e+00> : vector<64x96xf32>
    %56 = tpu.matmul %55, %0, %cst_43 {dimension_numbers = #tpu.dot_dimension_numbers<[1], [0], [0], [1], [0, 0, 1, 1], [], []>} : vector<64x128xbf16>, vector<128x96xbf16>, vector<64x96xf32> -> vector<64x96xf32>
    %57 = vector.broadcast %1 : vector<1x96xf32> to vector<64x96xf32>
    %58 = arith.mulf %56, %57 : vector<64x96xf32>
    %59 = vector.broadcast %2 : vector<1x96xf32> to vector<64x96xf32>
    %60 = arith.addf %58, %59 : vector<64x96xf32>
    %cst_44 = arith.constant 0.000000e+00 : f32
    %cst_45 = arith.constant 6.000000e+00 : f32
    %61 = vector.broadcast %cst_44 : f32 to vector<64x96xf32>
    %62 = arith.maximumf %61, %60 : vector<64x96xf32>
    %63 = vector.broadcast %cst_45 : f32 to vector<64x96xf32>
    %64 = arith.minimumf %63, %62 : vector<64x96xf32>
    %65 = vector.shape_cast %64 : vector<64x96xf32> to vector<8x8x96xf32>
    %c3_46 = arith.constant 3 : index
    %c1_47 = arith.constant 1 : index
    %c1_48 = arith.constant 1 : index
    %c0_49 = arith.constant 0 : index
    %66 = vector.load %arg12[%c3_46, %c1_47, %c1_48, %c0_49] : memref<4x9x9x96xf32, #tpu.memory_space<vmem>>, vector<1x8x8x96xf32>
    %67 = vector.shape_cast %66 : vector<1x8x8x96xf32> to vector<8x8x96xf32>
    %68 = vector.shape_cast %65 : vector<8x8x96xf32> to vector<1x8x8x96xf32>
    tpu.vector_store %arg12[%c3_46, %c1_47, %c1_48, %c0_49], %68 {strides = array<i32>} : memref<4x9x9x96xf32, #tpu.memory_space<vmem>>, vector<1x8x8x96xf32>,
    %c0_50 = arith.constant 0 : index
    %c0_51 = arith.constant 0 : index
    %c0_52 = arith.constant 0 : index
    %69 = vector.load %arg5[%c0_50, %c0_51, %c0_52] : memref<9x1x96xf32, #tpu.memory_space<vmem>>, vector<9x1x96xf32>
    %cst_53 = arith.constant 0.000000e+00 : f32
    %70 = vector.broadcast %cst_53 : f32 to vector<8x8x96xf32>
    %c3_54 = arith.constant 3 : index
    %c0_55 = arith.constant 0 : index
    %c0_56 = arith.constant 0 : index
    %c0_57 = arith.constant 0 : index
    %71 = vector.load %arg12[%c3_54, %c0_55, %c0_56, %c0_57] : memref<4x9x9x96xf32, #tpu.memory_space<vmem>>, vector<1x8x8x96xf32>
    %72 = vector.shape_cast %71 : vector<1x8x8x96xf32> to vector<8x8x96xf32>
    %73 = vector.extract_strided_slice %69 {offsets = [0, 0, 0], sizes = [1, 1, 96], strides = [1, 1, 1]} : vector<9x1x96xf32> to vector<1x1x96xf32>
    %74 = vector.shape_cast %73 : vector<1x1x96xf32> to vector<1x96xf32>
    %75 = vector.shape_cast %74 : vector<1x96xf32> to vector<1x1x96xf32>
    %76 = vector.broadcast %75 : vector<1x1x96xf32> to vector<8x8x96xf32>
    %77 = arith.mulf %72, %76 : vector<8x8x96xf32>
    %78 = arith.addf %70, %77 : vector<8x8x96xf32>
    %c2_58 = arith.constant 2 : index
    %c0_59 = arith.constant 0 : index
    %c0_60 = arith.constant 0 : index
    %c0_61 = arith.constant 0 : index
    %79 = vector.load %arg12[%c2_58, %c0_59, %c0_60, %c0_61] : memref<4x9x9x96xf32, #tpu.memory_space<vmem>>, vector<1x8x8x96xf32>
    %80 = vector.shape_cast %79 : vector<1x8x8x96xf32> to vector<8x8x96xf32>
    %81 = vector.extract_strided_slice %69 {offsets = [1, 0, 0], sizes = [1, 1, 96], strides = [1, 1, 1]} : vector<9x1x96xf32> to vector<1x1x96xf32>
    %82 = vector.shape_cast %81 : vector<1x1x96xf32> to vector<1x96xf32>
    %83 = vector.shape_cast %82 : vector<1x96xf32> to vector<1x1x96xf32>
    %84 = vector.broadcast %83 : vector<1x1x96xf32> to vector<8x8x96xf32>
    %85 = arith.mulf %80, %84 : vector<8x8x96xf32>
    %86 = arith.addf %78, %85 : vector<8x8x96xf32>
    %c3_62 = arith.constant 3 : index
    %c0_63 = arith.constant 0 : index
    %c1_64 = arith.constant 1 : index
    %c0_65 = arith.constant 0 : index
    %87 = vector.load %arg12[%c3_62, %c0_63, %c1_64, %c0_65] : memref<4x9x9x96xf32, #tpu.memory_space<vmem>>, vector<1x8x8x96xf32>
    %88 = vector.shape_cast %87 : vector<1x8x8x96xf32> to vector<8x8x96xf32>
    %89 = vector.extract_strided_slice %69 {offsets = [2, 0, 0], sizes = [1, 1, 96], strides = [1, 1, 1]} : vector<9x1x96xf32> to vector<1x1x96xf32>
    %90 = vector.shape_cast %89 : vector<1x1x96xf32> to vector<1x96xf32>
    %91 = vector.shape_cast %90 : vector<1x96xf32> to vector<1x1x96xf32>
    %92 = vector.broadcast %91 : vector<1x1x96xf32> to vector<8x8x96xf32>
    %93 = arith.mulf %88, %92 : vector<8x8x96xf32>
    %94 = arith.addf %86, %93 : vector<8x8x96xf32>
    %c1_66 = arith.constant 1 : index
    %c0_67 = arith.constant 0 : index
    %c0_68 = arith.constant 0 : index
    %c0_69 = arith.constant 0 : index
    %95 = vector.load %arg12[%c1_66, %c0_67, %c0_68, %c0_69] : memref<4x9x9x96xf32, #tpu.memory_space<vmem>>, vector<1x8x8x96xf32>
    %96 = vector.shape_cast %95 : vector<1x8x8x96xf32> to vector<8x8x96xf32>
    %97 = vector.extract_strided_slice %69 {offsets = [3, 0, 0], sizes = [1, 1, 96], strides = [1, 1, 1]} : vector<9x1x96xf32> to vector<1x1x96xf32>
    %98 = vector.shape_cast %97 : vector<1x1x96xf32> to vector<1x96xf32>
    %99 = vector.shape_cast %98 : vector<1x96xf32> to vector<1x1x96xf32>
    %100 = vector.broadcast %99 : vector<1x1x96xf32> to vector<8x8x96xf32>
    %101 = arith.mulf %96, %100 : vector<8x8x96xf32>
    %102 = arith.addf %94, %101 : vector<8x8x96xf32>
    %c0_70 = arith.constant 0 : index
    %c0_71 = arith.constant 0 : index
    %c0_72 = arith.constant 0 : index
    %c0_73 = arith.constant 0 : index
    %103 = vector.load %arg12[%c0_70, %c0_71, %c0_72, %c0_73] : memref<4x9x9x96xf32, #tpu.memory_space<vmem>>, vector<1x8x8x96xf32>
    %104 = vector.shape_cast %103 : vector<1x8x8x96xf32> to vector<8x8x96xf32>
    %105 = vector.extract_strided_slice %69 {offsets = [4, 0, 0], sizes = [1, 1, 96], strides = [1, 1, 1]} : vector<9x1x96xf32> to vector<1x1x96xf32>
    %106 = vector.shape_cast %105 : vector<1x1x96xf32> to vector<1x96xf32>
    %107 = vector.shape_cast %106 : vector<1x96xf32> to vector<1x1x96xf32>
    %108 = vector.broadcast %107 : vector<1x1x96xf32> to vector<8x8x96xf32>
    %109 = arith.mulf %104, %108 : vector<8x8x96xf32>
    %110 = arith.addf %102, %109 : vector<8x8x96xf32>
    %c1_74 = arith.constant 1 : index
    %c0_75 = arith.constant 0 : index
    %c1_76 = arith.constant 1 : index
    %c0_77 = arith.constant 0 : index
    %111 = vector.load %arg12[%c1_74, %c0_75, %c1_76, %c0_77] : memref<4x9x9x96xf32, #tpu.memory_space<vmem>>, vector<1x8x8x96xf32>
    %112 = vector.shape_cast %111 : vector<1x8x8x96xf32> to vector<8x8x96xf32>
    %113 = vector.extract_strided_slice %69 {offsets = [5, 0, 0], sizes = [1, 1, 96], strides = [1, 1, 1]} : vector<9x1x96xf32> to vector<1x1x96xf32>
    %114 = vector.shape_cast %113 : vector<1x1x96xf32> to vector<1x96xf32>
    %115 = vector.shape_cast %114 : vector<1x96xf32> to vector<1x1x96xf32>
    %116 = vector.broadcast %115 : vector<1x1x96xf32> to vector<8x8x96xf32>
    %117 = arith.mulf %112, %116 : vector<8x8x96xf32>
    %118 = arith.addf %110, %117 : vector<8x8x96xf32>
    %c3_78 = arith.constant 3 : index
    %c1_79 = arith.constant 1 : index
    %c0_80 = arith.constant 0 : index
    %c0_81 = arith.constant 0 : index
    %119 = vector.load %arg12[%c3_78, %c1_79, %c0_80, %c0_81] : memref<4x9x9x96xf32, #tpu.memory_space<vmem>>, vector<1x8x8x96xf32>
    %120 = vector.shape_cast %119 : vector<1x8x8x96xf32> to vector<8x8x96xf32>
    %121 = vector.extract_strided_slice %69 {offsets = [6, 0, 0], sizes = [1, 1, 96], strides = [1, 1, 1]} : vector<9x1x96xf32> to vector<1x1x96xf32>
    %122 = vector.shape_cast %121 : vector<1x1x96xf32> to vector<1x96xf32>
    %123 = vector.shape_cast %122 : vector<1x96xf32> to vector<1x1x96xf32>
    %124 = vector.broadcast %123 : vector<1x1x96xf32> to vector<8x8x96xf32>
    %125 = arith.mulf %120, %124 : vector<8x8x96xf32>
    %126 = arith.addf %118, %125 : vector<8x8x96xf32>
    %c2_82 = arith.constant 2 : index
    %c1_83 = arith.constant 1 : index
    %c0_84 = arith.constant 0 : index
    %c0_85 = arith.constant 0 : index
    %127 = vector.load %arg12[%c2_82, %c1_83, %c0_84, %c0_85] : memref<4x9x9x96xf32, #tpu.memory_space<vmem>>, vector<1x8x8x96xf32>
    %128 = vector.shape_cast %127 : vector<1x8x8x96xf32> to vector<8x8x96xf32>
    %129 = vector.extract_strided_slice %69 {offsets = [7, 0, 0], sizes = [1, 1, 96], strides = [1, 1, 1]} : vector<9x1x96xf32> to vector<1x1x96xf32>
    %130 = vector.shape_cast %129 : vector<1x1x96xf32> to vector<1x96xf32>
    %131 = vector.shape_cast %130 : vector<1x96xf32> to vector<1x1x96xf32>
    %132 = vector.broadcast %131 : vector<1x1x96xf32> to vector<8x8x96xf32>
    %133 = arith.mulf %128, %132 : vector<8x8x96xf32>
    %134 = arith.addf %126, %133 : vector<8x8x96xf32>
    %c3_86 = arith.constant 3 : index
    %c1_87 = arith.constant 1 : index
    %c1_88 = arith.constant 1 : index
    %c0_89 = arith.constant 0 : index
    %135 = vector.load %arg12[%c3_86, %c1_87, %c1_88, %c0_89] : memref<4x9x9x96xf32, #tpu.memory_space<vmem>>, vector<1x8x8x96xf32>
    %136 = vector.shape_cast %135 : vector<1x8x8x96xf32> to vector<8x8x96xf32>
    %137 = vector.extract_strided_slice %69 {offsets = [8, 0, 0], sizes = [1, 1, 96], strides = [1, 1, 1]} : vector<9x1x96xf32> to vector<1x1x96xf32>
    %138 = vector.shape_cast %137 : vector<1x1x96xf32> to vector<1x96xf32>
    %139 = vector.shape_cast %138 : vector<1x96xf32> to vector<1x1x96xf32>
    %140 = vector.broadcast %139 : vector<1x1x96xf32> to vector<8x8x96xf32>
    %141 = arith.mulf %136, %140 : vector<8x8x96xf32>
    %142 = arith.addf %134, %141 : vector<8x8x96xf32>
    %c0_90 = arith.constant 0 : index
    %c0_91 = arith.constant 0 : index
    %143 = vector.load %arg6[%c0_90, %c0_91] : memref<1x96xf32, #tpu.memory_space<vmem>>, vector<1x96xf32>
    %144 = vector.shape_cast %143 : vector<1x96xf32> to vector<1x1x96xf32>
    %145 = vector.broadcast %144 : vector<1x1x96xf32> to vector<8x8x96xf32>
    %146 = arith.mulf %142, %145 : vector<8x8x96xf32>
    %c0_92 = arith.constant 0 : index
    %c0_93 = arith.constant 0 : index
    %147 = vector.load %arg7[%c0_92, %c0_93] : memref<1x96xf32, #tpu.memory_space<vmem>>, vector<1x96xf32>
    %148 = vector.shape_cast %147 : vector<1x96xf32> to vector<1x1x96xf32>
    %149 = vector.broadcast %148 : vector<1x1x96xf32> to vector<8x8x96xf32>
    %150 = arith.addf %146, %149 : vector<8x8x96xf32>
    %cst_94 = arith.constant 0.000000e+00 : f32
    %cst_95 = arith.constant 6.000000e+00 : f32
    %151 = vector.broadcast %cst_94 : f32 to vector<8x8x96xf32>
    %152 = arith.maximumf %151, %150 : vector<8x8x96xf32>
    %153 = vector.broadcast %cst_95 : f32 to vector<8x8x96xf32>
    %154 = arith.minimumf %153, %152 : vector<8x8x96xf32>
    %155 = vector.shape_cast %154 : vector<8x8x96xf32> to vector<64x96xf32>
    %156 = arith.truncf %155 : vector<64x96xf32> to vector<64x96xbf16>
    %c0_96 = arith.constant 0 : index
    %c0_97 = arith.constant 0 : index
    %157 = vector.load %arg8[%c0_96, %c0_97] : memref<96x128xbf16, #tpu.memory_space<vmem>>, vector<96x128xbf16>
    %cst_98 = arith.constant dense<0.000000e+00> : vector<64x128xf32>
    %158 = tpu.matmul %156, %157, %cst_98 {dimension_numbers = #tpu.dot_dimension_numbers<[1], [0], [0], [1], [0, 0, 1, 1], [], []>} : vector<64x96xbf16>, vector<96x128xbf16>, vector<64x128xf32> -> vector<64x128xf32>
    %c0_99 = arith.constant 0 : index
    %c0_100 = arith.constant 0 : index
    %159 = vector.load %arg9[%c0_99, %c0_100] : memref<1x128xf32, #tpu.memory_space<vmem>>, vector<1x128xf32>
    %160 = vector.broadcast %159 : vector<1x128xf32> to vector<64x128xf32>
    %161 = arith.mulf %158, %160 : vector<64x128xf32>
    %c0_101 = arith.constant 0 : index
    %c0_102 = arith.constant 0 : index
    %162 = vector.load %arg10[%c0_101, %c0_102] : memref<1x128xf32, #tpu.memory_space<vmem>>, vector<1x128xf32>
    %163 = vector.broadcast %162 : vector<1x128xf32> to vector<64x128xf32>
    %164 = arith.addf %161, %163 : vector<64x128xf32>
    %165 = vector.shape_cast %164 : vector<64x128xf32> to vector<8x8x128xf32>
    %166 = arith.truncf %165 : vector<8x8x128xf32> to vector<8x8x128xbf16>
    %c0_103 = arith.constant 0 : index
    %c0_104 = arith.constant 0 : index
    %c0_105 = arith.constant 0 : index
    %c0_106 = arith.constant 0 : index
    %167 = vector.load %arg11[%c0_103, %c0_104, %c0_105, %c0_106] : memref<1x8x8x128xbf16, #tpu.memory_space<vmem>>, vector<1x8x8x128xbf16>
    %168 = vector.shape_cast %167 : vector<1x8x8x128xbf16> to vector<8x8x128xbf16>
    %169 = vector.shape_cast %166 : vector<8x8x128xbf16> to vector<1x8x8x128xbf16>
    tpu.vector_store %arg11[%c0_103, %c0_104, %c0_105, %c0_106], %169 {strides = array<i32>} : memref<1x8x8x128xbf16, #tpu.memory_space<vmem>>, vector<1x8x8x128xbf16>,
    return
  }
  func.func @transform_0(%arg0: i32) -> (i32, i32, i32, i32) {
    %c0_i32 = arith.constant 0 : i32
    %c0_i32_0 = arith.constant 0 : i32
    %c0_i32_1 = arith.constant 0 : i32
    %c0_i32_2 = arith.constant 0 : i32
    return %arg0, %c0_i32, %c0_i32_0, %c0_i32_1 : i32, i32, i32, i32
  }
  func.func @transform_1(%arg0: i32) -> (i32, i32) {
    %c0_i32 = arith.constant 0 : i32
    %c0_i32_0 = arith.constant 0 : i32
    %c0_i32_1 = arith.constant 0 : i32
    return %c0_i32, %c0_i32_0 : i32, i32
  }
  func.func @transform_2(%arg0: i32) -> (i32, i32) {
    %c0_i32 = arith.constant 0 : i32
    %c0_i32_0 = arith.constant 0 : i32
    %c0_i32_1 = arith.constant 0 : i32
    return %c0_i32, %c0_i32_0 : i32, i32
  }
  func.func @transform_3(%arg0: i32) -> (i32, i32) {
    %c0_i32 = arith.constant 0 : i32
    %c0_i32_0 = arith.constant 0 : i32
    %c0_i32_1 = arith.constant 0 : i32
    return %c0_i32, %c0_i32_0 : i32, i32
  }
  func.func @transform_4(%arg0: i32) -> (i32, i32, i32) {
    %c0_i32 = arith.constant 0 : i32
    %c0_i32_0 = arith.constant 0 : i32
    %c0_i32_1 = arith.constant 0 : i32
    %c0_i32_2 = arith.constant 0 : i32
    return %c0_i32, %c0_i32_0, %c0_i32_1 : i32, i32, i32
  }
  func.func @transform_5(%arg0: i32) -> (i32, i32) {
    %c0_i32 = arith.constant 0 : i32
    %c0_i32_0 = arith.constant 0 : i32
    %c0_i32_1 = arith.constant 0 : i32
    return %c0_i32, %c0_i32_0 : i32, i32
  }
  func.func @transform_6(%arg0: i32) -> (i32, i32) {
    %c0_i32 = arith.constant 0 : i32
    %c0_i32_0 = arith.constant 0 : i32
    %c0_i32_1 = arith.constant 0 : i32
    return %c0_i32, %c0_i32_0 : i32, i32
  }
  func.func @transform_7(%arg0: i32) -> (i32, i32) {
    %c0_i32 = arith.constant 0 : i32
    %c0_i32_0 = arith.constant 0 : i32
    %c0_i32_1 = arith.constant 0 : i32
    return %c0_i32, %c0_i32_0 : i32, i32
  }
  func.func @transform_8(%arg0: i32) -> (i32, i32) {
    %c0_i32 = arith.constant 0 : i32
    %c0_i32_0 = arith.constant 0 : i32
    %c0_i32_1 = arith.constant 0 : i32
    return %c0_i32, %c0_i32_0 : i32, i32
  }
  func.func @transform_9(%arg0: i32) -> (i32, i32) {
    %c0_i32 = arith.constant 0 : i32
    %c0_i32_0 = arith.constant 0 : i32
    %c0_i32_1 = arith.constant 0 : i32
    return %c0_i32, %c0_i32_0 : i32, i32
  }
  func.func @transform_10(%arg0: i32) -> (i32, i32, i32, i32) {
    %c0_i32 = arith.constant 0 : i32
    %c0_i32_0 = arith.constant 0 : i32
    %c0_i32_1 = arith.constant 0 : i32
    %c0_i32_2 = arith.constant 0 : i32
    return %arg0, %c0_i32, %c0_i32_0, %c0_i32_1 : i32, i32, i32, i32
  }
}

module attributes {stable_mosaic.version = 11 : i64} {
  func.func @_bottleneck_kernel(%arg0: i32, %arg1: memref<1x8x8x128xbf16, #tpu.memory_space<vmem>>, %arg2: memref<128x144xbf16, #tpu.memory_space<vmem>>, %arg3: memref<1x144xf32, #tpu.memory_space<vmem>>, %arg4: memref<1x144xf32, #tpu.memory_space<vmem>>, %arg5: memref<9x1x144xf32, #tpu.memory_space<vmem>>, %arg6: memref<1x144xf32, #tpu.memory_space<vmem>>, %arg7: memref<1x144xf32, #tpu.memory_space<vmem>>, %arg8: memref<144x128xbf16, #tpu.memory_space<vmem>>, %arg9: memref<1x128xf32, #tpu.memory_space<vmem>>, %arg10: memref<1x128xf32, #tpu.memory_space<vmem>>, %arg11: memref<1x8x8x128xbf16, #tpu.memory_space<vmem>>, %arg12: memref<1x10x10x144xf32, #tpu.memory_space<vmem>>) attributes {dimension_semantics = [#tpu.dimension_semantics<parallel>], iteration_bounds = array<i64: 2>, scalar_prefetch = 0 : i64, scratch_operands = 1 : i64, tpu.core_type = #tpu.core_type<tc>, window_params = [{transform_indices = @transform_0, window_bounds = array<i64: 1, 8, 8, 128>}, {pipeline_mode = #tpu.pipeline_mode<synchronous>, transform_indices = @transform_1, window_bounds = array<i64: 128, 144>}, {pipeline_mode = #tpu.pipeline_mode<synchronous>, transform_indices = @transform_2, window_bounds = array<i64: 1, 144>}, {pipeline_mode = #tpu.pipeline_mode<synchronous>, transform_indices = @transform_3, window_bounds = array<i64: 1, 144>}, {pipeline_mode = #tpu.pipeline_mode<synchronous>, transform_indices = @transform_4, window_bounds = array<i64: 9, 1, 144>}, {pipeline_mode = #tpu.pipeline_mode<synchronous>, transform_indices = @transform_5, window_bounds = array<i64: 1, 144>}, {pipeline_mode = #tpu.pipeline_mode<synchronous>, transform_indices = @transform_6, window_bounds = array<i64: 1, 144>}, {pipeline_mode = #tpu.pipeline_mode<synchronous>, transform_indices = @transform_7, window_bounds = array<i64: 144, 128>}, {pipeline_mode = #tpu.pipeline_mode<synchronous>, transform_indices = @transform_8, window_bounds = array<i64: 1, 128>}, {pipeline_mode = #tpu.pipeline_mode<synchronous>, transform_indices = @transform_9, window_bounds = array<i64: 1, 128>}, {transform_indices = @transform_10, window_bounds = array<i64: 1, 8, 8, 128>}]} {
    %c0 = arith.constant 0 : index
    %c0_0 = arith.constant 0 : index
    %0 = vector.load %arg2[%c0, %c0_0] : memref<128x144xbf16, #tpu.memory_space<vmem>>, vector<128x144xbf16>
    %c0_1 = arith.constant 0 : index
    %c0_2 = arith.constant 0 : index
    %1 = vector.load %arg3[%c0_1, %c0_2] : memref<1x144xf32, #tpu.memory_space<vmem>>, vector<1x144xf32>
    %c0_3 = arith.constant 0 : index
    %c0_4 = arith.constant 0 : index
    %2 = vector.load %arg4[%c0_3, %c0_4] : memref<1x144xf32, #tpu.memory_space<vmem>>, vector<1x144xf32>
    %cst = arith.constant 0.000000e+00 : f32
    %3 = vector.broadcast %cst : f32 to vector<1x10x10x144xf32>
    %c0_5 = arith.constant 0 : index
    %c0_6 = arith.constant 0 : index
    %c0_7 = arith.constant 0 : index
    %c0_8 = arith.constant 0 : index
    %4 = vector.load %arg12[%c0_5, %c0_6, %c0_7, %c0_8] : memref<1x10x10x144xf32, #tpu.memory_space<vmem>>, vector<1x10x10x144xf32>
    tpu.vector_store %arg12[%c0_5, %c0_6, %c0_7, %c0_8], %3 {strides = array<i32>} : memref<1x10x10x144xf32, #tpu.memory_space<vmem>>, vector<1x10x10x144xf32>,
    %c0_9 = arith.constant 0 : index
    %c0_10 = arith.constant 0 : index
    %c0_11 = arith.constant 0 : index
    %c0_12 = arith.constant 0 : index
    %5 = vector.load %arg1[%c0_9, %c0_10, %c0_11, %c0_12] : memref<1x8x8x128xbf16, #tpu.memory_space<vmem>>, vector<1x8x8x128xbf16>
    %6 = vector.shape_cast %5 : vector<1x8x8x128xbf16> to vector<8x8x128xbf16>
    %7 = vector.shape_cast %6 : vector<8x8x128xbf16> to vector<64x128xbf16>
    %cst_13 = arith.constant dense<0.000000e+00> : vector<64x144xf32>
    %8 = tpu.matmul %7, %0, %cst_13 {dimension_numbers = #tpu.dot_dimension_numbers<[1], [0], [0], [1], [0, 0, 1, 1], [], []>} : vector<64x128xbf16>, vector<128x144xbf16>, vector<64x144xf32> -> vector<64x144xf32>
    %9 = vector.broadcast %1 : vector<1x144xf32> to vector<64x144xf32>
    %10 = arith.mulf %8, %9 : vector<64x144xf32>
    %11 = vector.broadcast %2 : vector<1x144xf32> to vector<64x144xf32>
    %12 = arith.addf %10, %11 : vector<64x144xf32>
    %cst_14 = arith.constant 0.000000e+00 : f32
    %cst_15 = arith.constant 6.000000e+00 : f32
    %13 = vector.broadcast %cst_14 : f32 to vector<64x144xf32>
    %14 = arith.maximumf %13, %12 : vector<64x144xf32>
    %15 = vector.broadcast %cst_15 : f32 to vector<64x144xf32>
    %16 = arith.minimumf %15, %14 : vector<64x144xf32>
    %17 = vector.shape_cast %16 : vector<64x144xf32> to vector<8x8x144xf32>
    %c0_16 = arith.constant 0 : index
    %c1 = arith.constant 1 : index
    %c1_17 = arith.constant 1 : index
    %c0_18 = arith.constant 0 : index
    %18 = vector.load %arg12[%c0_16, %c1, %c1_17, %c0_18] : memref<1x10x10x144xf32, #tpu.memory_space<vmem>>, vector<1x8x8x144xf32>
    %19 = vector.shape_cast %18 : vector<1x8x8x144xf32> to vector<8x8x144xf32>
    %20 = vector.shape_cast %17 : vector<8x8x144xf32> to vector<1x8x8x144xf32>
    tpu.vector_store %arg12[%c0_16, %c1, %c1_17, %c0_18], %20 {strides = array<i32>} : memref<1x10x10x144xf32, #tpu.memory_space<vmem>>, vector<1x8x8x144xf32>,
    %c0_19 = arith.constant 0 : index
    %c0_20 = arith.constant 0 : index
    %c0_21 = arith.constant 0 : index
    %21 = vector.load %arg5[%c0_19, %c0_20, %c0_21] : memref<9x1x144xf32, #tpu.memory_space<vmem>>, vector<9x1x144xf32>
    %cst_22 = arith.constant 0.000000e+00 : f32
    %22 = vector.broadcast %cst_22 : f32 to vector<8x8x144xf32>
    %c0_23 = arith.constant 0 : index
    %c0_24 = arith.constant 0 : index
    %c0_25 = arith.constant 0 : index
    %c0_26 = arith.constant 0 : index
    %23 = vector.load %arg12[%c0_23, %c0_24, %c0_25, %c0_26] : memref<1x10x10x144xf32, #tpu.memory_space<vmem>>, vector<1x8x8x144xf32>
    %24 = vector.shape_cast %23 : vector<1x8x8x144xf32> to vector<8x8x144xf32>
    %25 = vector.extract_strided_slice %21 {offsets = [0, 0, 0], sizes = [1, 1, 144], strides = [1, 1, 1]} : vector<9x1x144xf32> to vector<1x1x144xf32>
    %26 = vector.shape_cast %25 : vector<1x1x144xf32> to vector<1x144xf32>
    %27 = vector.shape_cast %26 : vector<1x144xf32> to vector<1x1x144xf32>
    %28 = vector.broadcast %27 : vector<1x1x144xf32> to vector<8x8x144xf32>
    %29 = arith.mulf %24, %28 : vector<8x8x144xf32>
    %30 = arith.addf %22, %29 : vector<8x8x144xf32>
    %c0_27 = arith.constant 0 : index
    %c0_28 = arith.constant 0 : index
    %c1_29 = arith.constant 1 : index
    %c0_30 = arith.constant 0 : index
    %31 = vector.load %arg12[%c0_27, %c0_28, %c1_29, %c0_30] : memref<1x10x10x144xf32, #tpu.memory_space<vmem>>, vector<1x8x8x144xf32>
    %32 = vector.shape_cast %31 : vector<1x8x8x144xf32> to vector<8x8x144xf32>
    %33 = vector.extract_strided_slice %21 {offsets = [1, 0, 0], sizes = [1, 1, 144], strides = [1, 1, 1]} : vector<9x1x144xf32> to vector<1x1x144xf32>
    %34 = vector.shape_cast %33 : vector<1x1x144xf32> to vector<1x144xf32>
    %35 = vector.shape_cast %34 : vector<1x144xf32> to vector<1x1x144xf32>
    %36 = vector.broadcast %35 : vector<1x1x144xf32> to vector<8x8x144xf32>
    %37 = arith.mulf %32, %36 : vector<8x8x144xf32>
    %38 = arith.addf %30, %37 : vector<8x8x144xf32>
    %c0_31 = arith.constant 0 : index
    %c0_32 = arith.constant 0 : index
    %c2 = arith.constant 2 : index
    %c0_33 = arith.constant 0 : index
    %39 = vector.load %arg12[%c0_31, %c0_32, %c2, %c0_33] : memref<1x10x10x144xf32, #tpu.memory_space<vmem>>, vector<1x8x8x144xf32>
    %40 = vector.shape_cast %39 : vector<1x8x8x144xf32> to vector<8x8x144xf32>
    %41 = vector.extract_strided_slice %21 {offsets = [2, 0, 0], sizes = [1, 1, 144], strides = [1, 1, 1]} : vector<9x1x144xf32> to vector<1x1x144xf32>
    %42 = vector.shape_cast %41 : vector<1x1x144xf32> to vector<1x144xf32>
    %43 = vector.shape_cast %42 : vector<1x144xf32> to vector<1x1x144xf32>
    %44 = vector.broadcast %43 : vector<1x1x144xf32> to vector<8x8x144xf32>
    %45 = arith.mulf %40, %44 : vector<8x8x144xf32>
    %46 = arith.addf %38, %45 : vector<8x8x144xf32>
    %c0_34 = arith.constant 0 : index
    %c1_35 = arith.constant 1 : index
    %c0_36 = arith.constant 0 : index
    %c0_37 = arith.constant 0 : index
    %47 = vector.load %arg12[%c0_34, %c1_35, %c0_36, %c0_37] : memref<1x10x10x144xf32, #tpu.memory_space<vmem>>, vector<1x8x8x144xf32>
    %48 = vector.shape_cast %47 : vector<1x8x8x144xf32> to vector<8x8x144xf32>
    %49 = vector.extract_strided_slice %21 {offsets = [3, 0, 0], sizes = [1, 1, 144], strides = [1, 1, 1]} : vector<9x1x144xf32> to vector<1x1x144xf32>
    %50 = vector.shape_cast %49 : vector<1x1x144xf32> to vector<1x144xf32>
    %51 = vector.shape_cast %50 : vector<1x144xf32> to vector<1x1x144xf32>
    %52 = vector.broadcast %51 : vector<1x1x144xf32> to vector<8x8x144xf32>
    %53 = arith.mulf %48, %52 : vector<8x8x144xf32>
    %54 = arith.addf %46, %53 : vector<8x8x144xf32>
    %c0_38 = arith.constant 0 : index
    %c1_39 = arith.constant 1 : index
    %c1_40 = arith.constant 1 : index
    %c0_41 = arith.constant 0 : index
    %55 = vector.load %arg12[%c0_38, %c1_39, %c1_40, %c0_41] : memref<1x10x10x144xf32, #tpu.memory_space<vmem>>, vector<1x8x8x144xf32>
    %56 = vector.shape_cast %55 : vector<1x8x8x144xf32> to vector<8x8x144xf32>
    %57 = vector.extract_strided_slice %21 {offsets = [4, 0, 0], sizes = [1, 1, 144], strides = [1, 1, 1]} : vector<9x1x144xf32> to vector<1x1x144xf32>
    %58 = vector.shape_cast %57 : vector<1x1x144xf32> to vector<1x144xf32>
    %59 = vector.shape_cast %58 : vector<1x144xf32> to vector<1x1x144xf32>
    %60 = vector.broadcast %59 : vector<1x1x144xf32> to vector<8x8x144xf32>
    %61 = arith.mulf %56, %60 : vector<8x8x144xf32>
    %62 = arith.addf %54, %61 : vector<8x8x144xf32>
    %c0_42 = arith.constant 0 : index
    %c1_43 = arith.constant 1 : index
    %c2_44 = arith.constant 2 : index
    %c0_45 = arith.constant 0 : index
    %63 = vector.load %arg12[%c0_42, %c1_43, %c2_44, %c0_45] : memref<1x10x10x144xf32, #tpu.memory_space<vmem>>, vector<1x8x8x144xf32>
    %64 = vector.shape_cast %63 : vector<1x8x8x144xf32> to vector<8x8x144xf32>
    %65 = vector.extract_strided_slice %21 {offsets = [5, 0, 0], sizes = [1, 1, 144], strides = [1, 1, 1]} : vector<9x1x144xf32> to vector<1x1x144xf32>
    %66 = vector.shape_cast %65 : vector<1x1x144xf32> to vector<1x144xf32>
    %67 = vector.shape_cast %66 : vector<1x144xf32> to vector<1x1x144xf32>
    %68 = vector.broadcast %67 : vector<1x1x144xf32> to vector<8x8x144xf32>
    %69 = arith.mulf %64, %68 : vector<8x8x144xf32>
    %70 = arith.addf %62, %69 : vector<8x8x144xf32>
    %c0_46 = arith.constant 0 : index
    %c2_47 = arith.constant 2 : index
    %c0_48 = arith.constant 0 : index
    %c0_49 = arith.constant 0 : index
    %71 = vector.load %arg12[%c0_46, %c2_47, %c0_48, %c0_49] : memref<1x10x10x144xf32, #tpu.memory_space<vmem>>, vector<1x8x8x144xf32>
    %72 = vector.shape_cast %71 : vector<1x8x8x144xf32> to vector<8x8x144xf32>
    %73 = vector.extract_strided_slice %21 {offsets = [6, 0, 0], sizes = [1, 1, 144], strides = [1, 1, 1]} : vector<9x1x144xf32> to vector<1x1x144xf32>
    %74 = vector.shape_cast %73 : vector<1x1x144xf32> to vector<1x144xf32>
    %75 = vector.shape_cast %74 : vector<1x144xf32> to vector<1x1x144xf32>
    %76 = vector.broadcast %75 : vector<1x1x144xf32> to vector<8x8x144xf32>
    %77 = arith.mulf %72, %76 : vector<8x8x144xf32>
    %78 = arith.addf %70, %77 : vector<8x8x144xf32>
    %c0_50 = arith.constant 0 : index
    %c2_51 = arith.constant 2 : index
    %c1_52 = arith.constant 1 : index
    %c0_53 = arith.constant 0 : index
    %79 = vector.load %arg12[%c0_50, %c2_51, %c1_52, %c0_53] : memref<1x10x10x144xf32, #tpu.memory_space<vmem>>, vector<1x8x8x144xf32>
    %80 = vector.shape_cast %79 : vector<1x8x8x144xf32> to vector<8x8x144xf32>
    %81 = vector.extract_strided_slice %21 {offsets = [7, 0, 0], sizes = [1, 1, 144], strides = [1, 1, 1]} : vector<9x1x144xf32> to vector<1x1x144xf32>
    %82 = vector.shape_cast %81 : vector<1x1x144xf32> to vector<1x144xf32>
    %83 = vector.shape_cast %82 : vector<1x144xf32> to vector<1x1x144xf32>
    %84 = vector.broadcast %83 : vector<1x1x144xf32> to vector<8x8x144xf32>
    %85 = arith.mulf %80, %84 : vector<8x8x144xf32>
    %86 = arith.addf %78, %85 : vector<8x8x144xf32>
    %c0_54 = arith.constant 0 : index
    %c2_55 = arith.constant 2 : index
    %c2_56 = arith.constant 2 : index
    %c0_57 = arith.constant 0 : index
    %87 = vector.load %arg12[%c0_54, %c2_55, %c2_56, %c0_57] : memref<1x10x10x144xf32, #tpu.memory_space<vmem>>, vector<1x8x8x144xf32>
    %88 = vector.shape_cast %87 : vector<1x8x8x144xf32> to vector<8x8x144xf32>
    %89 = vector.extract_strided_slice %21 {offsets = [8, 0, 0], sizes = [1, 1, 144], strides = [1, 1, 1]} : vector<9x1x144xf32> to vector<1x1x144xf32>
    %90 = vector.shape_cast %89 : vector<1x1x144xf32> to vector<1x144xf32>
    %91 = vector.shape_cast %90 : vector<1x144xf32> to vector<1x1x144xf32>
    %92 = vector.broadcast %91 : vector<1x1x144xf32> to vector<8x8x144xf32>
    %93 = arith.mulf %88, %92 : vector<8x8x144xf32>
    %94 = arith.addf %86, %93 : vector<8x8x144xf32>
    %c0_58 = arith.constant 0 : index
    %c0_59 = arith.constant 0 : index
    %95 = vector.load %arg6[%c0_58, %c0_59] : memref<1x144xf32, #tpu.memory_space<vmem>>, vector<1x144xf32>
    %96 = vector.shape_cast %95 : vector<1x144xf32> to vector<1x1x144xf32>
    %97 = vector.broadcast %96 : vector<1x1x144xf32> to vector<8x8x144xf32>
    %98 = arith.mulf %94, %97 : vector<8x8x144xf32>
    %c0_60 = arith.constant 0 : index
    %c0_61 = arith.constant 0 : index
    %99 = vector.load %arg7[%c0_60, %c0_61] : memref<1x144xf32, #tpu.memory_space<vmem>>, vector<1x144xf32>
    %100 = vector.shape_cast %99 : vector<1x144xf32> to vector<1x1x144xf32>
    %101 = vector.broadcast %100 : vector<1x1x144xf32> to vector<8x8x144xf32>
    %102 = arith.addf %98, %101 : vector<8x8x144xf32>
    %cst_62 = arith.constant 0.000000e+00 : f32
    %cst_63 = arith.constant 6.000000e+00 : f32
    %103 = vector.broadcast %cst_62 : f32 to vector<8x8x144xf32>
    %104 = arith.maximumf %103, %102 : vector<8x8x144xf32>
    %105 = vector.broadcast %cst_63 : f32 to vector<8x8x144xf32>
    %106 = arith.minimumf %105, %104 : vector<8x8x144xf32>
    %107 = vector.shape_cast %106 : vector<8x8x144xf32> to vector<64x144xf32>
    %108 = arith.truncf %107 : vector<64x144xf32> to vector<64x144xbf16>
    %c0_64 = arith.constant 0 : index
    %c0_65 = arith.constant 0 : index
    %109 = vector.load %arg8[%c0_64, %c0_65] : memref<144x128xbf16, #tpu.memory_space<vmem>>, vector<144x128xbf16>
    %cst_66 = arith.constant dense<0.000000e+00> : vector<64x128xf32>
    %110 = tpu.matmul %108, %109, %cst_66 {dimension_numbers = #tpu.dot_dimension_numbers<[1], [0], [0], [1], [0, 0, 1, 1], [], []>} : vector<64x144xbf16>, vector<144x128xbf16>, vector<64x128xf32> -> vector<64x128xf32>
    %c0_67 = arith.constant 0 : index
    %c0_68 = arith.constant 0 : index
    %111 = vector.load %arg9[%c0_67, %c0_68] : memref<1x128xf32, #tpu.memory_space<vmem>>, vector<1x128xf32>
    %112 = vector.broadcast %111 : vector<1x128xf32> to vector<64x128xf32>
    %113 = arith.mulf %110, %112 : vector<64x128xf32>
    %c0_69 = arith.constant 0 : index
    %c0_70 = arith.constant 0 : index
    %114 = vector.load %arg10[%c0_69, %c0_70] : memref<1x128xf32, #tpu.memory_space<vmem>>, vector<1x128xf32>
    %115 = vector.broadcast %114 : vector<1x128xf32> to vector<64x128xf32>
    %116 = arith.addf %113, %115 : vector<64x128xf32>
    %117 = arith.extf %7 : vector<64x128xbf16> to vector<64x128xf32>
    %118 = arith.addf %116, %117 : vector<64x128xf32>
    %119 = vector.shape_cast %118 : vector<64x128xf32> to vector<8x8x128xf32>
    %120 = arith.truncf %119 : vector<8x8x128xf32> to vector<8x8x128xbf16>
    %c0_71 = arith.constant 0 : index
    %c0_72 = arith.constant 0 : index
    %c0_73 = arith.constant 0 : index
    %c0_74 = arith.constant 0 : index
    %121 = vector.load %arg11[%c0_71, %c0_72, %c0_73, %c0_74] : memref<1x8x8x128xbf16, #tpu.memory_space<vmem>>, vector<1x8x8x128xbf16>
    %122 = vector.shape_cast %121 : vector<1x8x8x128xbf16> to vector<8x8x128xbf16>
    %123 = vector.shape_cast %120 : vector<8x8x128xbf16> to vector<1x8x8x128xbf16>
    tpu.vector_store %arg11[%c0_71, %c0_72, %c0_73, %c0_74], %123 {strides = array<i32>} : memref<1x8x8x128xbf16, #tpu.memory_space<vmem>>, vector<1x8x8x128xbf16>,
    return
  }
  func.func @transform_0(%arg0: i32) -> (i32, i32, i32, i32) {
    %c0_i32 = arith.constant 0 : i32
    %c0_i32_0 = arith.constant 0 : i32
    %c0_i32_1 = arith.constant 0 : i32
    %c0_i32_2 = arith.constant 0 : i32
    return %arg0, %c0_i32, %c0_i32_0, %c0_i32_1 : i32, i32, i32, i32
  }
  func.func @transform_1(%arg0: i32) -> (i32, i32) {
    %c0_i32 = arith.constant 0 : i32
    %c0_i32_0 = arith.constant 0 : i32
    %c0_i32_1 = arith.constant 0 : i32
    return %c0_i32, %c0_i32_0 : i32, i32
  }
  func.func @transform_2(%arg0: i32) -> (i32, i32) {
    %c0_i32 = arith.constant 0 : i32
    %c0_i32_0 = arith.constant 0 : i32
    %c0_i32_1 = arith.constant 0 : i32
    return %c0_i32, %c0_i32_0 : i32, i32
  }
  func.func @transform_3(%arg0: i32) -> (i32, i32) {
    %c0_i32 = arith.constant 0 : i32
    %c0_i32_0 = arith.constant 0 : i32
    %c0_i32_1 = arith.constant 0 : i32
    return %c0_i32, %c0_i32_0 : i32, i32
  }
  func.func @transform_4(%arg0: i32) -> (i32, i32, i32) {
    %c0_i32 = arith.constant 0 : i32
    %c0_i32_0 = arith.constant 0 : i32
    %c0_i32_1 = arith.constant 0 : i32
    %c0_i32_2 = arith.constant 0 : i32
    return %c0_i32, %c0_i32_0, %c0_i32_1 : i32, i32, i32
  }
  func.func @transform_5(%arg0: i32) -> (i32, i32) {
    %c0_i32 = arith.constant 0 : i32
    %c0_i32_0 = arith.constant 0 : i32
    %c0_i32_1 = arith.constant 0 : i32
    return %c0_i32, %c0_i32_0 : i32, i32
  }
  func.func @transform_6(%arg0: i32) -> (i32, i32) {
    %c0_i32 = arith.constant 0 : i32
    %c0_i32_0 = arith.constant 0 : i32
    %c0_i32_1 = arith.constant 0 : i32
    return %c0_i32, %c0_i32_0 : i32, i32
  }
  func.func @transform_7(%arg0: i32) -> (i32, i32) {
    %c0_i32 = arith.constant 0 : i32
    %c0_i32_0 = arith.constant 0 : i32
    %c0_i32_1 = arith.constant 0 : i32
    return %c0_i32, %c0_i32_0 : i32, i32
  }
  func.func @transform_8(%arg0: i32) -> (i32, i32) {
    %c0_i32 = arith.constant 0 : i32
    %c0_i32_0 = arith.constant 0 : i32
    %c0_i32_1 = arith.constant 0 : i32
    return %c0_i32, %c0_i32_0 : i32, i32
  }
  func.func @transform_9(%arg0: i32) -> (i32, i32) {
    %c0_i32 = arith.constant 0 : i32
    %c0_i32_0 = arith.constant 0 : i32
    %c0_i32_1 = arith.constant 0 : i32
    return %c0_i32, %c0_i32_0 : i32, i32
  }
  func.func @transform_10(%arg0: i32) -> (i32, i32, i32, i32) {
    %c0_i32 = arith.constant 0 : i32
    %c0_i32_0 = arith.constant 0 : i32
    %c0_i32_1 = arith.constant 0 : i32
    %c0_i32_2 = arith.constant 0 : i32
    return %arg0, %c0_i32, %c0_i32_0, %c0_i32_1 : i32, i32, i32, i32
  }
}

module attributes {stable_mosaic.version = 11 : i64} {
  func.func @_conv2_pool_kernel(%arg0: i32, %arg1: memref<1x64x128xbf16, #tpu.memory_space<vmem>>, %arg2: memref<128x1280xbf16, #tpu.memory_space<vmem>>, %arg3: memref<1x1280xf32, #tpu.memory_space<vmem>>, %arg4: memref<1x1280xf32, #tpu.memory_space<vmem>>, %arg5: memref<1x1x1280xf32, #tpu.memory_space<vmem>>) attributes {dimension_semantics = [#tpu.dimension_semantics<parallel>], iteration_bounds = array<i64: 2>, scalar_prefetch = 0 : i64, scratch_operands = 0 : i64, tpu.core_type = #tpu.core_type<tc>, window_params = [{transform_indices = @transform_0, window_bounds = array<i64: 1, 64, 128>}, {pipeline_mode = #tpu.pipeline_mode<synchronous>, transform_indices = @transform_1, window_bounds = array<i64: 128, 1280>}, {pipeline_mode = #tpu.pipeline_mode<synchronous>, transform_indices = @transform_2, window_bounds = array<i64: 1, 1280>}, {pipeline_mode = #tpu.pipeline_mode<synchronous>, transform_indices = @transform_3, window_bounds = array<i64: 1, 1280>}, {transform_indices = @transform_4, window_bounds = array<i64: 1, 1, 1280>}]} {
    %c0 = arith.constant 0 : index
    %c0_0 = arith.constant 0 : index
    %c0_1 = arith.constant 0 : index
    %0 = vector.load %arg1[%c0, %c0_0, %c0_1] : memref<1x64x128xbf16, #tpu.memory_space<vmem>>, vector<1x64x128xbf16>
    %1 = vector.shape_cast %0 : vector<1x64x128xbf16> to vector<64x128xbf16>
    %c0_2 = arith.constant 0 : index
    %c0_3 = arith.constant 0 : index
    %2 = vector.load %arg2[%c0_2, %c0_3] : memref<128x1280xbf16, #tpu.memory_space<vmem>>, vector<128x1280xbf16>
    %cst = arith.constant dense<0.000000e+00> : vector<64x1280xf32>
    %3 = tpu.matmul %1, %2, %cst {dimension_numbers = #tpu.dot_dimension_numbers<[1], [0], [0], [1], [0, 0, 1, 1], [], []>} : vector<64x128xbf16>, vector<128x1280xbf16>, vector<64x1280xf32> -> vector<64x1280xf32>
    %c0_4 = arith.constant 0 : index
    %c0_5 = arith.constant 0 : index
    %4 = vector.load %arg3[%c0_4, %c0_5] : memref<1x1280xf32, #tpu.memory_space<vmem>>, vector<1x1280xf32>
    %5 = vector.broadcast %4 : vector<1x1280xf32> to vector<64x1280xf32>
    %6 = arith.mulf %3, %5 : vector<64x1280xf32>
    %c0_6 = arith.constant 0 : index
    %c0_7 = arith.constant 0 : index
    %7 = vector.load %arg4[%c0_6, %c0_7] : memref<1x1280xf32, #tpu.memory_space<vmem>>, vector<1x1280xf32>
    %8 = vector.broadcast %7 : vector<1x1280xf32> to vector<64x1280xf32>
    %9 = arith.addf %6, %8 : vector<64x1280xf32>
    %cst_8 = arith.constant 0.000000e+00 : f32
    %cst_9 = arith.constant 6.000000e+00 : f32
    %10 = vector.broadcast %cst_8 : f32 to vector<64x1280xf32>
    %11 = arith.maximumf %10, %9 : vector<64x1280xf32>
    %12 = vector.broadcast %cst_9 : f32 to vector<64x1280xf32>
    %13 = arith.minimumf %12, %11 : vector<64x1280xf32>
    %cst_10 = arith.constant dense<0.000000e+00> : vector<1280xf32>
    %14 = vector.multi_reduction <add>, %13, %cst_10 [0] : vector<64x1280xf32> to vector<1280xf32>
    %15 = vector.shape_cast %14 : vector<1280xf32> to vector<1x1280xf32>
    %cst_11 = arith.constant 6.400000e+01 : f32
    %16 = vector.broadcast %cst_11 : f32 to vector<1x1280xf32>
    %17 = arith.divf %15, %16 : vector<1x1280xf32>
    %c0_12 = arith.constant 0 : index
    %c0_13 = arith.constant 0 : index
    %c0_14 = arith.constant 0 : index
    %18 = vector.load %arg5[%c0_12, %c0_13, %c0_14] : memref<1x1x1280xf32, #tpu.memory_space<vmem>>, vector<1x1x1280xf32>
    %19 = vector.shape_cast %18 : vector<1x1x1280xf32> to vector<1x1280xf32>
    %20 = vector.shape_cast %17 : vector<1x1280xf32> to vector<1x1x1280xf32>
    tpu.vector_store %arg5[%c0_12, %c0_13, %c0_14], %20 {strides = array<i32>} : memref<1x1x1280xf32, #tpu.memory_space<vmem>>, vector<1x1x1280xf32>,
    return
  }
  func.func @transform_0(%arg0: i32) -> (i32, i32, i32) {
    %c0_i32 = arith.constant 0 : i32
    %c0_i32_0 = arith.constant 0 : i32
    %c0_i32_1 = arith.constant 0 : i32
    return %arg0, %c0_i32, %c0_i32_0 : i32, i32, i32
  }
  func.func @transform_1(%arg0: i32) -> (i32, i32) {
    %c0_i32 = arith.constant 0 : i32
    %c0_i32_0 = arith.constant 0 : i32
    %c0_i32_1 = arith.constant 0 : i32
    return %c0_i32, %c0_i32_0 : i32, i32
  }
  func.func @transform_2(%arg0: i32) -> (i32, i32) {
    %c0_i32 = arith.constant 0 : i32
    %c0_i32_0 = arith.constant 0 : i32
    %c0_i32_1 = arith.constant 0 : i32
    return %c0_i32, %c0_i32_0 : i32, i32
  }
  func.func @transform_3(%arg0: i32) -> (i32, i32) {
    %c0_i32 = arith.constant 0 : i32
    %c0_i32_0 = arith.constant 0 : i32
    %c0_i32_1 = arith.constant 0 : i32
    return %c0_i32, %c0_i32_0 : i32, i32
  }
  func.func @transform_4(%arg0: i32) -> (i32, i32, i32) {
    %c0_i32 = arith.constant 0 : i32
    %c0_i32_0 = arith.constant 0 : i32
    %c0_i32_1 = arith.constant 0 : i32
    return %arg0, %c0_i32, %c0_i32_0 : i32, i32, i32
  }
}

module attributes {stable_mosaic.version = 11 : i64} {
  func.func @_mm_bn_kernel(%arg0: i32, %arg1: memref<2x1280xf32, #tpu.memory_space<vmem>>, %arg2: memref<1280x128xbf16, #tpu.memory_space<vmem>>, %arg3: memref<1x128xf32, #tpu.memory_space<vmem>>, %arg4: memref<1x128xf32, #tpu.memory_space<vmem>>, %arg5: memref<2x128xf32, #tpu.memory_space<vmem>>) attributes {dimension_semantics = [#tpu.dimension_semantics<parallel>], iteration_bounds = array<i64: 1>, scalar_prefetch = 0 : i64, scratch_operands = 0 : i64, tpu.core_type = #tpu.core_type<tc>, window_params = [{transform_indices = @transform_0, window_bounds = array<i64: 2, 1280>}, {pipeline_mode = #tpu.pipeline_mode<synchronous>, transform_indices = @transform_1, window_bounds = array<i64: 1280, 128>}, {pipeline_mode = #tpu.pipeline_mode<synchronous>, transform_indices = @transform_2, window_bounds = array<i64: 1, 128>}, {pipeline_mode = #tpu.pipeline_mode<synchronous>, transform_indices = @transform_3, window_bounds = array<i64: 1, 128>}, {transform_indices = @transform_4, window_bounds = array<i64: 2, 128>}]} {
    %c0 = arith.constant 0 : index
    %c0_0 = arith.constant 0 : index
    %0 = vector.load %arg1[%c0, %c0_0] : memref<2x1280xf32, #tpu.memory_space<vmem>>, vector<2x1280xf32>
    %1 = arith.truncf %0 : vector<2x1280xf32> to vector<2x1280xbf16>
    %c0_1 = arith.constant 0 : index
    %c0_2 = arith.constant 0 : index
    %2 = vector.load %arg2[%c0_1, %c0_2] : memref<1280x128xbf16, #tpu.memory_space<vmem>>, vector<1280x128xbf16>
    %cst = arith.constant dense<0.000000e+00> : vector<2x128xf32>
    %3 = tpu.matmul %1, %2, %cst {dimension_numbers = #tpu.dot_dimension_numbers<[1], [0], [0], [1], [0, 0, 1, 1], [], []>} : vector<2x1280xbf16>, vector<1280x128xbf16>, vector<2x128xf32> -> vector<2x128xf32>
    %c0_3 = arith.constant 0 : index
    %c0_4 = arith.constant 0 : index
    %4 = vector.load %arg3[%c0_3, %c0_4] : memref<1x128xf32, #tpu.memory_space<vmem>>, vector<1x128xf32>
    %5 = vector.broadcast %4 : vector<1x128xf32> to vector<2x128xf32>
    %6 = arith.mulf %3, %5 : vector<2x128xf32>
    %c0_5 = arith.constant 0 : index
    %c0_6 = arith.constant 0 : index
    %7 = vector.load %arg4[%c0_5, %c0_6] : memref<1x128xf32, #tpu.memory_space<vmem>>, vector<1x128xf32>
    %8 = vector.broadcast %7 : vector<1x128xf32> to vector<2x128xf32>
    %9 = arith.addf %6, %8 : vector<2x128xf32>
    %c0_7 = arith.constant 0 : index
    %c0_8 = arith.constant 0 : index
    %10 = vector.load %arg5[%c0_7, %c0_8] : memref<2x128xf32, #tpu.memory_space<vmem>>, vector<2x128xf32>
    tpu.vector_store %arg5[%c0_7, %c0_8], %9 {strides = array<i32>} : memref<2x128xf32, #tpu.memory_space<vmem>>, vector<2x128xf32>,
    return
  }
  func.func @transform_0(%arg0: i32) -> (i32, i32) {
    %c0_i32 = arith.constant 0 : i32
    %c0_i32_0 = arith.constant 0 : i32
    return %arg0, %c0_i32 : i32, i32
  }
  func.func @transform_1(%arg0: i32) -> (i32, i32) {
    %c0_i32 = arith.constant 0 : i32
    %c0_i32_0 = arith.constant 0 : i32
    %c0_i32_1 = arith.constant 0 : i32
    return %c0_i32, %c0_i32_0 : i32, i32
  }
  func.func @transform_2(%arg0: i32) -> (i32, i32) {
    %c0_i32 = arith.constant 0 : i32
    %c0_i32_0 = arith.constant 0 : i32
    %c0_i32_1 = arith.constant 0 : i32
    return %c0_i32, %c0_i32_0 : i32, i32
  }
  func.func @transform_3(%arg0: i32) -> (i32, i32) {
    %c0_i32 = arith.constant 0 : i32
    %c0_i32_0 = arith.constant 0 : i32
    %c0_i32_1 = arith.constant 0 : i32
    return %c0_i32, %c0_i32_0 : i32, i32
  }
  func.func @transform_4(%arg0: i32) -> (i32, i32) {
    %c0_i32 = arith.constant 0 : i32
    %c0_i32_0 = arith.constant 0 : i32
    return %arg0, %c0_i32 : i32, i32
  }
}

</mosaic_0001>

<bundles_post_ra>
// kernel: mobilenetv2_forward.6
= control target key start
LH: loop header
LB: loop body
LE: loop exit
PB: predicated region body
PF: predicated region fallthrough
CT: control target
= control target key end

     0   :  { %s1238_s15 = smov 0   ;;  %s1397_s0 = inlined_call_operand.vmem [shape: bf16[512,36], index: 0, kind: input, shape index: {}]   ;;  %s1398_s1 = inlined_call_operand.vmem [shape: bf16[36,128], index: 1, kind: input, shape index: {}]   ;;  %s1399_s2 = inlined_call_operand.vmem [shape: f32[1,128], index: 2, kind: input, shape index: {}]   ;;  %s1400_s3 = inlined_call_operand.vmem [shape: f32[1,128], index: 3, kind: input, shape index: {}]   ;;  %s1401_s4 = inlined_call_operand.vmem [shape: bf16[512,128], index: 4, kind: output, shape index: {}]  }
   0x1 LB: > { %s906_s16 = sadd.s32 4294967295, %s1211_s15   ;;  %p910_p0 = scmp.ge.s32.totalorder %s1211_s15, 1  ;;  %s1211_s15 = sphi %s1238_s15, %s14_s15  }
   0x2   : > { %p163_p1 = scmp.lt.s32.totalorder %s1211_s15, 3 }
   0x4   : > { %p164_p2 = pnand %p910_p0, %p163_p1 }
   0x5   : > { %s911_s21 = sshll.u32 (!%p164_p2), %s906_s16, 5 }
   0x6   : > { %167 = sbr.rel (%p164_p2) target bundleno = 261 (0x105), region = 36  ;;  %p190_p3 = scmp.lt.s32.totalorder (!%p164_p2), %s911_s21, 63 }
   0xb   : > { %v1186_v0 = vld [vmem:[%s1398_s1 + $0x10] ss:$0 sps:$4 sm:$0x33]   ;;  %vm383_vm0 = vcmask 1041408   ;;  %v1187_v1 = vld [vmem:[%s1398_s1 + $0x8] sm:$0xff]   ;;  %v1188_v3 = vld [vmem:[%s1398_s1] sm:$0xff]  }
   0xc   : > { %1176 = vmatprep.subr.msk.bf16.mxu0 %vm383_vm0, %v1186_v0  ;;  %1177 = vmatprep.subr.msk.bf16.mxu1 %vm383_vm0, %v1186_v0  ;;  %v385_v2 = vsel %vm383_vm0, %v1186_v0, 0  ;;  %s1403_s21 = smov (!%p190_p3, %s911_s21), 63  ;;  %vm334_vm1 = vcmask 293888   ;;  %v1300_v20 = vld [vmem:[%s1399_s2] ss:$0 sm:$0xff] }
   0xd   : > { %1133 = vmatpush3.bf16.msra.mxu0 %v385_v2  ;;  %1173 = vmatpush3.bf16.msra.mxu1 %v385_v2  ;;  %s912_s24 = sshll.u32 %s1403_s21, 2  ;;  %v1305_v22 = vld [vmem:[%s1400_s3] ss:$0 sm:$0xff] }
   0xe   : > { %1134 = vmatprep.subr.bf16.mxu0 %v1187_v1  ;;  %1171 = vmatprep.subr.bf16.mxu1 %v1187_v1  ;;  %s1263_s27 = scalar_lea.vmem %s1397_s0, %s912_s24  ;;  %s1334_s8 = scalar_lea.vmem %s1401_s4, %s912_s24 }
   0xf   : > { %v1189_v4 = vld [vmem:[%s1263_s27] sm:$0xff]   ;;  %v1191_v6 = vld [vmem:[%s1263_s27 + $0x8] sm:$0xff]   ;;  %v1193_v8 = vld [vmem:[%s1263_s27 + $0x10] sm:$0xff]  }
  0x10   : > { %v1190_v5 = vld [vmem:[%s1263_s27 + $0x40] sm:$0xff]   ;;  %1138 = vmatprep.mubr.msk.bf16.mxu0 %vm334_vm1, %v1189_v4  ;;  %v1192_v7 = vld [vmem:[%s1263_s27 + $0x48] sm:$0xff]   ;;  %v1194_v9 = vld [vmem:[%s1263_s27 + $0x50] sm:$0xff]  }
  0x11   : > { %1135 = vmatpush3.bf16.msra.mxu0 %v1187_v1  ;;  %1174 = vmatpush3.bf16.msra.mxu1 %v1187_v1  ;;  %v1195_v10 = vld [vmem:[%s1263_s27 + $0x18] sm:$0xff]   ;;  %v1197_v12 = vld [vmem:[%s1263_s27 + $0x20] sm:$0xff]   ;;  %v1199_v14 = vld [vmem:[%s1263_s27 + $0x28] sm:$0xff]  }
  0x12   : > { %1136 = vmatprep.subr.bf16.mxu0 %v1188_v3  ;;  %1172 = vmatprep.subr.bf16.mxu1 %v1188_v3  ;;  %v1196_v11 = vld [vmem:[%s1263_s27 + $0x58] sm:$0xff]   ;;  %v1198_v13 = vld [vmem:[%s1263_s27 + $0x60] sm:$0xff]   ;;  %v1200_v15 = vld [vmem:[%s1263_s27 + $0x68] sm:$0xff]  }
  0x13   : > { %1154 = vmatprep.mubr.msk.bf16.mxu1 %vm334_vm1, %v1190_v5  ;;  %v1201_v16 = vld [vmem:[%s1263_s27 + $0x30] sm:$0xff]   ;;  %v1203_v18 = vld [vmem:[%s1263_s27 + $0x38] sm:$0xff]  }
  0x14   : > { %v1202_v17 = vld [vmem:[%s1263_s27 + $0x70] sm:$0xff]   ;;  %v1204_v19 = vld [vmem:[%s1263_s27 + $0x78] sm:$0xff]  }
  0x15   : > { %1137 = vmatpush3.bf16.msra.mxu0 %v1188_v3  ;;  %1175 = vmatpush3.bf16.msra.mxu1 %v1188_v3 }
  0x18   : > { %1139 = vmatmul.mubr.msk.bf16.vlgmr.msra.gmra.mxu0 %vm334_vm1, %v1191_v6  ;;  %1155 = vmatmul.mubr.msk.bf16.vlgmr.msra.gmra.mxu1 %vm334_vm1, %v1192_v7 }
  0x19   : > { %1142 = vmatprep.mubr.msk.bf16.mxu0 %vm334_vm1, %v1193_v8  ;;  %1158 = vmatprep.mubr.msk.bf16.mxu1 %vm334_vm1, %v1194_v9 }
  0x20   : > { %1143 = vmatmul.mubr.msk.bf16.gmra.mxu0 %vm334_vm1, %v1195_v10  ;;  %1159 = vmatmul.mubr.msk.bf16.gmra.mxu1 %vm334_vm1, %v1196_v11 }
  0x21   : > { %1146 = vmatprep.mubr.msk.bf16.mxu0 %vm334_vm1, %v1197_v12  ;;  %1162 = vmatprep.mubr.msk.bf16.mxu1 %vm334_vm1, %v1198_v13 }
  0x28   : > { %1147 = vmatmul.mubr.msk.bf16.gmra.mxu0 %vm334_vm1, %v1199_v14  ;;  %1163 = vmatmul.mubr.msk.bf16.gmra.mxu1 %vm334_vm1, %v1200_v15 }
  0x29   : > { %1150 = vmatprep.mubr.msk.bf16.mxu0 %vm334_vm1, %v1201_v16  ;;  %1166 = vmatprep.mubr.msk.bf16.mxu1 %vm334_vm1, %v1202_v17 }
  0x30   : > { %1151 = vmatmul.mubr.msk.bf16.gmra.mxu0 %vm334_vm1, %v1203_v18  ;;  %1167 = vmatmul.mubr.msk.bf16.gmra.mxu1 %vm334_vm1, %v1204_v19 }
  0xd8   : > { %v1140_v21 = vpop.f32.mrf.mxu0  ;;  %v1156_v23 = vpop.f32.mrf.mxu1 }
  0xd9   : > { %v557_v24 = vmul.f32 %v1140_v21, %v1300_v20  ;;  %v573_v25 = vmul.f32 %v1156_v23, %v1300_v20 }
  0xda   : > { %v421_v26 = vpop.f32.mrf.mxu0  ;;  %v485_v27 = vpop.f32.mrf.mxu1 }
  0xdb   : > { %v596_v28 = vadd.f32 %v1305_v22, %v557_v24  ;;  %v612_v29 = vadd.f32 %v1305_v22, %v573_v25  ;;  %v555_v30 = vmul.f32 %v1300_v20, %v421_v26  ;;  %v571_v31 = vmul.f32 %v1300_v20, %v485_v27 }
  0xdc   : > { %v1141_v32 = vpop.f32.mrf.mxu0  ;;  %v1157_v33 = vpop.f32.mrf.mxu1 }
  0xdd   : > { %v628_v34 = vmax.f32 %v596_v28, 0.0  ;;  %v644_v35 = vmax.f32 %v612_v29, 0.0  ;;  %v594_v36 = vadd.f32 %v1305_v22, %v555_v30  ;;  %v610_v37 = vadd.f32 %v1305_v22, %v571_v31 }
  0xde   : > { %v558_v38 = vmul.f32 %v1141_v32, %v1300_v20  ;;  %v574_v39 = vmul.f32 %v1157_v33, %v1300_v20  ;;  %v424_v40 = vpop.f32.mrf.mxu0  ;;  %v488_v41 = vpop.f32.mrf.mxu1 }
  0xdf   : > { %v660_v42 = vmin.f32 %v628_v34, 6.0  ;;  %v676_v43 = vmin.f32 %v644_v35, 6.0  ;;  %v556_v46 = vmul.f32 %v1300_v20, %v424_v40  ;;  %v572_v47 = vmul.f32 %v1300_v20, %v488_v41 }
  0xe0   : > { %v597_v44 = vadd.f32 %v1305_v22, %v558_v38  ;;  %v613_v45 = vadd.f32 %v1305_v22, %v574_v39  ;;  %v1144_v48 = vpop.f32.mrf.mxu0  ;;  %v1160_v49 = vpop.f32.mrf.mxu1  ;;  %v626_v50 = vmax.f32 %v594_v36, 0.0  ;;  %v642_v51 = vmax.f32 %v610_v37, 0.0 }
  0xe1   : > { %v561_v52 = vmul.f32 %v1144_v48, %v1300_v20  ;;  %v577_v53 = vmul.f32 %v1160_v49, %v1300_v20  ;;  %v595_v56 = vadd.f32 %v1305_v22, %v556_v46  ;;  %v611_v57 = vadd.f32 %v1305_v22, %v572_v47 }
  0xe2   : > { %v629_v54 = vmax.f32 %v597_v44, 0.0  ;;  %v645_v55 = vmax.f32 %v613_v45, 0.0  ;;  %v437_v58 = vpop.f32.mrf.mxu0  ;;  %v501_v59 = vpop.f32.mrf.mxu1  ;;  %v658_v6 = vmin.f32 %v626_v50, 6.0  ;;  %v674_v7 = vmin.f32 %v642_v51, 6.0 }
  0xe3   : > { %v600_v60 = vadd.f32 %v1305_v22, %v561_v52  ;;  %v616_v61 = vadd.f32 %v1305_v22, %v577_v53  ;;  %v559_v62 = vmul.f32 %v1300_v20, %v437_v58  ;;  %v575_v63 = vmul.f32 %v1300_v20, %v501_v59 }
  0xe4   : > { %v661_v0 = vmin.f32 %v629_v54, 6.0  ;;  %v677_v1 = vmin.f32 %v645_v55, 6.0  ;;  %v627_v2 = vmax.f32 %v595_v56, 0.0  ;;  %v643_v3 = vmax.f32 %v611_v57, 0.0  ;;  %v1145_v4 = vpop.f32.mrf.mxu0  ;;  %v1161_v5 = vpop.f32.mrf.mxu1 }
  0xe5   : > { %v598_v8 = vadd.f32 %v1305_v22, %v559_v62  ;;  %v614_v9 = vadd.f32 %v1305_v22, %v575_v63  ;;  %v632_v16 = vmax.f32 %v600_v60, 0.0  ;;  %v648_v17 = vmax.f32 %v616_v61, 0.0 }
  0xe6   : > { %v1026_v10 = vpack.c.bf16 %v661_v0, %v660_v42  ;;  %v1066_v11 = vpack.c.bf16 %v677_v1, %v676_v43  ;;  %v659_v12 = vmin.f32 %v627_v2, 6.0  ;;  %v675_v13 = vmin.f32 %v643_v3, 6.0  ;;  %v440_v14 = vpop.f32.mrf.mxu0  ;;  %v504_v15 = vpop.f32.mrf.mxu1 }
  0xe7   : > { %v562_v21 = vmul.f32 %v1145_v4, %v1300_v20  ;;  %v578_v23 = vmul.f32 %v1161_v5, %v1300_v20  ;;  %v630_v26 = vmax.f32 %v598_v8, 0.0  ;;  %v646_v27 = vmax.f32 %v614_v9, 0.0 }
  0xe8   : > { %1098 = vst [vmem:[%s1334_s8 + $0x8] sm:$0xff] %v1026_v10   ;;  %1106 = vst [vmem:[%s1334_s8 + $0x48] sm:$0xff] %v1066_v11   ;;  %v1021_v18 = vpack.c.bf16 %v659_v12, %v658_v6  ;;  %v1061_v19 = vpack.c.bf16 %v675_v13, %v674_v7  ;;  %v1148_v24 = vpop.f32.mrf.mxu0  ;;  %v1164_v25 = vpop.f32.mrf.mxu1  ;;  %v560_v28 = vmul.f32 %v1300_v20, %v440_v14  ;;  %v664_v50 = vmin.f32 %v632_v16, 6.0 }
  0xe9   : > { %v576_v29 = vmul.f32 %v1300_v20, %v504_v15  ;;  %v601_v30 = vadd.f32 %v1305_v22, %v562_v21  ;;  %v617_v31 = vadd.f32 %v1305_v22, %v578_v23  ;;  %v565_v32 = vmul.f32 %v1148_v24, %v1300_v20 }
  0xea   : > { %1022 = vst [vmem:[%s1334_s8] sm:$0xff] %v1021_v18   ;;  %1105 = vst [vmem:[%s1334_s8 + $0x40] sm:$0xff] %v1061_v19   ;;  %v581_v33 = vmul.f32 %v1164_v25, %v1300_v20  ;;  %v453_v34 = vpop.f32.mrf.mxu0  ;;  %v517_v35 = vpop.f32.mrf.mxu1  ;;  %v599_v36 = vadd.f32 %v1305_v22, %v560_v28  ;;  %v680_v51 = vmin.f32 %v648_v17, 6.0  ;;  %v662_v56 = vmin.f32 %v630_v26, 6.0 }
  0xeb   : > { %v615_v37 = vadd.f32 %v1305_v22, %v576_v29  ;;  %v563_v38 = vmul.f32 %v1300_v20, %v453_v34  ;;  %v579_v39 = vmul.f32 %v1300_v20, %v517_v35  ;;  %v633_v40 = vmax.f32 %v601_v30, 0.0 }
  0xec   : > { %v649_v41 = vmax.f32 %v617_v31, 0.0  ;;  %v604_v42 = vadd.f32 %v1305_v22, %v565_v32  ;;  %v620_v43 = vadd.f32 %v1305_v22, %v581_v33  ;;  %v1149_v44 = vpop.f32.mrf.mxu0  ;;  %v1165_v45 = vpop.f32.mrf.mxu1  ;;  %v631_v46 = vmax.f32 %v599_v36, 0.0 }
  0xed   : > { %v647_v47 = vmax.f32 %v615_v37, 0.0  ;;  %v602_v48 = vadd.f32 %v1305_v22, %v563_v38  ;;  %v618_v49 = vadd.f32 %v1305_v22, %v579_v39  ;;  %v665_v52 = vmin.f32 %v633_v40, 6.0 }
  0xee   : > { %v681_v53 = vmin.f32 %v649_v41, 6.0  ;;  %v456_v54 = vpop.f32.mrf.mxu0  ;;  %v520_v55 = vpop.f32.mrf.mxu1  ;;  %v678_v57 = vmin.f32 %v646_v27, 6.0  ;;  %v663_v58 = vmin.f32 %v631_v46, 6.0  ;;  %v636_v62 = vmax.f32 %v604_v42, 0.0 }
  0xef   : > { %v679_v59 = vmin.f32 %v647_v47, 6.0  ;;  %v1036_v60 = vpack.c.bf16 %v665_v52, %v664_v50  ;;  %v652_v63 = vmax.f32 %v620_v43, 0.0  ;;  %v634_v4 = vmax.f32 %v602_v48, 0.0 }
  0xf0   : > { %v1076_v61 = vpack.c.bf16 %v681_v53, %v680_v51  ;;  %v1152_v0 = vpop.f32.mrf.mxu0  ;;  %v1168_v1 = vpop.f32.mrf.mxu1  ;;  %v1031_v2 = vpack.c.bf16 %v663_v58, %v662_v56  ;;  %v650_v5 = vmax.f32 %v618_v49, 0.0  ;;  %v566_v6 = vmul.f32 %v1149_v44, %v1300_v20 }
  0xf1   : > { %v1071_v3 = vpack.c.bf16 %v679_v59, %v678_v57  ;;  %1100 = vst [vmem:[%s1334_s8 + $0x18] sm:$0xff] %v1036_v60   ;;  %v582_v7 = vmul.f32 %v1165_v45, %v1300_v20  ;;  %v564_v8 = vmul.f32 %v1300_v20, %v456_v54  ;;  %v580_v9 = vmul.f32 %v1300_v20, %v520_v55 }
  0xf2   : > { %1108 = vst [vmem:[%s1334_s8 + $0x58] sm:$0xff] %v1076_v61   ;;  %v469_v10 = vpop.f32.mrf.mxu0  ;;  %v533_v11 = vpop.f32.mrf.mxu1  ;;  %1099 = vst [vmem:[%s1334_s8 + $0x10] sm:$0xff] %v1031_v2   ;;  %v569_v12 = vmul.f32 %v1152_v0, %v1300_v20  ;;  %v585_v13 = vmul.f32 %v1168_v1, %v1300_v20  ;;  %v605_v16 = vadd.f32 %v1305_v22, %v566_v6  ;;  %v668_v24 = vmin.f32 %v636_v62, 6.0 }
  0xf3   : > { %1107 = vst [vmem:[%s1334_s8 + $0x50] sm:$0xff] %v1071_v3   ;;  %v567_v14 = vmul.f32 %v1300_v20, %v469_v10  ;;  %v583_v15 = vmul.f32 %v1300_v20, %v533_v11  ;;  %v621_v17 = vadd.f32 %v1305_v22, %v582_v7  ;;  %v603_v18 = vadd.f32 %v1305_v22, %v564_v8 }
  0xf4   : > { %v619_v19 = vadd.f32 %v1305_v22, %v580_v9  ;;  %v1153_v21 = vpop.f32.mrf.mxu0  ;;  %v1169_v23 = vpop.f32.mrf.mxu1  ;;  %v684_v25 = vmin.f32 %v652_v63, 6.0  ;;  %v666_v26 = vmin.f32 %v634_v4, 6.0  ;;  %v682_v27 = vmin.f32 %v650_v5, 6.0 }
  0xf5   : > { %v637_v28 = vmax.f32 %v605_v16, 0.0  ;;  %v653_v29 = vmax.f32 %v621_v17, 0.0  ;;  %v635_v30 = vmax.f32 %v603_v18, 0.0  ;;  %v608_v32 = vadd.f32 %v1305_v22, %v569_v12 }
  0xf6   : > { %v651_v31 = vmax.f32 %v619_v19, 0.0  ;;  %v624_v33 = vadd.f32 %v1305_v22, %v585_v13  ;;  %v606_v34 = vadd.f32 %v1305_v22, %v567_v14  ;;  %v622_v35 = vadd.f32 %v1305_v22, %v583_v15  ;;  %v472_v40 = vpop.f32.mrf.mxu0  ;;  %v536_v41 = vpop.f32.mrf.mxu1 }
  0xf7   : > { %v669_v36 = vmin.f32 %v637_v28, 6.0  ;;  %v685_v37 = vmin.f32 %v653_v29, 6.0  ;;  %v667_v38 = vmin.f32 %v635_v30, 6.0  ;;  %v570_v46 = vmul.f32 %v1153_v21, %v1300_v20 }
  0xf8   : > { %v683_v39 = vmin.f32 %v651_v31, 6.0  ;;  %v586_v47 = vmul.f32 %v1169_v23, %v1300_v20  ;;  %v568_v48 = vmul.f32 %v1300_v20, %v472_v40  ;;  %v584_v49 = vmul.f32 %v1300_v20, %v536_v41 }
  0xf9   : > { %v1046_v42 = vpack.c.bf16 %v669_v36, %v668_v24  ;;  %v1086_v43 = vpack.c.bf16 %v685_v37, %v684_v25  ;;  %v1041_v44 = vpack.c.bf16 %v667_v38, %v666_v26  ;;  %v640_v50 = vmax.f32 %v608_v32, 0.0 }
  0xfa   : > { %v1081_v45 = vpack.c.bf16 %v683_v39, %v682_v27  ;;  %v656_v51 = vmax.f32 %v624_v33, 0.0  ;;  %v638_v52 = vmax.f32 %v606_v34, 0.0  ;;  %v654_v53 = vmax.f32 %v622_v35, 0.0 }
  0xfb   : > { %1102 = vst [vmem:[%s1334_s8 + $0x28] sm:$0xff] %v1046_v42   ;;  %1110 = vst [vmem:[%s1334_s8 + $0x68] sm:$0xff] %v1086_v43   ;;  %v609_v54 = vadd.f32 %v1305_v22, %v570_v46  ;;  %v625_v55 = vadd.f32 %v1305_v22, %v586_v47  ;;  %v607_v56 = vadd.f32 %v1305_v22, %v568_v48  ;;  %v672_v61 = vmin.f32 %v640_v50, 6.0 }
  0xfc   : > { %1101 = vst [vmem:[%s1334_s8 + $0x20] sm:$0xff] %v1041_v44   ;;  %1109 = vst [vmem:[%s1334_s8 + $0x60] sm:$0xff] %v1081_v45   ;;  %v623_v57 = vadd.f32 %v1305_v22, %v584_v49  ;;  %v688_v62 = vmin.f32 %v656_v51, 6.0  ;;  %v670_v63 = vmin.f32 %v638_v52, 6.0  ;;  %v686_v0 = vmin.f32 %v654_v53, 6.0 }
  0xfd   : > { %v641_v58 = vmax.f32 %v609_v54, 0.0  ;;  %v657_v59 = vmax.f32 %v625_v55, 0.0  ;;  %v639_v20 = vmax.f32 %v607_v56, 0.0 }
  0xfe   : > { %v655_v60 = vmax.f32 %v623_v57, 0.0 }
  0xff   : > { %v673_v1 = vmin.f32 %v641_v58, 6.0  ;;  %v689_v2 = vmin.f32 %v657_v59, 6.0  ;;  %v671_v3 = vmin.f32 %v639_v20, 6.0 }
 0x100   : > { %v687_v4 = vmin.f32 %v655_v60, 6.0 }
 0x101   : > { %v1056_v5 = vpack.c.bf16 %v673_v1, %v672_v61  ;;  %v1096_v6 = vpack.c.bf16 %v689_v2, %v688_v62  ;;  %v1051_v7 = vpack.c.bf16 %v671_v3, %v670_v63 }
 0x102   : > { %v1091_v22 = vpack.c.bf16 %v687_v4, %v686_v0 }
 0x103   : > { %1104 = vst [vmem:[%s1334_s8 + $0x38] sm:$0xff] %v1056_v5   ;;  %1112 = vst [vmem:[%s1334_s8 + $0x78] sm:$0xff] %v1096_v6  }
 0x104   : > { %1103 = vst [vmem:[%s1334_s8 + $0x30] sm:$0xff] %v1051_v7   ;;  %1111 = vst [vmem:[%s1334_s8 + $0x70] sm:$0xff] %v1091_v22  }
 0x105 PF: > { %s14_s15 = sadd.s32 1, %s1211_s15  }
 0x106   : > { %p11_p4 = scmp.ge.s32.totalorder %s14_s15, 4  }
 0x108   :  { %13 = sbr.rel (!%p11_p4) target bundleno = 1 (0x1), region = 66 }

// kernel: mobilenetv2_forward.7
= control target key start
LH: loop header
LB: loop body
LE: loop exit
PB: predicated region body
PF: predicated region fallthrough
CT: control target
= control target key end

     0   :  { %s3014_s13 = smov 0   ;;  %s4302_s0 = inlined_call_operand.vmem [shape: bf16[2,16,16,128], index: 0, kind: input, shape index: {}]   ;;  %s4303_s1 = inlined_call_operand.vmem [shape: bf16[128,32], index: 1, kind: input, shape index: {}]   ;;  %s4304_s2 = inlined_call_operand.vmem [shape: f32[1,32], index: 2, kind: input, shape index: {}]   ;;  %s4305_s3 = inlined_call_operand.vmem [shape: f32[1,32], index: 3, kind: input, shape index: {}]   ;;  %s4306_s4 = inlined_call_operand.vmem [shape: f32[9,1,32], index: 4, kind: input, shape index: {}]   ;;  %s4307_s5 = inlined_call_operand.vmem [shape: f32[1,32], index: 5, kind: input, shape index: {}]   ;;  %s4308_s6 = inlined_call_operand.vmem [shape: f32[1,32], index: 6, kind: input, shape index: {}]   ;;  %s4309_s7 = inlined_call_operand.vmem [shape: bf16[32,128], index: 7, kind: input, shape index: {}]   ;;  %s4310_s8 = inlined_call_operand.vmem [shape: f32[1,128], index: 8, kind: input, shape index: {}]   ;;  %s4311_s9 = inlined_call_operand.vmem [shape: f32[1,128], index: 9, kind: input, shape index: {}]   ;;  %s4312_s10 = inlined_call_operand.vmem [shape: bf16[2,16,16,128], index: 10, kind: output, shape index: {}]  }
   0x1 LB: > { %s2549_s14 = sadd.s32 4294967295, %s2956_s13   ;;  %p2553_p0 = scmp.ge.s32.totalorder %s2956_s13, 1  ;;  %s2956_s13 = sphi %s3014_s13, %s20_s13  }
   0x2   : > { %p312_p1 = scmp.lt.s32.totalorder %s2956_s13, 3 }
   0x4   : > { %p313_p2 = pnand %p2553_p0, %p312_p1 }
   0x5   : > { %p350_p3 = scmp.lt.s32.totalorder (!%p313_p2), %s2549_s14, 1 }
   0x6   : > { %316 = sbr.rel (%p313_p2) target bundleno = 668 (0x29c), region = 60 }
   0xb   : > { %v2913_v0 = vld [vmem:[%s4303_s1 + $0x38] sm:$0xff]   ;;  %v2914_v1 = vld [vmem:[%s4303_s1 + $0x30] sm:$0xff]   ;;  %vm379_vm0 = vcmask 261120   ;;  %s4314_s14 = smov (!%p350_p3, %s2549_s14), 1  ;;  %v2915_v2 = vld [vmem:[%s4303_s1 + $0x28] sm:$0xff]   ;;  %v2958_v3 = vmov 0.0  }
   0xc   : > { %2820 = vmatprep.subr.bf16.mxu0 %v2913_v0  ;;  %s2649_s21 = sshll.u32 %s4314_s14, 7  ;;  %387 = vst.msk [vmem:[#allocation2 + $0x30] sm:$0xff] %vm379_vm0, %v2958_v3  ;;  %388 = vst.msk [vmem:[#allocation2 + $0x38] sm:$0xff] %vm379_vm0, %v2958_v3  ;;  %v2916_v4 = vld [vmem:[%s4303_s1 + $0x20] sm:$0xff]   ;;  %v2917_v6 = vld [vmem:[%s4303_s1 + $0x18] sm:$0xff]   ;;  %vm382_vm1 = vcmask 254976  }
   0xd   : > { %2821 = vmatpush3.bf16.msra.mxu0 %v2913_v0  ;;  %380 = vst.msk [vmem:[#allocation2] sm:$0xff] %vm379_vm0, %v2958_v3  ;;  %381 = vst.msk [vmem:[#allocation2 + $0x8] sm:$0xff] %vm379_vm0, %v2958_v3  ;;  %s3111_s24 = scalar_lea.vmem %s4302_s0, %s2649_s21  ;;  %v2918_v7 = vld [vmem:[%s4303_s1 + $0x10] sm:$0xff]   ;;  %v2919_v8 = vld [vmem:[%s4303_s1 + $0x8] sm:$0xff]   ;;  %s4223_s25 = scalar_lea.vmem %s4312_s10, %s2649_s21 }
   0xe   : > { %2822 = vmatprep.subr.bf16.mxu0 %v2914_v1  ;;  %384 = vst.msk [vmem:[#allocation2 + $0x18] sm:$0xff] %vm379_vm0, %v2958_v3  ;;  %385 = vst.msk [vmem:[#allocation2 + $0x20] sm:$0xff] %vm379_vm0, %v2958_v3  ;;  %v2921_v5 = vld [vmem:[%s3111_s24] sm:$0xff]   ;;  %v2922_v10 = vld [vmem:[%s3111_s24 + $0x8] sm:$0xff]  }
   0xf   : > { %390 = vst.msk [vmem:[#allocation2 + $0x48] sm:$0xff] %vm379_vm0, %v2958_v3  ;;  %391 = vst.msk [vmem:[#allocation2 + $0x50] sm:$0xff] %vm379_vm0, %v2958_v3  ;;  %2836 = vmatprep.mubr.bf16.mxu0 %v2921_v5  ;;  %v2920_v9 = vld [vmem:[%s4303_s1] sm:$0xff]   ;;  %v2923_v11 = vld [vmem:[%s3111_s24 + $0x10] sm:$0xff]  }
  0x10   : > { %393 = vst.msk [vmem:[#allocation2 + $0x60] sm:$0xff] %vm379_vm0, %v2958_v3  ;;  %394 = vst.msk [vmem:[#allocation2 + $0x68] sm:$0xff] %vm379_vm0, %v2958_v3  ;;  %v2924_v12 = vld [vmem:[%s3111_s24 + $0x18] sm:$0xff]   ;;  %v2925_v13 = vld [vmem:[%s3111_s24 + $0x20] sm:$0xff]  }
  0x11   : > { %396 = vst.msk [vmem:[#allocation2 + $0x78] sm:$0xff] %vm379_vm0, %v2958_v3  ;;  %397 = vst.msk [vmem:[#allocation2 + $0x80] sm:$0xff] %vm379_vm0, %v2958_v3  ;;  %2823 = vmatpush3.bf16.msra.mxu0 %v2914_v1  ;;  %v2926_v14 = vld [vmem:[%s3111_s24 + $0x28] sm:$0xff]   ;;  %v2927_v15 = vld [vmem:[%s3111_s24 + $0x30] sm:$0xff]  }
  0x12   : > { %399 = vst.msk [vmem:[#allocation2 + $0x90] sm:$0xff] %vm379_vm0, %v2958_v3  ;;  %400 = vst.msk [vmem:[#allocation2 + $0x98] sm:$0xff] %vm379_vm0, %v2958_v3  ;;  %2824 = vmatprep.subr.bf16.mxu0 %v2915_v2  ;;  %v2928_v16 = vld [vmem:[%s3111_s24 + $0x38] sm:$0xff]   ;;  %v2929_v17 = vld [vmem:[%s3111_s24 + $0x40] sm:$0xff]  }
  0x13   : > { %402 = vst.msk [vmem:[#allocation2 + $0xa8] sm:$0xff] %vm379_vm0, %v2958_v3  ;;  %403 = vst.msk [vmem:[#allocation2 + $0xb0] sm:$0xff] %vm379_vm0, %v2958_v3  ;;  %v2930_v18 = vld [vmem:[%s3111_s24 + $0x48] sm:$0xff]   ;;  %v2931_v19 = vld [vmem:[%s3111_s24 + $0x50] sm:$0xff]  }
  0x14   : > { %405 = vst.msk [vmem:[#allocation2 + $0xc0] sm:$0xff] %vm379_vm0, %v2958_v3  ;;  %406 = vst.msk [vmem:[#allocation2 + $0xc8] sm:$0xff] %vm379_vm0, %v2958_v3  ;;  %v2932_v20 = vld [vmem:[%s3111_s24 + $0x58] sm:$0xff]   ;;  %v2933_v21 = vld [vmem:[%s3111_s24 + $0x60] sm:$0xff]  }
  0x15   : > { %408 = vst.msk [vmem:[#allocation2 + $0xd8] sm:$0xff] %vm379_vm0, %v2958_v3  ;;  %409 = vst.msk [vmem:[#allocation2 + $0xe0] sm:$0xff] %vm379_vm0, %v2958_v3  ;;  %2825 = vmatpush3.bf16.msra.mxu0 %v2915_v2  ;;  %v2934_v22 = vld [vmem:[%s3111_s24 + $0x68] sm:$0xff]   ;;  %v2935_v23 = vld [vmem:[%s3111_s24 + $0x70] sm:$0xff]  }
  0x16   : > { %411 = vst.msk [vmem:[#allocation2 + $0xf0] sm:$0xff] %vm379_vm0, %v2958_v3  ;;  %412 = vst.msk [vmem:[#allocation2 + $0xf8] sm:$0xff] %vm379_vm0, %v2958_v3  ;;  %2826 = vmatprep.subr.bf16.mxu0 %v2916_v4  ;;  %v2936_v24 = vld [vmem:[%s3111_s24 + $0x78] sm:$0xff]   ;;  %v2937_v25 = vld [vmem:[%s4309_s7 + $0x8] sm:$0xff]  }
  0x17   : > { %414 = vst.msk [vmem:[#allocation2 + $0x108] sm:$0xff] %vm379_vm0, %v2958_v3  ;;  %415 = vst.msk [vmem:[#allocation2 + $0x110] sm:$0xff] %vm379_vm0, %v2958_v3  ;;  %2868 = vmatprep.subr.bf16.mxu1 %v2937_v25  ;;  %v2938_v26 = vld [vmem:[%s4309_s7] sm:$0xff]   ;;  %v955_v41 = vld [vmem:[#allocation2 + $0x8] sm:$0xff] }
  0x18   : > { %417 = vst.msk [vmem:[#allocation2 + $0x120] sm:$0xff] %vm379_vm0, %v2958_v3  ;;  %418 = vst.msk [vmem:[#allocation2 + $0x128] sm:$0xff] %vm379_vm0, %v2958_v3  ;;  %2869 = vmatpush3.bf16.msra.mxu1 %v2937_v25  ;;  %v3189_v27 = vld [vmem:[%s4304_s2] ss:$0 sm:$0xff]  ;;  %v3207_v36 = vld [vmem:[%s4306_s4 + $0x1] ss:$0 sm:$0xff] }
  0x19   : > { %420 = vst.msk [vmem:[#allocation2 + $0x138] sm:$0xff] %vm379_vm0, %v2958_v3  ;;  %421 = vst.msk [vmem:[#allocation2 + $0x140] sm:$0xff] %vm379_vm0, %v2958_v3  ;;  %2827 = vmatpush3.bf16.msra.mxu0 %v2916_v4  ;;  %2870 = vmatprep.subr.bf16.mxu1 %v2938_v26  ;;  %v3194_v28 = vld [vmem:[%s4305_s3] ss:$0 sm:$0xff]  ;;  %v1056_v42 = vld [vmem:[#allocation2 + $0x1] sm:$0xff] }
  0x1a   : > { %423 = vst.msk [vmem:[#allocation2 + $0x150] sm:$0xff] %vm379_vm0, %v2958_v3  ;;  %424 = vst.msk [vmem:[#allocation2 + $0x158] sm:$0xff] %vm379_vm0, %v2958_v3  ;;  %2828 = vmatprep.subr.bf16.mxu0 %v2917_v6  ;;  %v3202_v35 = vld [vmem:[%s4306_s4] ss:$0 sm:$0xff]  ;;  %v1094_v52 = vmul.f32 %v3207_v36, %v1056_v42  ;;  %v3223_v58 = vld [vmem:[%s4306_s4 + $0x2] ss:$0 sm:$0xff] }
  0x1b   : > { %426 = vst.msk [vmem:[#allocation2 + $0x168] sm:$0xff] %vm379_vm0, %v2958_v3  ;;  %427 = vst.msk [vmem:[#allocation2 + $0x170] sm:$0xff] %vm379_vm0, %v2958_v3  ;;  %v954_v37 = vld [vmem:[#allocation2] sm:$0xff]  ;;  %v993_v51 = vmul.f32 %v3202_v35, %v955_v41 }
  0x1c   : > { %429 = vst.msk [vmem:[#allocation2 + $0x180] sm:$0xff] %vm379_vm0, %v2958_v3  ;;  %430 = vst.msk [vmem:[#allocation2 + $0x188] sm:$0xff] %vm379_vm0, %v2958_v3  ;;  %2871 = vmatpush3.bf16.msra.mxu1 %v2938_v26  ;;  %v992_v50 = vmul.f32 %v3202_v35, %v954_v37  ;;  %v1158_v59 = vld [vmem:[#allocation2 + $0x2] sm:$0xff] }
  0x1d   : > { %432 = vst.msk [vmem:[#allocation2 + $0x198] sm:$0xff] %vm379_vm0, %v2958_v3  ;;  %433 = vst.msk [vmem:[#allocation2 + $0x1a0] sm:$0xff] %vm379_vm0, %v2958_v3  ;;  %2829 = vmatpush3.bf16.msra.mxu0 %v2917_v6  ;;  %v1196_v5 = vmul.f32 %v3223_v58, %v1158_v59 }
  0x1e   : > { %2830 = vmatprep.subr.bf16.mxu0 %v2918_v7  ;;  %389 = vst.msk [vmem:[#allocation2 + $0x40] sm:$0x3] %vm382_vm1, %v2958_v3  ;;  %383 = vst.msk [vmem:[#allocation2 + $0x10] sm:$0x3] %vm382_vm1, %v2958_v3 }
  0x1f   : > { %386 = vst.msk [vmem:[#allocation2 + $0x28] sm:$0x3] %vm382_vm1, %v2958_v3  ;;  %392 = vst.msk [vmem:[#allocation2 + $0x58] sm:$0x3] %vm382_vm1, %v2958_v3 }
  0x20   : > { %395 = vst.msk [vmem:[#allocation2 + $0x70] sm:$0x3] %vm382_vm1, %v2958_v3  ;;  %398 = vst.msk [vmem:[#allocation2 + $0x88] sm:$0x3] %vm382_vm1, %v2958_v3 }
  0x21   : > { %2831 = vmatpush3.bf16.msra.mxu0 %v2918_v7  ;;  %401 = vst.msk [vmem:[#allocation2 + $0xa0] sm:$0x3] %vm382_vm1, %v2958_v3  ;;  %404 = vst.msk [vmem:[#allocation2 + $0xb8] sm:$0x3] %vm382_vm1, %v2958_v3 }
  0x22   : > { %2832 = vmatprep.subr.bf16.mxu0 %v2919_v8  ;;  %407 = vst.msk [vmem:[#allocation2 + $0xd0] sm:$0x3] %vm382_vm1, %v2958_v3  ;;  %410 = vst.msk [vmem:[#allocation2 + $0xe8] sm:$0x3] %vm382_vm1, %v2958_v3 }
  0x23   : > { %413 = vst.msk [vmem:[#allocation2 + $0x100] sm:$0x3] %vm382_vm1, %v2958_v3  ;;  %416 = vst.msk [vmem:[#allocation2 + $0x118] sm:$0x3] %vm382_vm1, %v2958_v3 }
  0x24   : > { %419 = vst.msk [vmem:[#allocation2 + $0x130] sm:$0x3] %vm382_vm1, %v2958_v3  ;;  %422 = vst.msk [vmem:[#allocation2 + $0x148] sm:$0x3] %vm382_vm1, %v2958_v3 }
  0x25   : > { %2833 = vmatpush3.bf16.msra.mxu0 %v2919_v8  ;;  %425 = vst.msk [vmem:[#allocation2 + $0x160] sm:$0x3] %vm382_vm1, %v2958_v3  ;;  %428 = vst.msk [vmem:[#allocation2 + $0x178] sm:$0x3] %vm382_vm1, %v2958_v3  ;;  %v1057_v43 = vld [vmem:[#allocation2 + $0x9] sm:$0xff] }
  0x26   : > { %2834 = vmatprep.subr.bf16.mxu0 %v2920_v9  ;;  %431 = vst.msk [vmem:[#allocation2 + $0x190] sm:$0x3] %vm382_vm1, %v2958_v3  ;;  %434 = vst.msk [vmem:[#allocation2 + $0x1a8] sm:$0x3] %vm382_vm1, %v2958_v3  ;;  %v1095_v53 = vmul.f32 %v3207_v36, %v1057_v43  ;;  %v1159_v60 = vld [vmem:[#allocation2 + $0xa] sm:$0xff]  ;;  %v1126_v3 = vadd.f32 %v1094_v52, %v992_v50 }
  0x27   : > { %v1197_v6 = vmul.f32 %v3223_v58, %v1159_v60 }
  0x28   : > { %v1127_v4 = vadd.f32 %v1095_v53, %v993_v51 }
  0x29   : > { %2835 = vmatpush3.bf16.msra.mxu0 %v2920_v9 }
  0x2c   : > { %2837 = vmatmul.mubr.bf16.vlgmr.msra.gmra.mxu0 %v2922_v10 }
  0x2d   : > { %2840 = vmatprep.mubr.bf16.mxu0 %v2923_v11 }
  0x34   : > { %2841 = vmatmul.mubr.bf16.gmra.mxu0 %v2924_v12  ;;  %v3236_v12 = vld [vmem:[%s4306_s4 + $0x3] ss:$0 sm:$0xff] }
  0x35   : > { %2844 = vmatprep.mubr.bf16.mxu0 %v2925_v13  ;;  %v3241_v13 = vld [vmem:[%s4306_s4 + $0x4] ss:$0 sm:$0xff] }
  0x3c   : > { %2845 = vmatmul.mubr.bf16.gmra.mxu0 %v2926_v14 }
  0x3d   : > { %2848 = vmatprep.mubr.bf16.mxu0 %v2927_v15 }
  0x44   : > { %2849 = vmatmul.mubr.bf16.gmra.mxu0 %v2928_v16 }
  0x45   : > { %2852 = vmatprep.mubr.bf16.mxu0 %v2929_v17 }
  0x4c   : > { %2853 = vmatmul.mubr.bf16.gmra.mxu0 %v2930_v18  ;;  %v3249_v18 = vld [vmem:[%s4306_s4 + $0x6] ss:$0 sm:$0xff] }
  0x4d   : > { %2856 = vmatprep.mubr.bf16.mxu0 %v2931_v19  ;;  %v3254_v19 = vld [vmem:[%s4306_s4 + $0x7] ss:$0 sm:$0xff] }
  0x54   : > { %2857 = vmatmul.mubr.bf16.gmra.mxu0 %v2932_v20 }
  0x55   : > { %2860 = vmatprep.mubr.bf16.mxu0 %v2933_v21  ;;  %v1228_v21 = vadd.f32 %v1196_v5, %v1126_v3 }
  0x5c   : > { %2861 = vmatmul.mubr.bf16.gmra.mxu0 %v2934_v22  ;;  %v1229_v22 = vadd.f32 %v1197_v6, %v1127_v4  ;;  %v3312_v6 = vld [vmem:[%s4306_s4 + $0x5] ss:$0 sm:$0xff] }
  0x5d   : > { %2864 = vmatprep.mubr.bf16.mxu0 %v2935_v23 }
  0x64   : > { %2865 = vmatmul.mubr.bf16.gmra.mxu0 %v2936_v24 }
  0xec   : > { %v2838_v29 = vpop.f32.mrf.mxu0 }
  0xed   : > { %v780_v30 = vmul.f32 %v2838_v29, %v3189_v27 }
  0xee   : > { %v645_v31 = vpop.f32.mrf.mxu0 }
  0xef   : > { %v818_v32 = vadd.f32 %v3194_v28, %v780_v30  ;;  %v778_v33 = vmul.f32 %v3189_v27, %v645_v31 }
  0xf0   : > { %v2839_v34 = vpop.f32.mrf.mxu0 }
  0xf1   : > { %v850_v38 = vmax.f32 %v818_v32, 0.0  ;;  %v816_v39 = vadd.f32 %v3194_v28, %v778_v33  ;;  %v781_v40 = vmul.f32 %v2839_v34, %v3189_v27 }
  0xf2   : > { %v648_v44 = vpop.f32.mrf.mxu0 }
  0xf3   : > { %v882_v45 = vmin.f32 %v850_v38, 6.0  ;;  %v848_v46 = vmax.f32 %v816_v39, 0.0  ;;  %v819_v47 = vadd.f32 %v3194_v28, %v781_v40  ;;  %v779_v48 = vmul.f32 %v3189_v27, %v648_v44  ;;  %v3283_v44 = vld [vmem:[%s4306_s4 + $0x8] ss:$0 sm:$0xff] }
  0xf4   : > { %v2842_v49 = vpop.f32.mrf.mxu0 }
  0xf5   : > { %915 = vst.msk [vmem:[#allocation2 + $0x31] sm:$0xff] %vm379_vm0, %v882_v45  ;;  %v880_v54 = vmin.f32 %v848_v46, 6.0  ;;  %v851_v55 = vmax.f32 %v819_v47, 0.0  ;;  %v817_v56 = vadd.f32 %v3194_v28, %v779_v48  ;;  %v784_v57 = vmul.f32 %v2842_v49, %v3189_v27 }
  0xf6   : > { %v661_v61 = vpop.f32.mrf.mxu0 }
  0xf7   : > { %913 = vst.msk [vmem:[#allocation2 + $0x19] sm:$0xff] %vm379_vm0, %v880_v54  ;;  %v883_v62 = vmin.f32 %v851_v55, 6.0  ;;  %v849_v63 = vmax.f32 %v817_v56, 0.0  ;;  %v822_v0 = vadd.f32 %v3194_v28, %v784_v57  ;;  %v782_v1 = vmul.f32 %v3189_v27, %v661_v61 }
  0xf8   : > { %v2843_v2 = vpop.f32.mrf.mxu0 }
  0xf9   : > { %916 = vst.msk [vmem:[#allocation2 + $0x39] sm:$0xff] %vm379_vm0, %v883_v62  ;;  %v881_v7 = vmin.f32 %v849_v63, 6.0  ;;  %v854_v8 = vmax.f32 %v822_v0, 0.0  ;;  %v820_v9 = vadd.f32 %v3194_v28, %v782_v1  ;;  %v785_v10 = vmul.f32 %v2843_v2, %v3189_v27 }
  0xfa   : > { %v664_v11 = vpop.f32.mrf.mxu0 }
  0xfb   : > { %914 = vst.msk [vmem:[#allocation2 + $0x21] sm:$0xff] %vm379_vm0, %v881_v7  ;;  %v886_v14 = vmin.f32 %v854_v8, 6.0  ;;  %v852_v15 = vmax.f32 %v820_v9, 0.0  ;;  %v823_v16 = vadd.f32 %v3194_v28, %v785_v10  ;;  %v783_v17 = vmul.f32 %v3189_v27, %v664_v11 }
  0xfc   : > { %v2846_v20 = vpop.f32.mrf.mxu0  ;;  %v3256_v23 = vld [vmem:[#allocation2 + $0x30] sm:$0xff] }
  0xfd   : > { %v3258_v24 = vld [vmem:[#allocation2 + $0x31] sm:$0xff]  ;;  %919 = vst.msk [vmem:[#allocation2 + $0x61] sm:$0xff] %vm379_vm0, %v886_v14  ;;  %v884_v25 = vmin.f32 %v852_v15, 6.0  ;;  %v855_v26 = vmax.f32 %v823_v16, 0.0  ;;  %v821_v29 = vadd.f32 %v3194_v28, %v783_v17  ;;  %v788_v30 = vmul.f32 %v2846_v20, %v3189_v27 }
  0xfe   : > { %v677_v31 = vpop.f32.mrf.mxu0  ;;  %v1260_v32 = vld [vmem:[#allocation2 + $0x18] sm:$0xff]  ;;  %v1605_v34 = vmul.f32 %v3249_v18, %v3256_v23  ;;  %v3267_v37 = vmul.f32 %v3254_v19, %v3258_v24  ;;  %v3271_v38 = vmul.f32 %v3236_v12, %v3256_v23  ;;  %v3275_v39 = vmul.f32 %v3241_v13, %v3258_v24 }
  0xff   : > { %v1362_v33 = vld [vmem:[#allocation2 + $0x19] sm:$0xff]  ;;  %917 = vst.msk [vmem:[#allocation2 + $0x49] sm:$0xff] %vm379_vm0, %v884_v25  ;;  %v887_v40 = vmin.f32 %v855_v26, 6.0  ;;  %v853_v41 = vmax.f32 %v821_v29, 0.0  ;;  %v826_v42 = vadd.f32 %v3194_v28, %v788_v30  ;;  %v786_v43 = vmul.f32 %v3189_v27, %v677_v31 }
 0x100   : > { %v2847_v45 = vpop.f32.mrf.mxu0  ;;  %v1298_v46 = vmul.f32 %v3236_v12, %v1260_v32  ;;  %v1400_v47 = vmul.f32 %v3241_v13, %v1362_v33  ;;  %v3287_v48 = vld [vmem:[#allocation2 + $0x38] sm:$0xff]  ;;  %v994_v51 = vmul.f32 %v3202_v35, %v1260_v32  ;;  %v1096_v52 = vmul.f32 %v3207_v36, %v1362_v33 }
 0x101   : > { %v3289_v49 = vld [vmem:[#allocation2 + $0x39] sm:$0xff]  ;;  %920 = vst.msk [vmem:[#allocation2 + $0x69] sm:$0xff] %vm379_vm0, %v887_v40  ;;  %v885_v53 = vmin.f32 %v853_v41, 6.0  ;;  %v858_v54 = vmax.f32 %v826_v42, 0.0  ;;  %v824_v55 = vadd.f32 %v3194_v28, %v786_v43  ;;  %v789_v56 = vmul.f32 %v2847_v45, %v3189_v27 }
 0x102   : > { %v3291_v50 = vld [vmem:[#allocation2 + $0x32] sm:$0xff]  ;;  %v680_v57 = vpop.f32.mrf.mxu0  ;;  %v1261_v59 = vld [vmem:[#allocation2 + $0x20] sm:$0xff]  ;;  %v1330_v60 = vadd.f32 %v1298_v46, %v1228_v21  ;;  %v1606_v63 = vmul.f32 %v3249_v18, %v3287_v48  ;;  %v3302_v0 = vmul.f32 %v3254_v19, %v3289_v49 }
 0x103   : > { %v1363_v61 = vld [vmem:[#allocation2 + $0x21] sm:$0xff]  ;;  %v1809_v1 = vmul.f32 %v3283_v44, %v3291_v50  ;;  %918 = vst.msk [vmem:[#allocation2 + $0x51] sm:$0xff] %vm379_vm0, %v885_v53  ;;  %v890_v2 = vmin.f32 %v858_v54, 6.0  ;;  %v856_v3 = vmax.f32 %v824_v55, 0.0  ;;  %v827_v4 = vadd.f32 %v3194_v28, %v789_v56 }
 0x104   : > { %v1464_v62 = vld [vmem:[#allocation2 + $0x1a] sm:$0xff]  ;;  %v787_v5 = vmul.f32 %v3189_v27, %v680_v57  ;;  %v1465_v7 = vld [vmem:[#allocation2 + $0x22] sm:$0xff]  ;;  %v2850_v9 = vpop.f32.mrf.mxu0  ;;  %v1299_v10 = vmul.f32 %v3236_v12, %v1261_v59  ;;  %v1401_v11 = vmul.f32 %v3241_v13, %v1363_v61  ;;  %v1432_v14 = vadd.f32 %v1400_v47, %v1330_v60 }
 0x105   : > { %v3314_v8 = vld [vmem:[#allocation2 + $0x3a] sm:$0xff]  ;;  %v1502_v15 = vmul.f32 %v3312_v6, %v1464_v62  ;;  %923 = vst.msk [vmem:[#allocation2 + $0x91] sm:$0xff] %vm379_vm0, %v890_v2  ;;  %v888_v16 = vmin.f32 %v856_v3, 6.0  ;;  %v859_v17 = vmax.f32 %v827_v4, 0.0  ;;  %v792_v21 = vmul.f32 %v2850_v9, %v3189_v27 }
 0x106   : > { %v825_v20 = vadd.f32 %v3194_v28, %v787_v5  ;;  %v693_v25 = vpop.f32.mrf.mxu0  ;;  %v1331_v26 = vadd.f32 %v1299_v10, %v1229_v22  ;;  %v1503_v29 = vmul.f32 %v3312_v6, %v1465_v7  ;;  %v1810_v31 = vmul.f32 %v3283_v44, %v3314_v8  ;;  %v3340_v5 = vld [vmem:[%s4307_s5] ss:$0 sm:$0xff] }
 0x107   : > { %v1534_v30 = vadd.f32 %v1502_v15, %v1432_v14  ;;  %921 = vst.msk [vmem:[#allocation2 + $0x79] sm:$0xff] %vm379_vm0, %v888_v16  ;;  %v891_v32 = vmin.f32 %v859_v17, 6.0  ;;  %v830_v40 = vadd.f32 %v3194_v28, %v792_v21  ;;  %v790_v41 = vmul.f32 %v3189_v27, %v693_v25  ;;  %v3350_v17 = vld [vmem:[%s4308_s6] ss:$0 sm:$0xff] }
 0x108   : > { %v857_v33 = vmax.f32 %v825_v20, 0.0  ;;  %v2851_v42 = vpop.f32.mrf.mxu0  ;;  %v1433_v43 = vadd.f32 %v1401_v11, %v1331_v26  ;;  %v995_v46 = vmul.f32 %v3202_v35, %v1261_v59  ;;  %v1097_v22 = vmul.f32 %v3207_v36, %v1363_v61 }
 0x109   : > { %v1637_v45 = vadd.f32 %v1605_v34, %v1534_v30  ;;  %924 = vst.msk [vmem:[#allocation2 + $0x99] sm:$0xff] %vm379_vm0, %v891_v32  ;;  %v862_v53 = vmax.f32 %v830_v40, 0.0  ;;  %v828_v54 = vadd.f32 %v3194_v28, %v790_v41  ;;  %v793_v55 = vmul.f32 %v2851_v42, %v3189_v27 }
 0x10a   : > { %v889_v47 = vmin.f32 %v857_v33, 6.0  ;;  %v696_v56 = vpop.f32.mrf.mxu0  ;;  %v1535_v57 = vadd.f32 %v1503_v29, %v1433_v43  ;;  %v1128_v2 = vadd.f32 %v1096_v52, %v994_v51  ;;  %v1129_v3 = vadd.f32 %v1097_v22, %v995_v46 }
 0x10b   : > { %v1739_v60 = vadd.f32 %v3267_v37, %v1637_v45  ;;  %v894_v34 = vmin.f32 %v862_v53, 6.0  ;;  %v860_v59 = vmax.f32 %v828_v54, 0.0  ;;  %v831_v61 = vadd.f32 %v3194_v28, %v793_v55 }
 0x10c   : > { %922 = vst.msk [vmem:[#allocation2 + $0x81] sm:$0xff] %vm379_vm0, %v889_v47  ;;  %v791_v4 = vmul.f32 %v3189_v27, %v696_v56  ;;  %v2854_v9 = vpop.f32.mrf.mxu0  ;;  %v1638_v10 = vadd.f32 %v1606_v63, %v1535_v57  ;;  %v1198_v37 = vmul.f32 %v3223_v58, %v1464_v62  ;;  %v1199_v51 = vmul.f32 %v3223_v58, %v1465_v7  ;;  %v3370_v57 = vld [vmem:[#allocation2 + $0x48] sm:$0xff] }
 0x10d   : > { %v1841_v11 = vadd.f32 %v1809_v1, %v1739_v60  ;;  %927 = vst.msk [vmem:[#allocation2 + $0xc1] sm:$0xff] %vm379_vm0, %v894_v34  ;;  %v892_v52 = vmin.f32 %v860_v59, 6.0  ;;  %v863_v14 = vmax.f32 %v831_v61, 0.0  ;;  %v796_v16 = vmul.f32 %v2854_v9, %v3189_v27 }
 0x10e   : > { %v829_v15 = vadd.f32 %v3194_v28, %v791_v4  ;;  %v709_v20 = vpop.f32.mrf.mxu0  ;;  %v1740_v63 = vadd.f32 %v3302_v0, %v1638_v10  ;;  %v1230_v1 = vadd.f32 %v1198_v37, %v1128_v2  ;;  %v1231_v7 = vadd.f32 %v1199_v51, %v1129_v3 }
 0x10f   : > { %v1880_v62 = vmul.f32 %v3340_v5, %v1841_v11  ;;  %925 = vst.msk [vmem:[#allocation2 + $0xa9] sm:$0xff] %vm379_vm0, %v892_v52  ;;  %v895_v21 = vmin.f32 %v863_v14, 6.0  ;;  %v834_v26 = vadd.f32 %v3194_v28, %v796_v16  ;;  %v794_v29 = vmul.f32 %v3189_v27, %v709_v20  ;;  %v3377_v11 = vld [vmem:[#allocation2 + $0x50] sm:$0xff] }
 0x110   : > { %v861_v25 = vmax.f32 %v829_v15, 0.0  ;;  %v2855_v30 = vpop.f32.mrf.mxu0  ;;  %v1842_v32 = vadd.f32 %v1810_v31, %v1740_v63  ;;  %v1301_v40 = vmul.f32 %v3236_v12, %v3287_v48  ;;  %v1332_v0 = vadd.f32 %v3271_v38, %v1230_v1 }
 0x111   : > { %v1919_v33 = vadd.f32 %v3350_v17, %v1880_v62  ;;  %928 = vst.msk [vmem:[#allocation2 + $0xc9] sm:$0xff] %vm379_vm0, %v895_v21  ;;  %v866_v42 = vmax.f32 %v834_v26, 0.0  ;;  %v832_v43 = vadd.f32 %v3194_v28, %v794_v29  ;;  %v797_v45 = vmul.f32 %v2855_v30, %v3189_v27  ;;  %v3388_v62 = vld [vmem:[#allocation2 + $0x49] sm:$0xff] }
 0x112   : > { %v893_v41 = vmin.f32 %v861_v25, 6.0  ;;  %v712_v46 = vpop.f32.mrf.mxu0  ;;  %v1881_v22 = vmul.f32 %v3340_v5, %v1842_v32  ;;  %v1333_v31 = vadd.f32 %v1301_v40, %v1231_v7  ;;  %v1403_v53 = vmul.f32 %v3241_v13, %v3289_v49  ;;  %v3395_v40 = vld [vmem:[#allocation2 + $0x51] sm:$0xff] }
 0x113   : > { %v1951_v47 = vmax.f32 %v1919_v33, 0.0  ;;  %v898_v54 = vmin.f32 %v866_v42, 6.0  ;;  %v864_v38 = vmax.f32 %v832_v43, 0.0  ;;  %v835_v55 = vadd.f32 %v3194_v28, %v797_v45 }
 0x114   : > { %926 = vst.msk [vmem:[#allocation2 + $0xb1] sm:$0xff] %vm379_vm0, %v893_v41  ;;  %v795_v56 = vmul.f32 %v3189_v27, %v712_v46  ;;  %v2858_v60 = vpop.f32.mrf.mxu0  ;;  %v1920_v2 = vadd.f32 %v3350_v17, %v1881_v22  ;;  %v1434_v34 = vadd.f32 %v3275_v39, %v1332_v0  ;;  %v1435_v59 = vadd.f32 %v1403_v53, %v1333_v31  ;;  %v3397_v0 = vld [vmem:[#allocation2 + $0x4a] sm:$0xff]  ;;  %v3399_v41 = vld [vmem:[#allocation2 + $0x52] sm:$0xff] }
 0x115   : > { %v1983_v3 = vmin.f32 %v1951_v47, 6.0  ;;  %931 = vst.msk [vmem:[#allocation2 + $0xf1] sm:$0xff] %vm379_vm0, %v898_v54  ;;  %v896_v61 = vmin.f32 %v864_v38, 6.0  ;;  %v867_v4 = vmax.f32 %v835_v55, 0.0  ;;  %v800_v10 = vmul.f32 %v2858_v60, %v3189_v27 }
 0x116   : > { %v833_v9 = vadd.f32 %v3194_v28, %v795_v56  ;;  %v725_v37 = vpop.f32.mrf.mxu0  ;;  %v1952_v51 = vmax.f32 %v1920_v2, 0.0  ;;  %v1504_v52 = vmul.f32 %v3312_v6, %v3291_v50  ;;  %v1505_v14 = vmul.f32 %v3312_v6, %v3314_v8 }
 0x117   : > { %v1607_v39 = vmul.f32 %v3249_v18, %v3370_v57  ;;  %929 = vst.msk [vmem:[#allocation2 + $0xd9] sm:$0xff] %vm379_vm0, %v896_v61  ;;  %v899_v15 = vmin.f32 %v867_v4, 6.0  ;;  %v838_v20 = vadd.f32 %v3194_v28, %v800_v10  ;;  %v798_v63 = vmul.f32 %v3189_v27, %v725_v37 }
 0x118   : > { %v865_v16 = vmax.f32 %v833_v9, 0.0  ;;  %v2859_v1 = vpop.f32.mrf.mxu0  ;;  %v1984_v7 = vmin.f32 %v1952_v51, 6.0  ;;  %v1536_v21 = vadd.f32 %v1504_v52, %v1434_v34  ;;  %v1537_v25 = vadd.f32 %v1505_v14, %v1435_v59 }
 0x119   : > { %v1608_v26 = vmul.f32 %v3249_v18, %v3377_v11  ;;  %932 = vst.msk [vmem:[#allocation2 + $0xf9] sm:$0xff] %vm379_vm0, %v899_v15  ;;  %v870_v30 = vmax.f32 %v838_v20, 0.0  ;;  %v836_v32 = vadd.f32 %v3194_v28, %v798_v63  ;;  %v801_v33 = vmul.f32 %v2859_v1, %v3189_v27 }
 0x11a   : > { %v897_v29 = vmin.f32 %v865_v16, 6.0  ;;  %v728_v42 = vpop.f32.mrf.mxu0  ;;  %v2015_v43 = vpack.c.bf16 %v1984_v7, %v1983_v3  ;;  %v1639_v45 = vadd.f32 %v1607_v39, %v1536_v21  ;;  %v1709_v22 = vmul.f32 %v3254_v19, %v3388_v62 }
 0x11b   : > { %v1640_v46 = vadd.f32 %v1608_v26, %v1537_v25  ;;  %v902_v47 = vmin.f32 %v870_v30, 6.0  ;;  %v868_v31 = vmax.f32 %v836_v32, 0.0  ;;  %v839_v53 = vadd.f32 %v3194_v28, %v801_v33 }
 0x11c   : > { %930 = vst.msk [vmem:[#allocation2 + $0xe1] sm:$0xff] %vm379_vm0, %v897_v29  ;;  %v799_v54 = vmul.f32 %v3189_v27, %v728_v42  ;;  %2872 = vmatprep.mubr.msk.bf16.mxu1 %vm379_vm0, %v2015_v43  ;;  %v2862_v38 = vpop.f32.mrf.mxu0  ;;  %v1710_v55 = vmul.f32 %v3254_v19, %v3395_v40  ;;  %v1741_v56 = vadd.f32 %v1709_v22, %v1639_v45 }
 0x11d   : > { %v1811_v60 = vmul.f32 %v3283_v44, %v3397_v0  ;;  %v1812_v2 = vmul.f32 %v3283_v44, %v3399_v41  ;;  %935 = vst.msk [vmem:[#allocation2 + $0x121] sm:$0xff] %vm379_vm0, %v902_v47  ;;  %v900_v3 = vmin.f32 %v868_v31, 6.0  ;;  %v871_v34 = vmax.f32 %v839_v53, 0.0 }
 0x11e   : > { %v837_v59 = vadd.f32 %v3194_v28, %v799_v54  ;;  %v804_v61 = vmul.f32 %v2862_v38, %v3189_v27  ;;  %v741_v4 = vpop.f32.mrf.mxu0  ;;  %v1742_v9 = vadd.f32 %v1710_v55, %v1640_v46  ;;  %v996_v37 = vmul.f32 %v3202_v35, %v3256_v23 }
 0x11f   : > { %v1843_v10 = vadd.f32 %v1811_v60, %v1741_v56  ;;  %v997_v51 = vmul.f32 %v3202_v35, %v3287_v48  ;;  %933 = vst.msk [vmem:[#allocation2 + $0x109] sm:$0xff] %vm379_vm0, %v900_v3  ;;  %v903_v52 = vmin.f32 %v871_v34, 6.0  ;;  %v802_v15 = vmul.f32 %v3189_v27, %v741_v4  ;;  %v3445_v34 = vld [vmem:[#allocation2 + $0x60] sm:$0xff]  ;;  %v3452_v4 = vld [vmem:[#allocation2 + $0x68] sm:$0xff] }
 0x120   : > { %v869_v14 = vmax.f32 %v837_v59, 0.0  ;;  %v842_v39 = vadd.f32 %v3194_v28, %v804_v61  ;;  %v1844_v16 = vadd.f32 %v1812_v2, %v1742_v9  ;;  %v2863_v63 = vpop.f32.mrf.mxu0  ;;  %v1098_v1 = vmul.f32 %v3207_v36, %v3258_v24  ;;  %v3454_v9 = vld [vmem:[#allocation2 + $0x61] sm:$0xff] }
 0x121   : > { %v1882_v20 = vmul.f32 %v3340_v5, %v1843_v10  ;;  %v1099_v23 = vmul.f32 %v3207_v36, %v3289_v49  ;;  %936 = vst.msk [vmem:[#allocation2 + $0x129] sm:$0xff] %vm379_vm0, %v903_v52  ;;  %v840_v21 = vadd.f32 %v3194_v28, %v802_v15  ;;  %v805_v25 = vmul.f32 %v2863_v63, %v3189_v27  ;;  %v3464_v15 = vld [vmem:[#allocation2 + $0x6a] sm:$0xff] }
 0x122   : > { %v901_v48 = vmin.f32 %v869_v14, 6.0  ;;  %v874_v7 = vmax.f32 %v842_v39, 0.0  ;;  %v1883_v26 = vmul.f32 %v3340_v5, %v1844_v16  ;;  %v744_v30 = vpop.f32.mrf.mxu0  ;;  %v1130_v32 = vadd.f32 %v1098_v1, %v996_v37  ;;  %v3460_v14 = vld [vmem:[#allocation2 + $0x69] sm:$0xff] }
 0x123   : > { %v1921_v29 = vadd.f32 %v3350_v17, %v1882_v20  ;;  %v1131_v33 = vadd.f32 %v1099_v23, %v997_v51  ;;  %v872_v42 = vmax.f32 %v840_v21, 0.0  ;;  %v843_v49 = vadd.f32 %v3194_v28, %v805_v25  ;;  %v3462_v39 = vld [vmem:[#allocation2 + $0x62] sm:$0xff] }
 0x124   : > { %934 = vst.msk [vmem:[#allocation2 + $0x111] sm:$0xff] %vm379_vm0, %v901_v48  ;;  %v906_v24 = vmin.f32 %v874_v7, 6.0  ;;  %v803_v43 = vmul.f32 %v3189_v27, %v744_v30  ;;  %v1922_v45 = vadd.f32 %v3350_v17, %v1883_v26  ;;  %v1200_v22 = vmul.f32 %v3223_v58, %v3291_v50  ;;  %v2866_v55 = vpop.f32.mrf.mxu0 }
 0x125   : > { %v1953_v46 = vmax.f32 %v1921_v29, 0.0  ;;  %v1201_v47 = vmul.f32 %v3223_v58, %v3314_v8  ;;  %v904_v31 = vmin.f32 %v872_v42, 6.0  ;;  %v875_v53 = vmax.f32 %v843_v49, 0.0 }
 0x126   : > { %939 = vst.msk [vmem:[#allocation2 + $0x151] sm:$0xff] %vm379_vm0, %v906_v24  ;;  %v841_v54 = vadd.f32 %v3194_v28, %v803_v43  ;;  %v1302_v38 = vmul.f32 %v3236_v12, %v3370_v57  ;;  %v1954_v56 = vmax.f32 %v1922_v45, 0.0  ;;  %v1232_v2 = vadd.f32 %v1200_v22, %v1130_v32  ;;  %v757_v23 = vpop.f32.mrf.mxu0 }
 0x127   : > { %v1985_v60 = vmin.f32 %v1953_v46, 6.0  ;;  %v1233_v3 = vadd.f32 %v1201_v47, %v1131_v33  ;;  %937 = vst.msk [vmem:[#allocation2 + $0x139] sm:$0xff] %vm379_vm0, %v904_v31  ;;  %v907_v50 = vmin.f32 %v875_v53, 6.0  ;;  %v1303_v59 = vmul.f32 %v3236_v12, %v3377_v11 }
 0x128   : > { %v873_v8 = vmax.f32 %v841_v54, 0.0  ;;  %v1404_v61 = vmul.f32 %v3241_v13, %v3388_v62  ;;  %v1986_v10 = vmin.f32 %v1954_v56, 6.0  ;;  %v1334_v37 = vadd.f32 %v1302_v38, %v1232_v2 }
 0x129   : > { %v1405_v51 = vmul.f32 %v3241_v13, %v3395_v40  ;;  %v1506_v52 = vmul.f32 %v3312_v6, %v3397_v0  ;;  %940 = vst.msk [vmem:[#allocation2 + $0x159] sm:$0xff] %vm379_vm0, %v907_v50  ;;  %v1335_v20 = vadd.f32 %v1303_v59, %v1233_v3  ;;  %v1507_v63 = vmul.f32 %v3312_v6, %v3399_v41  ;;  %v3503_v59 = vld [vmem:[#allocation2 + $0x78] sm:$0xff] }
 0x12a   : > { %v905_v16 = vmin.f32 %v873_v8, 6.0  ;;  %v1609_v1 = vmul.f32 %v3249_v18, %v3445_v34  ;;  %v2016_v48 = vpack.c.bf16 %v1986_v10, %v1985_v60  ;;  %v1436_v7 = vadd.f32 %v1404_v61, %v1334_v37 }
 0x12b   : > { %v1610_v21 = vmul.f32 %v3249_v18, %v3452_v4  ;;  %v1711_v25 = vmul.f32 %v3254_v19, %v3454_v9  ;;  %v1437_v26 = vadd.f32 %v1405_v51, %v1335_v20  ;;  %v1712_v29 = vmul.f32 %v3254_v19, %v3460_v14  ;;  %v3507_v51 = vld [vmem:[#allocation2 + $0x80] sm:$0xff] }
 0x12c   : > { %938 = vst.msk [vmem:[#allocation2 + $0x141] sm:$0xff] %vm379_vm0, %v905_v16  ;;  %v1813_v30 = vmul.f32 %v3283_v44, %v3462_v39  ;;  %v1814_v32 = vmul.f32 %v3283_v44, %v3464_v15  ;;  %2873 = vmatmul.mubr.msk.bf16.vlgmr.msra.gmra.mxu1 %vm379_vm0, %v2016_v48  ;;  %v1538_v33 = vadd.f32 %v1506_v52, %v1436_v7  ;;  %v3515_v48 = vld [vmem:[#allocation2 + $0x7a] sm:$0xff] }
 0x12d   : > { %v808_v24 = vmul.f32 %v2866_v55, %v3189_v27  ;;  %v806_v42 = vmul.f32 %v3189_v27, %v757_v23  ;;  %v998_v49 = vmul.f32 %v3202_v35, %v3370_v57  ;;  %v1539_v43 = vadd.f32 %v1507_v63, %v1437_v26  ;;  %v3513_v23 = vld [vmem:[#allocation2 + $0x81] sm:$0xff] }
 0x12e   : > { %v999_v45 = vmul.f32 %v3202_v35, %v3377_v11  ;;  %v1100_v46 = vmul.f32 %v3207_v36, %v3388_v62  ;;  %v1101_v22 = vmul.f32 %v3207_v36, %v3395_v40  ;;  %v1641_v47 = vadd.f32 %v1609_v1, %v1538_v33  ;;  %v3511_v1 = vld [vmem:[#allocation2 + $0x79] sm:$0xff] }
 0x12f   : > { %v846_v31 = vadd.f32 %v3194_v28, %v808_v24  ;;  %v844_v53 = vadd.f32 %v3194_v28, %v806_v42  ;;  %v1202_v54 = vmul.f32 %v3223_v58, %v3397_v0  ;;  %v1642_v38 = vadd.f32 %v1610_v21, %v1539_v43  ;;  %v2867_v0 = vpop.f32.mrf.mxu0 }
 0x130   : > { %v1132_v57 = vadd.f32 %v1100_v46, %v998_v49  ;;  %v1133_v55 = vadd.f32 %v1101_v22, %v999_v45  ;;  %v1203_v11 = vmul.f32 %v3223_v58, %v3399_v41  ;;  %v1743_v56 = vadd.f32 %v1711_v25, %v1641_v47 }
 0x131   : > { %v878_v60 = vmax.f32 %v846_v31, 0.0  ;;  %v876_v62 = vmax.f32 %v844_v53, 0.0  ;;  %v1304_v40 = vmul.f32 %v3236_v12, %v3445_v34  ;;  %v1744_v2 = vadd.f32 %v1712_v29, %v1642_v38  ;;  %v3526_v29 = vld [vmem:[#allocation2 + $0x82] sm:$0xff]  ;;  %v760_v42 = vpop.f32.mrf.mxu0 }
 0x132   : > { %v1234_v3 = vadd.f32 %v1202_v54, %v1132_v57  ;;  %v1235_v50 = vadd.f32 %v1203_v11, %v1133_v55  ;;  %v1305_v8 = vmul.f32 %v3236_v12, %v3452_v4  ;;  %v1845_v61 = vadd.f32 %v1813_v30, %v1743_v56 }
 0x133   : > { %v910_v10 = vmin.f32 %v878_v60, 6.0  ;;  %v908_v37 = vmin.f32 %v876_v62, 6.0  ;;  %v1406_v41 = vmul.f32 %v3241_v13, %v3454_v9  ;;  %v1846_v52 = vadd.f32 %v1814_v32, %v1744_v2 }
 0x134   : > { %v1336_v16 = vadd.f32 %v1304_v40, %v1234_v3  ;;  %v1337_v20 = vadd.f32 %v1305_v8, %v1235_v50  ;;  %v1407_v63 = vmul.f32 %v3241_v13, %v3460_v14  ;;  %v1884_v7 = vmul.f32 %v3340_v5, %v1845_v61 }
 0x135   : > { %943 = vst.msk [vmem:[#allocation2 + $0x181] sm:$0xff] %vm379_vm0, %v910_v10  ;;  %941 = vst.msk [vmem:[#allocation2 + $0x169] sm:$0xff] %vm379_vm0, %v908_v37  ;;  %v1508_v21 = vmul.f32 %v3312_v6, %v3462_v39  ;;  %v1509_v25 = vmul.f32 %v3312_v6, %v3464_v15  ;;  %v1611_v26 = vmul.f32 %v3249_v18, %v3503_v59 }
 0x136   : > { %v1885_v30 = vmul.f32 %v3340_v5, %v1846_v52  ;;  %v1438_v32 = vadd.f32 %v1406_v41, %v1336_v16  ;;  %v1439_v33 = vadd.f32 %v1407_v63, %v1337_v20  ;;  %v1612_v24 = vmul.f32 %v3249_v18, %v3507_v51 }
 0x137   : > { %v1923_v49 = vadd.f32 %v3350_v17, %v1884_v7  ;;  %v1713_v43 = vmul.f32 %v3254_v19, %v3511_v1  ;;  %v1714_v45 = vmul.f32 %v3254_v19, %v3513_v23  ;;  %v1815_v46 = vmul.f32 %v3283_v44, %v3515_v48 }
 0x138   : > { %v1924_v22 = vadd.f32 %v3350_v17, %v1885_v30  ;;  %v1540_v47 = vadd.f32 %v1508_v21, %v1438_v32  ;;  %v1541_v31 = vadd.f32 %v1509_v25, %v1439_v33  ;;  %v1816_v53 = vmul.f32 %v3283_v44, %v3526_v29  ;;  %v3566_v30 = vld [vmem:[#allocation2 + $0x98] sm:$0xff] }
 0x139   : > { %v1955_v54 = vmax.f32 %v1923_v49, 0.0  ;;  %v809_v38 = vmul.f32 %v2867_v0, %v3189_v27  ;;  %v807_v57 = vmul.f32 %v3189_v27, %v760_v42  ;;  %v1000_v55 = vmul.f32 %v3202_v35, %v3445_v34  ;;  %v3568_v32 = vld [vmem:[#allocation2 + $0x91] sm:$0xff]  ;;  %v3578_v49 = vld [vmem:[#allocation2 + $0x99] sm:$0xff] }
 0x13a   : > { %v1956_v11 = vmax.f32 %v1924_v22, 0.0  ;;  %v1643_v56 = vadd.f32 %v1611_v26, %v1540_v47  ;;  %v1644_v60 = vadd.f32 %v1612_v24, %v1541_v31  ;;  %v1001_v62 = vmul.f32 %v3202_v35, %v3452_v4  ;;  %v3564_v26 = vld [vmem:[#allocation2 + $0x90] sm:$0xff]  ;;  %v3586_v31 = vld [vmem:[#allocation2 + $0x9a] sm:$0xff] }
 0x13b   : > { %v1987_v40 = vmin.f32 %v1955_v54, 6.0  ;;  %v847_v2 = vadd.f32 %v3194_v28, %v809_v38  ;;  %v845_v3 = vadd.f32 %v3194_v28, %v807_v57  ;;  %v1102_v50 = vmul.f32 %v3207_v36, %v3454_v9  ;;  %v3584_v47 = vld [vmem:[#allocation2 + $0x92] sm:$0xff] }
 0x13c   : > { %v1988_v8 = vmin.f32 %v1956_v11, 6.0  ;;  %v1745_v0 = vadd.f32 %v1713_v43, %v1643_v56  ;;  %v1746_v27 = vadd.f32 %v1714_v45, %v1644_v60  ;;  %v1103_v34 = vmul.f32 %v3207_v36, %v3460_v14 }
 0x13d   : > { %v879_v61 = vmax.f32 %v847_v2, 0.0  ;;  %v877_v10 = vmax.f32 %v845_v3, 0.0  ;;  %v1134_v37 = vadd.f32 %v1102_v50, %v1000_v55  ;;  %v1204_v4 = vmul.f32 %v3223_v58, %v3462_v39 }
 0x13e   : > { %v2017_v41 = vpack.c.bf16 %v1988_v8, %v1987_v40  ;;  %v1847_v52 = vadd.f32 %v1815_v46, %v1745_v0  ;;  %v1848_v16 = vadd.f32 %v1816_v53, %v1746_v27  ;;  %v1135_v20 = vadd.f32 %v1103_v34, %v1001_v62 }
 0x13f   : > { %v911_v28 = vmin.f32 %v879_v61, 6.0  ;;  %v909_v63 = vmin.f32 %v877_v10, 6.0  ;;  %v1205_v9 = vmul.f32 %v3223_v58, %v3464_v15  ;;  %v1236_v7 = vadd.f32 %v1204_v4, %v1134_v37 }
 0x140   : > { %2876 = vmatprep.mubr.msk.bf16.mxu1 %vm379_vm0, %v2017_v41  ;;  %v1886_v14 = vmul.f32 %v3340_v5, %v1847_v52  ;;  %v1887_v21 = vmul.f32 %v3340_v5, %v1848_v16  ;;  %v1306_v25 = vmul.f32 %v3236_v12, %v3503_v59  ;;  %v1307_v39 = vmul.f32 %v3236_v12, %v3507_v51 }
 0x141   : > { %944 = vst.msk [vmem:[#allocation2 + $0x189] sm:$0xff] %vm379_vm0, %v911_v28  ;;  %942 = vst.msk [vmem:[#allocation2 + $0x171] sm:$0xff] %vm379_vm0, %v909_v63  ;;  %v1237_v15 = vadd.f32 %v1205_v9, %v1135_v20  ;;  %v1408_v33 = vmul.f32 %v3241_v13, %v3511_v1  ;;  %v1409_v24 = vmul.f32 %v3241_v13, %v3513_v23  ;;  %v3616_v28 = vld [vmem:[#allocation2 + $0xa8] sm:$0xff] }
 0x142   : > { %v1510_v42 = vmul.f32 %v3312_v6, %v3515_v48  ;;  %v1925_v43 = vadd.f32 %v3350_v17, %v1886_v14  ;;  %v1926_v45 = vadd.f32 %v3350_v17, %v1887_v21  ;;  %v1338_v46 = vadd.f32 %v1306_v25, %v1236_v7  ;;  %v3620_v63 = vld [vmem:[#allocation2 + $0xa9] sm:$0xff]  ;;  %v3629_v14 = vld [vmem:[#allocation2 + $0xb1] sm:$0xff] }
 0x143   : > { %v1511_v22 = vmul.f32 %v3312_v6, %v3526_v29  ;;  %v1339_v53 = vadd.f32 %v1307_v39, %v1237_v15  ;;  %v1613_v54 = vmul.f32 %v3249_v18, %v3564_v26  ;;  %v1614_v38 = vmul.f32 %v3249_v18, %v3566_v30 }
 0x144   : > { %v1715_v57 = vmul.f32 %v3254_v19, %v3568_v32  ;;  %v1957_v55 = vmax.f32 %v1925_v43, 0.0  ;;  %v1958_v11 = vmax.f32 %v1926_v45, 0.0  ;;  %v1440_v56 = vadd.f32 %v1408_v33, %v1338_v46  ;;  %v3633_v33 = vld [vmem:[#allocation2 + $0xaa] sm:$0xff] }
 0x145   : > { %v1716_v60 = vmul.f32 %v3254_v19, %v3578_v49  ;;  %v1441_v62 = vadd.f32 %v1409_v24, %v1339_v53  ;;  %v1817_v40 = vmul.f32 %v3283_v44, %v3584_v47  ;;  %v1818_v2 = vmul.f32 %v3283_v44, %v3586_v31  ;;  %v3635_v24 = vld [vmem:[#allocation2 + $0xb2] sm:$0xff] }
 0x146   : > { %v1002_v3 = vmul.f32 %v3202_v35, %v3503_v59  ;;  %v1989_v50 = vmin.f32 %v1957_v55, 6.0  ;;  %v1990_v8 = vmin.f32 %v1958_v11, 6.0  ;;  %v1542_v0 = vadd.f32 %v1510_v42, %v1440_v56 }
 0x147   : > { %v1003_v27 = vmul.f32 %v3202_v35, %v3507_v51  ;;  %v1543_v34 = vadd.f32 %v1511_v22, %v1441_v62  ;;  %v1104_v61 = vmul.f32 %v3207_v36, %v3511_v1  ;;  %v1105_v10 = vmul.f32 %v3207_v36, %v3513_v23  ;;  %v3618_v23 = vld [vmem:[#allocation2 + $0xb0] sm:$0xff] }
 0x148   : > { %v1206_v37 = vmul.f32 %v3223_v58, %v3515_v48  ;;  %v2018_v4 = vpack.c.bf16 %v1990_v8, %v1989_v50  ;;  %v1645_v41 = vadd.f32 %v1613_v54, %v1542_v0  ;;  %v1207_v59 = vmul.f32 %v3223_v58, %v3526_v29 }
 0x149   : > { %v1308_v52 = vmul.f32 %v3236_v12, %v3564_v26  ;;  %v1646_v16 = vadd.f32 %v1614_v38, %v1543_v34  ;;  %v1136_v51 = vadd.f32 %v1104_v61, %v1002_v3  ;;  %v1137_v20 = vadd.f32 %v1105_v10, %v1003_v27 }
 0x14a   : > { %v1309_v1 = vmul.f32 %v3236_v12, %v3566_v30  ;;  %2877 = vmatmul.mubr.msk.bf16.gmra.mxu1 %vm379_vm0, %v2018_v4  ;;  %v1747_v48 = vadd.f32 %v1715_v57, %v1645_v41  ;;  %v1410_v29 = vmul.f32 %v3241_v13, %v3568_v32  ;;  %v1411_v9 = vmul.f32 %v3241_v13, %v3578_v49 }
 0x14b   : > { %v1512_v7 = vmul.f32 %v3312_v6, %v3584_v47  ;;  %v1748_v21 = vadd.f32 %v1716_v60, %v1646_v16  ;;  %v1238_v25 = vadd.f32 %v1206_v37, %v1136_v51  ;;  %v1239_v39 = vadd.f32 %v1207_v59, %v1137_v20  ;;  %v3671_v16 = vld [vmem:[#allocation2 + $0xc0] sm:$0xff] }
 0x14c   : > { %v1513_v15 = vmul.f32 %v3312_v6, %v3586_v31  ;;  %v1849_v42 = vadd.f32 %v1817_v40, %v1747_v48  ;;  %v1615_v43 = vmul.f32 %v3249_v18, %v3616_v28  ;;  %v1616_v45 = vmul.f32 %v3249_v18, %v3618_v23  ;;  %v3677_v48 = vld [vmem:[#allocation2 + $0xc1] sm:$0xff] }
 0x14d   : > { %v1717_v46 = vmul.f32 %v3254_v19, %v3620_v63  ;;  %v1850_v22 = vadd.f32 %v1818_v2, %v1748_v21  ;;  %v1340_v53 = vadd.f32 %v1308_v52, %v1238_v25  ;;  %v1341_v54 = vadd.f32 %v1309_v1, %v1239_v39  ;;  %v3675_v1 = vld [vmem:[#allocation2 + $0xc8] sm:$0xff] }
 0x14e   : > { %v1718_v38 = vmul.f32 %v3254_v19, %v3629_v14  ;;  %v1888_v57 = vmul.f32 %v3340_v5, %v1849_v42  ;;  %v1819_v55 = vmul.f32 %v3283_v44, %v3633_v33  ;;  %v1820_v11 = vmul.f32 %v3283_v44, %v3635_v24  ;;  %v3683_v25 = vld [vmem:[#allocation2 + $0xc9] sm:$0xff] }
 0x14f   : > { %v1004_v56 = vmul.f32 %v3202_v35, %v3564_v26  ;;  %v1889_v60 = vmul.f32 %v3340_v5, %v1850_v22  ;;  %v1442_v62 = vadd.f32 %v1410_v29, %v1340_v53  ;;  %v1443_v40 = vadd.f32 %v1411_v9, %v1341_v54  ;;  %v3685_v39 = vld [vmem:[#allocation2 + $0xc2] sm:$0xff] }
 0x150   : > { %v1005_v2 = vmul.f32 %v3202_v35, %v3566_v30  ;;  %v1927_v3 = vadd.f32 %v3350_v17, %v1888_v57  ;;  %v1106_v50 = vmul.f32 %v3207_v36, %v3568_v32  ;;  %v1107_v8 = vmul.f32 %v3207_v36, %v3578_v49 }
 0x151   : > { %v1208_v0 = vmul.f32 %v3223_v58, %v3584_v47  ;;  %v1928_v26 = vadd.f32 %v3350_v17, %v1889_v60  ;;  %v1544_v27 = vadd.f32 %v1512_v7, %v1442_v62  ;;  %v1545_v34 = vadd.f32 %v1513_v15, %v1443_v40  ;;  %v3707_v62 = vld [vmem:[%s4306_s4] ss:$0 sm:$0xff] }
 0x152   : > { %v1209_v61 = vmul.f32 %v3223_v58, %v3586_v31  ;;  %v1959_v10 = vmax.f32 %v1927_v3, 0.0  ;;  %v1138_v35 = vadd.f32 %v1106_v50, %v1004_v56  ;;  %v1139_v30 = vadd.f32 %v1107_v8, %v1005_v2  ;;  %v3718_v50 = vld [vmem:[%s4306_s4 + $0x1] ss:$0 sm:$0xff] }
 0x153   : > { %v1310_v37 = vmul.f32 %v3236_v12, %v3616_v28  ;;  %v1960_v32 = vmax.f32 %v1928_v26, 0.0  ;;  %v1647_v4 = vadd.f32 %v1615_v43, %v1544_v27  ;;  %v1648_v41 = vadd.f32 %v1616_v45, %v1545_v34  ;;  %v3689_v45 = vld [vmem:[#allocation2 + $0xca] sm:$0xff]  ;;  %v3727_v27 = vld [vmem:[%s4306_s4 + $0x2] ss:$0 sm:$0xff] }
 0x154   : > { %v1311_v36 = vmul.f32 %v3236_v12, %v3618_v23  ;;  %v1991_v49 = vmin.f32 %v1959_v10, 6.0  ;;  %v1240_v47 = vadd.f32 %v1208_v0, %v1138_v35  ;;  %v1241_v59 = vadd.f32 %v1209_v61, %v1139_v30 }
 0x155   : > { %v1412_v52 = vmul.f32 %v3241_v13, %v3620_v63  ;;  %v1992_v58 = vmin.f32 %v1960_v32, 6.0  ;;  %v1749_v31 = vadd.f32 %v1717_v46, %v1647_v4  ;;  %v1750_v51 = vadd.f32 %v1718_v38, %v1648_v41 }
 0x156   : > { %v1413_v20 = vmul.f32 %v3241_v13, %v3629_v14  ;;  %v1342_v29 = vadd.f32 %v1310_v37, %v1240_v47  ;;  %v1343_v9 = vadd.f32 %v1311_v36, %v1241_v59  ;;  %v1514_v7 = vmul.f32 %v3312_v6, %v3633_v33  ;;  %v3740_v59 = vld [vmem:[%s4306_s4 + $0x4] ss:$0 sm:$0xff] }
 0x157   : > { %v1515_v21 = vmul.f32 %v3312_v6, %v3635_v24  ;;  %v2019_v15 = vpack.c.bf16 %v1992_v58, %v1991_v49  ;;  %v1851_v42 = vadd.f32 %v1819_v55, %v1749_v31  ;;  %v1852_v43 = vadd.f32 %v1820_v11, %v1750_v51  ;;  %v3746_v58 = vld [vmem:[#allocation2 + $0xe0] sm:$0xff] }
 0x158   : > { %v1617_v13 = vmul.f32 %v3249_v18, %v3671_v16  ;;  %v1444_v46 = vadd.f32 %v1412_v52, %v1342_v29  ;;  %v1445_v22 = vadd.f32 %v1413_v20, %v1343_v9  ;;  %v1618_v53 = vmul.f32 %v3249_v18, %v3675_v1  ;;  %v3744_v52 = vld [vmem:[#allocation2 + $0xd8] sm:$0xff]  ;;  %v3754_v9 = vld [vmem:[#allocation2 + $0xe1] sm:$0xff] }
 0x159   : > { %v1719_v54 = vmul.f32 %v3254_v19, %v3677_v48  ;;  %2880 = vmatprep.mubr.msk.bf16.mxu1 %vm379_vm0, %v2019_v15  ;;  %v1890_v38 = vmul.f32 %v3340_v5, %v1851_v42  ;;  %v1891_v57 = vmul.f32 %v3340_v5, %v1852_v43  ;;  %v1720_v55 = vmul.f32 %v3254_v19, %v3683_v25  ;;  %v3748_v31 = vld [vmem:[#allocation2 + $0xd9] sm:$0xff] }
 0x15a   : > { %v1821_v11 = vmul.f32 %v3283_v44, %v3685_v39  ;;  %v1546_v56 = vadd.f32 %v1514_v7, %v1444_v46  ;;  %v1547_v60 = vadd.f32 %v1515_v21, %v1445_v22  ;;  %v1822_v18 = vmul.f32 %v3283_v44, %v3689_v45  ;;  %v3760_v43 = vld [vmem:[#allocation2 + $0xda] sm:$0xff]  ;;  %v3768_v22 = vld [vmem:[%s4306_s4 + $0x6] ss:$0 sm:$0xff] }
 0x15b   : > { %v1006_v40 = vmul.f32 %v3707_v62, %v3616_v28  ;;  %v1929_v2 = vadd.f32 %v3350_v17, %v1890_v38  ;;  %v1930_v19 = vadd.f32 %v3350_v17, %v1891_v57  ;;  %v1007_v3 = vmul.f32 %v3707_v62, %v3618_v23 }
 0x15c   : > { %v1108_v8 = vmul.f32 %v3718_v50, %v3620_v63  ;;  %v1649_v0 = vadd.f32 %v1617_v13, %v1546_v56  ;;  %v1650_v26 = vadd.f32 %v1618_v53, %v1547_v60  ;;  %v1109_v28 = vmul.f32 %v3718_v50, %v3629_v14  ;;  %v3762_v13 = vld [vmem:[#allocation2 + $0xe2] sm:$0xff] }
 0x15d   : > { %v1210_v23 = vmul.f32 %v3727_v27, %v3633_v33  ;;  %v1961_v34 = vmax.f32 %v1929_v2, 0.0  ;;  %v1962_v61 = vmax.f32 %v1930_v19, 0.0  ;;  %v1211_v35 = vmul.f32 %v3727_v27, %v3635_v24 }
 0x15e   : > { %v1140_v10 = vadd.f32 %v1108_v8, %v1006_v40  ;;  %v1751_v63 = vadd.f32 %v1719_v54, %v1649_v0  ;;  %v1752_v30 = vadd.f32 %v1720_v55, %v1650_v26  ;;  %v1141_v37 = vadd.f32 %v1109_v28, %v1007_v3 }
 0x15f   : > { %v1312_v14 = vmul.f32 %v3236_v12, %v3671_v16  ;;  %v1993_v32 = vmin.f32 %v1961_v34, 6.0  ;;  %v1994_v4 = vmin.f32 %v1962_v61, 6.0  ;;  %v1313_v36 = vmul.f32 %v3236_v12, %v3675_v1 }
 0x160   : > { %v1242_v41 = vadd.f32 %v1210_v23, %v1140_v10  ;;  %v1853_v49 = vadd.f32 %v1821_v11, %v1751_v63  ;;  %v1854_v33 = vadd.f32 %v1822_v18, %v1752_v30  ;;  %v1243_v47 = vadd.f32 %v1211_v35, %v1141_v37 }
 0x161   : > { %v1414_v24 = vmul.f32 %v3740_v59, %v3677_v48  ;;  %v2020_v51 = vpack.c.bf16 %v1994_v4, %v1993_v32  ;;  %v1415_v12 = vmul.f32 %v3740_v59, %v3683_v25  ;;  %v1516_v29 = vmul.f32 %v3312_v6, %v3685_v39  ;;  %v3814_v32 = vld [vmem:[#allocation2 + $0xf8] sm:$0xff] }
 0x162   : > { %v1344_v20 = vadd.f32 %v1312_v14, %v1242_v41  ;;  %v1892_v7 = vmul.f32 %v3340_v5, %v1853_v49  ;;  %v1893_v21 = vmul.f32 %v3340_v5, %v1854_v33  ;;  %v1345_v15 = vadd.f32 %v1313_v36, %v1243_v47  ;;  %v3818_v33 = vld [vmem:[#allocation2 + $0xf1] sm:$0xff]  ;;  %v3820_v47 = vld [vmem:[#allocation2 + $0xf9] sm:$0xff] }
 0x163   : > { %v1517_v42 = vmul.f32 %v3312_v6, %v3689_v45  ;;  %2881 = vmatmul.mubr.msk.bf16.gmra.mxu1 %vm379_vm0, %v2020_v51  ;;  %v1619_v53 = vmul.f32 %v3768_v22, %v3744_v52  ;;  %v1620_v54 = vmul.f32 %v3768_v22, %v3746_v58  ;;  %v3777_v6 = vld [vmem:[%s4306_s4 + $0x7] ss:$0 sm:$0xff]  ;;  %v1823_v18 = vmul.f32 %v3283_v44, %v3760_v43 }
 0x164   : > { %v1446_v46 = vadd.f32 %v1414_v24, %v1344_v20  ;;  %v1721_v38 = vmul.f32 %v3777_v6, %v3748_v31  ;;  %v1931_v57 = vadd.f32 %v3350_v17, %v1892_v7  ;;  %v1932_v55 = vadd.f32 %v3350_v17, %v1893_v21  ;;  %v3822_v24 = vld [vmem:[#allocation2 + $0xf2] sm:$0xff]  ;;  %v3828_v20 = vld [vmem:[%s4306_s4 + $0x5] ss:$0 sm:$0xff]  ;;  %v3836_v21 = vld [vmem:[#allocation2 + $0xfa] sm:$0xff] }
 0x165   : > { %v1447_v11 = vadd.f32 %v1415_v12, %v1345_v15  ;;  %v1722_v56 = vmul.f32 %v3777_v6, %v3754_v9  ;;  %v1824_v40 = vmul.f32 %v3283_v44, %v3762_v13  ;;  %v1008_v2 = vmul.f32 %v3707_v62, %v3671_v16 }
 0x166   : > { %v1548_v60 = vadd.f32 %v1516_v29, %v1446_v46  ;;  %v1963_v19 = vmax.f32 %v1931_v57, 0.0  ;;  %v1964_v3 = vmax.f32 %v1932_v55, 0.0  ;;  %v1009_v0 = vmul.f32 %v3707_v62, %v3675_v1  ;;  %v3804_v1 = vld [vmem:[%s4306_s4 + $0x3] ss:$0 sm:$0xff]  ;;  %v3849_v55 = vld [vmem:[%s4306_s4 + $0x8] ss:$0 sm:$0xff] }
 0x167   : > { %v1549_v8 = vadd.f32 %v1517_v42, %v1447_v11  ;;  %v1110_v28 = vmul.f32 %v3718_v50, %v3677_v48  ;;  %v1111_v23 = vmul.f32 %v3718_v50, %v3683_v25  ;;  %v1212_v34 = vmul.f32 %v3727_v27, %v3685_v39  ;;  %v3808_v25 = vld [vmem:[#allocation2 + $0xf0] sm:$0xff] }
 0x168   : > { %v1651_v26 = vadd.f32 %v1619_v53, %v1548_v60  ;;  %v1995_v44 = vmin.f32 %v1963_v19, 6.0  ;;  %v1996_v61 = vmin.f32 %v1964_v3, 6.0  ;;  %v1213_v16 = vmul.f32 %v3727_v27, %v3689_v45 }
 0x169   : > { %v1652_v10 = vadd.f32 %v1620_v54, %v1549_v8  ;;  %v1142_v63 = vadd.f32 %v1110_v28, %v1008_v2  ;;  %v1143_v30 = vadd.f32 %v1111_v23, %v1009_v0  ;;  %v1314_v48 = vmul.f32 %v3804_v1, %v3744_v52 }
 0x16a   : > { %v1753_v35 = vadd.f32 %v1721_v38, %v1651_v26  ;;  %v2021_v39 = vpack.c.bf16 %v1996_v61, %v1995_v44  ;;  %v1315_v14 = vmul.f32 %v3804_v1, %v3746_v58  ;;  %v1416_v45 = vmul.f32 %v3740_v59, %v3748_v31 }
 0x16b   : > { %v1754_v37 = vadd.f32 %v1722_v56, %v1652_v10  ;;  %v1244_v41 = vadd.f32 %v1212_v34, %v1142_v63  ;;  %v1245_v36 = vadd.f32 %v1213_v16, %v1143_v30  ;;  %v1417_v49 = vmul.f32 %v3740_v59, %v3754_v9 }
 0x16c   : > { %v1855_v4 = vadd.f32 %v1823_v18, %v1753_v35  ;;  %2884 = vmatprep.mubr.msk.bf16.mxu1 %vm379_vm0, %v2021_v39  ;;  %v1518_v12 = vmul.f32 %v3828_v20, %v3760_v43  ;;  %v1519_v29 = vmul.f32 %v3828_v20, %v3762_v13  ;;  %v1621_v7 = vmul.f32 %v3768_v22, %v3808_v25  ;;  %v3875_v39 = vld [vmem:[#allocation2 + $0x108] sm:$0xff] }
 0x16d   : > { %v1856_v51 = vadd.f32 %v1824_v40, %v1754_v37  ;;  %v1346_v42 = vadd.f32 %v1314_v48, %v1244_v41  ;;  %v1347_v46 = vadd.f32 %v1315_v14, %v1245_v36  ;;  %v1622_v53 = vmul.f32 %v3768_v22, %v3814_v32  ;;  %v3879_v37 = vld [vmem:[#allocation2 + $0x109] sm:$0xff]  ;;  %v3885_v36 = vld [vmem:[#allocation2 + $0x111] sm:$0xff] }
 0x16e   : > { %v1894_v15 = vmul.f32 %v3340_v5, %v1855_v4  ;;  %v1723_v38 = vmul.f32 %v3777_v6, %v3818_v33  ;;  %v1724_v57 = vmul.f32 %v3777_v6, %v3820_v47  ;;  %v1825_v11 = vmul.f32 %v3849_v55, %v3822_v24 }
 0x16f   : > { %v1895_v54 = vmul.f32 %v3340_v5, %v1856_v51  ;;  %v1448_v60 = vadd.f32 %v1416_v45, %v1346_v42  ;;  %v1449_v18 = vadd.f32 %v1417_v49, %v1347_v46  ;;  %v1826_v5 = vmul.f32 %v3849_v55, %v3836_v21 }
 0x170   : > { %v1933_v56 = vadd.f32 %v3350_v17, %v1894_v15  ;;  %v1010_v2 = vmul.f32 %v3707_v62, %v3744_v52  ;;  %v1011_v19 = vmul.f32 %v3707_v62, %v3746_v58  ;;  %v1112_v3 = vmul.f32 %v3718_v50, %v3748_v31  ;;  %v3891_v15 = vld [vmem:[#allocation2 + $0x112] sm:$0xff] }
 0x171   : > { %v1934_v40 = vadd.f32 %v3350_v17, %v1895_v54  ;;  %v1550_v0 = vadd.f32 %v1518_v12, %v1448_v60  ;;  %v1551_v26 = vadd.f32 %v1519_v29, %v1449_v18  ;;  %v1113_v28 = vmul.f32 %v3718_v50, %v3754_v9 }
 0x172   : > { %v1965_v8 = vmax.f32 %v1933_v56, 0.0  ;;  %v1144_v34 = vadd.f32 %v1112_v3, %v1010_v2  ;;  %v1214_v17 = vmul.f32 %v3727_v27, %v3760_v43  ;;  %v1215_v52 = vmul.f32 %v3727_v27, %v3762_v13  ;;  %v3877_v13 = vld [vmem:[#allocation2 + $0x110] sm:$0xff] }
 0x173   : > { %v1966_v23 = vmax.f32 %v1934_v40, 0.0  ;;  %v1653_v61 = vadd.f32 %v1621_v7, %v1550_v0  ;;  %v1654_v58 = vadd.f32 %v1622_v53, %v1551_v26  ;;  %v1145_v10 = vadd.f32 %v1113_v28, %v1011_v19  ;;  %v3889_v7 = vld [vmem:[#allocation2 + $0x10a] sm:$0xff]  ;;  %v3918_v19 = vld [vmem:[%s4308_s6] ss:$0 sm:$0xff] }
 0x174   : > { %v1997_v44 = vmin.f32 %v1965_v8, 6.0  ;;  %v1246_v31 = vadd.f32 %v1214_v17, %v1144_v34  ;;  %v1316_v35 = vmul.f32 %v3804_v1, %v3808_v25  ;;  %v1317_v9 = vmul.f32 %v3804_v1, %v3814_v32 }
 0x175   : > { %v1998_v16 = vmin.f32 %v1966_v23, 6.0  ;;  %v1755_v63 = vadd.f32 %v1723_v38, %v1653_v61  ;;  %v1756_v30 = vadd.f32 %v1724_v57, %v1654_v58  ;;  %v1247_v48 = vadd.f32 %v1215_v52, %v1145_v10  ;;  %v3903_v38 = vld [vmem:[%s4307_s5] ss:$0 sm:$0xff] }
 0x176   : > { %v1418_v43 = vmul.f32 %v3740_v59, %v3818_v33  ;;  %v1348_v45 = vadd.f32 %v1316_v35, %v1246_v31  ;;  %v1419_v4 = vmul.f32 %v3740_v59, %v3820_v47  ;;  %v1520_v41 = vmul.f32 %v3828_v20, %v3822_v24 }
 0x177   : > { %v2022_v14 = vpack.c.bf16 %v1998_v16, %v1997_v44  ;;  %v1857_v49 = vadd.f32 %v1825_v11, %v1755_v63  ;;  %v1858_v51 = vadd.f32 %v1826_v5, %v1756_v30  ;;  %v1349_v12 = vadd.f32 %v1317_v9, %v1247_v48  ;;  %v3938_v48 = vld [vmem:[#allocation2 + $0x120] sm:$0xff] }
 0x178   : > { %v1521_v29 = vmul.f32 %v3828_v20, %v3836_v21  ;;  %v1450_v42 = vadd.f32 %v1418_v43, %v1348_v45  ;;  %v1623_v46 = vmul.f32 %v3768_v22, %v3875_v39  ;;  %v1624_v53 = vmul.f32 %v3768_v22, %v3877_v13  ;;  %v3942_v43 = vld [vmem:[#allocation2 + $0x121] sm:$0xff] }
 0x179   : > { %2885 = vmatmul.mubr.msk.bf16.gmra.mxu1 %vm379_vm0, %v2022_v14  ;;  %v1725_v54 = vmul.f32 %v3777_v6, %v3879_v37  ;;  %v1896_v57 = vmul.f32 %v3903_v38, %v1857_v49  ;;  %v1897_v11 = vmul.f32 %v3903_v38, %v1858_v51  ;;  %v1451_v56 = vadd.f32 %v1419_v4, %v1349_v12  ;;  %v3948_v49 = vld [vmem:[#allocation2 + $0x129] sm:$0xff] }
 0x17a   : > { %v1726_v60 = vmul.f32 %v3777_v6, %v3885_v36  ;;  %v1552_v18 = vadd.f32 %v1520_v41, %v1450_v42  ;;  %v1827_v5 = vmul.f32 %v3849_v55, %v3889_v7  ;;  %v1828_v40 = vmul.f32 %v3849_v55, %v3891_v15 }
 0x17b   : > { %v1012_v2 = vmul.f32 %v3707_v62, %v3808_v25  ;;  %v1935_v3 = vadd.f32 %v3918_v19, %v1896_v57  ;;  %v1936_v8 = vadd.f32 %v3918_v19, %v1897_v11  ;;  %v1553_v0 = vadd.f32 %v1521_v29, %v1451_v56 }
 0x17c   : > { %v1013_v26 = vmul.f32 %v3707_v62, %v3814_v32  ;;  %v1655_v28 = vadd.f32 %v1623_v46, %v1552_v18  ;;  %v1114_v23 = vmul.f32 %v3718_v50, %v3818_v33  ;;  %v1115_v25 = vmul.f32 %v3718_v50, %v3820_v47  ;;  %v3953_v46 = vld [vmem:[#allocation2 + $0x122] sm:$0xff] }
 0x17d   : > { %v1216_v34 = vmul.f32 %v3727_v27, %v3822_v24  ;;  %v1967_v17 = vmax.f32 %v1935_v3, 0.0  ;;  %v1968_v52 = vmax.f32 %v1936_v8, 0.0  ;;  %v1656_v44 = vadd.f32 %v1624_v53, %v1553_v0  ;;  %v3955_v53 = vld [vmem:[#allocation2 + $0x12a] sm:$0xff] }
 0x17e   : > { %v1217_v61 = vmul.f32 %v3727_v27, %v3836_v21  ;;  %v1757_v58 = vadd.f32 %v1725_v54, %v1655_v28  ;;  %v1146_v10 = vadd.f32 %v1114_v23, %v1012_v2  ;;  %v1147_v16 = vadd.f32 %v1115_v25, %v1013_v26  ;;  %v3940_v21 = vld [vmem:[#allocation2 + $0x128] sm:$0xff] }
 0x17f   : > { %v1318_v32 = vmul.f32 %v3804_v1, %v3875_v39  ;;  %v1999_v31 = vmin.f32 %v1967_v17, 6.0  ;;  %v2000_v33 = vmin.f32 %v1968_v52, 6.0  ;;  %v1758_v35 = vadd.f32 %v1726_v60, %v1656_v44 }
 0x180   : > { %v1319_v47 = vmul.f32 %v3804_v1, %v3877_v13  ;;  %v1859_v9 = vadd.f32 %v1827_v5, %v1757_v58  ;;  %v1248_v24 = vadd.f32 %v1216_v34, %v1146_v10  ;;  %v1249_v63 = vadd.f32 %v1217_v61, %v1147_v16 }
 0x181   : > { %v1420_v30 = vmul.f32 %v3740_v59, %v3879_v37  ;;  %v2023_v14 = vpack.c.bf16 %v2000_v33, %v1999_v31  ;;  %v1860_v45 = vadd.f32 %v1828_v40, %v1758_v35  ;;  %v1421_v4 = vmul.f32 %v3740_v59, %v3885_v36  ;;  %v3991_v35 = vld [vmem:[#allocation2 + $0x138] sm:$0xff] }
 0x182   : > { %v1522_v41 = vmul.f32 %v3828_v20, %v3889_v7  ;;  %v1898_v51 = vmul.f32 %v3903_v38, %v1859_v9  ;;  %v1350_v12 = vadd.f32 %v1318_v32, %v1248_v24  ;;  %v1351_v29 = vadd.f32 %v1319_v47, %v1249_v63  ;;  %v3993_v47 = vld [vmem:[#allocation2 + $0x140] sm:$0xff] }
 0x183   : > { %v1523_v42 = vmul.f32 %v3828_v20, %v3891_v15  ;;  %2888 = vmatprep.mubr.msk.bf16.mxu1 %vm379_vm0, %v2023_v14  ;;  %v1899_v54 = vmul.f32 %v3903_v38, %v1860_v45  ;;  %v1625_v57 = vmul.f32 %v3768_v22, %v3938_v48  ;;  %v1626_v11 = vmul.f32 %v3768_v22, %v3940_v21  ;;  %v3999_v14 = vld [vmem:[#allocation2 + $0x141] sm:$0xff] }
 0x184   : > { %v1727_v56 = vmul.f32 %v3777_v6, %v3942_v43  ;;  %v1937_v60 = vadd.f32 %v3918_v19, %v1898_v51  ;;  %v1452_v18 = vadd.f32 %v1420_v30, %v1350_v12  ;;  %v1453_v5 = vadd.f32 %v1421_v4, %v1351_v29  ;;  %v3997_v30 = vld [vmem:[#allocation2 + $0x139] sm:$0xff]  ;;  %v4007_v29 = vld [vmem:[#allocation2 + $0x142] sm:$0xff] }
 0x185   : > { %v1728_v40 = vmul.f32 %v3777_v6, %v3948_v49  ;;  %v1938_v2 = vadd.f32 %v3918_v19, %v1899_v54  ;;  %v1829_v3 = vmul.f32 %v3849_v55, %v3953_v46  ;;  %v1830_v8 = vmul.f32 %v3849_v55, %v3955_v53  ;;  %v4005_v12 = vld [vmem:[#allocation2 + $0x13a] sm:$0xff] }
 0x186   : > { %v1014_v0 = vmul.f32 %v3707_v62, %v3875_v39  ;;  %v1969_v26 = vmax.f32 %v1937_v60, 0.0  ;;  %v1554_v28 = vadd.f32 %v1522_v41, %v1452_v18  ;;  %v1555_v23 = vadd.f32 %v1523_v42, %v1453_v5 }
 0x187   : > { %v1015_v25 = vmul.f32 %v3707_v62, %v3877_v13  ;;  %v1970_v34 = vmax.f32 %v1938_v2, 0.0  ;;  %v1116_v17 = vmul.f32 %v3718_v50, %v3879_v37  ;;  %v1117_v52 = vmul.f32 %v3718_v50, %v3885_v36 }
 0x188   : > { %v1218_v44 = vmul.f32 %v3727_v27, %v3889_v7  ;;  %v2001_v61 = vmin.f32 %v1969_v26, 6.0  ;;  %v1657_v58 = vadd.f32 %v1625_v57, %v1554_v28  ;;  %v1658_v10 = vadd.f32 %v1626_v11, %v1555_v23 }
 0x189   : > { %v1219_v39 = vmul.f32 %v3727_v27, %v3891_v15  ;;  %v2002_v16 = vmin.f32 %v1970_v34, 6.0  ;;  %v1148_v32 = vadd.f32 %v1116_v17, %v1014_v0  ;;  %v1149_v31 = vadd.f32 %v1117_v52, %v1015_v25 }
 0x18a   : > { %v1320_v13 = vmul.f32 %v3804_v1, %v3938_v48  ;;  %v1759_v33 = vadd.f32 %v1727_v56, %v1657_v58  ;;  %v1760_v37 = vadd.f32 %v1728_v40, %v1658_v10  ;;  %v1321_v36 = vmul.f32 %v3804_v1, %v3940_v21 }
 0x18b   : > { %v1422_v7 = vmul.f32 %v3740_v59, %v3942_v43  ;;  %v2024_v9 = vpack.c.bf16 %v2002_v16, %v2001_v61  ;;  %v1250_v15 = vadd.f32 %v1218_v44, %v1148_v32  ;;  %v1251_v24 = vadd.f32 %v1219_v39, %v1149_v31 }
 0x18c   : > { %v1423_v63 = vmul.f32 %v3740_v59, %v3948_v49  ;;  %v1861_v45 = vadd.f32 %v1829_v3, %v1759_v33  ;;  %v1862_v4 = vadd.f32 %v1830_v8, %v1760_v37  ;;  %v1524_v41 = vmul.f32 %v3828_v20, %v3953_v46 }
 0x18d   : > { %v1525_v51 = vmul.f32 %v3828_v20, %v3955_v53  ;;  %2889 = vmatmul.mubr.msk.bf16.gmra.mxu1 %vm379_vm0, %v2024_v9  ;;  %v1352_v42 = vadd.f32 %v1320_v13, %v1250_v15  ;;  %v1353_v54 = vadd.f32 %v1321_v36, %v1251_v24  ;;  %v1627_v57 = vmul.f32 %v3768_v22, %v3991_v35 }
 0x18e   : > { %v1628_v11 = vmul.f32 %v3768_v22, %v3993_v47  ;;  %v1900_v56 = vmul.f32 %v3903_v38, %v1861_v45  ;;  %v1901_v60 = vmul.f32 %v3903_v38, %v1862_v4  ;;  %v1729_v18 = vmul.f32 %v3777_v6, %v3997_v30 }
 0x18f   : > { %v1730_v5 = vmul.f32 %v3777_v6, %v3999_v14  ;;  %v1454_v40 = vadd.f32 %v1422_v7, %v1352_v42  ;;  %v1455_v2 = vadd.f32 %v1423_v63, %v1353_v54  ;;  %v1831_v3 = vmul.f32 %v3849_v55, %v4005_v12  ;;  %v4044_v7 = vld [vmem:[#allocation2 + $0x158] sm:$0xff] }
 0x190   : > { %v1832_v8 = vmul.f32 %v3849_v55, %v4007_v29  ;;  %v1939_v0 = vadd.f32 %v3918_v19, %v1900_v56  ;;  %v1940_v26 = vadd.f32 %v3918_v19, %v1901_v60  ;;  %v1016_v28 = vmul.f32 %v3707_v62, %v3938_v48  ;;  %v4054_v42 = vld [vmem:[#allocation2 + $0x159] sm:$0xff] }
 0x191   : > { %v1017_v23 = vmul.f32 %v3707_v62, %v3940_v21  ;;  %v1556_v25 = vadd.f32 %v1524_v41, %v1454_v40  ;;  %v1557_v34 = vadd.f32 %v1525_v51, %v1455_v2  ;;  %v1118_v17 = vmul.f32 %v3718_v50, %v3942_v43  ;;  %v4056_v54 = vld [vmem:[#allocation2 + $0x152] sm:$0xff] }
 0x192   : > { %v1119_v52 = vmul.f32 %v3718_v50, %v3948_v49  ;;  %v1971_v44 = vmax.f32 %v1939_v0, 0.0  ;;  %v1972_v61 = vmax.f32 %v1940_v26, 0.0  ;;  %v1220_v58 = vmul.f32 %v3727_v27, %v3953_v46  ;;  %v4042_v46 = vld [vmem:[#allocation2 + $0x150] sm:$0xff] }
 0x193   : > { %v1221_v10 = vmul.f32 %v3727_v27, %v3955_v53  ;;  %v1659_v48 = vadd.f32 %v1627_v57, %v1556_v25  ;;  %v1660_v39 = vadd.f32 %v1628_v11, %v1557_v34  ;;  %v1150_v16 = vadd.f32 %v1118_v17, %v1016_v28  ;;  %v4046_v53 = vld [vmem:[#allocation2 + $0x151] sm:$0xff]  ;;  %v4058_v57 = vld [vmem:[#allocation2 + $0x15a] sm:$0xff] }
 0x194   : > { %v1151_v21 = vadd.f32 %v1119_v52, %v1017_v23  ;;  %v2003_v32 = vmin.f32 %v1971_v44, 6.0  ;;  %v2004_v31 = vmin.f32 %v1972_v61, 6.0  ;;  %v1322_v43 = vmul.f32 %v3804_v1, %v3991_v35 }
 0x195   : > { %v1323_v49 = vmul.f32 %v3804_v1, %v3993_v47  ;;  %v1761_v13 = vadd.f32 %v1729_v18, %v1659_v48  ;;  %v1762_v33 = vadd.f32 %v1730_v5, %v1660_v39  ;;  %v1252_v37 = vadd.f32 %v1220_v58, %v1150_v16 }
 0x196   : > { %v1253_v36 = vadd.f32 %v1221_v10, %v1151_v21  ;;  %v2025_v9 = vpack.c.bf16 %v2004_v31, %v2003_v32  ;;  %v1424_v15 = vmul.f32 %v3740_v59, %v3997_v30  ;;  %v1425_v24 = vmul.f32 %v3740_v59, %v3999_v14 }
 0x197   : > { %v1526_v63 = vmul.f32 %v3828_v20, %v4005_v12  ;;  %v1863_v45 = vadd.f32 %v1831_v3, %v1761_v13  ;;  %v1864_v4 = vadd.f32 %v1832_v8, %v1762_v33  ;;  %v1354_v41 = vadd.f32 %v1322_v43, %v1252_v37  ;;  %v4097_v37 = vld [vmem:[#allocation2 + $0x168] sm:$0xff] }
 0x198   : > { %v1355_v51 = vadd.f32 %v1323_v49, %v1253_v36  ;;  %2892 = vmatprep.mubr.msk.bf16.mxu1 %vm379_vm0, %v2025_v9  ;;  %v1527_v11 = vmul.f32 %v3828_v20, %v4007_v29  ;;  %v1629_v56 = vmul.f32 %v3768_v22, %v4042_v46  ;;  %v1630_v60 = vmul.f32 %v3768_v22, %v4044_v7  ;;  %v4099_v36 = vld [vmem:[#allocation2 + $0x170] sm:$0xff] }
 0x199   : > { %v1731_v18 = vmul.f32 %v3777_v6, %v4046_v53  ;;  %v1902_v5 = vmul.f32 %v3903_v38, %v1863_v45  ;;  %v1903_v40 = vmul.f32 %v3903_v38, %v1864_v4  ;;  %v1456_v2 = vadd.f32 %v1424_v15, %v1354_v41  ;;  %v4105_v45 = vld [vmem:[#allocation2 + $0x171] sm:$0xff] }
 0x19a   : > { %v1457_v3 = vadd.f32 %v1425_v24, %v1355_v51  ;;  %v1732_v8 = vmul.f32 %v3777_v6, %v4054_v42  ;;  %v1833_v0 = vmul.f32 %v3849_v55, %v4056_v54  ;;  %v1834_v26 = vmul.f32 %v3849_v55, %v4058_v57 }
 0x19b   : > { %v1018_v28 = vmul.f32 %v3707_v62, %v3991_v35  ;;  %v1941_v23 = vadd.f32 %v3918_v19, %v1902_v5  ;;  %v1942_v25 = vadd.f32 %v3918_v19, %v1903_v40  ;;  %v1558_v34 = vadd.f32 %v1526_v63, %v1456_v2  ;;  %v4103_v63 = vld [vmem:[#allocation2 + $0x169] sm:$0xff] }
 0x19c   : > { %v1559_v17 = vadd.f32 %v1527_v11, %v1457_v3  ;;  %v1019_v52 = vmul.f32 %v3707_v62, %v3993_v47  ;;  %v1120_v44 = vmul.f32 %v3718_v50, %v3997_v30  ;;  %v1121_v61 = vmul.f32 %v3718_v50, %v3999_v14 }
 0x19d   : > { %v1222_v58 = vmul.f32 %v3727_v27, %v4005_v12  ;;  %v1973_v10 = vmax.f32 %v1941_v23, 0.0  ;;  %v1974_v35 = vmax.f32 %v1942_v25, 0.0  ;;  %v1661_v48 = vadd.f32 %v1629_v56, %v1558_v34  ;;  %v4111_v56 = vld [vmem:[#allocation2 + $0x16a] sm:$0xff] }
 0x19e   : > { %v1662_v39 = vadd.f32 %v1630_v60, %v1559_v17  ;;  %v1152_v16 = vadd.f32 %v1120_v44, %v1018_v28  ;;  %v1153_v21 = vadd.f32 %v1121_v61, %v1019_v52  ;;  %v1223_v32 = vmul.f32 %v3727_v27, %v4007_v29  ;;  %v4113_v60 = vld [vmem:[#allocation2 + $0x172] sm:$0xff] }
 0x19f   : > { %v1324_v47 = vmul.f32 %v3804_v1, %v4042_v46  ;;  %v2005_v31 = vmin.f32 %v1973_v10, 6.0  ;;  %v2006_v30 = vmin.f32 %v1974_v35, 6.0  ;;  %v1763_v43 = vadd.f32 %v1731_v18, %v1661_v48 }
 0x1a0   : > { %v1764_v49 = vadd.f32 %v1732_v8, %v1662_v39  ;;  %v1254_v14 = vadd.f32 %v1222_v58, %v1152_v16  ;;  %v1255_v13 = vadd.f32 %v1223_v32, %v1153_v21  ;;  %v1325_v12 = vmul.f32 %v3804_v1, %v4044_v7 }
 0x1a1   : > { %v1426_v33 = vmul.f32 %v3740_v59, %v4046_v53  ;;  %v2026_v29 = vpack.c.bf16 %v2006_v30, %v2005_v31  ;;  %v1865_v9 = vadd.f32 %v1833_v0, %v1763_v43  ;;  %v1427_v24 = vmul.f32 %v3740_v59, %v4054_v42 }
 0x1a2   : > { %v1866_v15 = vadd.f32 %v1834_v26, %v1764_v49  ;;  %v1356_v4 = vadd.f32 %v1324_v47, %v1254_v14  ;;  %v1357_v41 = vadd.f32 %v1325_v12, %v1255_v13  ;;  %v1528_v51 = vmul.f32 %v3828_v20, %v4056_v54  ;;  %v1595_v12 = vld [vmem:[#allocation2 + $0x180] sm:$0xff] }
 0x1a3   : > { %v1529_v11 = vmul.f32 %v3828_v20, %v4058_v57  ;;  %2893 = vmatmul.mubr.msk.bf16.gmra.mxu1 %vm379_vm0, %v2026_v29  ;;  %v1904_v18 = vmul.f32 %v3903_v38, %v1865_v9  ;;  %v1631_v40 = vmul.f32 %v3768_v22, %v4097_v37  ;;  %v1632_v2 = vmul.f32 %v3768_v22, %v4099_v36 }
 0x1a4   : > { %v1905_v5 = vmul.f32 %v3903_v38, %v1866_v15  ;;  %v1458_v3 = vadd.f32 %v1426_v33, %v1356_v4  ;;  %v1459_v8 = vadd.f32 %v1427_v24, %v1357_v41  ;;  %v1733_v0 = vmul.f32 %v3777_v6, %v4103_v63  ;;  %v1697_v15 = vld [vmem:[#allocation2 + $0x181] sm:$0xff]  ;;  %v1698_v24 = vld [vmem:[#allocation2 + $0x189] sm:$0xff] }
 0x1a5   : > { %v1734_v26 = vmul.f32 %v3777_v6, %v4105_v45  ;;  %v1943_v28 = vadd.f32 %v3918_v19, %v1904_v18  ;;  %v1835_v25 = vmul.f32 %v3849_v55, %v4111_v56  ;;  %v1836_v34 = vmul.f32 %v3849_v55, %v4113_v60  ;;  %v1799_v18 = vld [vmem:[#allocation2 + $0x182] sm:$0xff] }
 0x1a6   : > { %v1944_v23 = vadd.f32 %v3918_v19, %v1905_v5  ;;  %v1560_v17 = vadd.f32 %v1528_v51, %v1458_v3  ;;  %v1561_v52 = vadd.f32 %v1529_v11, %v1459_v8  ;;  %v1020_v44 = vmul.f32 %v3707_v62, %v4042_v46 }
 0x1a7   : > { %v1021_v61 = vmul.f32 %v3707_v62, %v4044_v7  ;;  %v1975_v58 = vmax.f32 %v1943_v28, 0.0  ;;  %v1122_v35 = vmul.f32 %v3718_v50, %v4046_v53  ;;  %v1123_v48 = vmul.f32 %v3718_v50, %v4054_v42 }
 0x1a8   : > { %v1976_v10 = vmax.f32 %v1944_v23, 0.0  ;;  %v1663_v39 = vadd.f32 %v1631_v40, %v1560_v17  ;;  %v1664_v16 = vadd.f32 %v1632_v2, %v1561_v52  ;;  %v1224_v21 = vmul.f32 %v3727_v27, %v4056_v54  ;;  %v1596_v54 = vld [vmem:[#allocation2 + $0x188] sm:$0xff] }
 0x1a9   : > { %v1225_v32 = vmul.f32 %v3727_v27, %v4058_v57  ;;  %v2007_v46 = vmin.f32 %v1975_v58, 6.0  ;;  %v1154_v31 = vadd.f32 %v1122_v35, %v1020_v44  ;;  %v1155_v7 = vadd.f32 %v1123_v48, %v1021_v61 }
 0x1aa   : > { %v2008_v47 = vmin.f32 %v1976_v10, 6.0  ;;  %v1765_v30 = vadd.f32 %v1733_v0, %v1663_v39  ;;  %v1766_v43 = vadd.f32 %v1734_v26, %v1664_v16  ;;  %v1326_v53 = vmul.f32 %v3804_v1, %v4097_v37 }
 0x1ab   : > { %v1327_v42 = vmul.f32 %v3804_v1, %v4099_v36  ;;  %v1256_v14 = vadd.f32 %v1224_v21, %v1154_v31  ;;  %v1257_v13 = vadd.f32 %v1225_v32, %v1155_v7  ;;  %v1428_v57 = vmul.f32 %v3740_v59, %v4103_v63 }
 0x1ac   : > { %v2027_v49 = vpack.c.bf16 %v2008_v47, %v2007_v46  ;;  %v1867_v33 = vadd.f32 %v1835_v25, %v1765_v30  ;;  %v1868_v29 = vadd.f32 %v1836_v34, %v1766_v43  ;;  %v1429_v9 = vmul.f32 %v3740_v59, %v4105_v45  ;;  %v1800_v34 = vld [vmem:[#allocation2 + $0x18a] sm:$0xff] }
 0x1ad   : > { %v1358_v4 = vadd.f32 %v1326_v53, %v1256_v14  ;;  %v1359_v41 = vadd.f32 %v1327_v42, %v1257_v13  ;;  %v1530_v51 = vmul.f32 %v3828_v20, %v4111_v56  ;;  %v1531_v11 = vmul.f32 %v3828_v20, %v4113_v60  ;;  %v1597_v53 = vld [vmem:[#allocation2 + $0x198] sm:$0xff] }
 0x1ae   : > { %2896 = vmatprep.mubr.msk.bf16.mxu1 %vm379_vm0, %v2027_v49  ;;  %v1906_v5 = vmul.f32 %v3903_v38, %v1867_v33  ;;  %v1907_v40 = vmul.f32 %v3903_v38, %v1868_v29  ;;  %v1633_v2 = vmul.f32 %v3768_v22, %v1595_v12  ;;  %v1634_v3 = vmul.f32 %v3768_v22, %v1596_v54  ;;  %v1598_v33 = vld [vmem:[#allocation2 + $0x1a0] sm:$0xff] }
 0x1af   : > { %v1460_v8 = vadd.f32 %v1428_v57, %v1358_v4  ;;  %v1461_v0 = vadd.f32 %v1429_v9, %v1359_v41  ;;  %v1735_v26 = vmul.f32 %v3777_v6, %v1697_v15  ;;  %v1736_v28 = vmul.f32 %v3777_v6, %v1698_v24  ;;  %v1699_v57 = vld [vmem:[#allocation2 + $0x199] sm:$0xff]  ;;  %v1700_v4 = vld [vmem:[#allocation2 + $0x1a1] sm:$0xff] }
 0x1b0   : > { %v1945_v23 = vadd.f32 %v3918_v19, %v1906_v5  ;;  %v1946_v25 = vadd.f32 %v3918_v19, %v1907_v40  ;;  %v1837_v17 = vmul.f32 %v3849_v55, %v1799_v18  ;;  %v1022_v52 = vmul.f32 %v3707_v62, %v4097_v37  ;;  %v1802_v40 = vld [vmem:[#allocation2 + $0x1a2] sm:$0xff] }
 0x1b1   : > { %v1562_v44 = vadd.f32 %v1530_v51, %v1460_v8  ;;  %v1563_v61 = vadd.f32 %v1531_v11, %v1461_v0  ;;  %v1023_v58 = vmul.f32 %v3707_v62, %v4099_v36  ;;  %v1124_v10 = vmul.f32 %v3718_v50, %v4103_v63  ;;  %v1801_v11 = vld [vmem:[#allocation2 + $0x19a] sm:$0xff] }
 0x1b2   : > { %v1977_v35 = vmax.f32 %v1945_v23, 0.0  ;;  %v1978_v48 = vmax.f32 %v1946_v25, 0.0  ;;  %v1125_v39 = vmul.f32 %v3718_v50, %v4105_v45  ;;  %v1226_v16 = vmul.f32 %v3727_v27, %v4111_v56 }
 0x1b3   : > { %v1665_v21 = vadd.f32 %v1633_v2, %v1562_v44  ;;  %v1666_v32 = vadd.f32 %v1634_v3, %v1563_v61  ;;  %v1838_v37 = vmul.f32 %v3849_v55, %v1800_v34  ;;  %v1156_v46 = vadd.f32 %v1124_v10, %v1022_v52 }
 0x1b4   : > { %v2009_v47 = vmin.f32 %v1977_v35, 6.0  ;;  %v2010_v31 = vmin.f32 %v1978_v48, 6.0  ;;  %v1157_v7 = vadd.f32 %v1125_v39, %v1023_v58  ;;  %v1227_v62 = vmul.f32 %v3727_v27, %v4113_v60 }
 0x1b5   : > { %v1767_v36 = vadd.f32 %v1735_v26, %v1665_v21  ;;  %v1768_v63 = vadd.f32 %v1736_v28, %v1666_v32  ;;  %v1258_v30 = vadd.f32 %v1226_v16, %v1156_v46  ;;  %v1328_v43 = vmul.f32 %v3804_v1, %v1595_v12 }
 0x1b6   : > { %v2028_v50 = vpack.c.bf16 %v2010_v31, %v2009_v47  ;;  %v1259_v45 = vadd.f32 %v1227_v62, %v1157_v7  ;;  %v1329_v56 = vmul.f32 %v3804_v1, %v1596_v54  ;;  %v1430_v13 = vmul.f32 %v3740_v59, %v1697_v15 }
 0x1b7   : > { %v1869_v42 = vadd.f32 %v1837_v17, %v1767_v36  ;;  %v1870_v49 = vadd.f32 %v1838_v37, %v1768_v63  ;;  %v1360_v14 = vadd.f32 %v1328_v43, %v1258_v30  ;;  %v1431_v27 = vmul.f32 %v3740_v59, %v1698_v24  ;;  %v4205_v37 = vld [vmem:[%s4310_s8] ss:$0 sm:$0xff] }
 0x1b8   : > { %2897 = vmatmul.mubr.msk.bf16.gmra.mxu1 %vm379_vm0, %v2028_v50  ;;  %v1361_v29 = vadd.f32 %v1329_v56, %v1259_v45  ;;  %v1532_v60 = vmul.f32 %v3828_v20, %v1799_v18  ;;  %v1635_v54 = vmul.f32 %v3768_v22, %v1597_v53  ;;  %v1533_v15 = vmul.f32 %v3828_v20, %v1800_v34 }
 0x1b9   : > { %v1908_v12 = vmul.f32 %v3903_v38, %v1869_v42  ;;  %v1909_v9 = vmul.f32 %v3903_v38, %v1870_v49  ;;  %v1462_v1 = vadd.f32 %v1430_v13, %v1360_v14  ;;  %v1636_v51 = vmul.f32 %v3768_v22, %v1598_v33 }
 0x1ba   : > { %v1463_v41 = vadd.f32 %v1431_v27, %v1361_v29  ;;  %v1737_v18 = vmul.f32 %v3777_v6, %v1699_v57  ;;  %v1738_v3 = vmul.f32 %v3777_v6, %v1700_v4  ;;  %v1839_v28 = vmul.f32 %v3849_v55, %v1801_v11 }
 0x1bb   : > { %v1947_v5 = vadd.f32 %v3918_v19, %v1908_v12  ;;  %v1948_v59 = vadd.f32 %v3918_v19, %v1909_v9  ;;  %v1564_v24 = vadd.f32 %v1532_v60, %v1462_v1  ;;  %v1840_v22 = vmul.f32 %v3849_v55, %v1802_v40 }
 0x1bc   : > { %v1565_v2 = vadd.f32 %v1533_v15, %v1463_v41 }
 0x1bd   : > { %v1979_v8 = vmax.f32 %v1947_v5, 0.0  ;;  %v1980_v0 = vmax.f32 %v1948_v59, 0.0  ;;  %v1667_v26 = vadd.f32 %v1635_v54, %v1564_v24 }
 0x1be   : > { %v1668_v20 = vadd.f32 %v1636_v51, %v1565_v2 }
 0x1bf   : > { %v2011_v23 = vmin.f32 %v1979_v8, 6.0  ;;  %v2012_v25 = vmin.f32 %v1980_v0, 6.0  ;;  %v1769_v34 = vadd.f32 %v1737_v18, %v1667_v26 }
 0x1c0   : > { %v1770_v17 = vadd.f32 %v1738_v3, %v1668_v20 }
 0x1c1   : > { %v2029_v52 = vpack.c.bf16 %v2012_v25, %v2011_v23  ;;  %v1871_v44 = vadd.f32 %v1839_v28, %v1769_v34 }
 0x1c2   : > { %v1872_v61 = vadd.f32 %v1840_v22, %v1770_v17 }
 0x1c3   : > { %2900 = vmatprep.mubr.msk.bf16.mxu1 %vm379_vm0, %v2029_v52  ;;  %v1910_v58 = vmul.f32 %v3903_v38, %v1871_v44 }
 0x1c4   : > { %v1911_v6 = vmul.f32 %v3903_v38, %v1872_v61 }
 0x1c5   : > { %v1949_v10 = vadd.f32 %v3918_v19, %v1910_v58 }
 0x1c6   : > { %v1950_v35 = vadd.f32 %v3918_v19, %v1911_v6  ;;  %v4211_v19 = vld [vmem:[%s4311_s9] ss:$0 sm:$0xff] }
 0x1c7   : > { %v1981_v48 = vmax.f32 %v1949_v10, 0.0 }
 0x1c8   : > { %v1982_v39 = vmax.f32 %v1950_v35, 0.0 }
 0x1c9   : > { %v2013_v55 = vmin.f32 %v1981_v48, 6.0 }
 0x1ca   : > { %v2014_v16 = vmin.f32 %v1982_v39, 6.0 }
 0x1cc   : > { %v2030_v21 = vpack.c.bf16 %v2014_v16, %v2013_v55 }
 0x1ce   : > { %2901 = vmatmul.mubr.msk.bf16.gmra.mxu1 %vm379_vm0, %v2030_v21 }
 0x1ec   : > { %v2874_v32 = vpop.f32.mrf.mxu1 }
 0x1ed   : > { %v2265_v38 = vmul.f32 %v2874_v32, %v4205_v37 }
 0x1ee   : > { %v2129_v46 = vpop.f32.mrf.mxu1 }
 0x1ef   : > { %v2263_v31 = vmul.f32 %v4205_v37, %v2129_v46  ;;  %v2304_v36 = vadd.f32 %v4211_v19, %v2265_v38 }
 0x1f0   : > { %v2875_v47 = vpop.f32.mrf.mxu1 }
 0x1f1   : > { %v2266_v7 = vmul.f32 %v2875_v47, %v4205_v37  ;;  %v2302_v43 = vadd.f32 %v4211_v19, %v2263_v31 }
 0x1f2   : > { %v2132_v62 = vpop.f32.mrf.mxu1 }
 0x1f3   : > { %v2305_v63 = vadd.f32 %v4211_v19, %v2266_v7  ;;  %v2264_v30 = vmul.f32 %v4205_v37, %v2132_v62 }
 0x1f5   : > { %v2691_v50 = vpack.c.bf16 %v2305_v63, %v2304_v36  ;;  %v2303_v45 = vadd.f32 %v4211_v19, %v2264_v30 }
 0x1f7   : > { %2763 = vst [vmem:[%s4223_s25 + $0x8] sm:$0xff] %v2691_v50   ;;  %v2686_v56 = vpack.c.bf16 %v2303_v45, %v2302_v43 }
 0x1f9   : > { %2687 = vst [vmem:[%s4223_s25] sm:$0xff] %v2686_v56  }
 0x20a   : > { %v2878_v53 = vpop.f32.mrf.mxu1 }
 0x20b   : > { %v2269_v49 = vmul.f32 %v2878_v53, %v4205_v37 }
 0x20c   : > { %v2145_v42 = vpop.f32.mrf.mxu1 }
 0x20d   : > { %v2267_v13 = vmul.f32 %v4205_v37, %v2145_v42  ;;  %v2308_v27 = vadd.f32 %v4211_v19, %v2269_v49 }
 0x20e   : > { %v2879_v14 = vpop.f32.mrf.mxu1 }
 0x20f   : > { %v2270_v33 = vmul.f32 %v2879_v14, %v4205_v37  ;;  %v2306_v12 = vadd.f32 %v4211_v19, %v2267_v13 }
 0x210   : > { %v2148_v29 = vpop.f32.mrf.mxu1 }
 0x211   : > { %v2309_v60 = vadd.f32 %v4211_v19, %v2270_v33  ;;  %v2268_v57 = vmul.f32 %v4205_v37, %v2148_v29 }
 0x213   : > { %v2701_v9 = vpack.c.bf16 %v2309_v60, %v2308_v27  ;;  %v2307_v1 = vadd.f32 %v4211_v19, %v2268_v57 }
 0x215   : > { %2765 = vst [vmem:[%s4223_s25 + $0x18] sm:$0xff] %v2701_v9   ;;  %v2696_v54 = vpack.c.bf16 %v2307_v1, %v2306_v12 }
 0x217   : > { %2764 = vst [vmem:[%s4223_s25 + $0x10] sm:$0xff] %v2696_v54  }
 0x223   : > { %v2882_v4 = vpop.f32.mrf.mxu1 }
 0x224   : > { %v2273_v15 = vmul.f32 %v2882_v4, %v4205_v37 }
 0x225   : > { %v2161_v41 = vpop.f32.mrf.mxu1 }
 0x226   : > { %v2271_v11 = vmul.f32 %v4205_v37, %v2161_v41  ;;  %v2312_v24 = vadd.f32 %v4211_v19, %v2273_v15 }
 0x227   : > { %v2883_v51 = vpop.f32.mrf.mxu1 }
 0x228   : > { %v2274_v5 = vmul.f32 %v2883_v51, %v4205_v37  ;;  %v2310_v2 = vadd.f32 %v4211_v19, %v2271_v11 }
 0x229   : > { %v2164_v59 = vpop.f32.mrf.mxu1 }
 0x22a   : > { %v2313_v18 = vadd.f32 %v4211_v19, %v2274_v5  ;;  %v2272_v40 = vmul.f32 %v4205_v37, %v2164_v59 }
 0x22c   : > { %v2711_v3 = vpack.c.bf16 %v2313_v18, %v2312_v24  ;;  %v2311_v8 = vadd.f32 %v4211_v19, %v2272_v40 }
 0x22e   : > { %2767 = vst [vmem:[%s4223_s25 + $0x28] sm:$0xff] %v2711_v3   ;;  %v2706_v0 = vpack.c.bf16 %v2311_v8, %v2310_v2 }
 0x230   : > { %2766 = vst [vmem:[%s4223_s25 + $0x20] sm:$0xff] %v2706_v0  }
 0x239   : > { %v2886_v26 = vpop.f32.mrf.mxu1 }
 0x23a   : > { %v2277_v20 = vmul.f32 %v2886_v26, %v4205_v37 }
 0x23b   : > { %v2177_v28 = vpop.f32.mrf.mxu1 }
 0x23c   : > { %v2275_v23 = vmul.f32 %v4205_v37, %v2177_v28  ;;  %v2316_v17 = vadd.f32 %v4211_v19, %v2277_v20 }
 0x23d   : > { %v2887_v22 = vpop.f32.mrf.mxu1 }
 0x23e   : > { %v2278_v25 = vmul.f32 %v2887_v22, %v4205_v37  ;;  %v2314_v61 = vadd.f32 %v4211_v19, %v2275_v23 }
 0x23f   : > { %v2180_v34 = vpop.f32.mrf.mxu1 }
 0x240   : > { %v2317_v52 = vadd.f32 %v4211_v19, %v2278_v25  ;;  %v2276_v44 = vmul.f32 %v4205_v37, %v2180_v34 }
 0x242   : > { %v2721_v58 = vpack.c.bf16 %v2317_v52, %v2316_v17  ;;  %v2315_v6 = vadd.f32 %v4211_v19, %v2276_v44 }
 0x244   : > { %2769 = vst [vmem:[%s4223_s25 + $0x38] sm:$0xff] %v2721_v58   ;;  %v2716_v10 = vpack.c.bf16 %v2315_v6, %v2314_v61 }
 0x246   : > { %2768 = vst [vmem:[%s4223_s25 + $0x30] sm:$0xff] %v2716_v10  }
 0x24d   : > { %v2890_v35 = vpop.f32.mrf.mxu1 }
 0x24e   : > { %v2281_v39 = vmul.f32 %v2890_v35, %v4205_v37 }
 0x24f   : > { %v2193_v48 = vpop.f32.mrf.mxu1 }
 0x250   : > { %v2279_v16 = vmul.f32 %v4205_v37, %v2193_v48  ;;  %v2320_v46 = vadd.f32 %v4211_v19, %v2281_v39 }
 0x251   : > { %v2891_v55 = vpop.f32.mrf.mxu1 }
 0x252   : > { %v2282_v21 = vmul.f32 %v2891_v55, %v4205_v37  ;;  %v2318_v31 = vadd.f32 %v4211_v19, %v2279_v16 }
 0x253   : > { %v2196_v32 = vpop.f32.mrf.mxu1 }
 0x254   : > { %v2321_v38 = vadd.f32 %v4211_v19, %v2282_v21  ;;  %v2280_v47 = vmul.f32 %v4205_v37, %v2196_v32 }
 0x256   : > { %v2731_v7 = vpack.c.bf16 %v2321_v38, %v2320_v46  ;;  %v2319_v62 = vadd.f32 %v4211_v19, %v2280_v47 }
 0x258   : > { %2771 = vst [vmem:[%s4223_s25 + $0x48] sm:$0xff] %v2731_v7   ;;  %v2726_v36 = vpack.c.bf16 %v2319_v62, %v2318_v31 }
 0x25a   : > { %2770 = vst [vmem:[%s4223_s25 + $0x40] sm:$0xff] %v2726_v36  }
 0x263   : > { %v2894_v63 = vpop.f32.mrf.mxu1 }
 0x264   : > { %v2285_v43 = vmul.f32 %v2894_v63, %v4205_v37 }
 0x265   : > { %v2209_v30 = vpop.f32.mrf.mxu1 }
 0x266   : > { %v2283_v45 = vmul.f32 %v4205_v37, %v2209_v30  ;;  %v2324_v42 = vadd.f32 %v4211_v19, %v2285_v43 }
 0x267   : > { %v2895_v50 = vpop.f32.mrf.mxu1 }
 0x268   : > { %v2286_v56 = vmul.f32 %v2895_v50, %v4205_v37  ;;  %v2322_v13 = vadd.f32 %v4211_v19, %v2283_v45 }
 0x269   : > { %v2212_v53 = vpop.f32.mrf.mxu1 }
 0x26a   : > { %v2325_v49 = vadd.f32 %v4211_v19, %v2286_v56  ;;  %v2284_v14 = vmul.f32 %v4205_v37, %v2212_v53 }
 0x26c   : > { %v2741_v33 = vpack.c.bf16 %v2325_v49, %v2324_v42  ;;  %v2323_v29 = vadd.f32 %v4211_v19, %v2284_v14 }
 0x26e   : > { %2773 = vst [vmem:[%s4223_s25 + $0x58] sm:$0xff] %v2741_v33   ;;  %v2736_v27 = vpack.c.bf16 %v2323_v29, %v2322_v13 }
 0x270   : > { %2772 = vst [vmem:[%s4223_s25 + $0x50] sm:$0xff] %v2736_v27  }
 0x278   : > { %v2898_v60 = vpop.f32.mrf.mxu1 }
 0x279   : > { %v2289_v12 = vmul.f32 %v2898_v60, %v4205_v37 }
 0x27a   : > { %v2225_v57 = vpop.f32.mrf.mxu1 }
 0x27b   : > { %v2287_v1 = vmul.f32 %v4205_v37, %v2225_v57  ;;  %v2328_v41 = vadd.f32 %v4211_v19, %v2289_v12 }
 0x27c   : > { %v2899_v9 = vpop.f32.mrf.mxu1 }
 0x27d   : > { %v2290_v54 = vmul.f32 %v2899_v9, %v4205_v37  ;;  %v2326_v11 = vadd.f32 %v4211_v19, %v2287_v1 }
 0x27e   : > { %v2228_v4 = vpop.f32.mrf.mxu1 }
 0x27f   : > { %v2329_v15 = vadd.f32 %v4211_v19, %v2290_v54  ;;  %v2288_v51 = vmul.f32 %v4205_v37, %v2228_v4 }
 0x281   : > { %v2751_v5 = vpack.c.bf16 %v2329_v15, %v2328_v41  ;;  %v2327_v59 = vadd.f32 %v4211_v19, %v2288_v51 }
 0x283   : > { %2775 = vst [vmem:[%s4223_s25 + $0x68] sm:$0xff] %v2751_v5   ;;  %v2746_v24 = vpack.c.bf16 %v2327_v59, %v2326_v11 }
 0x285   : > { %2774 = vst [vmem:[%s4223_s25 + $0x60] sm:$0xff] %v2746_v24  }
 0x28e   : > { %v2902_v18 = vpop.f32.mrf.mxu1 }
 0x28f   : > { %v2293_v2 = vmul.f32 %v2902_v18, %v4205_v37 }
 0x290   : > { %v2241_v40 = vpop.f32.mrf.mxu1 }
 0x291   : > { %v2291_v8 = vmul.f32 %v4205_v37, %v2241_v40  ;;  %v2332_v28 = vadd.f32 %v4211_v19, %v2293_v2 }
 0x292   : > { %v2903_v3 = vpop.f32.mrf.mxu1 }
 0x293   : > { %v2294_v0 = vmul.f32 %v2903_v3, %v4205_v37  ;;  %v2330_v23 = vadd.f32 %v4211_v19, %v2291_v8 }
 0x294   : > { %v2244_v26 = vpop.f32.mrf.mxu1 }
 0x295   : > { %v2333_v20 = vadd.f32 %v4211_v19, %v2294_v0  ;;  %v2292_v22 = vmul.f32 %v4205_v37, %v2244_v26 }
 0x297   : > { %v2761_v25 = vpack.c.bf16 %v2333_v20, %v2332_v28  ;;  %v2331_v34 = vadd.f32 %v4211_v19, %v2292_v22 }
 0x299   : > { %2777 = vst [vmem:[%s4223_s25 + $0x78] sm:$0xff] %v2761_v25   ;;  %v2756_v17 = vpack.c.bf16 %v2331_v34, %v2330_v23 }
 0x29b   : > { %2776 = vst [vmem:[%s4223_s25 + $0x70] sm:$0xff] %v2756_v17  }
 0x29c PF: > { %s20_s13 = sadd.s32 1, %s2956_s13  }
 0x29d   : > { %p17_p4 = scmp.ge.s32.totalorder %s20_s13, 4  }
 0x29f   :  { %19 = sbr.rel (!%p17_p4) target bundleno = 1 (0x1), region = 92 }

// kernel: mobilenetv2_forward.10
= control target key start
LH: loop header
LB: loop body
LE: loop exit
PB: predicated region body
PF: predicated region fallthrough
CT: control target
= control target key end

     0   :  { %s2058_s15 = smov 0   ;;  %s2702_s0 = inlined_call_operand.vmem [shape: bf16[2,64,128], index: 0, kind: input, shape index: {}]   ;;  %s2703_s1 = inlined_call_operand.vmem [shape: bf16[128,1280], index: 1, kind: input, shape index: {}]   ;;  %s2704_s2 = inlined_call_operand.vmem [shape: f32[1,1280], index: 2, kind: input, shape index: {}]   ;;  %s2705_s3 = inlined_call_operand.vmem [shape: f32[1,1280], index: 3, kind: input, shape index: {}]   ;;  %s2706_s4 = inlined_call_operand.vmem [shape: f32[2,1,1280], index: 4, kind: output, shape index: {}]  }
   0x1 LB: > { %s1778_s16 = sadd.s32 4294967295, %s2029_s15   ;;  %p1782_p0 = scmp.ge.s32.totalorder %s2029_s15, 1  ;;  %s2029_s15 = sphi %s2058_s15, %s14_s15  }
   0x2   : > { %p162_p1 = scmp.lt.s32.totalorder %s2029_s15, 3 }
   0x4   : > { %p163_p2 = pnand %p1782_p0, %p162_p1 }
   0x5   : > { %p187_p3 = scmp.lt.s32.totalorder (!%p163_p2), %s1778_s16, 1 }
   0x6   : > { %166 = sbr.rel (%p163_p2) target bundleno = 385 (0x181), region = 36 }
   0xb   : > { %v1899_v0 = vld [vmem:[%s2703_s1 + $0x234] ss:$40 sps:$4 sm:$0xff]   ;;  %v2031_v2 = vmov 0   ;;  %v1903_v3 = vld [vmem:[%s2703_s1 + $0x230] ss:$40 sps:$4 sm:$0xff]   ;;  %s2708_s16 = smov (!%p187_p3, %s1778_s16), 1 }
   0xc   : > { %v1901_v1 = vld [vmem:[%s2703_s1 + $0x23c] ss:$40 sps:$4 sm:$0xff]   ;;  %741 = vmatprep.mubr.bf16.mxu0 %v2031_v2  ;;  %814 = vmatprep.mubr.bf16.mxu1 %v2031_v2  ;;  %v1904_v4 = vld [vmem:[%s2703_s1 + $0x238] ss:$40 sps:$4 sm:$0xff]   ;;  %v1907_v6 = vld [vmem:[%s2703_s1 + $0x1ec] ss:$40 sps:$4 sm:$0xff]  }
   0xd   : > { %709 = vmatprep.subr.bf16.mxu0 %v1899_v0  ;;  %782 = vmatprep.subr.bf16.mxu1 %v1901_v1  ;;  %v1905_v5 = vld [vmem:[%s2703_s1 + $0x1e4] ss:$40 sps:$4 sm:$0xff]   ;;  %v1909_v7 = vld [vmem:[%s2703_s1 + $0x1e0] ss:$40 sps:$4 sm:$0xff]   ;;  %v1911_v9 = vld [vmem:[%s2703_s1 + $0x194] ss:$40 sps:$4 sm:$0xff]  }
   0xe   : > { %710 = vmatpush1.bf16.msra.mxu0 %v1903_v3  ;;  %783 = vmatpush1.bf16.msra.mxu1 %v1904_v4  ;;  %v1910_v8 = vld [vmem:[%s2703_s1 + $0x1e8] ss:$40 sps:$4 sm:$0xff]   ;;  %v1913_v10 = vld [vmem:[%s2703_s1 + $0x19c] ss:$40 sps:$4 sm:$0xff]   ;;  %v1916_v12 = vld [vmem:[%s2703_s1 + $0x198] ss:$40 sps:$4 sm:$0xff]  }
   0xf   : > { %711 = vmatprep.subr.bf16.mxu0 %v1905_v5  ;;  %784 = vmatprep.subr.bf16.mxu1 %v1907_v6  ;;  %v1915_v11 = vld [vmem:[%s2703_s1 + $0x190] ss:$40 sps:$4 sm:$0xff]   ;;  %v1917_v13 = vld [vmem:[%s2703_s1 + $0x144] ss:$40 sps:$4 sm:$0xff]   ;;  %v1921_v15 = vld [vmem:[%s2703_s1 + $0x140] ss:$40 sps:$4 sm:$0xff]  }
  0x10   : > { %v1919_v14 = vld [vmem:[%s2703_s1 + $0x14c] ss:$40 sps:$4 sm:$0xff]   ;;  %v1922_v16 = vld [vmem:[%s2703_s1 + $0x148] ss:$40 sps:$4 sm:$0xff]   ;;  %v1925_v18 = vld [vmem:[%s2703_s1 + $0xfc] ss:$40 sps:$4 sm:$0xff]  }
  0x11   : > { %v1923_v17 = vld [vmem:[%s2703_s1 + $0xf4] ss:$40 sps:$4 sm:$0xff]   ;;  %v1927_v19 = vld [vmem:[%s2703_s1 + $0xf0] ss:$40 sps:$4 sm:$0xff]   ;;  %v1929_v21 = vld [vmem:[%s2703_s1 + $0xa4] ss:$40 sps:$4 sm:$0xff]  }
  0x12   : > { %712 = vmatpush1.bf16.msra.mxu0 %v1909_v7  ;;  %785 = vmatpush1.bf16.msra.mxu1 %v1910_v8  ;;  %v1928_v20 = vld [vmem:[%s2703_s1 + $0xf8] ss:$40 sps:$4 sm:$0xff]   ;;  %v1931_v22 = vld [vmem:[%s2703_s1 + $0xac] ss:$40 sps:$4 sm:$0xff]   ;;  %s1871_s11 = sshll.u32 %s2708_s16, 5  ;;  %s1888_s24 = smul.u32 10, %s2708_s16 }
  0x13   : > { %713 = vmatprep.subr.bf16.mxu0 %v1911_v9  ;;  %786 = vmatprep.subr.bf16.mxu1 %v1913_v10  ;;  %v1933_v23 = vld [vmem:[%s2703_s1 + $0xa0] ss:$40 sps:$4 sm:$0xff]   ;;  %v1935_v25 = vld [vmem:[%s2703_s1 + $0x54] ss:$40 sps:$4 sm:$0xff]   ;;  %s2153_s22 = scalar_lea.vmem %s2702_s0, %s1871_s11  ;;  %v1939_v27 = vld [vmem:[%s2703_s1 + $0x50] ss:$40 sps:$4 sm:$0xff]  }
  0x14   : > { %v1934_v24 = vld [vmem:[%s2703_s1 + $0xa8] ss:$40 sps:$4 sm:$0xff]   ;;  %v1937_v26 = vld [vmem:[%s2703_s1 + $0x5c] ss:$40 sps:$4 sm:$0xff]   ;;  %v1940_v28 = vld [vmem:[%s2703_s1 + $0x58] ss:$40 sps:$4 sm:$0xff]   ;;  %s2692_s26 = scalar_lea.vmem %s2706_s4, %s1888_s24 }
  0x15   : > { %v1941_v29 = vld [vmem:[%s2703_s1 + $0x4] ss:$40 sps:$4 sm:$0xff]   ;;  %v1945_v31 = vld [vmem:[%s2703_s1] ss:$40 sps:$4 sm:$0xff]   ;;  %v1956_v38 = vld [vmem:[%s2703_s1 + $0x1f4] ss:$40 sps:$4 sm:$0xff]  }
  0x16   : > { %714 = vmatpush1.bf16.msra.mxu0 %v1915_v11  ;;  %787 = vmatpush1.bf16.msra.mxu1 %v1916_v12  ;;  %v1943_v30 = vld [vmem:[%s2703_s1 + $0xc] ss:$40 sps:$4 sm:$0xff]   ;;  %v1946_v32 = vld [vmem:[%s2703_s1 + $0x8] ss:$40 sps:$4 sm:$0xff]   ;;  %v2183_v35 = vld [vmem:[%s2153_s22] sm:$0xff]  }
  0x17   : > { %715 = vmatprep.subr.bf16.mxu0 %v1917_v13  ;;  %788 = vmatprep.subr.bf16.mxu1 %v1919_v14  ;;  %v1950_v33 = vld [vmem:[%s2703_s1 + $0x244] ss:$40 sps:$4 sm:$0xff]   ;;  %v1948_v36 = vld [vmem:[%s2703_s1 + $0x240] ss:$40 sps:$4 sm:$0xff]   ;;  %v1954_v40 = vld [vmem:[%s2703_s1 + $0x1f0] ss:$40 sps:$4 sm:$0xff]  }
  0x18   : > { %v1953_v34 = vld [vmem:[%s2703_s1 + $0x24c] ss:$40 sps:$4 sm:$0xff]   ;;  %v1951_v37 = vld [vmem:[%s2703_s1 + $0x248] ss:$40 sps:$4 sm:$0xff]   ;;  %v1959_v39 = vld [vmem:[%s2703_s1 + $0x1fc] ss:$40 sps:$4 sm:$0xff]  }
  0x19   : > { %v1957_v41 = vld [vmem:[%s2703_s1 + $0x1f8] ss:$40 sps:$4 sm:$0xff]   ;;  %v1963_v42 = vld [vmem:[%s2703_s1 + $0x1a4] ss:$40 sps:$4 sm:$0xff]   ;;  %v1964_v46 = vld [vmem:[%s2703_s1 + $0x1a8] ss:$40 sps:$4 sm:$0xff]  }
  0x1a   : > { %716 = vmatpush1.bf16.msra.mxu0 %v1921_v15  ;;  %789 = vmatpush1.bf16.msra.mxu1 %v1922_v16  ;;  %v1966_v43 = vld [vmem:[%s2703_s1 + $0x1ac] ss:$40 sps:$4 sm:$0xff]   ;;  %v1961_v45 = vld [vmem:[%s2703_s1 + $0x1a0] ss:$40 sps:$4 sm:$0xff]   ;;  %v1972_v48 = vld [vmem:[%s2703_s1 + $0x15c] ss:$40 sps:$4 sm:$0xff]  }
  0x1b   : > { %717 = vmatprep.subr.bf16.mxu0 %v1923_v17  ;;  %790 = vmatprep.subr.bf16.mxu1 %v1925_v18  ;;  %v2214_v44 = vld [vmem:[%s2153_s22 + $0x8] sm:$0xff]   ;;  %v1969_v47 = vld [vmem:[%s2703_s1 + $0x154] ss:$40 sps:$4 sm:$0xff]   ;;  %v1967_v49 = vld [vmem:[%s2703_s1 + $0x150] ss:$40 sps:$4 sm:$0xff]  }
  0x1c   : > { %v1970_v50 = vld [vmem:[%s2703_s1 + $0x158] ss:$40 sps:$4 sm:$0xff]   ;;  %v1976_v51 = vld [vmem:[%s2703_s1 + $0x104] ss:$40 sps:$4 sm:$0xff]   ;;  %v2245_v53 = vld [vmem:[%s2153_s22 + $0x10] sm:$0xff]  }
  0x1d   : > { %v1979_v52 = vld [vmem:[%s2703_s1 + $0x10c] ss:$40 sps:$4 sm:$0xff]   ;;  %v1974_v54 = vld [vmem:[%s2703_s1 + $0x100] ss:$40 sps:$4 sm:$0xff]   ;;  %v1985_v57 = vld [vmem:[%s2703_s1 + $0xbc] ss:$40 sps:$4 sm:$0xff]  }
  0x1e   : > { %718 = vmatpush1.bf16.msra.mxu0 %v1927_v19  ;;  %791 = vmatpush1.bf16.msra.mxu1 %v1928_v20  ;;  %v1977_v55 = vld [vmem:[%s2703_s1 + $0x108] ss:$40 sps:$4 sm:$0xff]   ;;  %v1982_v56 = vld [vmem:[%s2703_s1 + $0xb4] ss:$40 sps:$4 sm:$0xff]   ;;  %v1983_v59 = vld [vmem:[%s2703_s1 + $0xb8] ss:$40 sps:$4 sm:$0xff]  }
  0x1f   : > { %719 = vmatprep.subr.bf16.mxu0 %v1929_v21  ;;  %792 = vmatprep.subr.bf16.mxu1 %v1931_v22  ;;  %v1980_v58 = vld [vmem:[%s2703_s1 + $0xb0] ss:$40 sps:$4 sm:$0xff]   ;;  %v1989_v60 = vld [vmem:[%s2703_s1 + $0x64] ss:$40 sps:$4 sm:$0xff]   ;;  %v1987_v63 = vld [vmem:[%s2703_s1 + $0x60] ss:$40 sps:$4 sm:$0xff]   ;;  %v1078_v22 = vlaneseq }
  0x20   : > { %v1992_v61 = vld [vmem:[%s2703_s1 + $0x6c] ss:$40 sps:$4 sm:$0xff]   ;;  %v2276_v62 = vld [vmem:[%s2153_s22 + $0x18] sm:$0xff]   ;;  %v1990_v0 = vld [vmem:[%s2703_s1 + $0x68] ss:$40 sps:$4 sm:$0xff]  }
  0x21   : > { %v1995_v1 = vld [vmem:[%s2703_s1 + $0x14] ss:$40 sps:$4 sm:$0xff]   ;;  %v1993_v4 = vld [vmem:[%s2703_s1 + $0x10] ss:$40 sps:$4 sm:$0xff]   ;;  %v2004_v8 = vld [vmem:[%s2703_s1 + $0x204] ss:$40 sps:$4 sm:$0xff]  }
  0x22   : > { %720 = vmatpush1.bf16.msra.mxu0 %v1933_v23  ;;  %793 = vmatpush1.bf16.msra.mxu1 %v1934_v24  ;;  %v1998_v3 = vld [vmem:[%s2703_s1 + $0x1c] ss:$40 sps:$4 sm:$0xff]   ;;  %v1996_v5 = vld [vmem:[%s2703_s1 + $0x18] ss:$40 sps:$4 sm:$0xff]   ;;  %v2371_v23 = vshrl.u32 %v1078_v22, 7  ;;  %vm1722_vm0 = vcmp.lt.s32.totalorder %v1078_v22, 256 }
  0x23   : > { %721 = vmatprep.subr.bf16.mxu0 %v1935_v25  ;;  %794 = vmatprep.subr.bf16.mxu1 %v1937_v26  ;;  %v2001_v6 = vld [vmem:[%s2703_s1 + $0x254] ss:$40 sps:$4 sm:$0xff]   ;;  %v1999_v7 = vld [vmem:[%s2703_s1 + $0x250] ss:$40 sps:$4 sm:$0xff]   ;;  %v2002_v9 = vld [vmem:[%s2703_s1 + $0x200] ss:$40 sps:$4 sm:$0xff]  }
  0x24   : > { %v2007_v10 = vld [vmem:[%s2703_s1 + $0x1b4] ss:$40 sps:$4 sm:$0xff]   ;;  %v2005_v11 = vld [vmem:[%s2703_s1 + $0x1b0] ss:$40 sps:$4 sm:$0xff]   ;;  %v2010_v12 = vld [vmem:[%s2703_s1 + $0x164] ss:$40 sps:$4 sm:$0xff]  }
  0x25   : > { %v2008_v13 = vld [vmem:[%s2703_s1 + $0x160] ss:$40 sps:$4 sm:$0xff]   ;;  %v2013_v14 = vld [vmem:[%s2703_s1 + $0x114] ss:$40 sps:$4 sm:$0xff]   ;;  %v2011_v15 = vld [vmem:[%s2703_s1 + $0x110] ss:$40 sps:$4 sm:$0xff]  }
  0x26   : > { %722 = vmatpush1.bf16.msra.mxu0 %v1939_v27  ;;  %795 = vmatpush1.bf16.msra.mxu1 %v1940_v28  ;;  %v2016_v16 = vld [vmem:[%s2703_s1 + $0xc4] ss:$40 sps:$4 sm:$0xff]   ;;  %v2014_v17 = vld [vmem:[%s2703_s1 + $0xc0] ss:$40 sps:$4 sm:$0xff]   ;;  %v2019_v18 = vld [vmem:[%s2703_s1 + $0x74] ss:$40 sps:$4 sm:$0xff]  }
  0x27   : > { %723 = vmatprep.subr.bf16.mxu0 %v1941_v29  ;;  %796 = vmatprep.subr.bf16.mxu1 %v1943_v30  ;;  %v2017_v19 = vld [vmem:[%s2703_s1 + $0x70] ss:$40 sps:$4 sm:$0xff]   ;;  %v2022_v20 = vld [vmem:[%s2703_s1 + $0x24] ss:$40 sps:$4 sm:$0xff]   ;;  %v2020_v21 = vld [vmem:[%s2703_s1 + $0x20] ss:$40 sps:$4 sm:$0xff]  }
  0x28   : > { %v2374_v24 = vsub.s32 0, %v2371_v23  ;;  %v1088_v25 = vsub.s32 2, %v2371_v23  ;;  %v1074_v26 = vld [vmem:[%s2704_s2] sm:$0xff]  ;;  %v2381_v27 = vsub.s32 1, %v2371_v23 }
  0x29   : > { %v1208_v28 = vld [vmem:[%s2705_s3] sm:$0xff] }
  0x2a   : > { %724 = vmatpush1.bf16.msra.mxu0 %v1945_v31  ;;  %797 = vmatpush1.bf16.msra.mxu1 %v1946_v32  ;;  %v2388_v29 = vrot.slane %v1074_v26, %v2374_v24  ;;  %v2390_v30 = vrot.slane %v1074_v26, %v1088_v25  ;;  %v1096_v31 = vsub.s32 4, %v2371_v23  ;;  %v2394_v32 = vrot.slane %v1208_v28, %v2374_v24 }
  0x2b   : > { %855 = vmatprep.subr.bf16.mxu0 %v1950_v33  ;;  %928 = vmatprep.subr.bf16.mxu1 %v1953_v34  ;;  %v2396_v33 = vrot.slane %v1208_v28, %v1088_v25  ;;  %v2399_v34 = vrot.slane %v1074_v26, %v2381_v27 }
  0x2d   : > { %742 = vmatmul.mubr.bf16.vlgmr.msra.gmra.mxu0 %v2183_v35  ;;  %815 = vmatmul.mubr.bf16.vlgmr.msra.gmra.mxu1 %v2183_v35 }
  0x2e   : > { %856 = vmatpush1.bf16.msra.mxu0 %v1948_v36  ;;  %929 = vmatpush1.bf16.msra.mxu1 %v1951_v37 }
  0x2f   : > { %857 = vmatprep.subr.bf16.mxu0 %v1956_v38  ;;  %930 = vmatprep.subr.bf16.mxu1 %v1959_v39  ;;  %v2404_v38 = vrot.slane %v1208_v28, %v2381_v27  ;;  %v1104_v39 = vsub.s32 6, %v2371_v23 }
  0x30   : > { %751 = vmatprep.mubr.bf16.mxu0 %v2031_v2  ;;  %824 = vmatprep.mubr.bf16.mxu1 %v2031_v2 }
  0x32   : > { %858 = vmatpush1.bf16.msra.mxu0 %v1954_v40  ;;  %931 = vmatpush1.bf16.msra.mxu1 %v1957_v41  ;;  %v1100_v40 = vsub.s32 5, %v2371_v23 }
  0x33   : > { %859 = vmatprep.subr.bf16.mxu0 %v1963_v42  ;;  %932 = vmatprep.subr.bf16.mxu1 %v1966_v43 }
  0x35   : > { %752 = vmatmul.mubr.bf16.gmra.mxu0 %v2214_v44  ;;  %825 = vmatmul.mubr.bf16.gmra.mxu1 %v2214_v44 }
  0x36   : > { %860 = vmatpush1.bf16.msra.mxu0 %v1961_v45  ;;  %933 = vmatpush1.bf16.msra.mxu1 %v1964_v46 }
  0x37   : > { %861 = vmatprep.subr.bf16.mxu0 %v1969_v47  ;;  %934 = vmatprep.subr.bf16.mxu1 %v1972_v48  ;;  %v2413_v47 = vrot.slane %v1074_v26, %v1096_v31 }
  0x38   : > { %761 = vmatprep.mubr.bf16.mxu0 %v2031_v2  ;;  %834 = vmatprep.mubr.bf16.mxu1 %v2031_v2 }
  0x3a   : > { %862 = vmatpush1.bf16.msra.mxu0 %v1967_v49  ;;  %935 = vmatpush1.bf16.msra.mxu1 %v1970_v50 }
  0x3b   : > { %863 = vmatprep.subr.bf16.mxu0 %v1976_v51  ;;  %936 = vmatprep.subr.bf16.mxu1 %v1979_v52 }
  0x3d   : > { %762 = vmatmul.mubr.bf16.gmra.mxu0 %v2245_v53  ;;  %835 = vmatmul.mubr.bf16.gmra.mxu1 %v2245_v53 }
  0x3e   : > { %864 = vmatpush1.bf16.msra.mxu0 %v1974_v54  ;;  %937 = vmatpush1.bf16.msra.mxu1 %v1977_v55  ;;  %v2419_v54 = vrot.slane %v1208_v28, %v1096_v31  ;;  %v2421_v55 = vrot.slane %v1074_v26, %v1104_v39 }
  0x3f   : > { %865 = vmatprep.subr.bf16.mxu0 %v1982_v56  ;;  %938 = vmatprep.subr.bf16.mxu1 %v1985_v57  ;;  %v2423_v56 = vrot.slane %v1074_v26, %v1100_v40  ;;  %v2425_v57 = vrot.slane %v1208_v28, %v1100_v40 }
  0x40   : > { %771 = vmatprep.mubr.bf16.mxu0 %v2031_v2  ;;  %844 = vmatprep.mubr.bf16.mxu1 %v2031_v2 }
  0x42   : > { %866 = vmatpush1.bf16.msra.mxu0 %v1980_v58  ;;  %939 = vmatpush1.bf16.msra.mxu1 %v1983_v59 }
  0x43   : > { %867 = vmatprep.subr.bf16.mxu0 %v1989_v60  ;;  %940 = vmatprep.subr.bf16.mxu1 %v1992_v61 }
  0x45   : > { %772 = vmatmul.mubr.bf16.gmra.mxu0 %v2276_v62  ;;  %845 = vmatmul.mubr.bf16.gmra.mxu1 %v2276_v62 }
  0x46   : > { %868 = vmatpush1.bf16.msra.mxu0 %v1987_v63  ;;  %941 = vmatpush1.bf16.msra.mxu1 %v1990_v0 }
  0x47   : > { %869 = vmatprep.subr.bf16.mxu0 %v1995_v1  ;;  %942 = vmatprep.subr.bf16.mxu1 %v1998_v3  ;;  %v2433_v3 = vrot.slane %v1208_v28, %v1104_v39 }
  0x48   : > { %887 = vmatprep.mubr.bf16.mxu0 %v2031_v2  ;;  %960 = vmatprep.mubr.bf16.mxu1 %v2031_v2 }
  0x4a   : > { %870 = vmatpush1.bf16.msra.mxu0 %v1993_v4  ;;  %943 = vmatpush1.bf16.msra.mxu1 %v1996_v5 }
  0x4b   : > { %1001 = vmatprep.subr.bf16.mxu0 %v2001_v6  ;;  %1872 = vmatprep.subr.bf16.mxu1 %v2001_v6 }
  0x4d   : > { %888 = vmatmul.mubr.bf16.vlgmr.msra.gmra.mxu0 %v2183_v35  ;;  %961 = vmatmul.mubr.bf16.vlgmr.msra.gmra.mxu1 %v2183_v35 }
  0x4e   : > { %1002 = vmatpush1.bf16.msra.mxu0 %v1999_v7  ;;  %1880 = vmatpush1.bf16.msra.mxu1 %v1999_v7 }
  0x4f   : > { %1003 = vmatprep.subr.bf16.mxu0 %v2004_v8  ;;  %897 = vmatprep.mubr.bf16.mxu0 %v2031_v2 }
  0x50   : > { %970 = vmatprep.mubr.bf16.mxu1 %v2031_v2  ;;  %1873 = vmatprep.subr.bf16.mxu1 %v2004_v8 }
  0x52   : > { %1004 = vmatpush1.bf16.msra.mxu0 %v2002_v9  ;;  %1881 = vmatpush1.bf16.msra.mxu1 %v2002_v9 }
  0x53   : > { %1005 = vmatprep.subr.bf16.mxu0 %v2007_v10  ;;  %1874 = vmatprep.subr.bf16.mxu1 %v2007_v10 }
  0x55   : > { %898 = vmatmul.mubr.bf16.gmra.mxu0 %v2214_v44  ;;  %971 = vmatmul.mubr.bf16.gmra.mxu1 %v2214_v44 }
  0x56   : > { %1006 = vmatpush1.bf16.msra.mxu0 %v2005_v11  ;;  %1882 = vmatpush1.bf16.msra.mxu1 %v2005_v11 }
  0x57   : > { %1007 = vmatprep.subr.bf16.mxu0 %v2010_v12  ;;  %907 = vmatprep.mubr.bf16.mxu0 %v2031_v2 }
  0x58   : > { %980 = vmatprep.mubr.bf16.mxu1 %v2031_v2  ;;  %1875 = vmatprep.subr.bf16.mxu1 %v2010_v12 }
  0x5a   : > { %1008 = vmatpush1.bf16.msra.mxu0 %v2008_v13  ;;  %1883 = vmatpush1.bf16.msra.mxu1 %v2008_v13 }
  0x5b   : > { %1009 = vmatprep.subr.bf16.mxu0 %v2013_v14  ;;  %1876 = vmatprep.subr.bf16.mxu1 %v2013_v14 }
  0x5d   : > { %908 = vmatmul.mubr.bf16.gmra.mxu0 %v2245_v53  ;;  %981 = vmatmul.mubr.bf16.gmra.mxu1 %v2245_v53 }
  0x5e   : > { %1010 = vmatpush1.bf16.msra.mxu0 %v2011_v15  ;;  %1884 = vmatpush1.bf16.msra.mxu1 %v2011_v15 }
  0x5f   : > { %1011 = vmatprep.subr.bf16.mxu0 %v2016_v16  ;;  %917 = vmatprep.mubr.bf16.mxu0 %v2031_v2 }
  0x60   : > { %990 = vmatprep.mubr.bf16.mxu1 %v2031_v2  ;;  %1877 = vmatprep.subr.bf16.mxu1 %v2016_v16 }
  0x62   : > { %1012 = vmatpush1.bf16.msra.mxu0 %v2014_v17  ;;  %1885 = vmatpush1.bf16.msra.mxu1 %v2014_v17 }
  0x63   : > { %1013 = vmatprep.subr.bf16.mxu0 %v2019_v18  ;;  %1878 = vmatprep.subr.bf16.mxu1 %v2019_v18 }
  0x65   : > { %918 = vmatmul.mubr.bf16.gmra.mxu0 %v2276_v62  ;;  %991 = vmatmul.mubr.bf16.gmra.mxu1 %v2276_v62 }
  0x66   : > { %1014 = vmatpush1.bf16.msra.mxu0 %v2017_v19  ;;  %1886 = vmatpush1.bf16.msra.mxu1 %v2017_v19 }
  0x67   : > { %1015 = vmatprep.subr.bf16.mxu0 %v2022_v20  ;;  %1879 = vmatprep.subr.bf16.mxu1 %v2022_v20 }
  0x68   : > { %1033 = vmatprep.mubr.bf16.mxu0 %v2031_v2  ;;  %1053 = vmatprep.mubr.bf16.mxu1 %v2031_v2 }
  0x6a   : > { %1016 = vmatpush1.bf16.msra.mxu0 %v2020_v21  ;;  %1887 = vmatpush1.bf16.msra.mxu1 %v2020_v21 }
  0x6d   : > { %1034 = vmatmul.mubr.bf16.vlgmr.msra.gmra.mxu0 %v2183_v35  ;;  %1054 = vmatmul.mubr.bf16.vlgmr.msra.gmra.mxu1 %v2245_v53 }
  0x6e   : > { %1043 = vmatprep.mubr.bf16.mxu0 %v2031_v2  ;;  %1063 = vmatprep.mubr.bf16.mxu1 %v2031_v2  ;;  %v1092_v2 = vsub.s32 3, %v2371_v23 }
  0x70   : > { %v2401_v35 = vrot.slane %v1074_v26, %v1092_v2  ;;  %v2410_v43 = vrot.slane %v1208_v28, %v1092_v2 }
  0x75   : > { %1044 = vmatmul.mubr.bf16.gmra.mxu0 %v2214_v44  ;;  %1064 = vmatmul.mubr.bf16.gmra.mxu1 %v2276_v62  ;;  %v1108_v44 = vsub.s32 7, %v2371_v23 }
  0x77   : > { %v2429_v61 = vrot.slane %v1074_v26, %v1108_v44  ;;  %v2435_v4 = vrot.slane %v1208_v28, %v1108_v44 }
  0xed   : > { %v743_v36 = vpop.f32.mrf.mxu0  ;;  %v816_v37 = vpop.f32.mrf.mxu1 }
  0xee   : > { %v1128_v41 = vmul.f32 %v2388_v29, %v743_v36  ;;  %v1130_v42 = vmul.f32 %v2390_v30, %v816_v37 }
  0xef   : > { %v745_v45 = vpop.f32.mrf.mxu0  ;;  %v818_v46 = vpop.f32.mrf.mxu1 }
  0xf0   : > { %v1262_v48 = vadd.f32 %v2394_v32, %v1128_v41  ;;  %v1264_v49 = vadd.f32 %v2396_v33, %v1130_v42  ;;  %v1129_v50 = vmul.f32 %v2399_v34, %v745_v45  ;;  %v1131_v51 = vmul.f32 %v2401_v35, %v818_v46 }
  0xf1   : > { %v747_v52 = vpop.f32.mrf.mxu0  ;;  %v820_v53 = vpop.f32.mrf.mxu1 }
  0xf2   : > { %v1344_v58 = vmax.f32 %v1264_v49, 0.0  ;;  %v1263_v59 = vadd.f32 %v2404_v38, %v1129_v50  ;;  %v1265_v60 = vadd.f32 %v2410_v43, %v1131_v51  ;;  %v1138_v62 = vmul.f32 %v2388_v29, %v747_v52 }
  0xf3   : > { %v1140_v63 = vmul.f32 %v2390_v30, %v820_v53  ;;  %v749_v0 = vpop.f32.mrf.mxu0  ;;  %v822_v1 = vpop.f32.mrf.mxu1  ;;  %v1342_v5 = vmax.f32 %v1262_v48, 0.0 }
  0xf4   : > { %v1424_v6 = vmin.f32 %v1344_v58, 6.0  ;;  %v1345_v7 = vmax.f32 %v1265_v60, 0.0  ;;  %v1272_v8 = vadd.f32 %v2394_v32, %v1138_v62  ;;  %v1139_v10 = vmul.f32 %v2399_v34, %v749_v0 }
  0xf5   : > { %v1274_v9 = vadd.f32 %v2396_v33, %v1140_v63  ;;  %v1141_v11 = vmul.f32 %v2401_v35, %v822_v1  ;;  %v753_v12 = vpop.f32.mrf.mxu0  ;;  %v826_v13 = vpop.f32.mrf.mxu1  ;;  %v1343_v14 = vmax.f32 %v1263_v59, 0.0  ;;  %v1422_v50 = vmin.f32 %v1342_v5, 6.0 }
  0xf6   : > { %v1425_v15 = vmin.f32 %v1345_v7, 6.0  ;;  %v1148_v16 = vmul.f32 %v2388_v29, %v753_v12  ;;  %v1150_v17 = vmul.f32 %v2390_v30, %v826_v13  ;;  %v1352_v18 = vmax.f32 %v1272_v8, 0.0 }
  0xf7   : > { %v1354_v19 = vmax.f32 %v1274_v9, 0.0  ;;  %v1273_v20 = vadd.f32 %v2404_v38, %v1139_v10  ;;  %v1275_v21 = vadd.f32 %v2410_v43, %v1141_v11  ;;  %v755_v25 = vpop.f32.mrf.mxu0  ;;  %v828_v26 = vpop.f32.mrf.mxu1  ;;  %v1423_v60 = vmin.f32 %v1343_v14, 6.0 }
  0xf8   : > { %v1282_v2 = vadd.f32 %v2394_v32, %v1148_v16  ;;  %v1284_v28 = vadd.f32 %v2396_v33, %v1150_v17  ;;  %v1149_v31 = vmul.f32 %v2399_v34, %v755_v25  ;;  %v1151_v36 = vmul.f32 %v2401_v35, %v828_v26 }
  0xf9   : > { %v1432_v37 = vmin.f32 %v1352_v18, 6.0  ;;  %v1434_v39 = vmin.f32 %v1354_v19, 6.0  ;;  %v1353_v40 = vmax.f32 %v1273_v20, 0.0  ;;  %v1355_v41 = vmax.f32 %v1275_v21, 0.0  ;;  %v757_v42 = vpop.f32.mrf.mxu0  ;;  %v830_v44 = vpop.f32.mrf.mxu1 }
  0xfa   : > { %v1362_v45 = vmax.f32 %v1282_v2, 0.0  ;;  %v1364_v46 = vmax.f32 %v1284_v28, 0.0  ;;  %v1283_v48 = vadd.f32 %v2404_v38, %v1149_v31  ;;  %v1285_v49 = vadd.f32 %v2410_v43, %v1151_v36 }
  0xfb   : > { %v1528_v51 = vadd.f32 %v1434_v39, %v1424_v6  ;;  %v1433_v52 = vmin.f32 %v1353_v40, 6.0  ;;  %v1435_v53 = vmin.f32 %v1355_v41, 6.0  ;;  %v759_v58 = vpop.f32.mrf.mxu0  ;;  %v832_v59 = vpop.f32.mrf.mxu1  ;;  %v1502_v1 = vadd.f32 %v1432_v37, %v1422_v50 }
  0xfc   : > { %v1444_v62 = vmin.f32 %v1364_v46, 6.0  ;;  %v1363_v63 = vmax.f32 %v1283_v48, 0.0  ;;  %v1365_v0 = vmax.f32 %v1285_v49, 0.0  ;;  %v1158_v7 = vmul.f32 %v2388_v29, %v757_v42 }
  0xfd   : > { %v1160_v8 = vmul.f32 %v2390_v30, %v830_v44  ;;  %v763_v9 = vpop.f32.mrf.mxu0  ;;  %v836_v10 = vpop.f32.mrf.mxu1  ;;  %v2032_v11 = vmov 1966171168   ;;  %v1515_v5 = vadd.f32 %v1433_v52, %v1423_v60  ;;  %v1541_v6 = vadd.f32 %v1435_v53, %v1425_v15 }
  0xfe   : > { %v2453_v12 = vunpack.c.l.s4 %v2032_v11  ;;  %v1442_v13 = vmin.f32 %v1362_v45, 6.0  ;;  %v1529_v16 = vadd.f32 %v1528_v51, %v1444_v62  ;;  %v1292_v17 = vadd.f32 %v2394_v32, %v1158_v7 }
  0xff   : > { %v1294_v14 = vadd.f32 %v2396_v33, %v1160_v8  ;;  %v1159_v18 = vmul.f32 %v2399_v34, %v759_v58  ;;  %v1161_v19 = vmul.f32 %v2401_v35, %v832_v59  ;;  %v765_v20 = vpop.f32.mrf.mxu0  ;;  %v838_v21 = vpop.f32.mrf.mxu1  ;;  %v1443_v25 = vmin.f32 %v1363_v63, 6.0 }
 0x100   : > { %v1445_v26 = vmin.f32 %v1365_v0, 6.0  ;;  %v1168_v2 = vmul.f32 %v2388_v29, %v763_v9  ;;  %v1170_v28 = vmul.f32 %v2390_v30, %v836_v10  ;;  %v1372_v31 = vmax.f32 %v1292_v17, 0.0 }
 0x101   : > { %v1374_v15 = vmax.f32 %v1294_v14, 0.0  ;;  %v1293_v36 = vadd.f32 %v2404_v38, %v1159_v18  ;;  %v1295_v37 = vadd.f32 %v2410_v43, %v1161_v19  ;;  %v767_v39 = vpop.f32.mrf.mxu0  ;;  %v840_v40 = vpop.f32.mrf.mxu1  ;;  %v1169_v44 = vmul.f32 %v2399_v34, %v765_v20 }
 0x102   : > { %v1302_v41 = vadd.f32 %v2394_v32, %v1168_v2  ;;  %v1304_v42 = vadd.f32 %v2396_v33, %v1170_v28  ;;  %v1171_v45 = vmul.f32 %v2401_v35, %v838_v21  ;;  %v1452_v46 = vmin.f32 %v1372_v31, 6.0 }
 0x103   : > { %v1454_v48 = vmin.f32 %v1374_v15, 6.0  ;;  %v1373_v49 = vmax.f32 %v1293_v36, 0.0  ;;  %v1375_v50 = vmax.f32 %v1295_v37, 0.0  ;;  %v769_v51 = vpop.f32.mrf.mxu0  ;;  %v842_v52 = vpop.f32.mrf.mxu1  ;;  %v1303_v59 = vadd.f32 %v2404_v38, %v1169_v44 }
 0x104   : > { %v1382_v53 = vmax.f32 %v1302_v41, 0.0  ;;  %v1384_v58 = vmax.f32 %v1304_v42, 0.0  ;;  %v1305_v60 = vadd.f32 %v2410_v43, %v1171_v45  ;;  %v1503_v62 = vadd.f32 %v1502_v1, %v1442_v13 }
 0x105   : > { %v1453_v63 = vmin.f32 %v1373_v49, 6.0  ;;  %v1455_v0 = vmin.f32 %v1375_v50, 6.0  ;;  %v773_v7 = vpop.f32.mrf.mxu0  ;;  %v846_v8 = vpop.f32.mrf.mxu1  ;;  %v1659_v9 = vunpack.c.0.s8 %v2453_v12  ;;  %v1516_v10 = vadd.f32 %v1515_v5, %v1443_v25 }
 0x106   : > { %v1542_v11 = vadd.f32 %v1541_v6, %v1445_v26  ;;  %v1383_v17 = vmax.f32 %v1303_v59, 0.0  ;;  %v1385_v14 = vmax.f32 %v1305_v60, 0.0  ;;  %v1504_v18 = vadd.f32 %v1503_v62, %v1452_v46 }
 0x107   : > { %v1530_v19 = vadd.f32 %v1529_v16, %v1454_v48  ;;  %v1178_v20 = vmul.f32 %v2388_v29, %v767_v39  ;;  %v1180_v21 = vmul.f32 %v2390_v30, %v840_v40  ;;  %v775_v2 = vpop.f32.mrf.mxu0  ;;  %v848_v28 = vpop.f32.mrf.mxu1  ;;  %v1517_v31 = vadd.f32 %v1516_v10, %v1453_v63 }
 0x108   : > { %v1543_v1 = vadd.f32 %v1542_v11, %v1455_v0  ;;  %v1462_v13 = vmin.f32 %v1382_v53, 6.0  ;;  %v1464_v15 = vmin.f32 %v1384_v58, 6.0  ;;  %v1179_v5 = vmul.f32 %v2399_v34, %v769_v51 }
 0x109   : > { %v1312_v36 = vadd.f32 %v2394_v32, %v1178_v20  ;;  %v1314_v37 = vadd.f32 %v2396_v33, %v1180_v21  ;;  %v1181_v6 = vmul.f32 %v2401_v35, %v842_v52  ;;  %v777_v25 = vpop.f32.mrf.mxu0  ;;  %v850_v16 = vpop.f32.mrf.mxu1  ;;  %v1463_v26 = vmin.f32 %v1383_v17, 6.0 }
 0x10a   : > { %v1465_v39 = vmin.f32 %v1385_v14, 6.0  ;;  %v1188_v40 = vmul.f32 %v2388_v29, %v773_v7  ;;  %v1190_v41 = vmul.f32 %v2390_v30, %v846_v8  ;;  %v1313_v45 = vadd.f32 %v2404_v38, %v1179_v5 }
 0x10b   : > { %v1392_v42 = vmax.f32 %v1312_v36, 0.0  ;;  %v1394_v44 = vmax.f32 %v1314_v37, 0.0  ;;  %v1315_v46 = vadd.f32 %v2410_v43, %v1181_v6  ;;  %v779_v48 = vpop.f32.mrf.mxu0  ;;  %v852_v49 = vpop.f32.mrf.mxu1  ;;  %v1189_v52 = vmul.f32 %v2399_v34, %v775_v2 }
 0x10c   : > { %v1322_v50 = vadd.f32 %v2394_v32, %v1188_v40  ;;  %v1324_v51 = vadd.f32 %v2396_v33, %v1190_v41  ;;  %v1191_v53 = vmul.f32 %v2401_v35, %v848_v28  ;;  %v1393_v60 = vmax.f32 %v1313_v45, 0.0 }
 0x10d   : > { %v1472_v58 = vmin.f32 %v1392_v42, 6.0  ;;  %v1474_v59 = vmin.f32 %v1394_v44, 6.0  ;;  %v1395_v62 = vmax.f32 %v1315_v46, 0.0  ;;  %v889_v63 = vpop.f32.mrf.mxu0  ;;  %v962_v0 = vpop.f32.mrf.mxu1  ;;  %v1323_v10 = vadd.f32 %v2404_v38, %v1189_v52 }
 0x10e   : > { %v1402_v7 = vmax.f32 %v1322_v50, 0.0  ;;  %v1404_v8 = vmax.f32 %v1324_v51, 0.0  ;;  %v1325_v11 = vadd.f32 %v2410_v43, %v1191_v53  ;;  %v1505_v17 = vadd.f32 %v1504_v18, %v1462_v13 }
 0x10f   : > { %v1531_v14 = vadd.f32 %v1530_v19, %v1464_v15  ;;  %v1473_v20 = vmin.f32 %v1393_v60, 6.0  ;;  %v1475_v21 = vmin.f32 %v1395_v62, 6.0  ;;  %v891_v36 = vpop.f32.mrf.mxu0  ;;  %v964_v2 = vpop.f32.mrf.mxu1  ;;  %v1518_v37 = vadd.f32 %v1517_v31, %v1463_v26 }
 0x110   : > { %v1544_v28 = vadd.f32 %v1543_v1, %v1465_v39  ;;  %v1403_v5 = vmax.f32 %v1323_v10, 0.0  ;;  %v1405_v6 = vmax.f32 %v1325_v11, 0.0  ;;  %v1506_v40 = vadd.f32 %v1505_v17, %v1472_v58 }
 0x111   : > { %v1532_v41 = vadd.f32 %v1531_v14, %v1474_v59  ;;  %v1198_v42 = vmul.f32 %v2388_v29, %v777_v25  ;;  %v1200_v44 = vmul.f32 %v2390_v30, %v850_v16  ;;  %v893_v45 = vpop.f32.mrf.mxu0  ;;  %v966_v46 = vpop.f32.mrf.mxu1  ;;  %v1519_v50 = vadd.f32 %v1518_v37, %v1473_v20 }
 0x112   : > { %v1545_v51 = vadd.f32 %v1544_v28, %v1475_v21  ;;  %v1482_v18 = vmin.f32 %v1402_v7, 6.0  ;;  %v1484_v19 = vmin.f32 %v1404_v8, 6.0  ;;  %v1199_v31 = vmul.f32 %v2399_v34, %v779_v48 }
 0x113   : > { %v1332_v13 = vadd.f32 %v2394_v32, %v1198_v42  ;;  %v1334_v15 = vadd.f32 %v2396_v33, %v1200_v44  ;;  %v1201_v1 = vmul.f32 %v2401_v35, %v852_v49  ;;  %v895_v26 = vpop.f32.mrf.mxu0  ;;  %v968_v39 = vpop.f32.mrf.mxu1  ;;  %v1483_v52 = vmin.f32 %v1403_v5, 6.0 }
 0x114   : > { %v1485_v29 = vmin.f32 %v1405_v6, 6.0  ;;  %v1132_v30 = vmul.f32 %v2413_v47, %v889_v63  ;;  %v1134_v25 = vmul.f32 %v2421_v55, %v962_v0  ;;  %v1333_v58 = vadd.f32 %v2404_v38, %v1199_v31 }
 0x115   : > { %v1412_v16 = vmax.f32 %v1332_v13, 0.0  ;;  %v1414_v53 = vmax.f32 %v1334_v15, 0.0  ;;  %v1335_v32 = vadd.f32 %v2410_v43, %v1201_v1  ;;  %v2496_v59 = vpop.f32.mrf.mxu0  ;;  %v2498_v33 = vpop.f32.mrf.mxu1  ;;  %v1507_v34 = vadd.f32 %v1506_v40, %v1482_v18 }
 0x116   : > { %v1533_v35 = vadd.f32 %v1532_v41, %v1484_v19  ;;  %v2501_v48 = vadd.f32 %v2419_v54, %v1132_v30  ;;  %v1268_v49 = vadd.f32 %v2433_v3, %v1134_v25  ;;  %v1413_v63 = vmax.f32 %v1333_v58, 0.0  ;;  %v1075_v58 = vld [vmem:[%s2704_s2 + $0x8] sm:$0x3] }
 0x117   : > { %v1492_v60 = vmin.f32 %v1412_v16, 6.0  ;;  %v1494_v62 = vmin.f32 %v1414_v53, 6.0  ;;  %v1415_v0 = vmax.f32 %v1335_v32, 0.0  ;;  %v2504_v7 = vpop.f32.mrf.mxu0  ;;  %v2506_v38 = vpop.f32.mrf.mxu1  ;;  %v1520_v43 = vadd.f32 %v1519_v50, %v1483_v52 }
 0x118   : > { %v1546_v8 = vadd.f32 %v1545_v51, %v1485_v29  ;;  %v1133_v10 = vmul.f32 %v2423_v56, %v891_v36  ;;  %v1135_v11 = vmul.f32 %v2429_v61, %v964_v2  ;;  %v1493_v20 = vmin.f32 %v1413_v63, 6.0  ;;  %v1209_v63 = vld [vmem:[%s2705_s3 + $0x8] sm:$0x3] }
 0x119   : > { %v1508_v17 = vadd.f32 %v1507_v34, %v1492_v60  ;;  %v1534_v14 = vadd.f32 %v1533_v35, %v1494_v62  ;;  %v1495_v21 = vmin.f32 %v1415_v0, 6.0  ;;  %v2510_v37 = vpop.f32.mrf.mxu0  ;;  %v2512_v28 = vpop.f32.mrf.mxu1  ;;  %v2517_v5 = vsub.s32 %v1659_v9, %v2371_v23 }
 0x11a   : > { %v1346_v6 = vmax.f32 %v2501_v48, 0.0  ;;  %v1348_v40 = vmax.f32 %v1268_v49, 0.0  ;;  %v1521_v42 = vadd.f32 %v1520_v43, %v1493_v20  ;;  %v1267_v50 = vadd.f32 %v2425_v57, %v1133_v10 }
 0x11b   : > { %v1509_v41 = vrot.slane %v1508_v17, 4  ;;  %v1535_v36 = vrot.slane %v1534_v14, 4  ;;  %v1547_v2 = vadd.f32 %v1546_v8, %v1495_v21  ;;  %v2520_v44 = vpop.f32.mrf.mxu0  ;;  %v1269_v51 = vadd.f32 %v2435_v4, %v1135_v11  ;;  %v2526_v15 = vpop.f32.mrf.mxu1 }
 0x11c   : > { %v1142_v18 = vmul.f32 %v2413_v47, %v893_v45  ;;  %v1144_v19 = vmul.f32 %v2421_v55, %v966_v46  ;;  %v1522_v9 = vrot.slane %v1521_v42, 4  ;;  %v1143_v29 = vmul.f32 %v2423_v56, %v895_v26 }
 0x11d   : > { %v1510_v12 = vadd.f32 %v1509_v41, %v1508_v17  ;;  %v1536_v23 = vadd.f32 %v1535_v36, %v1534_v14  ;;  %v1548_v13 = vrot.slane %v1547_v2, 4  ;;  %v2528_v31 = vpop.f32.mrf.mxu0  ;;  %v1145_v30 = vmul.f32 %v2429_v61, %v968_v39  ;;  %v2541_v62 = vpop.f32.mrf.mxu1 }
 0x11e   : > { %v1276_v1 = vadd.f32 %v2419_v54, %v1142_v18  ;;  %v1278_v52 = vadd.f32 %v2433_v3, %v1144_v19  ;;  %v1523_v16 = vadd.f32 %v1522_v9, %v1521_v42  ;;  %v1277_v35 = vadd.f32 %v2425_v57, %v1143_v29 }
 0x11f   : > { %v1511_v25 = vrot.slane %v1510_v12, 2  ;;  %v1537_v45 = vrot.slane %v1536_v23, 2  ;;  %v1549_v46 = vadd.f32 %v1548_v13, %v1547_v2  ;;  %v2534_v53 = vpop.f32.mrf.mxu0  ;;  %v1279_v48 = vadd.f32 %v2435_v4, %v1145_v30  ;;  %v984_v19 = vpop.f32.mrf.mxu1 }
 0x120   : > { %v1356_v32 = vmax.f32 %v1276_v1, 0.0  ;;  %v1358_v34 = vmax.f32 %v1278_v52, 0.0  ;;  %v1347_v60 = vmax.f32 %v1267_v50, 0.0  ;;  %v1349_v39 = vmax.f32 %v1269_v51, 0.0 }
 0x121   : > { %v1512_v49 = vadd.f32 %v1511_v25, %v1510_v12  ;;  %v1538_v26 = vadd.f32 %v1537_v45, %v1536_v23  ;;  %v1524_v0 = vrot.slane %v1523_v16, 2  ;;  %v1550_v43 = vrot.slane %v1549_v46, 2  ;;  %v2549_v21 = vpop.f32.mrf.mxu0 }
 0x122   : > { %v1428_v8 = vmin.f32 %v1348_v40, 6.0  ;;  %v2547_v10 = vrot.slane %v1075_v58, %v2374_v24  ;;  %v1436_v11 = vmin.f32 %v1356_v32, 6.0  ;;  %v1438_v17 = vmin.f32 %v1358_v34, 6.0 }
 0x123   : > { %v1357_v14 = vmax.f32 %v1277_v35, 0.0  ;;  %v1359_v20 = vmax.f32 %v1279_v48, 0.0  ;;  %v1426_v41 = vmin.f32 %v1346_v6, 6.0  ;;  %v2552_v36 = vrot.slane %v1209_v63, %v2374_v24  ;;  %v2564_v29 = vpop.f32.mrf.mxu0 }
 0x124   : > { %v2555_v42 = vrot.slane %v1075_v58, %v2381_v27  ;;  %v2558_v2 = vrot.slane %v1209_v63, %v2381_v27  ;;  %v1513_v40 = vrot.slane %v1512_v49, 1  ;;  %v1539_v50 = vrot.slane %v1538_v26, 1  ;;  %v986_v58 = vpop.f32.mrf.mxu1 }
 0x125   : > { %v1427_v51 = vmin.f32 %v1347_v60, 6.0  ;;  %v1429_v18 = vmin.f32 %v1349_v39, 6.0  ;;  %v1525_v12 = vadd.f32 %v1524_v0, %v1523_v16  ;;  %v1551_v23 = vadd.f32 %v1550_v43, %v1549_v46 }
 0x126   : > { %v1152_v9 = vmul.f32 %v2413_v47, %v2496_v59  ;;  %v1154_v24 = vmul.f32 %v2421_v55, %v2498_v33  ;;  %v1554_v6 = vadd.f32 %v1436_v11, %v1426_v41  ;;  %v1580_v13 = vadd.f32 %v1438_v17, %v1428_v8  ;;  %v988_v17 = vpop.f32.mrf.mxu1 }
 0x127   : > { %v1437_v1 = vmin.f32 %v1357_v14, 6.0  ;;  %v1439_v52 = vmin.f32 %v1359_v20, 6.0  ;;  %v1153_v25 = vmul.f32 %v2423_v56, %v2504_v7  ;;  %v1155_v45 = vmul.f32 %v2429_v61, %v2506_v38 }
 0x128   : > { %v1286_v27 = vadd.f32 %v2419_v54, %v1152_v9  ;;  %v1288_v30 = vadd.f32 %v2433_v3, %v1154_v24  ;;  %v1514_v59 = vadd.f32 %v1513_v40, %v1512_v49  ;;  %v1540_v16 = vadd.f32 %v1539_v50, %v1538_v26  ;;  %v2580_v49 = vpop.f32.mrf.mxu0 }
 0x129   : > { %v1162_v33 = vmul.f32 %v2413_v47, %v2510_v37  ;;  %v1164_v46 = vmul.f32 %v2421_v55, %v2512_v28  ;;  %v1287_v35 = vadd.f32 %v2425_v57, %v1153_v25  ;;  %v1289_v48 = vadd.f32 %v2435_v4, %v1155_v45 }
 0x12a   : > { %v1366_v32 = vmax.f32 %v1286_v27, 0.0  ;;  %v1368_v34 = vmax.f32 %v1288_v30, 0.0  ;;  %v1526_v60 = vrot.slane %v1525_v12, 1  ;;  %v1552_v7 = vrot.slane %v1551_v23, 1  ;;  %v921_v30 = vpop.f32.mrf.mxu0 }
 0x12b   : > { %v1296_v39 = vadd.f32 %v2419_v54, %v1162_v33  ;;  %v1298_v38 = vadd.f32 %v2433_v3, %v1164_v46  ;;  %v1367_v63 = vmax.f32 %v1287_v35, 0.0  ;;  %v1369_v0 = vmax.f32 %v1289_v48, 0.0 }
 0x12c   : > { %v1446_v26 = vmin.f32 %v1366_v32, 6.0  ;;  %v1448_v37 = vmin.f32 %v1368_v34, 6.0  ;;  %v1567_v28 = vadd.f32 %v1437_v1, %v1427_v51  ;;  %v1593_v43 = vadd.f32 %v1439_v52, %v1429_v18  ;;  %v923_v32 = vpop.f32.mrf.mxu0 }
 0x12d   : > { %v1376_v8 = vmax.f32 %v1296_v39, 0.0  ;;  %v1378_v11 = vmax.f32 %v1298_v38, 0.0  ;;  %v2582_v14 = vmul.f32 0.015625, %v1514_v59  ;;  %v2584_v20 = vmul.f32 0.015625, %v1540_v16 }
 0x12e   : > { %v1447_v41 = vmin.f32 %v1367_v63, 6.0  ;;  %v1449_v40 = vmin.f32 %v1369_v0, 6.0  ;;  %v1527_v50 = vadd.f32 %v1526_v60, %v1525_v12  ;;  %v2586_v9 = vadd.f32 %v1552_v7, %v1551_v23  ;;  %v992_v23 = vpop.f32.mrf.mxu1 }
 0x12f   : > { %v1555_v24 = vadd.f32 %v1554_v6, %v1446_v26  ;;  %v1163_v27 = vmul.f32 %v2423_v56, %v2520_v44  ;;  %v1581_v25 = vadd.f32 %v1580_v13, %v1448_v37  ;;  %v1456_v51 = vmin.f32 %v1376_v8, 6.0 }
 0x130   : > { %v1165_v18 = vmul.f32 %v2429_v61, %v2526_v15  ;;  %v1172_v1 = vmul.f32 %v2413_v47, %v2528_v31  ;;  %v1568_v52 = vadd.f32 %v1567_v28, %v1447_v41  ;;  %v1594_v45 = vadd.f32 %v1593_v43, %v1449_v40  ;;  %v925_v43 = vpop.f32.mrf.mxu0 }
 0x131   : > { %v1458_v59 = vmin.f32 %v1378_v11, 6.0  ;;  %v1297_v12 = vadd.f32 %v2425_v57, %v1163_v27  ;;  %v1174_v44 = vmul.f32 %v2421_v55, %v2541_v62  ;;  %v1173_v13 = vmul.f32 %v2423_v56, %v2534_v53 }
 0x132   : > { %v1299_v6 = vadd.f32 %v2435_v4, %v1165_v18  ;;  %v1306_v16 = vadd.f32 %v2419_v54, %v1172_v1  ;;  %v1175_v33 = vmul.f32 %v2429_v61, %v984_v19  ;;  %v1182_v31 = vmul.f32 %v2413_v47, %v2549_v21  ;;  %v994_v19 = vpop.f32.mrf.mxu1 }
 0x133   : > { %v1377_v15 = vmax.f32 %v1297_v12, 0.0  ;;  %v1184_v46 = vmul.f32 %v2421_v55, %v986_v58  ;;  %v1308_v48 = vadd.f32 %v2433_v3, %v1174_v44  ;;  %v1307_v60 = vadd.f32 %v2425_v57, %v1173_v13 }
 0x134   : > { %v1379_v34 = vmax.f32 %v1299_v6, 0.0  ;;  %v1386_v35 = vmax.f32 %v1306_v16, 0.0  ;;  %v1309_v62 = vadd.f32 %v2435_v4, %v1175_v33  ;;  %v1316_v53 = vadd.f32 %v2419_v54, %v1182_v31  ;;  %v996_v6 = vpop.f32.mrf.mxu1 }
 0x135   : > { %v1457_v7 = vmin.f32 %v1377_v15, 6.0  ;;  %v1318_v39 = vadd.f32 %v2433_v3, %v1184_v46  ;;  %v1388_v21 = vmax.f32 %v1308_v48, 0.0  ;;  %v1387_v37 = vmax.f32 %v1307_v60, 0.0 }
 0x136   : > { %v1459_v38 = vmin.f32 %v1379_v34, 6.0  ;;  %v1466_v26 = vmin.f32 %v1386_v35, 6.0  ;;  %v1556_v58 = vadd.f32 %v1555_v24, %v1456_v51  ;;  %v1389_v63 = vmax.f32 %v1309_v62, 0.0  ;;  %v998_v34 = vpop.f32.mrf.mxu1 }
 0x137   : > { %v1396_v0 = vmax.f32 %v1316_v53, 0.0  ;;  %v1398_v28 = vmax.f32 %v1318_v39, 0.0  ;;  %v2610_v8 = vmul.f32 0.015625, %v1527_v50  ;;  %v1582_v11 = vadd.f32 %v1581_v25, %v1458_v59 }
 0x138   : > { %v1468_v41 = vmin.f32 %v1388_v21, 6.0  ;;  %v1467_v40 = vmin.f32 %v1387_v37, 6.0  ;;  %v1569_v27 = vadd.f32 %v1568_v52, %v1457_v7  ;;  %v1595_v18 = vadd.f32 %v1594_v45, %v1459_v38  ;;  %v1035_v52 = vpop.f32.mrf.mxu0  ;;  %v1055_v38 = vpop.f32.mrf.mxu1 }
 0x139   : > { %v1557_v1 = vadd.f32 %v1556_v58, %v1466_v26  ;;  %v1183_v12 = vmul.f32 %v2423_v56, %v2564_v29  ;;  %v1469_v16 = vmin.f32 %v1389_v63, 6.0  ;;  %v1476_v44 = vmin.f32 %v1396_v0, 6.0 }
 0x13a   : > { %v1185_v24 = vmul.f32 %v2429_v61, %v988_v17  ;;  %v1192_v51 = vmul.f32 %v2413_v47, %v2580_v49  ;;  %v1583_v13 = vadd.f32 %v1582_v11, %v1468_v41  ;;  %v1478_v50 = vmin.f32 %v1398_v28, 6.0  ;;  %v1037_v39 = vpop.f32.mrf.mxu0 }
 0x13b   : > { %v1317_v25 = vadd.f32 %v2425_v57, %v1183_v12  ;;  %v1194_v59 = vmul.f32 %v2421_v55, %v992_v23  ;;  %v1570_v45 = vadd.f32 %v1569_v27, %v1467_v40  ;;  %v1193_v33 = vmul.f32 %v2423_v56, %v921_v30 }
 0x13c   : > { %v1319_v15 = vadd.f32 %v2435_v4, %v1185_v24  ;;  %v1326_v29 = vadd.f32 %v2419_v54, %v1192_v51  ;;  %v1195_v46 = vmul.f32 %v2429_v61, %v994_v19  ;;  %v1202_v49 = vmul.f32 %v2413_v47, %v923_v32  ;;  %v1039_v12 = vpop.f32.mrf.mxu0 }
 0x13d   : > { %v1397_v31 = vmax.f32 %v1317_v25, 0.0  ;;  %v1328_v17 = vadd.f32 %v2433_v3, %v1194_v59  ;;  %v1327_v23 = vadd.f32 %v2425_v57, %v1193_v33  ;;  %v1204_v60 = vmul.f32 %v2421_v55, %v996_v6 }
 0x13e   : > { %v1399_v35 = vmax.f32 %v1319_v15, 0.0  ;;  %v1406_v48 = vmax.f32 %v1326_v29, 0.0  ;;  %v1329_v53 = vadd.f32 %v2435_v4, %v1195_v46  ;;  %v1336_v30 = vadd.f32 %v2419_v54, %v1202_v49  ;;  %v1041_v29 = vpop.f32.mrf.mxu0 }
 0x13f   : > { %v1477_v7 = vmin.f32 %v1397_v31, 6.0  ;;  %v1408_v62 = vmax.f32 %v1328_v17, 0.0  ;;  %v1558_v26 = vadd.f32 %v1557_v1, %v1476_v44  ;;  %v1338_v47 = vadd.f32 %v2433_v3, %v1204_v60  ;;  %v1057_v1 = vpop.f32.mrf.mxu1 }
 0x140   : > { %v1479_v21 = vmin.f32 %v1399_v35, 6.0  ;;  %v1486_v19 = vmin.f32 %v1406_v48, 6.0  ;;  %v1407_v37 = vmax.f32 %v1327_v23, 0.0  ;;  %v1409_v58 = vmax.f32 %v1329_v53, 0.0 }
 0x141   : > { %v1488_v32 = vmin.f32 %v1408_v62, 6.0  ;;  %v1416_v63 = vmax.f32 %v1336_v30, 0.0  ;;  %v1636_v0 = vmul.f32 0.015625, %v2586_v9  ;;  %v1596_v55 = vadd.f32 %v1595_v18, %v1469_v16 }
 0x142   : > { %v1584_v28 = vadd.f32 %v1583_v13, %v1478_v50  ;;  %v1418_v11 = vmax.f32 %v1338_v47, 0.0  ;;  %v1571_v41 = vadd.f32 %v1570_v45, %v1477_v7  ;;  %v1559_v40 = vadd.f32 %v1558_v26, %v1486_v19 }
 0x143   : > { %v1496_v27 = vmin.f32 %v1416_v63, 6.0  ;;  %v1203_v54 = vmul.f32 %v2423_v56, %v925_v43  ;;  %v1597_v6 = vadd.f32 %v1596_v55, %v1479_v21  ;;  %v1205_v3 = vmul.f32 %v2429_v61, %v998_v34  ;;  %v1059_v61 = vpop.f32.mrf.mxu1 }
 0x144   : > { %v1585_v44 = vadd.f32 %v1584_v28, %v1488_v32  ;;  %v1498_v24 = vmin.f32 %v1418_v11, 6.0  ;;  %v1487_v51 = vmin.f32 %v1407_v37, 6.0  ;;  %v1489_v25 = vmin.f32 %v1409_v58, 6.0 }
 0x145   : > { %v1560_v59 = vadd.f32 %v1559_v40, %v1496_v27  ;;  %v1337_v9 = vadd.f32 %v2425_v57, %v1203_v54  ;;  %v1339_v16 = vadd.f32 %v2435_v4, %v1205_v3  ;;  %v1136_v13 = vmul.f32 %v2547_v10, %v1035_v52 }
 0x146   : > { %v1586_v18 = vadd.f32 %v1585_v44, %v1498_v24  ;;  %v1137_v50 = vmul.f32 %v2555_v42, %v1037_v39  ;;  %v1176_v45 = vmul.f32 %v2547_v10, %v1055_v38  ;;  %v1146_v15 = vmul.f32 %v2547_v10, %v1039_v12 }
 0x147   : > { %v1561_v56 = vrot.slane %v1560_v59, 4  ;;  %v1417_v43 = vmax.f32 %v1337_v9, 0.0  ;;  %v1653_v33 = vcombine.low %v2582_v14, %v2610_v8  ;;  %v1654_v57 = vcombine.low %v2584_v20, %v1636_v0  ;;  %v1045_v8 = vpop.f32.mrf.mxu0  ;;  %v1061_v20 = vpop.f32.mrf.mxu1 }
 0x148   : > { %v1587_v31 = vrot.slane %v1586_v18, 4  ;;  %v1419_v17 = vmax.f32 %v1339_v16, 0.0  ;;  %v1572_v4 = vadd.f32 %v1571_v41, %v1487_v51  ;;  %v1598_v46 = vadd.f32 %v1597_v6, %v1489_v25 }
 0x149   : > { %v1562_v52 = vadd.f32 %v1561_v56, %v1560_v59  ;;  %v1497_v49 = vmin.f32 %v1417_v43, 6.0  ;;  %v1270_v48 = vadd.f32 %v2552_v36, %v1136_v13  ;;  %v1271_v23 = vadd.f32 %v2558_v2, %v1137_v50  ;;  %v1047_v28 = vpop.f32.mrf.mxu0  ;;  %v1065_v11 = vpop.f32.mrf.mxu1 }
 0x14a   : > { %v1588_v34 = vadd.f32 %v1587_v31, %v1586_v18  ;;  %v1499_v35 = vmin.f32 %v1419_v17, 6.0  ;;  %v1310_v62 = vadd.f32 %v2552_v36, %v1176_v45  ;;  %v1280_v14 = vadd.f32 %v2552_v36, %v1146_v15 }
 0x14b   : > { %v1563_v60 = vrot.slane %v1562_v52, 2  ;;  %v1573_v7 = vadd.f32 %v1572_v4, %v1497_v49  ;;  %v2647_v53 = vrot.slane %v1653_v33, %v2517_v5  ;;  %v2650_v38 = vrot.slane %v1654_v57, %v2517_v5  ;;  %v1067_v50 = vpop.f32.mrf.mxu1 }
 0x14c   : > { %v1589_v30 = vrot.slane %v1588_v34, 2  ;;  %v1599_v39 = vadd.f32 %v1598_v46, %v1499_v35  ;;  %v1147_v19 = vmul.f32 %v2555_v42, %v1041_v29  ;;  %v1350_v37 = vmax.f32 %v1270_v48, 0.0 }
 0x14d   : > { %v1564_v26 = vadd.f32 %v1563_v60, %v1562_v52  ;;  %v1574_v21 = vrot.slane %v1573_v7, 4  ;;  %v1351_v58 = vmax.f32 %v1271_v23, 0.0  ;;  %v1390_v0 = vmax.f32 %v1310_v62, 0.0  ;;  %v1069_v48 = vpop.f32.mrf.mxu1 }
 0x14e   : > { %v1590_v47 = vadd.f32 %v1589_v30, %v1588_v34  ;;  %v1600_v32 = vrot.slane %v1599_v39, 4  ;;  %v1360_v55 = vmax.f32 %v1280_v14, 0.0  ;;  %v1177_v27 = vmul.f32 %v2555_v42, %v1057_v1  ;;  %v1049_v1 = vpop.f32.mrf.mxu0 }
 0x14f   : > { %v1575_v63 = vadd.f32 %v1574_v21, %v1573_v7  ;;  %v1565_v41 = vrot.slane %v1564_v26, 1  ;;  %v1186_v54 = vmul.f32 %v2547_v10, %v1059_v61  ;;  %v1685_v12 = vcombine.low %v2647_v53, %v2650_v38 }
 0x150   : > { %v1601_v40 = vadd.f32 %v1600_v32, %v1599_v39  ;;  %v1281_v44 = vadd.f32 %v2558_v2, %v1147_v19  ;;  %v1156_v24 = vmul.f32 %v2547_v10, %v1045_v8  ;;  %v1591_v3 = vrot.slane %v1590_v47, 1  ;;  %v1051_v14 = vpop.f32.mrf.mxu0 }
 0x151   : > { %v1576_v6 = vrot.slane %v1575_v63, 2  ;;  %v1430_v25 = vmin.f32 %v1350_v37, 6.0  ;;  %v1431_v59 = vmin.f32 %v1351_v58, 6.0  ;;  %v1470_v18 = vmin.f32 %v1390_v0, 6.0  ;;  %v1071_v0 = vpop.f32.mrf.mxu1 }
 0x152   : > { %v1602_v51 = vrot.slane %v1601_v40, 2  ;;  %v1440_v16 = vmin.f32 %v1360_v55, 6.0  ;;  %v1290_v13 = vadd.f32 %v2552_v36, %v1156_v24  ;;  %v1566_v56 = vadd.f32 %v1565_v41, %v1564_v26 }
 0x153   : > { %v1577_v9 = vadd.f32 %v1576_v6, %v1575_v63  ;;  %v2661_v45 = vadd.f32 %v2558_v2, %v1177_v27  ;;  %v1320_v15 = vadd.f32 %v2552_v36, %v1186_v54  ;;  %v1361_v61 = vmax.f32 %v1281_v44, 0.0 }
 0x154   : > { %v1603_v43 = vadd.f32 %v1602_v51, %v1601_v40  ;;  %v1370_v33 = vmax.f32 %v1290_v13, 0.0  ;;  %v1157_v57 = vmul.f32 %v2555_v42, %v1047_v28  ;;  %v1592_v31 = vadd.f32 %v1591_v3, %v1590_v47 }
 0x155   : > { %v1578_v29 = vrot.slane %v1577_v9, 1  ;;  %v1196_v4 = vmul.f32 %v2547_v10, %v1065_v11  ;;  %v1166_v46 = vmul.f32 %v2547_v10, %v1049_v1  ;;  %v1606_v49 = vadd.f32 %v1440_v16, %v1430_v25 }
 0x156   : > { %v1604_v17 = vrot.slane %v1603_v43, 1  ;;  %v1187_v34 = vmul.f32 %v2555_v42, %v1061_v20  ;;  %v1291_v35 = vadd.f32 %v2558_v2, %v1157_v57  ;;  %v1400_v60 = vmax.f32 %v1320_v15, 0.0 }
 0x157   : > { %v1579_v52 = vadd.f32 %v1578_v29, %v1577_v9  ;;  %v1450_v7 = vmin.f32 %v1370_v33, 6.0  ;;  %v1300_v62 = vadd.f32 %v2552_v36, %v1166_v46  ;;  %v1637_v8 = vmul.f32 0.015625, %v1566_v56 }
 0x158   : > { %v1605_v23 = vadd.f32 %v1604_v17, %v1603_v43  ;;  %v1371_v39 = vmax.f32 %v1291_v35, 0.0  ;;  %v1330_v26 = vadd.f32 %v2552_v36, %v1196_v4  ;;  %v1639_v21 = vmul.f32 0.015625, %v1592_v31 }
 0x159   : > { %v1638_v30 = vmul.f32 0.015625, %v1579_v52  ;;  %v1441_v47 = vmin.f32 %v1361_v61, 6.0  ;;  %v1380_v32 = vmax.f32 %v1300_v62, 0.0  ;;  %v1321_v20 = vadd.f32 %v2558_v2, %v1187_v34 }
 0x15a   : > { %v1640_v19 = vmul.f32 0.015625, %v1605_v23  ;;  %v1197_v58 = vmul.f32 %v2555_v42, %v1067_v50  ;;  %v1167_v63 = vmul.f32 %v2555_v42, %v1051_v14  ;;  %v1607_v28 = vadd.f32 %v1606_v49, %v1450_v7 }
 0x15b   : > { %v1655_v37 = vcombine.low %v1637_v8, %v1638_v30  ;;  %v1460_v11 = vmin.f32 %v1380_v32, 6.0  ;;  %v1206_v41 = vmul.f32 %v2547_v10, %v1069_v48  ;;  %v1451_v27 = vmin.f32 %v1371_v39, 6.0 }
 0x15c   : > { %v1656_v55 = vcombine.low %v1639_v21, %v1640_v19  ;;  %v1410_v54 = vmax.f32 %v1330_v26, 0.0  ;;  %v1301_v6 = vadd.f32 %v2558_v2, %v1167_v63  ;;  %v1207_v51 = vmul.f32 %v2555_v42, %v1071_v0 }
 0x15d   : > { %v1677_v40 = vrot.slane %v1655_v37, %v2517_v5  ;;  %v1608_v24 = vadd.f32 %v1607_v28, %v1460_v11  ;;  %v1340_v3 = vadd.f32 %v2552_v36, %v1206_v41  ;;  %v1391_v25 = vmax.f32 %v2661_v45, 0.0 }
 0x15e   : > { %v1684_v44 = vrot.slane %v1656_v55, %v2517_v5  ;;  %v1619_v9 = vadd.f32 %v1441_v47, %v1431_v59  ;;  %v1331_v16 = vadd.f32 %v2558_v2, %v1197_v58  ;;  %v1381_v10 = vmax.f32 %v1301_v6, 0.0 }
 0x15f   : > { %v1480_v1 = vmin.f32 %v1400_v60, 6.0  ;;  %v1609_v50 = vadd.f32 %v1608_v24, %v1470_v18  ;;  %v1420_v56 = vmax.f32 %v1340_v3, 0.0  ;;  %v1401_v43 = vmax.f32 %v1321_v20, 0.0 }
 0x160   : > { %v1686_v13 = vcombine.low %v1677_v40, %v1684_v44  ;;  %v1620_v15 = vadd.f32 %v1619_v9, %v1451_v27  ;;  %v1461_v29 = vmin.f32 %v1381_v10, 6.0  ;;  %v1341_v61 = vadd.f32 %v2558_v2, %v1207_v51 }
 0x161   : > { %v1693_v36 = vrot.slane %v1685_v12, %v2517_v5  ;;  %v1490_v59 = vmin.f32 %v1410_v54, 6.0  ;;  %v1610_v45 = vadd.f32 %v1609_v50, %v1480_v1  ;;  %v1471_v18 = vmin.f32 %v1391_v25, 6.0 }
 0x162   : > { %v1700_v42 = vrot.slane %v1686_v13, %v2517_v5  ;;  %v1411_v33 = vmax.f32 %v1331_v16, 0.0  ;;  %v1621_v57 = vadd.f32 %v1620_v15, %v1461_v29  ;;  %v1500_v2 = vmin.f32 %v1420_v56, 6.0 }
 0x163   : > { %v1611_v17 = vadd.f32 %v1610_v45, %v1490_v59  ;;  %v1481_v4 = vmin.f32 %v1401_v43, 6.0  ;;  %v1421_v53 = vmax.f32 %v1341_v61, 0.0 }
 0x164   : > { %v1701_v31 = vcombine.low %v1693_v36, %v1700_v42  ;;  %v1622_v46 = vadd.f32 %v1621_v57, %v1471_v18  ;;  %v1491_v12 = vmin.f32 %v1411_v33, 6.0 }
 0x165   : > { %v1612_v38 = vadd.f32 %v1611_v17, %v1500_v2  ;;  %v1501_v34 = vmin.f32 %v1421_v53, 6.0 }
 0x166   : > { %1719 = vst [vmem:[%s2692_s26] sm:$0xff] %v1701_v31  ;;  %v1623_v52 = vadd.f32 %v1622_v46, %v1481_v4 }
 0x167   : > { %v1613_v49 = vrot.slane %v1612_v38, 4 }
 0x168   : > { %v1624_v35 = vadd.f32 %v1623_v52, %v1491_v12 }
 0x169   : > { %v1614_v48 = vadd.f32 %v1613_v49, %v1612_v38 }
 0x16a   : > { %v1625_v23 = vadd.f32 %v1624_v35, %v1501_v34 }
 0x16b   : > { %v1615_v60 = vrot.slane %v1614_v48, 2 }
 0x16c   : > { %v1626_v7 = vrot.slane %v1625_v23, 4 }
 0x16d   : > { %v1616_v62 = vadd.f32 %v1615_v60, %v1614_v48 }
 0x16e   : > { %v1627_v14 = vadd.f32 %v1626_v7, %v1625_v23 }
 0x16f   : > { %v1617_v8 = vrot.slane %v1616_v62, 1 }
 0x170   : > { %v1628_v30 = vrot.slane %v1627_v14, 2 }
 0x171   : > { %v1618_v26 = vadd.f32 %v1617_v8, %v1616_v62 }
 0x172   : > { %v1629_v39 = vadd.f32 %v1628_v30, %v1627_v14 }
 0x173   : > { %v1641_v47 = vmul.f32 0.015625, %v1618_v26 }
 0x174   : > { %v1630_v21 = vrot.slane %v1629_v39, 1 }
 0x176   : > { %v1631_v19 = vadd.f32 %v1630_v21, %v1629_v39 }
 0x178   : > { %v1642_v32 = vmul.f32 0.015625, %v1631_v19 }
 0x17a   : > { %v1702_v37 = vcombine.low %v1641_v47, %v1642_v32 }
 0x17c   : > { %v1709_v20 = vrot.slane %v1702_v37, %v2517_v5 }
 0x17e   : > { %v1716_v58 = vrot.slane %v1709_v20, %v2517_v5 }
 0x180   : > { %1724 = vst.msk [vmem:[%s2692_s26 + $0x8] sm:$0x3] %vm1722_vm0, %v1716_v58 }
 0x181 PF: > { %s14_s15 = sadd.s32 1, %s2029_s15  }
 0x182   : > { %p11_p4 = scmp.ge.s32.totalorder %s14_s15, 4  }
 0x184   :  { %13 = sbr.rel (!%p11_p4) target bundleno = 1 (0x1), region = 66 }

// kernel: mobilenetv2_forward.8
= control target key start
LH: loop header
LB: loop body
LE: loop exit
PB: predicated region body
PF: predicated region fallthrough
CT: control target
= control target key end

     0   :  { %s2028_s13 = smov 0   ;;  %s2590_s0 = inlined_call_operand.vmem [shape: bf16[8,8,8,128], index: 0, kind: input, shape index: {}]   ;;  %s2591_s1 = inlined_call_operand.vmem [shape: bf16[128,96], index: 1, kind: input, shape index: {}]   ;;  %s2592_s2 = inlined_call_operand.vmem [shape: f32[1,96], index: 2, kind: input, shape index: {}]   ;;  %s2593_s3 = inlined_call_operand.vmem [shape: f32[1,96], index: 3, kind: input, shape index: {}]   ;;  %s2594_s4 = inlined_call_operand.vmem [shape: f32[9,1,96], index: 4, kind: input, shape index: {}]   ;;  %s2595_s5 = inlined_call_operand.vmem [shape: f32[1,96], index: 5, kind: input, shape index: {}]   ;;  %s2596_s6 = inlined_call_operand.vmem [shape: f32[1,96], index: 6, kind: input, shape index: {}]   ;;  %s2597_s7 = inlined_call_operand.vmem [shape: bf16[96,128], index: 7, kind: input, shape index: {}]   ;;  %s2598_s8 = inlined_call_operand.vmem [shape: f32[1,128], index: 8, kind: input, shape index: {}]   ;;  %s2599_s9 = inlined_call_operand.vmem [shape: f32[1,128], index: 9, kind: input, shape index: {}]   ;;  %s2600_s10 = inlined_call_operand.vmem [shape: bf16[2,8,8,128], index: 10, kind: output, shape index: {}]  }
   0x1 LB: > { %s2034_s14 = sadd.s32 4294967295, %s1970_s13   ;;  %p1633_p0 = scmp.ge.s32.totalorder %s1970_s13, 1  ;;  %s1970_s13 = sphi %s2028_s13, %s20_s13  }
   0x2   : > { %p314_p1 = scmp.lt.s32.totalorder %s1970_s13, 3 }
   0x4   : > { %p315_p2 = pnand %p1633_p0, %p314_p1 }
   0x5   : > { %s1634_s17 = sshll.u32 (!%p315_p2), %s2034_s14, 2  ;;  %p360_p4 = scmp.lt.s32.totalorder (!%p315_p2), %s2034_s14, 1 }
   0x6   : > { %318 = sbr.rel (%p315_p2) target bundleno = 542 (0x21e), region = 60  ;;  %p354_p3 = scmp.lt.s32.totalorder (!%p315_p2), %s1634_s17, 7 }
   0xb   : > { %v2041_v0 = vld [vmem:[%s2591_s1 + $0x38] sm:$0xff]   ;;  %v2047_v1 = vld [vmem:[%s2591_s1 + $0x30] sm:$0xff]   ;;  %vm384_vm0 = vcmask 785408   ;;  %s2602_s17 = smov (!%p354_p3, %s1634_s17), 7  ;;  %v2060_v2 = vld [vmem:[%s2591_s1 + $0x28] sm:$0xff]   ;;  %v1972_v3 = vmov 0.0  }
   0xc   : > { %1797 = vmatprep.subr.bf16.mxu0 %v2041_v0  ;;  %1821 = vmatprep.subr.bf16.mxu1 %v2041_v0  ;;  %s1714_s22 = sshll.u32 %s2602_s17, 5  ;;  %390 = vst.msk [vmem:[#allocation2 + $0x20] sm:$0xff] %vm384_vm0, %v1972_v3  ;;  %385 = vst.msk [vmem:[#allocation2] sm:$0xff] %vm384_vm0, %v1972_v3  ;;  %v2143_v4 = vld [vmem:[%s2591_s1 + $0x20] sm:$0xff]   ;;  %v1938_v7 = vld [vmem:[%s2591_s1 + $0x18] sm:$0xff]   ;;  %vm386_vm1 = vcmask 778240  }
   0xd   : > { %1798 = vmatpush3.bf16.msra.mxu0 %v2041_v0  ;;  %1822 = vmatpush3.bf16.msra.mxu1 %v2041_v0  ;;  %388 = vst.msk [vmem:[#allocation2 + $0x10] sm:$0xff] %vm384_vm0, %v1972_v3  ;;  %392 = vst.msk [vmem:[#allocation2 + $0x30] sm:$0xff] %vm384_vm0, %v1972_v3  ;;  %s2136_s25 = scalar_lea.vmem %s2590_s0, %s1714_s22  ;;  %v1939_v8 = vld [vmem:[%s2591_s1 + $0x10] sm:$0xff]   ;;  %v1940_v9 = vld [vmem:[%s2591_s1 + $0x8] sm:$0xff]   ;;  %s2604_s14 = smov (!%p360_p4, %s2034_s14), 1 }
   0xe   : > { %1799 = vmatprep.subr.bf16.mxu0 %v2047_v1  ;;  %1823 = vmatprep.subr.bf16.mxu1 %v2047_v1  ;;  %394 = vst.msk [vmem:[#allocation2 + $0x40] sm:$0xff] %vm384_vm0, %v1972_v3  ;;  %396 = vst.msk [vmem:[#allocation2 + $0x50] sm:$0xff] %vm384_vm0, %v1972_v3  ;;  %v1942_v5 = vld [vmem:[%s2136_s25] sm:$0xff]   ;;  %v1944_v11 = vld [vmem:[%s2136_s25 + $0x8] sm:$0xff]   ;;  %s1715_s24 = sshll.u32 %s2604_s14, 5 }
   0xf   : > { %398 = vst.msk [vmem:[#allocation2 + $0x60] sm:$0xff] %vm384_vm0, %v1972_v3  ;;  %400 = vst.msk [vmem:[#allocation2 + $0x70] sm:$0xff] %vm384_vm0, %v1972_v3  ;;  %v1943_v6 = vld [vmem:[%s2136_s25 + $0x20] sm:$0xff]   ;;  %1813 = vmatprep.mubr.bf16.mxu0 %v1942_v5  ;;  %v1945_v12 = vld [vmem:[%s2136_s25 + $0x28] sm:$0xff]   ;;  %s364_s27 = scalar_lea.vmem %s2600_s10, %s1715_s24 }
  0x10   : > { %404 = vst.msk [vmem:[#allocation2 + $0x90] sm:$0xff] %vm384_vm0, %v1972_v3  ;;  %406 = vst.msk [vmem:[#allocation2 + $0xa0] sm:$0xff] %vm384_vm0, %v1972_v3  ;;  %1837 = vmatprep.mubr.bf16.mxu1 %v1943_v6  ;;  %v1941_v10 = vld [vmem:[%s2591_s1] sm:$0xff]   ;;  %v1946_v13 = vld [vmem:[%s2136_s25 + $0x10] sm:$0xff]  }
  0x11   : > { %408 = vst.msk [vmem:[#allocation2 + $0xb0] sm:$0xff] %vm384_vm0, %v1972_v3  ;;  %410 = vst.msk [vmem:[#allocation2 + $0xc0] sm:$0xff] %vm384_vm0, %v1972_v3  ;;  %1800 = vmatpush3.bf16.msra.mxu0 %v2047_v1  ;;  %1824 = vmatpush3.bf16.msra.mxu1 %v2047_v1  ;;  %v1947_v14 = vld [vmem:[%s2136_s25 + $0x30] sm:$0xff]   ;;  %v1948_v15 = vld [vmem:[%s2136_s25 + $0x18] sm:$0xff]  }
  0x12   : > { %412 = vst.msk [vmem:[#allocation2 + $0xd0] sm:$0xff] %vm384_vm0, %v1972_v3  ;;  %414 = vst.msk [vmem:[#allocation2 + $0xe0] sm:$0xff] %vm384_vm0, %v1972_v3  ;;  %1801 = vmatprep.subr.bf16.mxu0 %v2060_v2  ;;  %1825 = vmatprep.subr.bf16.mxu1 %v2060_v2  ;;  %v1949_v16 = vld [vmem:[%s2136_s25 + $0x38] sm:$0xff]   ;;  %v1950_v17 = vld [vmem:[%s2136_s25 + $0x40] sm:$0xff]  }
  0x13   : > { %416 = vst.msk [vmem:[#allocation2 + $0xf0] sm:$0xff] %vm384_vm0, %v1972_v3  ;;  %418 = vst.msk [vmem:[#allocation2 + $0x100] sm:$0xff] %vm384_vm0, %v1972_v3  ;;  %v1951_v18 = vld [vmem:[%s2136_s25 + $0x60] sm:$0xff]   ;;  %v1952_v19 = vld [vmem:[%s2136_s25 + $0x48] sm:$0xff]  }
  0x14   : > { %422 = vst.msk [vmem:[#allocation2 + $0x120] sm:$0xff] %vm384_vm0, %v1972_v3  ;;  %424 = vst.msk [vmem:[#allocation2 + $0x130] sm:$0xff] %vm384_vm0, %v1972_v3  ;;  %v1953_v20 = vld [vmem:[%s2136_s25 + $0x68] sm:$0xff]   ;;  %v1954_v21 = vld [vmem:[%s2136_s25 + $0x50] sm:$0xff]  }
  0x15   : > { %426 = vst.msk [vmem:[#allocation2 + $0x140] sm:$0xff] %vm384_vm0, %v1972_v3  ;;  %428 = vst.msk [vmem:[#allocation2 + $0x150] sm:$0xff] %vm384_vm0, %v1972_v3  ;;  %1802 = vmatpush3.bf16.msra.mxu0 %v2060_v2  ;;  %1826 = vmatpush3.bf16.msra.mxu1 %v2060_v2  ;;  %v1955_v22 = vld [vmem:[%s2136_s25 + $0x70] sm:$0xff]   ;;  %v1956_v23 = vld [vmem:[%s2136_s25 + $0x58] sm:$0xff]  }
  0x16   : > { %430 = vst.msk [vmem:[#allocation2 + $0x160] sm:$0xff] %vm384_vm0, %v1972_v3  ;;  %432 = vst.msk [vmem:[#allocation2 + $0x170] sm:$0xff] %vm384_vm0, %v1972_v3  ;;  %1803 = vmatprep.subr.bf16.mxu0 %v2143_v4  ;;  %1827 = vmatprep.subr.bf16.mxu1 %v2143_v4  ;;  %v1957_v24 = vld [vmem:[%s2136_s25 + $0x78] sm:$0xff]   ;;  %v1958_v25 = vld [vmem:[%s2597_s7 + $0x28] sm:$0xff]  }
  0x17   : > { %434 = vst.msk [vmem:[#allocation2 + $0x180] sm:$0xff] %vm384_vm0, %v1972_v3  ;;  %436 = vst.msk [vmem:[#allocation2 + $0x190] sm:$0xff] %vm384_vm0, %v1972_v3  ;;  %v1959_v26 = vld [vmem:[%s2597_s7 + $0x20] sm:$0xff]   ;;  %v1960_v27 = vld [vmem:[%s2597_s7 + $0x18] sm:$0xff]  }
  0x18   : > { %438 = vst.msk [vmem:[#allocation2 + $0x1a0] sm:$0xff] %vm384_vm0, %v1972_v3  ;;  %440 = vst.msk [vmem:[#allocation2 + $0x1b0] sm:$0xff] %vm384_vm0, %v1972_v3  ;;  %v1961_v28 = vld [vmem:[%s2597_s7 + $0x10] sm:$0xff]   ;;  %v1962_v29 = vld [vmem:[%s2597_s7 + $0x8] sm:$0xff]  }
  0x19   : > { %442 = vst.msk [vmem:[#allocation2 + $0x1c0] sm:$0xff] %vm384_vm0, %v1972_v3  ;;  %444 = vst.msk [vmem:[#allocation2 + $0x1d0] sm:$0xff] %vm384_vm0, %v1972_v3  ;;  %1804 = vmatpush3.bf16.msra.mxu0 %v2143_v4  ;;  %1828 = vmatpush3.bf16.msra.mxu1 %v2143_v4  ;;  %v1963_v30 = vld [vmem:[%s2597_s7] sm:$0xff]  }
  0x1a   : > { %446 = vst.msk [vmem:[#allocation2 + $0x1e0] sm:$0xff] %vm384_vm0, %v1972_v3  ;;  %448 = vst.msk [vmem:[#allocation2 + $0x1f0] sm:$0xff] %vm384_vm0, %v1972_v3  ;;  %1805 = vmatprep.subr.bf16.mxu0 %v1938_v7  ;;  %1829 = vmatprep.subr.bf16.mxu1 %v1938_v7  ;;  %v2252_v31 = vld [vmem:[%s2592_s2] ss:$0 sm:$0xff]  ;;  %v2273_v44 = vld [vmem:[%s2594_s4 + $0x1] ss:$0 sm:$0xff] }
  0x1b   : > { %450 = vst.msk [vmem:[#allocation2 + $0x200] sm:$0xff] %vm384_vm0, %v1972_v3  ;;  %452 = vst.msk [vmem:[#allocation2 + $0x210] sm:$0xff] %vm384_vm0, %v1972_v3  ;;  %v2257_v32 = vld [vmem:[%s2593_s3] ss:$0 sm:$0xff] }
  0x1c   : > { %454 = vst.msk [vmem:[#allocation2 + $0x220] sm:$0xff] %vm384_vm0, %v1972_v3  ;;  %456 = vst.msk [vmem:[#allocation2 + $0x230] sm:$0xff] %vm384_vm0, %v1972_v3  ;;  %v2264_v39 = vld [vmem:[%s2594_s4] ss:$0 sm:$0xff] }
  0x1d   : > { %1806 = vmatpush3.bf16.msra.mxu0 %v1938_v7  ;;  %1830 = vmatpush3.bf16.msra.mxu1 %v1938_v7  ;;  %409 = vst.msk [vmem:[#allocation2 + $0xb8] sm:$0x1] %vm386_vm1, %v1972_v3  ;;  %405 = vst.msk [vmem:[#allocation2 + $0x98] sm:$0x1] %vm386_vm1, %v1972_v3  ;;  %v1113_v46 = vld [vmem:[#allocation2 + $0x120] sm:$0xff] }
  0x1e   : > { %1807 = vmatprep.subr.bf16.mxu0 %v1939_v8  ;;  %1831 = vmatprep.subr.bf16.mxu1 %v1939_v8  ;;  %407 = vst.msk [vmem:[#allocation2 + $0xa8] sm:$0x1] %vm386_vm1, %v1972_v3  ;;  %411 = vst.msk [vmem:[#allocation2 + $0xc8] sm:$0x1] %vm386_vm1, %v1972_v3  ;;  %v2283_v58 = vmul.f32 %v2273_v44, %v1113_v46 }
  0x1f   : > { %413 = vst.msk [vmem:[#allocation2 + $0xd8] sm:$0x1] %vm386_vm1, %v1972_v3  ;;  %415 = vst.msk [vmem:[#allocation2 + $0xe8] sm:$0x1] %vm386_vm1, %v1972_v3  ;;  %v1082_v45 = vld [vmem:[#allocation2 + $0x1b0] sm:$0xff] }
  0x20   : > { %417 = vst.msk [vmem:[#allocation2 + $0xf8] sm:$0x1] %vm386_vm1, %v1972_v3  ;;  %419 = vst.msk [vmem:[#allocation2 + $0x108] sm:$0x1] %vm386_vm1, %v1972_v3  ;;  %v2280_v57 = vmul.f32 %v2264_v39, %v1082_v45 }
  0x21   : > { %1808 = vmatpush3.bf16.msra.mxu0 %v1939_v8  ;;  %1832 = vmatpush3.bf16.msra.mxu1 %v1939_v8  ;;  %441 = vst.msk [vmem:[#allocation2 + $0x1b8] sm:$0x1] %vm386_vm1, %v1972_v3  ;;  %443 = vst.msk [vmem:[#allocation2 + $0x1c8] sm:$0x1] %vm386_vm1, %v1972_v3 }
  0x22   : > { %1809 = vmatprep.subr.bf16.mxu0 %v1940_v9  ;;  %1833 = vmatprep.subr.bf16.mxu1 %v1940_v9  ;;  %445 = vst.msk [vmem:[#allocation2 + $0x1d8] sm:$0x1] %vm386_vm1, %v1972_v3  ;;  %447 = vst.msk [vmem:[#allocation2 + $0x1e8] sm:$0x1] %vm386_vm1, %v1972_v3 }
  0x23   : > { %449 = vst.msk [vmem:[#allocation2 + $0x1f8] sm:$0x1] %vm386_vm1, %v1972_v3  ;;  %451 = vst.msk [vmem:[#allocation2 + $0x208] sm:$0x1] %vm386_vm1, %v1972_v3 }
  0x24   : > { %453 = vst.msk [vmem:[#allocation2 + $0x218] sm:$0x1] %vm386_vm1, %v1972_v3  ;;  %455 = vst.msk [vmem:[#allocation2 + $0x228] sm:$0x1] %vm386_vm1, %v1972_v3 }
  0x25   : > { %1810 = vmatpush3.bf16.msra.mxu0 %v1940_v9  ;;  %1834 = vmatpush3.bf16.msra.mxu1 %v1940_v9  ;;  %457 = vst.msk [vmem:[#allocation2 + $0x238] sm:$0x1] %vm386_vm1, %v1972_v3 }
  0x26   : > { %1811 = vmatprep.subr.bf16.mxu0 %v1941_v10  ;;  %1835 = vmatprep.subr.bf16.mxu1 %v1941_v10 }
  0x29   : > { %1812 = vmatpush3.bf16.msra.mxu0 %v1941_v10  ;;  %1836 = vmatpush3.bf16.msra.mxu1 %v1941_v10 }
  0x2a   : > { %1845 = vmatprep.subr.bf16.mxu0 %v2041_v0  ;;  %1869 = vmatprep.subr.bf16.mxu1 %v2041_v0 }
  0x2c   : > { %1814 = vmatmul.mubr.bf16.vlgmr.msra.gmra.mxu0 %v1944_v11  ;;  %1838 = vmatmul.mubr.bf16.vlgmr.msra.gmra.mxu1 %v1945_v12 }
  0x2d   : > { %1846 = vmatpush3.bf16.msra.mxu0 %v2041_v0  ;;  %1870 = vmatpush3.bf16.msra.mxu1 %v2041_v0 }
  0x2e   : > { %1847 = vmatprep.subr.bf16.mxu0 %v2047_v1  ;;  %1871 = vmatprep.subr.bf16.mxu1 %v2047_v1 }
  0x2f   : > { %1817 = vmatprep.mubr.bf16.mxu0 %v1946_v13  ;;  %1841 = vmatprep.mubr.bf16.mxu1 %v1947_v14 }
  0x31   : > { %1848 = vmatpush3.bf16.msra.mxu0 %v2047_v1  ;;  %1872 = vmatpush3.bf16.msra.mxu1 %v2047_v1 }
  0x32   : > { %1849 = vmatprep.subr.bf16.mxu0 %v2060_v2  ;;  %1873 = vmatprep.subr.bf16.mxu1 %v2060_v2 }
  0x34   : > { %1818 = vmatmul.mubr.bf16.gmra.mxu0 %v1948_v15  ;;  %1842 = vmatmul.mubr.bf16.gmra.mxu1 %v1949_v16 }
  0x35   : > { %1850 = vmatpush3.bf16.msra.mxu0 %v2060_v2  ;;  %1874 = vmatpush3.bf16.msra.mxu1 %v2060_v2 }
  0x36   : > { %1851 = vmatprep.subr.bf16.mxu0 %v2143_v4  ;;  %1875 = vmatprep.subr.bf16.mxu1 %v2143_v4 }
  0x37   : > { %1861 = vmatprep.mubr.bf16.mxu0 %v1950_v17  ;;  %1885 = vmatprep.mubr.bf16.mxu1 %v1951_v18 }
  0x39   : > { %1852 = vmatpush3.bf16.msra.mxu0 %v2143_v4  ;;  %1876 = vmatpush3.bf16.msra.mxu1 %v2143_v4 }
  0x3a   : > { %1853 = vmatprep.subr.bf16.mxu0 %v1938_v7  ;;  %1877 = vmatprep.subr.bf16.mxu1 %v1938_v7 }
  0x3d   : > { %1854 = vmatpush3.bf16.msra.mxu0 %v1938_v7  ;;  %1878 = vmatpush3.bf16.msra.mxu1 %v1938_v7 }
  0x3e   : > { %1855 = vmatprep.subr.bf16.mxu0 %v1939_v8  ;;  %1879 = vmatprep.subr.bf16.mxu1 %v1939_v8 }
  0x41   : > { %1856 = vmatpush3.bf16.msra.mxu0 %v1939_v8  ;;  %1880 = vmatpush3.bf16.msra.mxu1 %v1939_v8 }
  0x42   : > { %1857 = vmatprep.subr.bf16.mxu0 %v1940_v9  ;;  %1881 = vmatprep.subr.bf16.mxu1 %v1940_v9 }
  0x45   : > { %1858 = vmatpush3.bf16.msra.mxu0 %v1940_v9  ;;  %1882 = vmatpush3.bf16.msra.mxu1 %v1940_v9 }
  0x46   : > { %1859 = vmatprep.subr.bf16.mxu0 %v1941_v10  ;;  %1883 = vmatprep.subr.bf16.mxu1 %v1941_v10 }
  0x49   : > { %1860 = vmatpush3.bf16.msra.mxu0 %v1941_v10  ;;  %1884 = vmatpush3.bf16.msra.mxu1 %v1941_v10 }
  0x4a   : > { %1893 = vmatprep.subr.bf16.mxu0 %v1958_v25  ;;  %1913 = vmatprep.subr.bf16.mxu1 %v1958_v25 }
  0x4c   : > { %1862 = vmatmul.mubr.bf16.vlgmr.msra.gmra.mxu0 %v1952_v19  ;;  %1886 = vmatmul.mubr.bf16.vlgmr.msra.gmra.mxu1 %v1953_v20 }
  0x4d   : > { %1865 = vmatprep.mubr.bf16.mxu0 %v1954_v21  ;;  %1889 = vmatprep.mubr.bf16.mxu1 %v1955_v22 }
  0x4e   : > { %1894 = vmatpush3.bf16.msra.mxu0 %v1958_v25  ;;  %1919 = vmatpush3.bf16.msra.mxu1 %v1958_v25 }
  0x4f   : > { %1895 = vmatprep.subr.bf16.mxu0 %v1959_v26  ;;  %1914 = vmatprep.subr.bf16.mxu1 %v1959_v26 }
  0x52   : > { %1896 = vmatpush3.bf16.msra.mxu0 %v1959_v26  ;;  %1920 = vmatpush3.bf16.msra.mxu1 %v1959_v26 }
  0x53   : > { %1897 = vmatprep.subr.bf16.mxu0 %v1960_v27  ;;  %1915 = vmatprep.subr.bf16.mxu1 %v1960_v27 }
  0x54   : > { %1866 = vmatmul.mubr.bf16.gmra.mxu0 %v1956_v23  ;;  %1890 = vmatmul.mubr.bf16.gmra.mxu1 %v1957_v24 }
  0x56   : > { %1898 = vmatpush3.bf16.msra.mxu0 %v1960_v27  ;;  %1921 = vmatpush3.bf16.msra.mxu1 %v1960_v27 }
  0x57   : > { %1899 = vmatprep.subr.bf16.mxu0 %v1961_v28  ;;  %1916 = vmatprep.subr.bf16.mxu1 %v1961_v28 }
  0x5a   : > { %1900 = vmatpush3.bf16.msra.mxu0 %v1961_v28  ;;  %1922 = vmatpush3.bf16.msra.mxu1 %v1961_v28 }
  0x5b   : > { %1901 = vmatprep.subr.bf16.mxu0 %v1962_v29  ;;  %1917 = vmatprep.subr.bf16.mxu1 %v1962_v29 }
  0x5e   : > { %1902 = vmatpush3.bf16.msra.mxu0 %v1962_v29  ;;  %1923 = vmatpush3.bf16.msra.mxu1 %v1962_v29 }
  0x5f   : > { %1903 = vmatprep.subr.bf16.mxu0 %v1963_v30  ;;  %1918 = vmatprep.subr.bf16.mxu1 %v1963_v30 }
  0x62   : > { %1904 = vmatpush3.bf16.msra.mxu0 %v1963_v30  ;;  %1924 = vmatpush3.bf16.msra.mxu1 %v1963_v30 }
  0xec   : > { %v1815_v33 = vpop.f32.mrf.mxu0  ;;  %v1839_v34 = vpop.f32.mrf.mxu1 }
  0xed   : > { %v611_v35 = vmul.f32 %v1815_v33, %v2252_v31  ;;  %v755_v36 = vmul.f32 %v1839_v34, %v2252_v31 }
  0xee   : > { %v572_v37 = vpop.f32.mrf.mxu0  ;;  %v722_v38 = vpop.f32.mrf.mxu1 }
  0xef   : > { %v625_v40 = vadd.f32 %v2257_v32, %v611_v35  ;;  %v763_v41 = vadd.f32 %v2257_v32, %v755_v36  ;;  %v609_v42 = vmul.f32 %v2252_v31, %v572_v37  ;;  %v753_v43 = vmul.f32 %v2252_v31, %v722_v38  ;;  %v2310_v37 = vld [vmem:[%s2594_s4 + $0x2] ss:$0 sm:$0xff]  ;;  %v1143_v38 = vld [vmem:[#allocation2 + $0x1b1] sm:$0xff] }
  0xf0   : > { %v1816_v47 = vpop.f32.mrf.mxu0  ;;  %v1840_v48 = vpop.f32.mrf.mxu1 }
  0xf1   : > { %v633_v49 = vmax.f32 %v625_v40, 0.0  ;;  %v771_v50 = vmax.f32 %v763_v41, 0.0  ;;  %v623_v51 = vadd.f32 %v2257_v32, %v609_v42  ;;  %v761_v52 = vadd.f32 %v2257_v32, %v753_v43 }
  0xf2   : > { %v612_v53 = vmul.f32 %v1816_v47, %v2252_v31  ;;  %v756_v54 = vmul.f32 %v1840_v48, %v2252_v31  ;;  %v575_v55 = vpop.f32.mrf.mxu0  ;;  %v725_v56 = vpop.f32.mrf.mxu1 }
  0xf3   : > { %v641_v59 = vmin.f32 %v633_v49, 6.0  ;;  %v779_v60 = vmin.f32 %v771_v50, 6.0  ;;  %v631_v61 = vmax.f32 %v623_v51, 0.0  ;;  %v769_v62 = vmax.f32 %v761_v52, 0.0 }
  0xf4   : > { %v626_v63 = vadd.f32 %v2257_v32, %v612_v53  ;;  %v764_v0 = vadd.f32 %v2257_v32, %v756_v54  ;;  %v610_v1 = vmul.f32 %v2252_v31, %v575_v55  ;;  %v754_v2 = vmul.f32 %v2252_v31, %v725_v56  ;;  %v1819_v3 = vpop.f32.mrf.mxu0  ;;  %v1843_v4 = vpop.f32.mrf.mxu1 }
  0xf5   : > { %649 = vst.msk [vmem:[#allocation2 + $0x20] sm:$0xff] %vm384_vm0, %v641_v59  ;;  %788 = vst.msk [vmem:[#allocation2 + $0xb1] sm:$0xff] %vm384_vm0, %v779_v60  ;;  %v639_v5 = vmin.f32 %v631_v61, 6.0  ;;  %v777_v6 = vmin.f32 %v769_v62, 6.0  ;;  %v615_v7 = vmul.f32 %v1819_v3, %v2252_v31  ;;  %v759_v8 = vmul.f32 %v1843_v4, %v2252_v31  ;;  %v2330_v59 = vld [vmem:[%s2594_s4 + $0x3] ss:$0 sm:$0xff] }
  0xf6   : > { %v634_v9 = vmax.f32 %v626_v63, 0.0  ;;  %v772_v10 = vmax.f32 %v764_v0, 0.0  ;;  %v624_v11 = vadd.f32 %v2257_v32, %v610_v1  ;;  %v762_v12 = vadd.f32 %v2257_v32, %v754_v2  ;;  %v588_v13 = vpop.f32.mrf.mxu0  ;;  %v738_v14 = vpop.f32.mrf.mxu1  ;;  %v2340_v3 = vld [vmem:[%s2594_s4 + $0x4] ss:$0 sm:$0xff] }
  0xf7   : > { %647 = vst.msk [vmem:[#allocation2] sm:$0xff] %vm384_vm0, %v639_v5  ;;  %786 = vst.msk [vmem:[#allocation2 + $0x91] sm:$0xff] %vm384_vm0, %v777_v6  ;;  %v629_v15 = vadd.f32 %v2257_v32, %v615_v7  ;;  %v767_v16 = vadd.f32 %v2257_v32, %v759_v8  ;;  %v613_v17 = vmul.f32 %v2252_v31, %v588_v13  ;;  %v2345_v6 = vld [vmem:[%s2594_s4 + $0x5] ss:$0 sm:$0xff] }
  0xf8   : > { %v757_v18 = vmul.f32 %v2252_v31, %v738_v14  ;;  %v642_v19 = vmin.f32 %v634_v9, 6.0  ;;  %v780_v20 = vmin.f32 %v772_v10, 6.0  ;;  %v632_v21 = vmax.f32 %v624_v11, 0.0  ;;  %v1820_v23 = vpop.f32.mrf.mxu0  ;;  %v1844_v24 = vpop.f32.mrf.mxu1 }
  0xf9   : > { %v770_v22 = vmax.f32 %v762_v12, 0.0  ;;  %v637_v25 = vmax.f32 %v629_v15, 0.0  ;;  %v775_v26 = vmax.f32 %v767_v16, 0.0  ;;  %v627_v27 = vadd.f32 %v2257_v32, %v613_v17 }
  0xfa   : > { %v765_v28 = vadd.f32 %v2257_v32, %v757_v18  ;;  %650 = vst.msk [vmem:[#allocation2 + $0x30] sm:$0xff] %vm384_vm0, %v642_v19  ;;  %789 = vst.msk [vmem:[#allocation2 + $0xc1] sm:$0xff] %vm384_vm0, %v780_v20  ;;  %v640_v29 = vmin.f32 %v632_v21, 6.0  ;;  %v616_v33 = vmul.f32 %v1820_v23, %v2252_v31  ;;  %v760_v34 = vmul.f32 %v1844_v24, %v2252_v31  ;;  %v591_v35 = vpop.f32.mrf.mxu0  ;;  %v741_v36 = vpop.f32.mrf.mxu1 }
  0xfb   : > { %v778_v30 = vmin.f32 %v770_v22, 6.0  ;;  %v645_v40 = vmin.f32 %v637_v25, 6.0  ;;  %v783_v41 = vmin.f32 %v775_v26, 6.0  ;;  %v635_v42 = vmax.f32 %v627_v27, 0.0 }
  0xfc   : > { %v773_v43 = vmax.f32 %v765_v28, 0.0  ;;  %648 = vst.msk [vmem:[#allocation2 + $0x10] sm:$0xff] %vm384_vm0, %v640_v29  ;;  %v630_v45 = vadd.f32 %v2257_v32, %v616_v33  ;;  %v768_v46 = vadd.f32 %v2257_v32, %v760_v34  ;;  %v614_v47 = vmul.f32 %v2252_v31, %v591_v35  ;;  %v1175_v7 = vld [vmem:[#allocation2 + $0xb0] sm:$0xff]  ;;  %v1205_v10 = vld [vmem:[#allocation2 + $0x20] sm:$0xff] }
  0xfd   : > { %787 = vst.msk [vmem:[#allocation2 + $0xa1] sm:$0xff] %vm384_vm0, %v778_v30  ;;  %v758_v48 = vmul.f32 %v2252_v31, %v741_v36  ;;  %653 = vst.msk [vmem:[#allocation2 + $0x60] sm:$0xff] %vm384_vm0, %v645_v40  ;;  %v643_v49 = vmin.f32 %v635_v42, 6.0  ;;  %v1135_v51 = vadd.f32 %v2283_v58, %v2280_v57  ;;  %v1157_v52 = vmul.f32 %v2310_v37, %v1143_v38  ;;  %v1235_v11 = vld [vmem:[#allocation2 + $0xb1] sm:$0xff] }
  0xfe   : > { %792 = vst.msk [vmem:[#allocation2 + $0xf1] sm:$0xff] %vm384_vm0, %v783_v41  ;;  %v781_v50 = vmin.f32 %v773_v43, 6.0  ;;  %v638_v53 = vmax.f32 %v630_v45, 0.0  ;;  %v776_v54 = vmax.f32 %v768_v46, 0.0  ;;  %v628_v55 = vadd.f32 %v2257_v32, %v614_v47  ;;  %v1173_v60 = vld [vmem:[#allocation2 + $0x90] sm:$0xff]  ;;  %v1203_v4 = vld [vmem:[#allocation2] sm:$0xff] }
  0xff   : > { %v766_v56 = vadd.f32 %v2257_v32, %v758_v48  ;;  %651 = vst.msk [vmem:[#allocation2 + $0x40] sm:$0xff] %vm384_vm0, %v643_v49  ;;  %v1165_v1 = vadd.f32 %v1157_v52, %v1135_v51  ;;  %v1187_v2 = vmul.f32 %v2330_v59, %v1173_v60  ;;  %v1217_v8 = vmul.f32 %v2340_v3, %v1203_v4  ;;  %v1233_v9 = vld [vmem:[#allocation2 + $0x91] sm:$0xff] }
 0x100   : > { %790 = vst.msk [vmem:[#allocation2 + $0xd1] sm:$0xff] %vm384_vm0, %v781_v50  ;;  %v646_v61 = vmin.f32 %v638_v53, 6.0  ;;  %v784_v57 = vmin.f32 %v776_v54, 6.0  ;;  %v636_v58 = vmax.f32 %v628_v55, 0.0  ;;  %v1247_v19 = vmul.f32 %v2345_v6, %v1233_v9 }
 0x101   : > { %v774_v62 = vmax.f32 %v766_v56, 0.0  ;;  %v1195_v5 = vadd.f32 %v1187_v2, %v1165_v1  ;;  %v1176_v12 = vld [vmem:[#allocation2 + $0xc0] sm:$0xff]  ;;  %v1206_v13 = vld [vmem:[#allocation2 + $0x30] sm:$0xff]  ;;  %v2350_v20 = vmul.f32 %v2330_v59, %v1175_v7  ;;  %v2353_v21 = vmul.f32 %v2340_v3, %v1205_v10 }
 0x102   : > { %654 = vst.msk [vmem:[#allocation2 + $0x70] sm:$0xff] %vm384_vm0, %v646_v61  ;;  %793 = vst.msk [vmem:[#allocation2 + $0x101] sm:$0xff] %vm384_vm0, %v784_v57  ;;  %v644_v63 = vmin.f32 %v636_v58, 6.0  ;;  %v1236_v14 = vld [vmem:[#allocation2 + $0xc1] sm:$0xff]  ;;  %v2356_v26 = vmul.f32 %v2330_v59, %v1176_v12  ;;  %v2359_v27 = vmul.f32 %v2340_v3, %v1206_v13  ;;  %v2362_v28 = vmul.f32 %v2345_v6, %v1235_v11 }
 0x103   : > { %v782_v0 = vmin.f32 %v774_v62, 6.0  ;;  %v1204_v16 = vld [vmem:[#allocation2 + $0x10] sm:$0xff]  ;;  %v1225_v17 = vadd.f32 %v1217_v8, %v1195_v5  ;;  %v2365_v29 = vmul.f32 %v2345_v6, %v1236_v14 }
 0x104   : > { %652 = vst.msk [vmem:[#allocation2 + $0x50] sm:$0xff] %vm384_vm0, %v644_v63  ;;  %v1174_v15 = vld [vmem:[#allocation2 + $0xa0] sm:$0xff]  ;;  %v2373_v36 = vmul.f32 %v2340_v3, %v1204_v16 }
 0x105   : > { %791 = vst.msk [vmem:[#allocation2 + $0xe1] sm:$0xff] %vm384_vm0, %v782_v0  ;;  %v1234_v18 = vld [vmem:[#allocation2 + $0xa1] sm:$0xff]  ;;  %v1179_v22 = vld [vmem:[#allocation2 + $0xf0] sm:$0xff]  ;;  %v2370_v35 = vmul.f32 %v2330_v59, %v1174_v15  ;;  %v2378_v46 = vadd.f32 %v1247_v19, %v1225_v17 }
 0x106   : > { %v1209_v23 = vld [vmem:[#allocation2 + $0x60] sm:$0xff]  ;;  %v2376_v45 = vmul.f32 %v2345_v6, %v1234_v18  ;;  %v2381_v47 = vmul.f32 %v2330_v59, %v1179_v22 }
 0x107   : > { %v1177_v30 = vld [vmem:[#allocation2 + $0xd0] sm:$0xff]  ;;  %v1207_v38 = vld [vmem:[#allocation2 + $0x40] sm:$0xff]  ;;  %v2384_v48 = vmul.f32 %v2340_v3, %v1209_v23 }
 0x108   : > { %v1237_v40 = vld [vmem:[#allocation2 + $0xd1] sm:$0xff]  ;;  %v2391_v60 = vmul.f32 %v2330_v59, %v1177_v30  ;;  %v2394_v61 = vmul.f32 %v2340_v3, %v1207_v38 }
 0x109   : > { %v1180_v41 = vld [vmem:[#allocation2 + $0x100] sm:$0xff]  ;;  %v2397_v57 = vmul.f32 %v2345_v6, %v1237_v40 }
 0x10a   : > { %v2400_v58 = vmul.f32 %v2330_v59, %v1180_v41 }
 0x10b   : > { %v1208_v54 = vld [vmem:[#allocation2 + $0x50] sm:$0xff] }
 0x10c   : > { %v1863_v24 = vpop.f32.mrf.mxu0  ;;  %v1887_v25 = vpop.f32.mrf.mxu1  ;;  %v1178_v53 = vld [vmem:[#allocation2 + $0xe0] sm:$0xff]  ;;  %v2410_v9 = vmul.f32 %v2340_v3, %v1208_v54 }
 0x10d   : > { %v894_v33 = vmul.f32 %v1863_v24, %v2252_v31  ;;  %v1033_v34 = vmul.f32 %v1887_v25, %v2252_v31  ;;  %v2407_v8 = vmul.f32 %v2330_v59, %v1178_v53 }
 0x10e   : > { %v861_v42 = vpop.f32.mrf.mxu0  ;;  %v1000_v43 = vpop.f32.mrf.mxu1 }
 0x10f   : > { %v902_v49 = vadd.f32 %v2257_v32, %v894_v33  ;;  %v1041_v50 = vadd.f32 %v2257_v32, %v1033_v34  ;;  %v892_v51 = vmul.f32 %v2252_v31, %v861_v42  ;;  %v1031_v52 = vmul.f32 %v2252_v31, %v1000_v43 }
 0x110   : > { %v1864_v55 = vpop.f32.mrf.mxu0  ;;  %v1888_v56 = vpop.f32.mrf.mxu1 }
 0x111   : > { %v910_v62 = vmax.f32 %v902_v49, 0.0  ;;  %v1049_v63 = vmax.f32 %v1041_v50, 0.0  ;;  %v900_v0 = vadd.f32 %v2257_v32, %v892_v51  ;;  %v1039_v1 = vadd.f32 %v2257_v32, %v1031_v52 }
 0x112   : > { %v895_v2 = vmul.f32 %v1864_v55, %v2252_v31  ;;  %v1034_v4 = vmul.f32 %v1888_v56, %v2252_v31  ;;  %v864_v5 = vpop.f32.mrf.mxu0  ;;  %v1003_v7 = vpop.f32.mrf.mxu1 }
 0x113   : > { %v918_v10 = vmin.f32 %v910_v62, 6.0  ;;  %v1057_v11 = vmin.f32 %v1049_v63, 6.0  ;;  %v908_v12 = vmax.f32 %v900_v0, 0.0  ;;  %v1047_v13 = vmax.f32 %v1039_v1, 0.0 }
 0x114   : > { %v903_v14 = vadd.f32 %v2257_v32, %v895_v2  ;;  %v1042_v15 = vadd.f32 %v2257_v32, %v1034_v4  ;;  %v893_v16 = vmul.f32 %v2252_v31, %v864_v5  ;;  %v1032_v17 = vmul.f32 %v2252_v31, %v1003_v7  ;;  %v1867_v18 = vpop.f32.mrf.mxu0  ;;  %v1891_v19 = vpop.f32.mrf.mxu1 }
 0x115   : > { %927 = vst.msk [vmem:[#allocation2 + $0x150] sm:$0xff] %vm384_vm0, %v918_v10  ;;  %1066 = vst.msk [vmem:[#allocation2 + $0x1e1] sm:$0xff] %vm384_vm0, %v1057_v11  ;;  %v916_v59 = vmin.f32 %v908_v12, 6.0  ;;  %v1055_v22 = vmin.f32 %v1047_v13, 6.0  ;;  %v898_v23 = vmul.f32 %v1867_v18, %v2252_v31  ;;  %v1037_v24 = vmul.f32 %v1891_v19, %v2252_v31 }
 0x116   : > { %v911_v25 = vmax.f32 %v903_v14, 0.0  ;;  %v1050_v30 = vmax.f32 %v1042_v15, 0.0  ;;  %v901_v33 = vadd.f32 %v2257_v32, %v893_v16  ;;  %v1040_v34 = vadd.f32 %v2257_v32, %v1032_v17  ;;  %v877_v38 = vpop.f32.mrf.mxu0  ;;  %v1016_v40 = vpop.f32.mrf.mxu1 }
 0x117   : > { %925 = vst.msk [vmem:[#allocation2 + $0x130] sm:$0xff] %vm384_vm0, %v916_v59  ;;  %1064 = vst.msk [vmem:[#allocation2 + $0x1c1] sm:$0xff] %vm384_vm0, %v1055_v22  ;;  %v906_v41 = vadd.f32 %v2257_v32, %v898_v23  ;;  %v1045_v42 = vadd.f32 %v2257_v32, %v1037_v24  ;;  %v896_v43 = vmul.f32 %v2252_v31, %v877_v38  ;;  %v1238_v22 = vld [vmem:[#allocation2 + $0xe1] sm:$0xff] }
 0x118   : > { %v1035_v49 = vmul.f32 %v2252_v31, %v1016_v40  ;;  %v919_v50 = vmin.f32 %v911_v25, 6.0  ;;  %v1058_v51 = vmin.f32 %v1050_v30, 6.0  ;;  %v909_v52 = vmax.f32 %v901_v33, 0.0  ;;  %v1868_v54 = vpop.f32.mrf.mxu0  ;;  %v1892_v55 = vpop.f32.mrf.mxu1  ;;  %v2447_v25 = vld [vmem:[%s2594_s4 + $0x6] ss:$0 sm:$0xff] }
 0x119   : > { %v1048_v53 = vmax.f32 %v1040_v34, 0.0  ;;  %v914_v56 = vmax.f32 %v906_v41, 0.0  ;;  %v1053_v62 = vmax.f32 %v1045_v42, 0.0  ;;  %v904_v63 = vadd.f32 %v2257_v32, %v896_v43 }
 0x11a   : > { %v1043_v0 = vadd.f32 %v2257_v32, %v1035_v49  ;;  %928 = vst.msk [vmem:[#allocation2 + $0x160] sm:$0xff] %vm384_vm0, %v919_v50  ;;  %1067 = vst.msk [vmem:[#allocation2 + $0x1f1] sm:$0xff] %vm384_vm0, %v1058_v51  ;;  %v917_v1 = vmin.f32 %v909_v52, 6.0  ;;  %v899_v4 = vmul.f32 %v1868_v54, %v2252_v31  ;;  %v1038_v5 = vmul.f32 %v1892_v55, %v2252_v31  ;;  %v880_v7 = vpop.f32.mrf.mxu0  ;;  %v1019_v10 = vpop.f32.mrf.mxu1  ;;  %v2459_v49 = vld [vmem:[%s2594_s4 + $0x7] ss:$0 sm:$0xff] }
 0x11b   : > { %v1056_v2 = vmin.f32 %v1048_v53, 6.0  ;;  %v922_v11 = vmin.f32 %v914_v56, 6.0  ;;  %v1061_v12 = vmin.f32 %v1053_v62, 6.0  ;;  %v912_v13 = vmax.f32 %v904_v63, 0.0  ;;  %v2470_v63 = vld [vmem:[%s2594_s4 + $0x8] ss:$0 sm:$0xff] }
 0x11c   : > { %v1051_v14 = vmax.f32 %v1043_v0, 0.0  ;;  %v2434_v15 = vld [vmem:[#allocation2 + $0x150] sm:$0xff]  ;;  %926 = vst.msk [vmem:[#allocation2 + $0x140] sm:$0xff] %vm384_vm0, %v917_v1  ;;  %v907_v16 = vadd.f32 %v2257_v32, %v899_v4  ;;  %v1046_v17 = vadd.f32 %v2257_v32, %v1038_v5  ;;  %v897_v18 = vmul.f32 %v2252_v31, %v880_v7  ;;  %v1085_v59 = vld [vmem:[#allocation2 + $0x1e0] sm:$0xff] }
 0x11d   : > { %1065 = vst.msk [vmem:[#allocation2 + $0x1d1] sm:$0xff] %vm384_vm0, %v1056_v2  ;;  %v1036_v19 = vmul.f32 %v2252_v31, %v1019_v10  ;;  %931 = vst.msk [vmem:[#allocation2 + $0x190] sm:$0xff] %vm384_vm0, %v922_v11  ;;  %v920_v23 = vmin.f32 %v912_v13, 6.0  ;;  %v1099_v30 = vmul.f32 %v2264_v39, %v1085_v59  ;;  %v1130_v33 = vmul.f32 %v2273_v44, %v2434_v15  ;;  %v1146_v62 = vld [vmem:[#allocation2 + $0x1e1] sm:$0xff] }
 0x11e   : > { %1070 = vst.msk [vmem:[#allocation2 + $0x221] sm:$0xff] %vm384_vm0, %v1061_v12  ;;  %v1059_v24 = vmin.f32 %v1051_v14, 6.0  ;;  %v915_v34 = vmax.f32 %v907_v16, 0.0  ;;  %v1054_v31 = vmax.f32 %v1046_v17, 0.0  ;;  %v905_v38 = vadd.f32 %v2257_v32, %v897_v18  ;;  %v1083_v41 = vld [vmem:[#allocation2 + $0x1c0] sm:$0xff]  ;;  %v1114_v42 = vld [vmem:[#allocation2 + $0x130] sm:$0xff] }
 0x11f   : > { %v1044_v40 = vadd.f32 %v2257_v32, %v1036_v19  ;;  %v1144_v43 = vld [vmem:[#allocation2 + $0x1c1] sm:$0xff]  ;;  %929 = vst.msk [vmem:[#allocation2 + $0x170] sm:$0xff] %vm384_vm0, %v920_v23  ;;  %v1097_v50 = vmul.f32 %v2264_v39, %v1083_v41  ;;  %v1128_v51 = vmul.f32 %v2273_v44, %v1114_v42  ;;  %v1277_v52 = vmul.f32 %v2447_v25, %v1083_v41  ;;  %v2499_v41 = vld [vmem:[%s2596_s6] ss:$0 sm:$0xff] }
 0x120   : > { %1068 = vst.msk [vmem:[#allocation2 + $0x201] sm:$0xff] %vm384_vm0, %v1059_v24  ;;  %v2465_v32 = vmul.f32 %v2345_v6, %v1238_v22  ;;  %v923_v53 = vmin.f32 %v915_v34, 6.0  ;;  %v1062_v54 = vmin.f32 %v1054_v31, 6.0  ;;  %v913_v55 = vmax.f32 %v905_v38, 0.0 }
 0x121   : > { %v1052_v56 = vmax.f32 %v1044_v40, 0.0  ;;  %v1136_v0 = vadd.f32 %v1128_v51, %v1097_v50  ;;  %v1158_v1 = vmul.f32 %v2310_v37, %v1144_v43  ;;  %v1285_v2 = vadd.f32 %v1277_v52, %v2378_v46  ;;  %v1266_v5 = vld [vmem:[#allocation2 + $0x1f0] sm:$0xff]  ;;  %v1296_v13 = vld [vmem:[#allocation2 + $0x160] sm:$0xff] }
 0x122   : > { %v1307_v4 = vmul.f32 %v2459_v49, %v1114_v42  ;;  %932 = vst.msk [vmem:[#allocation2 + $0x1a0] sm:$0xff] %vm384_vm0, %v923_v53  ;;  %1071 = vst.msk [vmem:[#allocation2 + $0x231] sm:$0xff] %vm384_vm0, %v1062_v54  ;;  %v921_v7 = vmin.f32 %v913_v55, 6.0  ;;  %v1337_v11 = vmul.f32 %v2470_v63, %v1144_v43  ;;  %v1138_v12 = vadd.f32 %v1130_v33, %v1099_v30  ;;  %v2489_v30 = vld [vmem:[%s2595_s5] ss:$0 sm:$0xff] }
 0x123   : > { %v1060_v10 = vmin.f32 %v1052_v56, 6.0  ;;  %v1115_v14 = vld [vmem:[#allocation2 + $0x140] sm:$0xff]  ;;  %v1166_v16 = vadd.f32 %v1158_v1, %v1136_v0  ;;  %v1160_v46 = vmul.f32 %v2310_v37, %v1146_v62  ;;  %v2480_v22 = vmul.f32 %v2447_v25, %v1085_v59  ;;  %v1326_v56 = vld [vmem:[#allocation2 + $0x1f1] sm:$0xff] }
 0x124   : > { %v1264_v17 = vld [vmem:[#allocation2 + $0x1d0] sm:$0xff]  ;;  %v1315_v18 = vadd.f32 %v1307_v4, %v1285_v2  ;;  %930 = vst.msk [vmem:[#allocation2 + $0x180] sm:$0xff] %vm384_vm0, %v921_v7  ;;  %v1308_v24 = vmul.f32 %v2459_v49, %v1115_v14  ;;  %v1280_v34 = vmul.f32 %v2447_v25, %v1266_v5  ;;  %v1129_v40 = vmul.f32 %v2273_v44, %v1115_v14 }
 0x125   : > { %v1324_v19 = vld [vmem:[#allocation2 + $0x1d1] sm:$0xff]  ;;  %1069 = vst.msk [vmem:[#allocation2 + $0x211] sm:$0xff] %vm384_vm0, %v1060_v10  ;;  %v1278_v23 = vmul.f32 %v2447_v25, %v1264_v17  ;;  %v1098_v33 = vmul.f32 %v2264_v39, %v1264_v17  ;;  %v1196_v59 = vadd.f32 %v2370_v35, %v1166_v16  ;;  %v1168_v43 = vadd.f32 %v1160_v46, %v1138_v12 }
 0x126   : > { %v1338_v31 = vmul.f32 %v2470_v63, %v1324_v19  ;;  %v1345_v38 = vadd.f32 %v1337_v11, %v1315_v18  ;;  %v1159_v42 = vmul.f32 %v2310_v37, %v1324_v19  ;;  %v1309_v50 = vmul.f32 %v2459_v49, %v2434_v15  ;;  %v1118_v35 = vld [vmem:[#allocation2 + $0x170] sm:$0xff] }
 0x127   : > { %v1310_v51 = vmul.f32 %v2459_v49, %v1296_v13  ;;  %v1087_v52 = vld [vmem:[#allocation2 + $0x200] sm:$0xff]  ;;  %v1226_v53 = vadd.f32 %v2373_v36, %v1196_v59  ;;  %v1137_v55 = vadd.f32 %v1129_v40, %v1098_v33  ;;  %v1339_v0 = vmul.f32 %v2470_v63, %v1146_v62 }
 0x128   : > { %v1360_v54 = vmul.f32 %v2489_v30, %v1345_v38  ;;  %v1148_v1 = vld [vmem:[#allocation2 + $0x201] sm:$0xff]  ;;  %v1198_v2 = vadd.f32 %v2356_v26, %v1168_v43  ;;  %v1100_v4 = vmul.f32 %v2264_v39, %v1266_v5  ;;  %v1101_v7 = vmul.f32 %v2264_v39, %v1087_v52 }
 0x129   : > { %v1131_v15 = vmul.f32 %v2273_v44, %v1296_v13  ;;  %v1256_v10 = vadd.f32 %v2376_v45, %v1226_v53  ;;  %v1167_v36 = vadd.f32 %v1159_v42, %v1137_v55  ;;  %v1132_v12 = vmul.f32 %v2273_v44, %v1118_v35  ;;  %v1089_v55 = vld [vmem:[#allocation2 + $0x220] sm:$0xff] }
 0x12a   : > { %v1375_v11 = vadd.f32 %v2499_v41, %v1360_v54  ;;  %v1228_v14 = vadd.f32 %v2359_v27, %v1198_v2  ;;  %v1161_v62 = vmul.f32 %v2310_v37, %v1326_v56  ;;  %v1162_v26 = vmul.f32 %v2310_v37, %v1148_v1  ;;  %v2526_v2 = vld [vmem:[#allocation2 + $0x190] sm:$0xff] }
 0x12b   : > { %v1139_v16 = vadd.f32 %v1131_v15, %v1100_v4  ;;  %v1286_v17 = vadd.f32 %v1278_v23, %v1256_v10  ;;  %v1197_v18 = vadd.f32 %v2350_v20, %v1167_v36  ;;  %v1140_v19 = vadd.f32 %v1132_v12, %v1101_v7  ;;  %v1119_v46 = vld [vmem:[#allocation2 + $0x180] sm:$0xff] }
 0x12c   : > { %v1383_v5 = vmax.f32 %v1375_v11, 0.0  ;;  %v1268_v13 = vld [vmem:[#allocation2 + $0x210] sm:$0xff]  ;;  %v1258_v45 = vadd.f32 %v2365_v29, %v1228_v14  ;;  %v1340_v33 = vmul.f32 %v2470_v63, %v1326_v56  ;;  %v1281_v38 = vmul.f32 %v2447_v25, %v1087_v52  ;;  %v1150_v11 = vld [vmem:[#allocation2 + $0x221] sm:$0xff] }
 0x12d   : > { %v1169_v59 = vadd.f32 %v1161_v62, %v1139_v16  ;;  %v1316_v27 = vadd.f32 %v1308_v24, %v1286_v17  ;;  %v1227_v40 = vadd.f32 %v2353_v21, %v1197_v18  ;;  %v1170_v42 = vadd.f32 %v1162_v26, %v1140_v19  ;;  %v1328_v7 = vld [vmem:[#allocation2 + $0x211] sm:$0xff] }
 0x12e   : > { %v1282_v43 = vmul.f32 %v2447_v25, %v1268_v13  ;;  %v1391_v23 = vmin.f32 %v1383_v5, 6.0  ;;  %v1288_v53 = vadd.f32 %v1280_v34, %v1258_v45  ;;  %v1311_v54 = vmul.f32 %v2459_v49, %v1118_v35  ;;  %v1210_v5 = vld [vmem:[#allocation2 + $0x70] sm:$0xff] }
 0x12f   : > { %v1199_v20 = vadd.f32 %v2391_v60, %v1169_v59  ;;  %v1346_v29 = vadd.f32 %v1338_v31, %v1316_v27  ;;  %v1257_v56 = vadd.f32 %v2362_v28, %v1227_v40  ;;  %v1200_v52 = vadd.f32 %v2407_v8, %v1170_v42 }
 0x130   : > { %v1312_v24 = vmul.f32 %v2459_v49, %v1119_v46  ;;  %v1318_v21 = vadd.f32 %v1310_v51, %v1288_v53  ;;  %v1341_v34 = vmul.f32 %v2470_v63, %v1148_v1  ;;  %v1102_v60 = vmul.f32 %v2264_v39, %v1268_v13 }
 0x131   : > { %v1229_v4 = vadd.f32 %v2394_v61, %v1199_v20  ;;  %v1361_v35 = vmul.f32 %v2489_v30, %v1346_v29  ;;  %v1287_v15 = vadd.f32 %v2480_v22, %v1257_v56  ;;  %v1230_v31 = vadd.f32 %v2410_v9, %v1200_v52  ;;  %v1270_v20 = vld [vmem:[#allocation2 + $0x230] sm:$0xff] }
 0x132   : > { %v1103_v28 = vmul.f32 %v2264_v39, %v1089_v55  ;;  %v1348_v10 = vadd.f32 %v1340_v33, %v1318_v21  ;;  %v1133_v51 = vmul.f32 %v2273_v44, %v1119_v46  ;;  %v1134_v61 = vmul.f32 %v2273_v44, %v2526_v2  ;;  %v1239_v33 = vld [vmem:[#allocation2 + $0xf1] sm:$0xff] }
 0x133   : > { %v1259_v8 = vadd.f32 %v2397_v57, %v1229_v4  ;;  %v1376_v1 = vadd.f32 %v2499_v41, %v1361_v35  ;;  %v1317_v36 = vadd.f32 %v1309_v50, %v1287_v15  ;;  %v1260_v12 = vadd.f32 %v2465_v32, %v1230_v31 }
 0x134   : > { %v1163_v22 = vmul.f32 %v2310_v37, %v1328_v7  ;;  %v1363_v9 = vmul.f32 %v2489_v30, %v1348_v10  ;;  %v1141_v39 = vadd.f32 %v1133_v51, %v1102_v60  ;;  %v1142_v16 = vadd.f32 %v1134_v61, %v1103_v28  ;;  %v1330_v10 = vld [vmem:[#allocation2 + $0x231] sm:$0xff] }
 0x135   : > { %v1289_v14 = vadd.f32 %v1281_v38, %v1259_v8  ;;  %v1384_v62 = vmax.f32 %v1376_v1, 0.0  ;;  %v1347_v57 = vadd.f32 %v1339_v0, %v1317_v36  ;;  %v1290_v26 = vadd.f32 %v1282_v43, %v1260_v12 }
 0x136   : > { %v1164_v17 = vmul.f32 %v2310_v37, %v1150_v11  ;;  %v1378_v44 = vadd.f32 %v2499_v41, %v1363_v9  ;;  %v1342_v50 = vmul.f32 %v2470_v63, %v1328_v7  ;;  %v1171_v19 = vadd.f32 %v1163_v22, %v1141_v39  ;;  %v1240_v37 = vld [vmem:[#allocation2 + $0x101] sm:$0xff] }
 0x137   : > { %v1319_v18 = vadd.f32 %v1311_v54, %v1289_v14  ;;  %v1392_v32 = vmin.f32 %v1384_v62, 6.0  ;;  %v1362_v13 = vmul.f32 %v2489_v30, %v1347_v57  ;;  %v1320_v46 = vadd.f32 %v1312_v24, %v1290_v26  ;;  %v1300_v7 = vld [vmem:[#allocation2 + $0x1a0] sm:$0xff] }
 0x138   : > { %v1172_v45 = vadd.f32 %v1164_v17, %v1142_v16  ;;  %v1386_v59 = vmax.f32 %v1378_v44, 0.0  ;;  %v1201_v0 = vadd.f32 %v2381_v47, %v1171_v19  ;;  %v1224_v27 = vmul.f32 %v2340_v3, %v1210_v5  ;;  %v1710_v44 = vld [vmem:[%s2598_s8] ss:$0 sm:$0xff] }
 0x139   : > { %v1349_v38 = vadd.f32 %v1341_v34, %v1319_v18  ;;  %v1399_v40 = vpack.c.bf16 %v1392_v32, %v1391_v23  ;;  %v1377_v42 = vadd.f32 %v2499_v41, %v1362_v13  ;;  %v1350_v43 = vadd.f32 %v1342_v50, %v1320_v46 }
 0x13a   : > { %v1202_v53 = vadd.f32 %v2400_v58, %v1172_v45  ;;  %v1231_v29 = vadd.f32 %v2384_v48, %v1201_v0  ;;  %v1253_v56 = vmul.f32 %v2345_v6, %v1239_v33  ;;  %v1254_v23 = vmul.f32 %v2345_v6, %v1240_v37 }
 0x13b   : > { %v1364_v54 = vmul.f32 %v2489_v30, %v1349_v38  ;;  %1905 = vmatprep.mubr.msk.bf16.mxu0 %vm384_vm0, %v1399_v40  ;;  %v1385_v52 = vmax.f32 %v1377_v42, 0.0  ;;  %v1365_v47 = vmul.f32 %v2489_v30, %v1350_v43  ;;  %v1283_v58 = vmul.f32 %v2447_v25, %v1089_v55 }
 0x13c   : > { %v1232_v3 = vadd.f32 %v1224_v27, %v1202_v53  ;;  %v1261_v21 = vadd.f32 %v1253_v56, %v1231_v29  ;;  %v1284_v4 = vmul.f32 %v2447_v25, %v1270_v20  ;;  %v1394_v48 = vmin.f32 %v1386_v59, 6.0 }
 0x13d   : > { %v1379_v24 = vadd.f32 %v2499_v41, %v1364_v54  ;;  %v1393_v34 = vmin.f32 %v1385_v52, 6.0  ;;  %v1380_v60 = vadd.f32 %v2499_v41, %v1365_v47  ;;  %v1313_v28 = vmul.f32 %v2459_v49, %v2526_v2 }
 0x13e   : > { %v1262_v35 = vadd.f32 %v1254_v23, %v1232_v3  ;;  %v1291_v31 = vadd.f32 %v1283_v58, %v1261_v21  ;;  %v1314_v61 = vmul.f32 %v2459_v49, %v1300_v7  ;;  %v1343_v25 = vmul.f32 %v2470_v63, %v1150_v11 }
 0x13f   : > { %v1387_v15 = vmax.f32 %v1379_v24, 0.0  ;;  %v1400_v6 = vpack.c.bf16 %v1394_v48, %v1393_v34  ;;  %v1388_v8 = vmax.f32 %v1380_v60, 0.0  ;;  %v1344_v22 = vmul.f32 %v2470_v63, %v1330_v10 }
 0x140   : > { %v1292_v51 = vadd.f32 %v1284_v4, %v1262_v35  ;;  %v1321_v55 = vadd.f32 %v1313_v28, %v1291_v31 }
 0x141   : > { %1906 = vmatmul.mubr.msk.bf16.vlgmr.msra.gmra.mxu0 %vm384_vm0, %v1400_v6  ;;  %v1395_v1 = vmin.f32 %v1387_v15, 6.0  ;;  %v1396_v36 = vmin.f32 %v1388_v8, 6.0 }
 0x142   : > { %v1322_v12 = vadd.f32 %v1314_v61, %v1292_v51  ;;  %v1351_v9 = vadd.f32 %v1343_v25, %v1321_v55 }
 0x143   : > { %v1401_v14 = vpack.c.bf16 %v1396_v36, %v1395_v1 }
 0x144   : > { %v1352_v2 = vadd.f32 %v1344_v22, %v1322_v12  ;;  %v1366_v39 = vmul.f32 %v2489_v30, %v1351_v9 }
 0x145   : > { %1909 = vmatprep.mubr.msk.bf16.mxu1 %vm384_vm0, %v1401_v14 }
 0x146   : > { %v1367_v49 = vmul.f32 %v2489_v30, %v1352_v2  ;;  %v1381_v11 = vadd.f32 %v2499_v41, %v1366_v39 }
 0x148   : > { %v1382_v16 = vadd.f32 %v2499_v41, %v1367_v49  ;;  %v1389_v62 = vmax.f32 %v1381_v11, 0.0  ;;  %v1711_v41 = vld [vmem:[%s2599_s9] ss:$0 sm:$0xff] }
 0x14a   : > { %v1390_v57 = vmax.f32 %v1382_v16, 0.0  ;;  %v1397_v26 = vmin.f32 %v1389_v62, 6.0 }
 0x14c   : > { %v1398_v17 = vmin.f32 %v1390_v57, 6.0 }
 0x14e   : > { %v1402_v5 = vpack.c.bf16 %v1398_v17, %v1397_v26 }
 0x150   : > { %1910 = vmatmul.mubr.msk.bf16.vlgmr.msra.gmra.mxu1 %vm384_vm0, %v1402_v5 }
 0x201   : > { %v1907_v63 = vpop.f32.mrf.mxu0 }
 0x202   : > { %v1537_v30 = vmul.f32 %v1907_v63, %v1710_v44 }
 0x203   : > { %v1497_v18 = vpop.f32.mrf.mxu0 }
 0x204   : > { %v1535_v19 = vmul.f32 %v1710_v44, %v1497_v18  ;;  %v1552_v46 = vadd.f32 %v1711_v41, %v1537_v30 }
 0x205   : > { %v1908_v50 = vpop.f32.mrf.mxu0 }
 0x206   : > { %v1538_v32 = vmul.f32 %v1908_v50, %v1710_v44  ;;  %v1550_v59 = vadd.f32 %v1711_v41, %v1535_v19 }
 0x207   : > { %v1500_v13 = vpop.f32.mrf.mxu0 }
 0x208   : > { %v1553_v45 = vadd.f32 %v1711_v41, %v1538_v32  ;;  %v1536_v33 = vmul.f32 %v1710_v44, %v1500_v13 }
 0x20a   : > { %v1724_v38 = vpack.c.bf16 %v1553_v45, %v1552_v46  ;;  %v1551_v0 = vadd.f32 %v1711_v41, %v1536_v33 }
 0x20c   : > { %1736 = vst [vmem:[%s364_s27 + $0x8] sm:$0xff] %v1724_v38   ;;  %v1719_v27 = vpack.c.bf16 %v1551_v0, %v1550_v59 }
 0x20e   : > { %1720 = vst [vmem:[%s364_s27] sm:$0xff] %v1719_v27  }
 0x210   : > { %v1911_v37 = vpop.f32.mrf.mxu1 }
 0x211   : > { %v1541_v42 = vmul.f32 %v1911_v37, %v1710_v44 }
 0x212   : > { %v1513_v40 = vpop.f32.mrf.mxu1 }
 0x213   : > { %v1539_v53 = vmul.f32 %v1710_v44, %v1513_v40  ;;  %v1556_v29 = vadd.f32 %v1711_v41, %v1541_v42 }
 0x214   : > { %v1912_v43 = vpop.f32.mrf.mxu1 }
 0x215   : > { %v1542_v20 = vmul.f32 %v1912_v43, %v1710_v44  ;;  %v1554_v47 = vadd.f32 %v1711_v41, %v1539_v53 }
 0x216   : > { %v1516_v54 = vpop.f32.mrf.mxu1 }
 0x217   : > { %v1557_v56 = vadd.f32 %v1711_v41, %v1542_v20  ;;  %v1540_v52 = vmul.f32 %v1710_v44, %v1516_v54 }
 0x219   : > { %v1734_v3 = vpack.c.bf16 %v1557_v56, %v1556_v29  ;;  %v1555_v23 = vadd.f32 %v1711_v41, %v1540_v52 }
 0x21b   : > { %1738 = vst [vmem:[%s364_s27 + $0x18] sm:$0xff] %v1734_v3   ;;  %v1729_v24 = vpack.c.bf16 %v1555_v23, %v1554_v47 }
 0x21d   : > { %1737 = vst [vmem:[%s364_s27 + $0x10] sm:$0xff] %v1729_v24  }
 0x21e PF: > { %s20_s13 = sadd.s32 1, %s1970_s13  }
 0x21f   : > { %p17_p5 = scmp.ge.s32.totalorder %s20_s13, 4  }
 0x221   :  { %19 = sbr.rel (!%p17_p5) target bundleno = 1 (0x1), region = 98 }

// kernel: mobilenetv2_forward.9
= control target key start
LH: loop header
LB: loop body
LE: loop exit
PB: predicated region body
PF: predicated region fallthrough
CT: control target
= control target key end

     0   :  { %s2640_s13 = smov 0   ;;  %s3458_s0 = inlined_call_operand.vmem [shape: bf16[2,8,8,128], index: 0, kind: input, shape index: {}]   ;;  %s3459_s1 = inlined_call_operand.vmem [shape: bf16[128,144], index: 1, kind: input, shape index: {}]   ;;  %s3460_s2 = inlined_call_operand.vmem [shape: f32[1,144], index: 2, kind: input, shape index: {}]   ;;  %s3461_s3 = inlined_call_operand.vmem [shape: f32[1,144], index: 3, kind: input, shape index: {}]   ;;  %s3462_s4 = inlined_call_operand.vmem [shape: f32[9,1,144], index: 4, kind: input, shape index: {}]   ;;  %s3463_s5 = inlined_call_operand.vmem [shape: f32[1,144], index: 5, kind: input, shape index: {}]   ;;  %s3464_s6 = inlined_call_operand.vmem [shape: f32[1,144], index: 6, kind: input, shape index: {}]   ;;  %s3465_s7 = inlined_call_operand.vmem [shape: bf16[144,128], index: 7, kind: input, shape index: {}]   ;;  %s3466_s8 = inlined_call_operand.vmem [shape: f32[1,128], index: 8, kind: input, shape index: {}]   ;;  %s3467_s9 = inlined_call_operand.vmem [shape: f32[1,128], index: 9, kind: input, shape index: {}]   ;;  %s3468_s10 = inlined_call_operand.vmem [shape: bf16[2,8,8,128], index: 10, kind: output, shape index: {}]  }
   0x1 LB: > { %s2448_s14 = sadd.s32 4294967295, %s2581_s13   ;;  %p2452_p0 = scmp.ge.s32.totalorder %s2581_s13, 1  ;;  %s2581_s13 = sphi %s2640_s13, %s20_s13  }
   0x2   : > { %p312_p1 = scmp.lt.s32.totalorder %s2581_s13, 3 }
   0x4   : > { %p313_p2 = pnand %p2452_p0, %p312_p1 }
   0x5   : > { %p350_p3 = scmp.lt.s32.totalorder (!%p313_p2), %s2448_s14, 1 }
   0x6   : > { %316 = sbr.rel (%p313_p2) target bundleno = 660 (0x294), region = 60 }
   0xb   : > { %v2529_v0 = vld [vmem:[%s3459_s1 + $0x74] ss:$8 sps:$4 sm:$0xff]   ;;  %v2531_v1 = vld [vmem:[%s3459_s1 + $0x70] ss:$8 sps:$4 sm:$0xff]   ;;  %v2583_v2 = vmov 0   ;;  %v2584_v4 = vmov 0.0   ;;  %v607_v31 = vlaneseq }
   0xc   : > { %565 = vmatprep.mubr.bf16.mxu0 %v2583_v2  ;;  %2266 = vmatprep.subr.bf16.mxu1 %v2583_v2  ;;  %v2532_v3 = vld [vmem:[%s3459_s1 + $0x64] ss:$8 sps:$4 sm:$0xff]   ;;  %385 = vst [vmem:[#allocation2 + $0x20] sm:$0xff] %v2584_v4  ;;  %387 = vst [vmem:[#allocation2 + $0x30] sm:$0x3] %v2584_v4  ;;  %s3470_s14 = smov (!%p350_p3, %s2448_s14), 1 }
   0xd   : > { %533 = vmatprep.subr.bf16.mxu0 %v2529_v0  ;;  %379 = vst [vmem:[#allocation2] sm:$0xff] %v2584_v4  ;;  %382 = vst [vmem:[#allocation2 + $0x10] sm:$0x3] %v2584_v4  ;;  %v2534_v5 = vld [vmem:[%s3459_s1 + $0x60] ss:$8 sps:$4 sm:$0xff]   ;;  %s2494_s23 = sshll.u32 %s3470_s14, 5 }
   0xe   : > { %389 = vst [vmem:[#allocation2 + $0x40] sm:$0xff] %v2584_v4  ;;  %391 = vst [vmem:[#allocation2 + $0x50] sm:$0x3] %v2584_v4  ;;  %534 = vmatpush1.bf16.msra.mxu0 %v2531_v1  ;;  %v2535_v6 = vld [vmem:[%s3459_s1 + $0x54] ss:$8 sps:$4 sm:$0xff]   ;;  %s2727_s30 = scalar_lea.vmem %s3458_s0, %s2494_s23  ;;  %vm380_vm0 = vcmask 130048   ;;  %s3446_s17 = scalar_lea.vmem %s3468_s10, %s2494_s23 }
   0xf   : > { %393 = vst [vmem:[#allocation2 + $0x60] sm:$0xff] %v2584_v4  ;;  %395 = vst [vmem:[#allocation2 + $0x70] sm:$0x3] %v2584_v4  ;;  %535 = vmatprep.subr.bf16.mxu0 %v2532_v3  ;;  %v2537_v7 = vld [vmem:[%s3459_s1 + $0x50] ss:$8 sps:$4 sm:$0xff]   ;;  %v421_v18 = vld [vmem:[%s2727_s30] sm:$0xff]  }
  0x10   : > { %397 = vst [vmem:[#allocation2 + $0x80] sm:$0xff] %v2584_v4  ;;  %399 = vst [vmem:[#allocation2 + $0x90] sm:$0x3] %v2584_v4  ;;  %v2538_v8 = vld [vmem:[%s3459_s1 + $0x44] ss:$8 sps:$4 sm:$0xff]   ;;  %v425_v20 = vld [vmem:[%s2727_s30 + $0x10] sm:$0xff]  }
  0x11   : > { %401 = vst [vmem:[#allocation2 + $0xa0] sm:$0xff] %v2584_v4  ;;  %403 = vst [vmem:[#allocation2 + $0xb0] sm:$0x3] %v2584_v4  ;;  %v2540_v9 = vld [vmem:[%s3459_s1 + $0x40] ss:$8 sps:$4 sm:$0xff]   ;;  %v427_v21 = vld [vmem:[%s2727_s30 + $0x18] sm:$0xff]  }
  0x12   : > { %405 = vst [vmem:[#allocation2 + $0xc0] sm:$0xff] %v2584_v4  ;;  %407 = vst [vmem:[#allocation2 + $0xd0] sm:$0x3] %v2584_v4  ;;  %536 = vmatpush1.bf16.msra.mxu0 %v2534_v5  ;;  %v2541_v10 = vld [vmem:[%s3459_s1 + $0x34] ss:$8 sps:$4 sm:$0xff]   ;;  %v423_v19 = vld [vmem:[%s2727_s30 + $0x8] sm:$0xff]  }
  0x13   : > { %409 = vst [vmem:[#allocation2 + $0xe0] sm:$0xff] %v2584_v4  ;;  %411 = vst [vmem:[#allocation2 + $0xf0] sm:$0x3] %v2584_v4  ;;  %537 = vmatprep.subr.bf16.mxu0 %v2535_v6  ;;  %v2543_v11 = vld [vmem:[%s3459_s1 + $0x30] ss:$8 sps:$4 sm:$0xff]   ;;  %vm383_vm1 = vcmask 123904  }
  0x14   : > { %413 = vst [vmem:[#allocation2 + $0x100] sm:$0xff] %v2584_v4  ;;  %415 = vst [vmem:[#allocation2 + $0x110] sm:$0x3] %v2584_v4  ;;  %v2544_v12 = vld [vmem:[%s3459_s1 + $0x24] ss:$8 sps:$4 sm:$0xff]   ;;  %v2557_v22 = vld [vmem:[%s3465_s7 + $0x38] sm:$0xff]  }
  0x15   : > { %417 = vst [vmem:[#allocation2 + $0x120] sm:$0xff] %v2584_v4  ;;  %419 = vst [vmem:[#allocation2 + $0x130] sm:$0x3] %v2584_v4  ;;  %v2546_v13 = vld [vmem:[%s3459_s1 + $0x20] ss:$8 sps:$4 sm:$0xff]   ;;  %2267 = vmatpush1.bf16.msra.mxu1 %v2557_v22  ;;  %v2558_v23 = vld [vmem:[%s3465_s7 + $0x30] sm:$0xff]  }
  0x16   : > { %538 = vmatpush1.bf16.msra.mxu0 %v2537_v7  ;;  %v2547_v14 = vld [vmem:[%s3459_s1 + $0x14] ss:$8 sps:$4 sm:$0xff]   ;;  %v2549_v15 = vld [vmem:[%s3459_s1 + $0x10] ss:$8 sps:$4 sm:$0xff]   ;;  %v2550_v16 = vld [vmem:[%s3459_s1 + $0x4] ss:$8 sps:$4 sm:$0xff]   ;;  %2268 = vmatprep.subr.bf16.mxu1 %v2583_v2 }
  0x17   : > { %539 = vmatprep.subr.bf16.mxu0 %v2538_v8  ;;  %v2552_v17 = vld [vmem:[%s3459_s1] ss:$8 sps:$4 sm:$0xff]   ;;  %386 = vst.msk [vmem:[#allocation2 + $0x28] sm:$0xff] %vm380_vm0, %v2584_v4  ;;  %381 = vst.msk [vmem:[#allocation2 + $0x8] sm:$0xff] %vm380_vm0, %v2584_v4  ;;  %v2561_v26 = vld [vmem:[%s3465_s7 + $0x18] sm:$0xff]   ;;  %v608_v32 = vshrl.u32 %v607_v31, 7 }
  0x18   : > { %388 = vst.msk [vmem:[#allocation2 + $0x38] sm:$0x3] %vm383_vm1, %v2584_v4  ;;  %384 = vst.msk [vmem:[#allocation2 + $0x18] sm:$0x3] %vm383_vm1, %v2584_v4  ;;  %v2559_v24 = vld [vmem:[%s3465_s7 + $0x28] sm:$0xff]   ;;  %v2560_v25 = vld [vmem:[%s3465_s7 + $0x20] sm:$0xff]  }
  0x19   : > { %390 = vst.msk [vmem:[#allocation2 + $0x48] sm:$0xff] %vm380_vm0, %v2584_v4  ;;  %394 = vst.msk [vmem:[#allocation2 + $0x68] sm:$0xff] %vm380_vm0, %v2584_v4  ;;  %2269 = vmatpush1.bf16.msra.mxu1 %v2558_v23  ;;  %v2562_v27 = vld [vmem:[%s3465_s7 + $0x10] sm:$0xff]   ;;  %v2563_v28 = vld [vmem:[%s3465_s7 + $0x8] sm:$0xff]   ;;  %v2814_v33 = vsub.s32 1, %v608_v32  ;;  %v2830_v44 = vsub.s32 0, %v608_v32 }
  0x1a   : > { %540 = vmatpush1.bf16.msra.mxu0 %v2540_v9  ;;  %392 = vst.msk [vmem:[#allocation2 + $0x58] sm:$0x3] %vm383_vm1, %v2584_v4  ;;  %396 = vst.msk [vmem:[#allocation2 + $0x78] sm:$0x3] %vm383_vm1, %v2584_v4  ;;  %2270 = vmatprep.subr.bf16.mxu1 %v2583_v2  ;;  %v2564_v29 = vld [vmem:[%s3465_s7] sm:$0xff]   ;;  %vm950_vm2 = vcmask 1046528  }
  0x1b   : > { %541 = vmatprep.subr.bf16.mxu0 %v2541_v10  ;;  %398 = vst.msk [vmem:[#allocation2 + $0x88] sm:$0xff] %vm380_vm0, %v2584_v4  ;;  %402 = vst.msk [vmem:[#allocation2 + $0xa8] sm:$0xff] %vm380_vm0, %v2584_v4  ;;  %v2565_v30 = vld [vmem:[%s3465_s7 + $0x40] sm:$0xff]   ;;  %v845_v57 = vld [vmem:[#allocation2 + $0x10] sm:$0x1]  ;;  %vm742_vm3 = vcmask 130049  }
  0x1c   : > { %400 = vst.msk [vmem:[#allocation2 + $0x98] sm:$0x3] %vm383_vm1, %v2584_v4  ;;  %404 = vst.msk [vmem:[#allocation2 + $0xb8] sm:$0x3] %vm383_vm1, %v2584_v4  ;;  %v776_v34 = vld [vmem:[%s3462_s4 + $0x2] sm:$0x3] }
  0x1d   : > { %406 = vst.msk [vmem:[#allocation2 + $0xc8] sm:$0xff] %vm380_vm0, %v2584_v4  ;;  %410 = vst.msk [vmem:[#allocation2 + $0xe8] sm:$0xff] %vm380_vm0, %v2584_v4  ;;  %2271 = vmatpush1.bf16.msra.mxu1 %v2559_v24  ;;  %v2820_v35 = vrot.slane %v776_v34, %v2814_v33  ;;  %v777_v38 = vld [vmem:[%s3462_s4 + $0x4] sm:$0x3]  ;;  %v775_v45 = vld [vmem:[%s3462_s4] sm:$0x3]  ;;  %v2847_v54 = vrot.slane %v776_v34, %v2830_v44 }
  0x1e   : > { %542 = vmatpush1.bf16.msra.mxu0 %v2543_v11  ;;  %408 = vst.msk [vmem:[#allocation2 + $0xd8] sm:$0x3] %vm383_vm1, %v2584_v4  ;;  %412 = vst.msk [vmem:[#allocation2 + $0xf8] sm:$0x3] %vm383_vm1, %v2584_v4  ;;  %2272 = vmatprep.subr.bf16.mxu1 %v2583_v2  ;;  %v844_v36 = vld [vmem:[#allocation2 + $0x8] sm:$0xfe]  ;;  %v2828_v41 = vrot.slane %v777_v38, %v2814_v33  ;;  %v2839_v47 = vrot.slane %v775_v45, %v2814_v33 }
  0x1f   : > { %543 = vmatprep.subr.bf16.mxu0 %v2544_v12  ;;  %414 = vst.msk [vmem:[#allocation2 + $0x108] sm:$0xff] %vm380_vm0, %v2584_v4  ;;  %418 = vst.msk [vmem:[#allocation2 + $0x128] sm:$0xff] %vm380_vm0, %v2584_v4  ;;  %v846_v37 = vld [vmem:[#allocation2 + $0x18] sm:$0x1]  ;;  %v887_v39 = vmul.f32 %v2820_v35, %v844_v36  ;;  %v1032_v42 = vld [vmem:[#allocation2 + $0x8] sm:$0xfc]  ;;  %v2861_v1 = vrot.slane %v777_v38, %v2830_v44  ;;  %v888_v3 = vmul.f32 %v2847_v54, %v845_v57 }
  0x20   : > { %416 = vst.msk [vmem:[#allocation2 + $0x118] sm:$0x3] %vm383_vm1, %v2584_v4  ;;  %420 = vst.msk [vmem:[#allocation2 + $0x138] sm:$0x3] %vm383_vm1, %v2584_v4  ;;  %v889_v40 = vmul.f32 %v2820_v35, %v846_v37  ;;  %v1034_v43 = vld [vmem:[#allocation2 + $0x18] sm:$0x3]  ;;  %v1075_v52 = vmul.f32 %v2828_v41, %v1032_v42 }
  0x21   : > { %2273 = vmatpush1.bf16.msra.mxu1 %v2560_v25  ;;  %v377_v46 = vld [vmem:[%s3460_s2] sm:$0x3]  ;;  %v785_v49 = vld [vmem:[#allocation2 + $0x8] sm:$0xff]  ;;  %v954_v50 = vrot.slane %v887_v39, 1  ;;  %v1077_v53 = vmul.f32 %v2828_v41, %v1034_v43  ;;  %v1031_v6 = vld [vmem:[#allocation2] sm:$0xfc] }
  0x22   : > { %544 = vmatpush1.bf16.msra.mxu0 %v2546_v13  ;;  %2274 = vmatprep.subr.bf16.mxu1 %v2583_v2  ;;  %v378_v48 = vld [vmem:[%s3461_s3] sm:$0x3]  ;;  %v955_v51 = vrot.slane %v889_v40, 1  ;;  %v2850_v55 = vrot.slane %v377_v46, %v2830_v44  ;;  %v812_v59 = vmul.f32 %v2839_v47, %v785_v49  ;;  %v2857_v60 = vrot.slane %v377_v46, %v2814_v33  ;;  %v1033_v7 = vld [vmem:[#allocation2 + $0x10] sm:$0x3] }
  0x23   : > { %545 = vmatprep.subr.bf16.mxu0 %v2547_v14  ;;  %v843_v56 = vld [vmem:[#allocation2] sm:$0xfe]  ;;  %v2853_v58 = vrot.slane %v378_v48, %v2830_v44  ;;  %v1142_v62 = vrot.slane %v1075_v52, 2  ;;  %v1143_v63 = vrot.slane %v1077_v53, 2  ;;  %v2867_v5 = vrot.slane %v378_v48, %v2814_v33  ;;  %v779_v13 = vld [vmem:[%s3462_s4 + $0x8] sm:$0x3] }
  0x24   : > { %v956_v61 = vsel %vm950_vm2, %v954_v50, %v955_v51  ;;  %vm745_vm4 = vcmask 122880   ;;  %v778_v9 = vld [vmem:[%s3462_s4 + $0x6] sm:$0x3]  ;;  %vm1138_vm5 = vcmask 1045504   ;;  %v2878_v14 = vrot.slane %v775_v45, %v2830_v44  ;;  %v780_v36 = vld [vmem:[%s3462_s4 + $0xa] sm:$0x3] }
  0x25   : > { %2275 = vmatpush1.bf16.msra.mxu1 %v2561_v26  ;;  %v1016_v10 = vadd.f32 %v956_v61, %v812_v59  ;;  %v2886_v24 = vrot.slane %v778_v9, %v2830_v44  ;;  %v781_v37 = vld [vmem:[%s3462_s4 + $0xc] sm:$0x3]  ;;  %v782_v50 = vld [vmem:[%s3462_s4 + $0xe] sm:$0x3]  ;;  %v2915_v53 = vrot.slane %v780_v36, %v2830_v44 }
  0x26   : > { %546 = vmatpush1.bf16.msra.mxu0 %v2549_v15  ;;  %2276 = vmatprep.subr.bf16.mxu1 %v2583_v2  ;;  %v1144_v15 = vsel %vm1138_vm5, %v1142_v62, %v1143_v63  ;;  %v811_v39 = vmul.f32 0.0, %v2878_v14  ;;  %v2921_v57 = vrot.slane %v781_v37, %v2830_v44 }
  0x27   : > { %547 = vmatprep.subr.bf16.mxu0 %v2550_v16  ;;  %v2888_v26 = vadd.f32 %v1144_v15, %v1016_v10 }
  0x29   : > { %2277 = vmatpush1.bf16.msra.mxu1 %v2562_v27  ;;  %v2891_v27 = vrot.slane %v778_v9, %v2814_v33 }
  0x2a   : > { %548 = vmatpush1.bf16.msra.mxu0 %v2552_v17  ;;  %2278 = vmatprep.subr.bf16.mxu1 %v2583_v2 }
  0x2d   : > { %566 = vmatmul.mubr.bf16.vlgmr.msra.gmra.mxu0 %v421_v18  ;;  %2279 = vmatpush1.bf16.msra.mxu1 %v2563_v28  ;;  %v952_v18 = vrot.slane %v888_v3, 1  ;;  %v2894_v28 = vrot.slane %v779_v13, %v2830_v44 }
  0x2e   : > { %575 = vmatprep.mubr.bf16.mxu0 %v2583_v2  ;;  %2280 = vmatprep.subr.bf16.mxu1 %v2583_v2 }
  0x31   : > { %2281 = vmatpush1.bf16.msra.mxu1 %v2564_v29  ;;  %v2897_v29 = vrot.slane %v779_v13, %v2814_v33 }
  0x32   : > { %2296 = vmatprep.subr.bf16.mxu1 %v2583_v2 }
  0x35   : > { %576 = vmatmul.mubr.bf16.gmra.mxu0 %v423_v19  ;;  %2297 = vmatpush2.bf16.msra.mxu1 %v2565_v30  ;;  %v1074_v19 = vmul.f32 %v2861_v1, %v1031_v6 }
  0x36   : > { %585 = vmatprep.mubr.bf16.mxu0 %v2583_v2 }
  0x37   : > { %v1139_v42 = vrot.slane %v1074_v19, 2 }
  0x3d   : > { %586 = vmatmul.mubr.bf16.gmra.mxu0 %v425_v20  ;;  %v1076_v20 = vmul.f32 %v2861_v1, %v1033_v7 }
  0x3e   : > { %595 = vmatprep.mubr.bf16.mxu0 %v2583_v2  ;;  %v886_v2 = vmul.f32 %v2847_v54, %v843_v56  ;;  %v2918_v56 = vrot.slane %v780_v36, %v2814_v33 }
  0x3f   : > { %v1140_v43 = vrot.slane %v1076_v20, 2 }
  0x40   : > { %v951_v17 = vrot.slane %v886_v2, 1 }
  0x41   : > { %v1141_v7 = vsel %vm1138_vm5, %v1139_v42, %v1140_v43 }
  0x42   : > { %v953_v40 = vsel %vm950_vm2, %v951_v17, %v952_v18  ;;  %v2943_v17 = vrot.slane %v782_v50, %v2814_v33 }
  0x43   : > { %v1015_v6 = vadd.f32 %v953_v40, %v811_v39 }
  0x45   : > { %596 = vmatmul.mubr.bf16.gmra.mxu0 %v427_v21 }
  0xed   : > { %v567_v0 = vpop.f32.mrf.mxu0 }
  0xee   : > { %v617_v4 = vmul.f32 %v2850_v55, %v567_v0  ;;  %v783_v0 = vld [vmem:[%s3462_s4 + $0x10] sm:$0x3] }
  0xef   : > { %v569_v8 = vpop.f32.mrf.mxu0  ;;  %v2946_v18 = vrot.slane %v783_v0, %v2830_v44 }
  0xf0   : > { %v644_v11 = vadd.f32 %v2853_v58, %v617_v4  ;;  %v618_v12 = vmul.f32 %v2857_v60, %v569_v8  ;;  %v2929_v4 = vrot.slane %v782_v50, %v2830_v44 }
  0xf1   : > { %v571_v16 = vpop.f32.mrf.mxu0 }
  0xf2   : > { %v660_v21 = vmax.f32 %v644_v11, 0.0  ;;  %v645_v22 = vadd.f32 %v2867_v5, %v618_v12  ;;  %v619_v23 = vmul.f32 %v2850_v55, %v571_v16  ;;  %v2086_v12 = vld [vmem:[%s3463_s5] sm:$0x3]  ;;  %v2940_v16 = vrot.slane %v781_v37, %v2814_v33 }
  0xf3   : > { %v573_v25 = vpop.f32.mrf.mxu0  ;;  %v2966_v43 = vrot.slane %v2086_v12, %v2814_v33 }
  0xf4   : > { %v676_v30 = vmin.f32 %v660_v21, 6.0  ;;  %v661_v31 = vmax.f32 %v645_v22, 0.0  ;;  %v646_v32 = vadd.f32 %v2853_v58, %v619_v23  ;;  %v620_v34 = vmul.f32 %v2857_v60, %v573_v25  ;;  %v2114_v23 = vld [vmem:[%s3464_s6] sm:$0x3] }
  0xf5   : > { %v577_v38 = vpop.f32.mrf.mxu0 }
  0xf6   : > { %v708_v45 = vrot.slane %v676_v30, 7  ;;  %v677_v46 = vmin.f32 %v661_v31, 6.0  ;;  %v662_v48 = vmax.f32 %v646_v32, 0.0  ;;  %v647_v49 = vadd.f32 %v2867_v5, %v620_v34 }
  0xf7   : > { %v621_v51 = vmul.f32 %v2850_v55, %v577_v38  ;;  %v579_v52 = vpop.f32.mrf.mxu0  ;;  %v2954_v31 = vrot.slane %v783_v0, %v2814_v33  ;;  %v2957_v32 = vrot.slane %v2086_v12, %v2830_v44  ;;  %v2959_v34 = vadd.f32 %v1141_v7, %v1015_v6 }
  0xf8   : > { %741 = vst [vmem:[#allocation2 + $0x20] sm:$0xfe] %v708_v45  ;;  %744 = vst [vmem:[#allocation2 + $0x30] sm:$0x1] %v708_v45  ;;  %v709_v59 = vrot.slane %v677_v46, 7  ;;  %v678_v61 = vmin.f32 %v662_v48, 6.0  ;;  %v622_v63 = vmul.f32 %v2857_v60, %v579_v52  ;;  %v2969_v45 = vrot.slane %v2114_v23, %v2830_v44 }
  0xf9   : > { %v663_v62 = vmax.f32 %v647_v49, 0.0  ;;  %v648_v2 = vadd.f32 %v2853_v58, %v621_v51  ;;  %v581_v3 = vpop.f32.mrf.mxu0  ;;  %v2972_v46 = vrot.slane %v2114_v23, %v2814_v33 }
  0xfa   : > { %743 = vst.msk [vmem:[#allocation2 + $0x28] sm:$0xfe] %vm742_vm3, %v709_v59  ;;  %v710_v8 = vrot.slane %v678_v61, 7  ;;  %v649_v10 = vadd.f32 %v2867_v5, %v622_v63  ;;  %v623_v11 = vmul.f32 %v2850_v55, %v581_v3 }
  0xfb   : > { %746 = vst.msk [vmem:[#allocation2 + $0x38] sm:$0x1] %vm745_vm4, %v709_v59  ;;  %v679_v9 = vmin.f32 %v663_v62, 6.0  ;;  %v664_v13 = vmax.f32 %v648_v2, 0.0  ;;  %v583_v15 = vpop.f32.mrf.mxu0 }
  0xfc   : > { %747 = vst [vmem:[#allocation2 + $0x40] sm:$0xfe] %v710_v8  ;;  %749 = vst [vmem:[#allocation2 + $0x50] sm:$0x1] %v710_v8  ;;  %v665_v20 = vmax.f32 %v649_v10, 0.0  ;;  %v650_v21 = vadd.f32 %v2853_v58, %v623_v11  ;;  %v624_v22 = vmul.f32 %v2857_v60, %v583_v15 }
  0xfd   : > { %v711_v19 = vrot.slane %v679_v9, 7  ;;  %v680_v25 = vmin.f32 %v664_v13, 6.0  ;;  %v587_v30 = vpop.f32.mrf.mxu0 }
  0xfe   : > { %v681_v36 = vmin.f32 %v665_v20, 6.0  ;;  %v666_v37 = vmax.f32 %v650_v21, 0.0  ;;  %v651_v38 = vadd.f32 %v2867_v5, %v624_v22  ;;  %v625_v39 = vmul.f32 %v2850_v55, %v587_v30 }
  0xff   : > { %748 = vst.msk [vmem:[#allocation2 + $0x48] sm:$0xfe] %vm742_vm3, %v711_v19  ;;  %v712_v40 = vrot.slane %v680_v25, 7  ;;  %v589_v42 = vpop.f32.mrf.mxu0  ;;  %v2974_v48 = vld [vmem:[#allocation2 + $0x20] sm:$0xff]  ;;  %v849_v50 = vld [vmem:[#allocation2 + $0x30] sm:$0x1] }
 0x100   : > { %750 = vst.msk [vmem:[#allocation2 + $0x58] sm:$0x1] %vm745_vm4, %v711_v19  ;;  %v847_v49 = vld [vmem:[#allocation2 + $0x20] sm:$0xfe]  ;;  %v713_v51 = vrot.slane %v681_v36, 7  ;;  %v682_v52 = vmin.f32 %v666_v37, 6.0  ;;  %v652_v61 = vadd.f32 %v2853_v58, %v625_v39  ;;  %v626_v62 = vmul.f32 %v2857_v60, %v589_v42 }
 0x101   : > { %v667_v59 = vmax.f32 %v651_v38, 0.0  ;;  %751 = vst [vmem:[#allocation2 + $0x60] sm:$0xfe] %v712_v40  ;;  %753 = vst [vmem:[#allocation2 + $0x70] sm:$0x1] %v712_v40  ;;  %v591_v63 = vpop.f32.mrf.mxu0  ;;  %v787_v0 = vld [vmem:[#allocation2 + $0x28] sm:$0xff]  ;;  %v2980_v33 = vmul.f32 %v2878_v14, %v2974_v48  ;;  %v2983_v3 = vmul.f32 %v2847_v54, %v847_v49  ;;  %v2986_v6 = vmul.f32 %v2847_v54, %v849_v50 }
 0x102   : > { %v848_v44 = vld [vmem:[#allocation2 + $0x28] sm:$0xfe]  ;;  %v850_v2 = vld [vmem:[#allocation2 + $0x38] sm:$0x1]  ;;  %752 = vst.msk [vmem:[#allocation2 + $0x68] sm:$0xfe] %vm742_vm3, %v713_v51  ;;  %v627_v10 = vmul.f32 %v2850_v55, %v591_v63  ;;  %v653_v12 = vadd.f32 %v2867_v5, %v626_v62  ;;  %v814_v15 = vmul.f32 %v2839_v47, %v787_v0 }
 0x103   : > { %754 = vst.msk [vmem:[#allocation2 + $0x78] sm:$0x1] %vm745_vm4, %v713_v51  ;;  %v714_v7 = vrot.slane %v682_v52, 7  ;;  %v683_v8 = vmin.f32 %v667_v59, 6.0  ;;  %v668_v9 = vmax.f32 %v652_v61, 0.0  ;;  %v593_v13 = vpop.f32.mrf.mxu0  ;;  %v891_v19 = vmul.f32 %v2820_v35, %v848_v44 }
 0x104   : > { %v1036_v11 = vld [vmem:[#allocation2 + $0x28] sm:$0xfc]  ;;  %v893_v20 = vmul.f32 %v2820_v35, %v850_v2  ;;  %v654_v23 = vadd.f32 %v2853_v58, %v627_v10  ;;  %v628_v25 = vmul.f32 %v2857_v60, %v593_v13  ;;  %v1038_v30 = vld [vmem:[#allocation2 + $0x38] sm:$0x3]  ;;  %v669_v36 = vmax.f32 %v653_v12, 0.0 }
 0x105   : > { %755 = vst [vmem:[#allocation2 + $0x80] sm:$0xfe] %v714_v7  ;;  %757 = vst [vmem:[#allocation2 + $0x90] sm:$0x1] %v714_v7  ;;  %v715_v21 = vrot.slane %v683_v8, 7  ;;  %v684_v22 = vmin.f32 %v668_v9, 6.0  ;;  %v597_v37 = vpop.f32.mrf.mxu0  ;;  %v1079_v40 = vmul.f32 %v2828_v41, %v1036_v11  ;;  %v1081_v62 = vmul.f32 %v2828_v41, %v1038_v30 }
 0x106   : > { %v960_v38 = vrot.slane %v891_v19, 1  ;;  %v961_v39 = vrot.slane %v893_v20, 1  ;;  %v670_v49 = vmax.f32 %v654_v23, 0.0  ;;  %v655_v50 = vadd.f32 %v2867_v5, %v628_v25  ;;  %v3006_v9 = vld [vmem:[#allocation2 + $0x48] sm:$0xff]  ;;  %v1281_v30 = vld [vmem:[#allocation2 + $0x38] sm:$0x1] }
 0x107   : > { %756 = vst.msk [vmem:[#allocation2 + $0x88] sm:$0xfe] %vm742_vm3, %v715_v21  ;;  %v716_v42 = vrot.slane %v684_v22, 7  ;;  %v629_v51 = vmul.f32 %v2850_v55, %v597_v37  ;;  %v685_v52 = vmin.f32 %v669_v36, 6.0  ;;  %v599_v59 = vpop.f32.mrf.mxu0  ;;  %v1148_v63 = vrot.slane %v1079_v40, 2 }
 0x108   : > { %758 = vst.msk [vmem:[#allocation2 + $0x98] sm:$0x1] %vm745_vm4, %v715_v21  ;;  %v962_v61 = vsel %vm950_vm2, %v960_v38, %v961_v39  ;;  %v686_v44 = vmin.f32 %v670_v49, 6.0  ;;  %v671_v2 = vmax.f32 %v655_v50, 0.0  ;;  %v630_v8 = vmul.f32 %v2857_v60, %v599_v59  ;;  %v1279_v20 = vld [vmem:[#allocation2 + $0x28] sm:$0xfe] }
 0x109   : > { %759 = vst [vmem:[#allocation2 + $0xa0] sm:$0xfe] %v716_v42  ;;  %761 = vst [vmem:[#allocation2 + $0xb0] sm:$0x1] %v716_v42  ;;  %v656_v7 = vadd.f32 %v2853_v58, %v629_v51  ;;  %v717_v10 = vrot.slane %v685_v52, 7  ;;  %v601_v11 = vpop.f32.mrf.mxu0  ;;  %v1018_v12 = vadd.f32 %v962_v61, %v814_v15  ;;  %v1149_v13 = vrot.slane %v1081_v62, 2 }
 0x10a   : > { %v1247_v19 = vmul.f32 %v2891_v27, %v787_v0  ;;  %v718_v21 = vrot.slane %v686_v44, 7  ;;  %v687_v22 = vmin.f32 %v671_v2, 6.0  ;;  %v657_v25 = vadd.f32 %v2867_v5, %v630_v8  ;;  %v1283_v39 = vld [vmem:[#allocation2 + $0x48] sm:$0xfe]  ;;  %v1285_v51 = vld [vmem:[#allocation2 + $0x58] sm:$0x1] }
 0x10b   : > { %v672_v23 = vmax.f32 %v656_v7, 0.0  ;;  %760 = vst.msk [vmem:[#allocation2 + $0xa8] sm:$0xfe] %vm742_vm3, %v717_v10  ;;  %v631_v36 = vmul.f32 %v2850_v55, %v601_v11  ;;  %v603_v37 = vpop.f32.mrf.mxu0  ;;  %v1150_v38 = vsel %vm1138_vm5, %v1148_v63, %v1149_v13  ;;  %v1249_v15 = vmul.f32 %v2891_v27, %v3006_v9  ;;  %v1466_v2 = vld [vmem:[#allocation2 + $0x28] sm:$0xfc] }
 0x10c   : > { %762 = vst.msk [vmem:[#allocation2 + $0xb8] sm:$0x1] %vm745_vm4, %v717_v10  ;;  %v1263_v0 = vadd.f32 %v1247_v19, %v2888_v26  ;;  %763 = vst [vmem:[#allocation2 + $0xc0] sm:$0xfe] %v718_v21  ;;  %v719_v40 = vrot.slane %v687_v22, 7  ;;  %v673_v49 = vmax.f32 %v657_v25, 0.0  ;;  %v632_v50 = vmul.f32 %v2857_v60, %v603_v37 }
 0x10d   : > { %765 = vst [vmem:[#allocation2 + $0xd0] sm:$0x1] %v718_v21  ;;  %v688_v42 = vmin.f32 %v672_v23, 6.0  ;;  %v658_v52 = vadd.f32 %v2853_v58, %v631_v36  ;;  %v1206_v55 = vadd.f32 %v1150_v38, %v1018_v12  ;;  %v1322_v59 = vmul.f32 %v2897_v29, %v1279_v20  ;;  %v1468_v60 = vld [vmem:[#allocation2 + $0x38] sm:$0x3] }
 0x10e   : > { %v1324_v61 = vmul.f32 %v2897_v29, %v1281_v30  ;;  %764 = vst.msk [vmem:[#allocation2 + $0xc8] sm:$0xfe] %vm742_vm3, %v719_v40  ;;  %v689_v62 = vmin.f32 %v673_v49, 6.0  ;;  %v659_v63 = vadd.f32 %v2867_v5, %v632_v50  ;;  %v1326_v44 = vmul.f32 %v2897_v29, %v1283_v39  ;;  %v1470_v11 = vld [vmem:[#allocation2 + $0x48] sm:$0xfc] }
 0x10f   : > { %766 = vst.msk [vmem:[#allocation2 + $0xd8] sm:$0x1] %vm745_vm4, %v719_v40  ;;  %v720_v26 = vrot.slane %v688_v42, 7  ;;  %v674_v7 = vmax.f32 %v658_v52, 0.0  ;;  %v1265_v8 = vadd.f32 %v1249_v15, %v1206_v55  ;;  %v1328_v58 = vmul.f32 %v2897_v29, %v1285_v51  ;;  %v1472_v12 = vld [vmem:[#allocation2 + $0x58] sm:$0x3] }
 0x110   : > { %v1388_v10 = vrot.slane %v1322_v59, 1  ;;  %v721_v13 = vrot.slane %v689_v62, 7  ;;  %v675_v19 = vmax.f32 %v659_v63, 0.0  ;;  %v1389_v20 = vrot.slane %v1324_v61, 1  ;;  %v3033_v15 = vld [vmem:[#allocation2 + $0x68] sm:$0xff] }
 0x111   : > { %767 = vst [vmem:[#allocation2 + $0xe0] sm:$0xfe] %v720_v26  ;;  %769 = vst [vmem:[#allocation2 + $0xf0] sm:$0x1] %v720_v26  ;;  %v1394_v21 = vrot.slane %v1326_v44, 1  ;;  %v690_v22 = vmin.f32 %v674_v7, 6.0  ;;  %v1509_v5 = vmul.f32 %v2918_v56, %v1466_v2  ;;  %v1511_v25 = vmul.f32 %v2918_v56, %v1468_v60 }
 0x112   : > { %v1395_v23 = vrot.slane %v1328_v58, 1  ;;  %768 = vst.msk [vmem:[#allocation2 + $0xe8] sm:$0xfe] %vm742_vm3, %v721_v13  ;;  %v691_v30 = vmin.f32 %v675_v19, 6.0  ;;  %v1390_v36 = vsel %vm950_vm2, %v1388_v10, %v1389_v20  ;;  %v1513_v37 = vmul.f32 %v2918_v56, %v1470_v11  ;;  %v1713_v39 = vld [vmem:[#allocation2 + $0x48] sm:$0xfe] }
 0x113   : > { %770 = vst.msk [vmem:[#allocation2 + $0xf8] sm:$0x1] %vm745_vm4, %v721_v13  ;;  %v1515_v38 = vmul.f32 %v2918_v56, %v1472_v12  ;;  %v1715_v40 = vld [vmem:[#allocation2 + $0x58] sm:$0x1]  ;;  %v722_v42 = vrot.slane %v690_v22, 7  ;;  %v1450_v50 = vadd.f32 %v1390_v36, %v1263_v0  ;;  %v1575_v51 = vrot.slane %v1509_v5, 2 }
 0x114   : > { %v1396_v49 = vsel %vm950_vm2, %v1394_v21, %v1395_v23  ;;  %v1717_v52 = vld [vmem:[#allocation2 + $0x68] sm:$0xfe]  ;;  %v1719_v55 = vld [vmem:[#allocation2 + $0x78] sm:$0x1]  ;;  %v723_v59 = vrot.slane %v691_v30, 7  ;;  %v1576_v26 = vrot.slane %v1511_v25, 2  ;;  %v1681_v2 = vmul.f32 %v2940_v16, %v3006_v9 }
 0x115   : > { %v1452_v61 = vadd.f32 %v1396_v49, %v1265_v8  ;;  %v1581_v62 = vrot.slane %v1513_v37, 2  ;;  %v1900_v63 = vld [vmem:[#allocation2 + $0x48] sm:$0xfc]  ;;  %771 = vst [vmem:[#allocation2 + $0x100] sm:$0xfe] %v722_v42  ;;  %v1582_v44 = vrot.slane %v1515_v38, 2  ;;  %v1683_v60 = vmul.f32 %v2940_v16, %v3033_v15 }
 0x116   : > { %773 = vst [vmem:[#allocation2 + $0x110] sm:$0x1] %v722_v42  ;;  %v1756_v7 = vmul.f32 %v2943_v17, %v1713_v39  ;;  %772 = vst.msk [vmem:[#allocation2 + $0x108] sm:$0xfe] %vm742_vm3, %v723_v59  ;;  %v1577_v0 = vsel %vm1138_vm5, %v1575_v51, %v1576_v26  ;;  %v1758_v8 = vmul.f32 %v2943_v17, %v1715_v40  ;;  %v1902_v11 = vld [vmem:[#allocation2 + $0x58] sm:$0x3] }
 0x117   : > { %774 = vst.msk [vmem:[#allocation2 + $0x118] sm:$0x1] %vm745_vm4, %v723_v59  ;;  %v1760_v58 = vmul.f32 %v2943_v17, %v1717_v52  ;;  %v1762_v10 = vmul.f32 %v2943_v17, %v1719_v55  ;;  %v1904_v12 = vld [vmem:[#allocation2 + $0x68] sm:$0xfc]  ;;  %v1906_v13 = vld [vmem:[#allocation2 + $0x78] sm:$0x3]  ;;  %v1583_v19 = vsel %vm1138_vm5, %v1581_v62, %v1582_v44  ;;  %v1637_v20 = vadd.f32 %v1577_v0, %v1450_v50 }
 0x118   : > { %v1822_v21 = vrot.slane %v1756_v7, 1  ;;  %v1943_v22 = vmul.f32 %v2954_v31, %v1900_v63  ;;  %v1639_v23 = vadd.f32 %v1583_v19, %v1452_v61  ;;  %v1823_v5 = vrot.slane %v1758_v8, 1  ;;  %v1035_v40 = vld [vmem:[#allocation2 + $0x20] sm:$0xfc]  ;;  %v1037_v52 = vld [vmem:[#allocation2 + $0x30] sm:$0x3] }
 0x119   : > { %v1828_v25 = vrot.slane %v1760_v58, 1  ;;  %v1829_v30 = vrot.slane %v1762_v10, 1  ;;  %v1697_v36 = vadd.f32 %v1681_v2, %v1637_v20  ;;  %v1945_v37 = vmul.f32 %v2954_v31, %v1902_v11  ;;  %v3057_v7 = vld [vmem:[#allocation2 + $0x40] sm:$0xff]  ;;  %v1280_v11 = vld [vmem:[#allocation2 + $0x30] sm:$0x1] }
 0x11a   : > { %v1947_v38 = vmul.f32 %v2954_v31, %v1904_v12  ;;  %v1949_v39 = vmul.f32 %v2954_v31, %v1906_v13  ;;  %v1699_v42 = vadd.f32 %v1683_v60, %v1639_v23  ;;  %v1824_v49 = vsel %vm950_vm2, %v1822_v21, %v1823_v5  ;;  %v1278_v10 = vld [vmem:[#allocation2 + $0x20] sm:$0xfe]  ;;  %v1284_v20 = vld [vmem:[#allocation2 + $0x50] sm:$0x1] }
 0x11b   : > { %v1830_v50 = vsel %vm950_vm2, %v1828_v25, %v1829_v30  ;;  %v2009_v51 = vrot.slane %v1943_v22, 2  ;;  %v1884_v55 = vadd.f32 %v1824_v49, %v1697_v36  ;;  %v2010_v59 = vrot.slane %v1945_v37, 2  ;;  %v1282_v12 = vld [vmem:[#allocation2 + $0x40] sm:$0xfe] }
 0x11c   : > { %v2015_v61 = vrot.slane %v1947_v38, 2  ;;  %v2016_v26 = vrot.slane %v1949_v39, 2  ;;  %v1886_v62 = vadd.f32 %v1830_v50, %v1699_v42  ;;  %v957_v63 = vrot.slane %v2983_v3, 1  ;;  %v1465_v21 = vld [vmem:[#allocation2 + $0x20] sm:$0xfc] }
 0x11d   : > { %v958_v44 = vrot.slane %v2986_v6, 1  ;;  %v1078_v2 = vmul.f32 %v2861_v1, %v1035_v40  ;;  %v2011_v60 = vsel %vm1138_vm5, %v2009_v51, %v2010_v59  ;;  %v1080_v8 = vmul.f32 %v2861_v1, %v1037_v52  ;;  %v1467_v38 = vld [vmem:[#allocation2 + $0x30] sm:$0x3]  ;;  %v1469_v42 = vld [vmem:[#allocation2 + $0x40] sm:$0xfc] }
 0x11e   : > { %v2017_v0 = vsel %vm1138_vm5, %v2015_v61, %v2016_v26  ;;  %v1246_v58 = vmul.f32 %v2886_v24, %v2974_v48  ;;  %v2071_v13 = vadd.f32 %v2011_v60, %v1884_v55  ;;  %v1248_v5 = vmul.f32 %v2886_v24, %v3057_v7  ;;  %v1471_v55 = vld [vmem:[#allocation2 + $0x50] sm:$0x3] }
 0x11f   : > { %v2073_v3 = vadd.f32 %v2017_v0, %v1886_v62  ;;  %v959_v6 = vsel %vm950_vm2, %v957_v63, %v958_v44  ;;  %v1145_v19 = vrot.slane %v1078_v2, 2  ;;  %v1146_v23 = vrot.slane %v1080_v8, 2 }
 0x120   : > { %v1017_v22 = vadd.f32 %v959_v6, %v2980_v33  ;;  %v1262_v25 = vadd.f32 %v1246_v58, %v2959_v34  ;;  %v2099_v48 = vmul.f32 %v2966_v43, %v2071_v13  ;;  %v1321_v36 = vmul.f32 %v2894_v28, %v1278_v10  ;;  %v1714_v13 = vld [vmem:[#allocation2 + $0x50] sm:$0x1] }
 0x121   : > { %v2101_v30 = vmul.f32 %v2966_v43, %v2073_v3  ;;  %v1323_v37 = vmul.f32 %v2894_v28, %v1280_v11  ;;  %v1147_v39 = vsel %vm1138_vm5, %v1145_v19, %v1146_v23  ;;  %v1325_v40 = vmul.f32 %v2894_v28, %v1282_v12  ;;  %v3084_v11 = vld [vmem:[#allocation2 + $0x60] sm:$0xff] }
 0x122   : > { %v1327_v33 = vmul.f32 %v2894_v28, %v1284_v20  ;;  %v1508_v49 = vmul.f32 %v2915_v53, %v1465_v21  ;;  %v2127_v34 = vadd.f32 %v2972_v46, %v2099_v48  ;;  %v1205_v51 = vadd.f32 %v1147_v39, %v1017_v22  ;;  %v1712_v12 = vld [vmem:[#allocation2 + $0x40] sm:$0xfe]  ;;  %v1718_v22 = vld [vmem:[#allocation2 + $0x70] sm:$0x1] }
 0x123   : > { %v2129_v50 = vadd.f32 %v2972_v46, %v2101_v30  ;;  %v1385_v52 = vrot.slane %v1321_v36, 1  ;;  %v1386_v59 = vrot.slane %v1323_v37, 1  ;;  %v1391_v61 = vrot.slane %v1325_v40, 1  ;;  %v1716_v21 = vld [vmem:[#allocation2 + $0x60] sm:$0xfe] }
 0x124   : > { %v1392_v26 = vrot.slane %v1327_v33, 1  ;;  %v1510_v62 = vmul.f32 %v2915_v53, %v1467_v38  ;;  %v2143_v63 = vmax.f32 %v2127_v34, 0.0  ;;  %v1264_v2 = vadd.f32 %v1248_v5, %v1205_v51  ;;  %v1899_v40 = vld [vmem:[#allocation2 + $0x40] sm:$0xfc]  ;;  %v1901_v33 = vld [vmem:[#allocation2 + $0x50] sm:$0x3] }
 0x125   : > { %v2145_v44 = vmax.f32 %v2129_v50, 0.0  ;;  %v1512_v60 = vmul.f32 %v2915_v53, %v1469_v42  ;;  %v1387_v0 = vsel %vm950_vm2, %v1385_v52, %v1386_v59  ;;  %v1514_v58 = vmul.f32 %v2915_v53, %v1471_v55  ;;  %v1903_v50 = vld [vmem:[#allocation2 + $0x60] sm:$0xfc] }
 0x126   : > { %v1393_v8 = vsel %vm950_vm2, %v1391_v61, %v1392_v26  ;;  %v1572_v10 = vrot.slane %v1508_v49, 2  ;;  %v2159_v3 = vmin.f32 %v2143_v63, 6.0  ;;  %v1449_v19 = vadd.f32 %v1387_v0, %v1262_v25  ;;  %v1905_v61 = vld [vmem:[#allocation2 + $0x70] sm:$0x3] }
 0x127   : > { %v2161_v6 = vmin.f32 %v2145_v44, 6.0  ;;  %v1451_v20 = vadd.f32 %v1393_v8, %v1264_v2  ;;  %v1573_v23 = vrot.slane %v1510_v62, 2  ;;  %v1578_v5 = vrot.slane %v1512_v60, 2 }
 0x128   : > { %v1579_v48 = vrot.slane %v1514_v58, 2  ;;  %v1680_v30 = vmul.f32 %v2921_v57, %v3057_v7  ;;  %v1682_v37 = vmul.f32 %v2921_v57, %v3084_v11  ;;  %v1755_v38 = vmul.f32 %v2929_v4, %v1712_v12  ;;  %v852_v58 = vld [vmem:[#allocation2 + $0x48] sm:$0xfe] }
 0x129   : > { %v2175_v36 = vpack.c.bf16 %v2161_v6, %v2159_v3  ;;  %v1757_v39 = vmul.f32 %v2929_v4, %v1714_v13  ;;  %v1574_v25 = vsel %vm1138_vm5, %v1572_v10, %v1573_v23  ;;  %v1759_v49 = vmul.f32 %v2929_v4, %v1716_v21  ;;  %v854_v10 = vld [vmem:[#allocation2 + $0x58] sm:$0x1] }
 0x12a   : > { %v1580_v42 = vsel %vm1138_vm5, %v1578_v5, %v1579_v48  ;;  %v1761_v34 = vmul.f32 %v2929_v4, %v1718_v22  ;;  %v1636_v51 = vadd.f32 %v1574_v25, %v1449_v19  ;;  %v1819_v55 = vrot.slane %v1755_v38, 1  ;;  %v856_v19 = vld [vmem:[#allocation2 + $0x68] sm:$0xfe] }
 0x12b   : > { %2486 = vmatprep.mubr.msk.bf16.mxu1 %vm380_vm0, %v2175_v36  ;;  %v1638_v52 = vadd.f32 %v1580_v42, %v1451_v20  ;;  %v1820_v59 = vrot.slane %v1757_v39, 1  ;;  %v1825_v26 = vrot.slane %v1759_v49, 1  ;;  %v1942_v63 = vmul.f32 %v2946_v18, %v1899_v40  ;;  %v858_v20 = vld [vmem:[#allocation2 + $0x78] sm:$0x1]  ;;  %v1040_v48 = vld [vmem:[#allocation2 + $0x48] sm:$0xfc] }
 0x12c   : > { %v1826_v62 = vrot.slane %v1761_v34, 1  ;;  %v1944_v44 = vmul.f32 %v2946_v18, %v1901_v33  ;;  %v1696_v2 = vadd.f32 %v1680_v30, %v1636_v51  ;;  %v1946_v8 = vmul.f32 %v2946_v18, %v1903_v50  ;;  %v1042_v30 = vld [vmem:[#allocation2 + $0x58] sm:$0x3]  ;;  %v1044_v49 = vld [vmem:[#allocation2 + $0x68] sm:$0xfc] }
 0x12d   : > { %v1698_v60 = vadd.f32 %v1682_v37, %v1638_v52  ;;  %v1821_v0 = vsel %vm950_vm2, %v1819_v55, %v1820_v59  ;;  %v1948_v13 = vmul.f32 %v2946_v18, %v1905_v61  ;;  %v2006_v3 = vrot.slane %v1942_v63, 2  ;;  %v1046_v34 = vld [vmem:[#allocation2 + $0x78] sm:$0x3] }
 0x12e   : > { %v1827_v12 = vsel %vm950_vm2, %v1825_v26, %v1826_v62  ;;  %v2007_v6 = vrot.slane %v1944_v44, 2  ;;  %v1883_v21 = vadd.f32 %v1821_v0, %v1696_v2  ;;  %v2012_v23 = vrot.slane %v1946_v8, 2 }
 0x12f   : > { %v1885_v22 = vadd.f32 %v1827_v12, %v1698_v60  ;;  %v816_v5 = vmul.f32 %v3006_v9, %v2839_v47  ;;  %v2013_v37 = vrot.slane %v1948_v13, 2  ;;  %v818_v38 = vmul.f32 %v3033_v15, %v2839_v47 }
 0x130   : > { %v2008_v36 = vsel %vm1138_vm5, %v2006_v3, %v2007_v6  ;;  %v895_v39 = vmul.f32 %v2820_v35, %v852_v58  ;;  %v897_v33 = vmul.f32 %v2820_v35, %v854_v10  ;;  %v899_v25 = vmul.f32 %v2820_v35, %v856_v19  ;;  %v3121_v10 = vld [vmem:[#allocation2 + $0x88] sm:$0xff] }
 0x131   : > { %v2070_v40 = vadd.f32 %v2008_v36, %v1883_v21  ;;  %v901_v42 = vmul.f32 %v2820_v35, %v858_v20  ;;  %v2014_v9 = vsel %vm1138_vm5, %v2012_v23, %v2013_v37  ;;  %v1083_v51 = vmul.f32 %v2828_v41, %v1040_v48  ;;  %v1287_v19 = vld [vmem:[#allocation2 + $0x68] sm:$0xfe]  ;;  %v1289_v20 = vld [vmem:[#allocation2 + $0x78] sm:$0x1] }
 0x132   : > { %v966_v50 = vrot.slane %v895_v39, 1  ;;  %v1085_v52 = vmul.f32 %v2828_v41, %v1042_v30  ;;  %v2072_v55 = vadd.f32 %v2014_v9, %v1885_v22  ;;  %v967_v61 = vrot.slane %v897_v33, 1  ;;  %v1291_v30 = vld [vmem:[#allocation2 + $0x88] sm:$0xfe]  ;;  %v1293_v36 = vld [vmem:[#allocation2 + $0x98] sm:$0x1] }
 0x133   : > { %v2098_v59 = vmul.f32 %v2957_v32, %v2070_v40  ;;  %v972_v26 = vrot.slane %v899_v25, 1  ;;  %v973_v62 = vrot.slane %v901_v42, 1  ;;  %v1087_v63 = vmul.f32 %v2828_v41, %v1044_v49  ;;  %v1474_v33 = vld [vmem:[#allocation2 + $0x68] sm:$0xfc] }
 0x134   : > { %v1089_v44 = vmul.f32 %v2828_v41, %v1046_v34  ;;  %v1154_v2 = vrot.slane %v1083_v51, 2  ;;  %v2100_v60 = vmul.f32 %v2957_v32, %v2072_v55  ;;  %v968_v8 = vsel %vm950_vm2, %v966_v50, %v967_v61  ;;  %v1478_v55 = vld [vmem:[#allocation2 + $0x88] sm:$0xfc] }
 0x135   : > { %v2126_v0 = vadd.f32 %v2969_v45, %v2098_v59  ;;  %v1155_v58 = vrot.slane %v1085_v52, 2  ;;  %v974_v12 = vsel %vm950_vm2, %v972_v26, %v973_v62  ;;  %v1020_v13 = vadd.f32 %v968_v8, %v816_v5  ;;  %v1480_v59 = vld [vmem:[#allocation2 + $0x98] sm:$0x3] }
 0x136   : > { %v1160_v3 = vrot.slane %v1087_v63, 2  ;;  %v1161_v6 = vrot.slane %v1089_v44, 2  ;;  %v2128_v21 = vadd.f32 %v2969_v45, %v2100_v60  ;;  %v1022_v23 = vadd.f32 %v974_v12, %v818_v38  ;;  %v1476_v38 = vld [vmem:[#allocation2 + $0x78] sm:$0x3] }
 0x137   : > { %v2142_v22 = vmax.f32 %v2126_v0, 0.0  ;;  %v1156_v48 = vsel %vm1138_vm5, %v1154_v2, %v1155_v58  ;;  %v1251_v40 = vmul.f32 %v3033_v15, %v2891_v27  ;;  %v1253_v5 = vmul.f32 %v2891_v27, %v3121_v10 }
 0x138   : > { %v1162_v37 = vsel %vm1138_vm5, %v1160_v3, %v1161_v6  ;;  %v1208_v39 = vadd.f32 %v1156_v48, %v1020_v13  ;;  %v2144_v25 = vmax.f32 %v2128_v21, 0.0  ;;  %v1330_v34 = vmul.f32 %v2897_v29, %v1287_v19  ;;  %v3139_v13 = vld [vmem:[#allocation2 + $0xa8] sm:$0xff]  ;;  %v1723_v6 = vld [vmem:[#allocation2 + $0x98] sm:$0x1] }
 0x139   : > { %v2158_v42 = vmin.f32 %v2142_v22, 6.0  ;;  %v1210_v49 = vadd.f32 %v1162_v37, %v1022_v23  ;;  %v1332_v50 = vmul.f32 %v2897_v29, %v1289_v20  ;;  %v1334_v51 = vmul.f32 %v2897_v29, %v1291_v30  ;;  %v1721_v3 = vld [vmem:[#allocation2 + $0x88] sm:$0xfe]  ;;  %v1727_v48 = vld [vmem:[#allocation2 + $0xb8] sm:$0x1] }
 0x13a   : > { %v1267_v9 = vadd.f32 %v1251_v40, %v1208_v39  ;;  %v1336_v52 = vmul.f32 %v2897_v29, %v1293_v36  ;;  %v2160_v15 = vmin.f32 %v2144_v25, 6.0  ;;  %v1400_v26 = vrot.slane %v1330_v34, 1  ;;  %v1725_v23 = vld [vmem:[#allocation2 + $0xa8] sm:$0xfe] }
 0x13b   : > { %v1269_v61 = vadd.f32 %v1253_v5, %v1210_v49  ;;  %v1517_v62 = vmul.f32 %v2918_v56, %v1474_v33  ;;  %v1401_v63 = vrot.slane %v1332_v50, 1  ;;  %v1406_v44 = vrot.slane %v1334_v51, 1  ;;  %v1908_v40 = vld [vmem:[#allocation2 + $0x88] sm:$0xfc]  ;;  %v1910_v49 = vld [vmem:[#allocation2 + $0x98] sm:$0x3] }
 0x13c   : > { %v1407_v2 = vrot.slane %v1336_v52, 1  ;;  %v1519_v60 = vmul.f32 %v2918_v56, %v1476_v38  ;;  %v2174_v0 = vpack.c.bf16 %v2160_v15, %v2158_v42  ;;  %v1521_v8 = vmul.f32 %v2918_v56, %v1478_v55  ;;  %v1912_v51 = vld [vmem:[#allocation2 + $0xa8] sm:$0xfc]  ;;  %v1914_v52 = vld [vmem:[#allocation2 + $0xb8] sm:$0x3] }
 0x13d   : > { %v1523_v58 = vmul.f32 %v2918_v56, %v1480_v59  ;;  %v1587_v12 = vrot.slane %v1517_v62, 2  ;;  %v1402_v19 = vsel %vm950_vm2, %v1400_v26, %v1401_v63  ;;  %v1685_v22 = vmul.f32 %v2940_v16, %v3121_v10 }
 0x13e   : > { %v1408_v20 = vsel %vm950_vm2, %v1406_v44, %v1407_v2  ;;  %v1588_v21 = vrot.slane %v1519_v60, 2  ;;  %2299 = vmatmul.mubr.bf16.vlgmr.msra.gmra.mxu1 %v2174_v0  ;;  %v1454_v30 = vadd.f32 %v1402_v19, %v1267_v9  ;;  %v1593_v37 = vrot.slane %v1521_v8, 2 }
 0x13f   : > { %v1456_v36 = vadd.f32 %v1408_v20, %v1269_v61  ;;  %v1594_v39 = vrot.slane %v1523_v58, 2  ;;  %v1687_v33 = vmul.f32 %v2940_v16, %v3139_v13  ;;  %v1764_v25 = vmul.f32 %v2943_v17, %v1721_v3  ;;  %v851_v58 = vld [vmem:[#allocation2 + $0x40] sm:$0xfe] }
 0x140   : > { %v1589_v5 = vsel %vm1138_vm5, %v1587_v12, %v1588_v21  ;;  %v1766_v42 = vmul.f32 %v2943_v17, %v1723_v6  ;;  %v1768_v50 = vmul.f32 %v2943_v17, %v1725_v23  ;;  %v1770_v9 = vmul.f32 %v2943_v17, %v1727_v48  ;;  %v853_v12 = vld [vmem:[#allocation2 + $0x50] sm:$0x1]  ;;  %v855_v21 = vld [vmem:[#allocation2 + $0x60] sm:$0xfe] }
 0x141   : > { %v1595_v34 = vsel %vm1138_vm5, %v1593_v37, %v1594_v39  ;;  %v1641_v38 = vadd.f32 %v1589_v5, %v1454_v30  ;;  %v1834_v59 = vrot.slane %v1764_v25, 1  ;;  %v1951_v61 = vmul.f32 %v2954_v31, %v1908_v40  ;;  %v1039_v37 = vld [vmem:[#allocation2 + $0x40] sm:$0xfc]  ;;  %v1041_v25 = vld [vmem:[#allocation2 + $0x50] sm:$0x3] }
 0x142   : > { %v1643_v55 = vadd.f32 %v1595_v34, %v1456_v36  ;;  %v1835_v15 = vrot.slane %v1766_v42, 1  ;;  %v1840_v62 = vrot.slane %v1768_v50, 1  ;;  %v1841_v63 = vrot.slane %v1770_v9, 1  ;;  %v1043_v50 = vld [vmem:[#allocation2 + $0x60] sm:$0xfc] }
 0x143   : > { %v1701_v26 = vadd.f32 %v1685_v22, %v1641_v38  ;;  %v1953_v44 = vmul.f32 %v2954_v31, %v1910_v49  ;;  %v1955_v0 = vmul.f32 %v2954_v31, %v1912_v51  ;;  %v1957_v8 = vmul.f32 %v2954_v31, %v1914_v52  ;;  %v857_v22 = vld [vmem:[#allocation2 + $0x70] sm:$0x1] }
 0x144   : > { %v1703_v2 = vadd.f32 %v1687_v33, %v1643_v55  ;;  %v1836_v60 = vsel %vm950_vm2, %v1834_v59, %v1835_v15  ;;  %v1842_v3 = vsel %vm950_vm2, %v1840_v62, %v1841_v63  ;;  %v2021_v19 = vrot.slane %v1951_v61, 2 }
 0x145   : > { %v1888_v6 = vadd.f32 %v1836_v60, %v1701_v26  ;;  %v2022_v20 = vrot.slane %v1953_v44, 2  ;;  %v2027_v48 = vrot.slane %v1955_v0, 2  ;;  %v2028_v30 = vrot.slane %v1957_v8, 2  ;;  %v3176_v60 = vld [vmem:[#allocation2 + $0x80] sm:$0xff] }
 0x146   : > { %v1890_v23 = vadd.f32 %v1842_v3, %v1703_v2  ;;  %v815_v36 = vmul.f32 %v3057_v7, %v2878_v14  ;;  %v817_v40 = vmul.f32 %v3084_v11, %v2878_v14  ;;  %v894_v5 = vmul.f32 %v2847_v54, %v851_v58  ;;  %v1045_v7 = vld [vmem:[#allocation2 + $0x70] sm:$0x3]  ;;  %v1286_v3 = vld [vmem:[#allocation2 + $0x60] sm:$0xfe] }
 0x147   : > { %v2023_v39 = vsel %vm1138_vm5, %v2021_v19, %v2022_v20  ;;  %v896_v33 = vmul.f32 %v2847_v54, %v853_v12  ;;  %v2029_v42 = vsel %vm1138_vm5, %v2027_v48, %v2028_v30  ;;  %v898_v34 = vmul.f32 %v2847_v54, %v855_v21 }
 0x148   : > { %v2075_v49 = vadd.f32 %v2023_v39, %v1888_v6  ;;  %v900_v38 = vmul.f32 %v2847_v54, %v857_v22  ;;  %v2077_v9 = vadd.f32 %v2029_v42, %v1890_v23  ;;  %v963_v51 = vrot.slane %v894_v5, 1  ;;  %v1288_v6 = vld [vmem:[#allocation2 + $0x70] sm:$0x1]  ;;  %v1290_v23 = vld [vmem:[#allocation2 + $0x80] sm:$0xfe] }
 0x149   : > { %v964_v52 = vrot.slane %v896_v33, 1  ;;  %v1082_v55 = vmul.f32 %v2861_v1, %v1039_v37  ;;  %v969_v15 = vrot.slane %v898_v34, 1  ;;  %v1084_v26 = vmul.f32 %v2861_v1, %v1041_v25  ;;  %v1292_v5 = vld [vmem:[#allocation2 + $0x90] sm:$0x1] }
 0x14a   : > { %v2103_v59 = vmul.f32 %v2966_v43, %v2075_v49  ;;  %v970_v61 = vrot.slane %v900_v38, 1  ;;  %v2105_v62 = vmul.f32 %v2966_v43, %v2077_v9  ;;  %v1086_v44 = vmul.f32 %v2861_v1, %v1043_v50 }
 0x14b   : > { %v965_v63 = vsel %vm950_vm2, %v963_v51, %v964_v52  ;;  %v1088_v2 = vmul.f32 %v2861_v1, %v1045_v7  ;;  %v1151_v12 = vrot.slane %v1082_v55, 2  ;;  %v1152_v21 = vrot.slane %v1084_v26, 2  ;;  %v1475_v7 = vld [vmem:[#allocation2 + $0x70] sm:$0x3]  ;;  %v1477_v55 = vld [vmem:[#allocation2 + $0x80] sm:$0xfc] }
 0x14c   : > { %v2131_v0 = vadd.f32 %v2972_v46, %v2103_v59  ;;  %v971_v8 = vsel %vm950_vm2, %v969_v15, %v970_v61  ;;  %v1019_v58 = vadd.f32 %v965_v63, %v815_v36  ;;  %v2133_v19 = vadd.f32 %v2972_v46, %v2105_v62  ;;  %v1479_v59 = vld [vmem:[#allocation2 + $0x90] sm:$0x3] }
 0x14d   : > { %v1021_v20 = vadd.f32 %v971_v8, %v817_v40  ;;  %v1157_v22 = vrot.slane %v1086_v44, 2  ;;  %v1158_v30 = vrot.slane %v1088_v2, 2  ;;  %v1250_v37 = vmul.f32 %v3084_v11, %v2886_v24  ;;  %v1473_v40 = vld [vmem:[#allocation2 + $0x60] sm:$0xfc] }
 0x14e   : > { %v2147_v48 = vmax.f32 %v2131_v0, 0.0  ;;  %v1252_v39 = vmul.f32 %v2886_v24, %v3176_v60  ;;  %v2149_v33 = vmax.f32 %v2133_v19, 0.0  ;;  %v1153_v36 = vsel %vm1138_vm5, %v1151_v12, %v1152_v21  ;;  %v3193_v8 = vld [vmem:[#allocation2 + $0xa0] sm:$0xff] }
 0x14f   : > { %v1329_v25 = vmul.f32 %v2894_v28, %v1286_v3  ;;  %v1331_v42 = vmul.f32 %v2894_v28, %v1288_v6  ;;  %v1159_v34 = vsel %vm1138_vm5, %v1157_v22, %v1158_v30  ;;  %v1207_v38 = vadd.f32 %v1153_v36, %v1019_v58  ;;  %v1720_v58 = vld [vmem:[#allocation2 + $0x80] sm:$0xfe] }
 0x150   : > { %v2163_v49 = vmin.f32 %v2147_v48, 6.0  ;;  %v1333_v50 = vmul.f32 %v2894_v28, %v1290_v23  ;;  %v2165_v11 = vmin.f32 %v2149_v33, 6.0  ;;  %v1209_v9 = vadd.f32 %v1159_v34, %v1021_v20  ;;  %v1722_v20 = vld [vmem:[#allocation2 + $0x90] sm:$0x1]  ;;  %v1724_v21 = vld [vmem:[#allocation2 + $0xa0] sm:$0xfe] }
 0x151   : > { %v1335_v51 = vmul.f32 %v2894_v28, %v1292_v5  ;;  %v1397_v52 = vrot.slane %v1329_v25, 1  ;;  %v1266_v15 = vadd.f32 %v1250_v37, %v1207_v38  ;;  %v1398_v61 = vrot.slane %v1331_v42, 1  ;;  %v1726_v37 = vld [vmem:[#allocation2 + $0xb0] sm:$0x1] }
 0x152   : > { %v1403_v26 = vrot.slane %v1333_v50, 1  ;;  %v1516_v62 = vmul.f32 %v2915_v53, %v1473_v40  ;;  %v2177_v63 = vpack.c.bf16 %v2165_v11, %v2163_v49  ;;  %v1268_v44 = vadd.f32 %v1252_v39, %v1209_v9  ;;  %v1907_v39 = vld [vmem:[#allocation2 + $0x80] sm:$0xfc]  ;;  %v1909_v38 = vld [vmem:[#allocation2 + $0x90] sm:$0x3] }
 0x153   : > { %v1404_v2 = vrot.slane %v1335_v51, 1  ;;  %v1518_v0 = vmul.f32 %v2915_v53, %v1475_v7  ;;  %v1399_v12 = vsel %vm950_vm2, %v1397_v52, %v1398_v61  ;;  %v1520_v3 = vmul.f32 %v2915_v53, %v1477_v55  ;;  %v1911_v50 = vld [vmem:[#allocation2 + $0xa0] sm:$0xfc]  ;;  %v1913_v51 = vld [vmem:[#allocation2 + $0xb0] sm:$0x3] }
 0x154   : > { %v1522_v6 = vmul.f32 %v2915_v53, %v1479_v59  ;;  %v1584_v19 = vrot.slane %v1516_v62, 2  ;;  %2487 = vmatprep.mubr.msk.bf16.mxu1 %vm380_vm0, %v2177_v63  ;;  %v1453_v23 = vadd.f32 %v1399_v12, %v1266_v15  ;;  %v1684_v30 = vmul.f32 %v2921_v57, %v3176_v60 }
 0x155   : > { %v1405_v22 = vsel %vm950_vm2, %v1403_v26, %v1404_v2  ;;  %v1585_v48 = vrot.slane %v1518_v0, 2  ;;  %v1590_v33 = vrot.slane %v1520_v3, 2  ;;  %v1686_v25 = vmul.f32 %v2921_v57, %v3193_v8  ;;  %v860_v2 = vld [vmem:[#allocation2 + $0x88] sm:$0xfe] }
 0x156   : > { %v1455_v5 = vadd.f32 %v1405_v22, %v1268_v44  ;;  %v1591_v36 = vrot.slane %v1522_v6, 2  ;;  %v1763_v40 = vmul.f32 %v2929_v4, %v1720_v58  ;;  %v1765_v49 = vmul.f32 %v2929_v4, %v1722_v20  ;;  %v862_v6 = vld [vmem:[#allocation2 + $0x98] sm:$0x1] }
 0x157   : > { %v1586_v42 = vsel %vm1138_vm5, %v1584_v19, %v1585_v48  ;;  %v1767_v34 = vmul.f32 %v2929_v4, %v1724_v21  ;;  %v1769_v9 = vmul.f32 %v2929_v4, %v1726_v37  ;;  %v1950_v52 = vmul.f32 %v2946_v18, %v1907_v39  ;;  %v864_v19 = vld [vmem:[#allocation2 + $0xa8] sm:$0xfe]  ;;  %v866_v48 = vld [vmem:[#allocation2 + $0xb8] sm:$0x1] }
 0x158   : > { %v1592_v7 = vsel %vm1138_vm5, %v1590_v33, %v1591_v36  ;;  %v1640_v11 = vadd.f32 %v1586_v42, %v1453_v23  ;;  %v1831_v59 = vrot.slane %v1763_v40, 1  ;;  %v1832_v15 = vrot.slane %v1765_v49, 1  ;;  %v1050_v49 = vld [vmem:[#allocation2 + $0x98] sm:$0x3] }
 0x159   : > { %v1642_v55 = vadd.f32 %v1592_v7, %v1455_v5  ;;  %v1837_v61 = vrot.slane %v1767_v34, 1  ;;  %v1838_v62 = vrot.slane %v1769_v9, 1  ;;  %v1952_v63 = vmul.f32 %v2946_v18, %v1909_v38  ;;  %v1052_v34 = vld [vmem:[#allocation2 + $0xa8] sm:$0xfc] }
 0x15a   : > { %v1700_v26 = vadd.f32 %v1684_v30, %v1640_v11  ;;  %v1954_v44 = vmul.f32 %v2946_v18, %v1911_v50  ;;  %v1833_v58 = vsel %vm950_vm2, %v1831_v59, %v1832_v15  ;;  %v1956_v12 = vmul.f32 %v2946_v18, %v1913_v51  ;;  %v1048_v30 = vld [vmem:[#allocation2 + $0x88] sm:$0xfc]  ;;  %v1054_v11 = vld [vmem:[#allocation2 + $0xb8] sm:$0x3] }
 0x15b   : > { %v1702_v0 = vadd.f32 %v1686_v25, %v1642_v55  ;;  %v2018_v3 = vrot.slane %v1950_v52, 2  ;;  %v1839_v20 = vsel %vm950_vm2, %v1837_v61, %v1838_v62  ;;  %v2019_v22 = vrot.slane %v1952_v63, 2 }
 0x15c   : > { %v1887_v21 = vadd.f32 %v1833_v58, %v1700_v26  ;;  %v2024_v23 = vrot.slane %v1954_v44, 2  ;;  %v2025_v39 = vrot.slane %v1956_v12, 2  ;;  %v820_v5 = vmul.f32 %v3121_v10, %v2839_v47 }
 0x15d   : > { %v1889_v37 = vadd.f32 %v1839_v20, %v1702_v0  ;;  %v822_v33 = vmul.f32 %v3139_v13, %v2839_v47  ;;  %v2020_v36 = vsel %vm1138_vm5, %v2018_v3, %v2019_v22  ;;  %v903_v25 = vmul.f32 %v2820_v35, %v860_v2  ;;  %v3233_v0 = vld [vmem:[#allocation2 + $0xc8] sm:$0xff] }
 0x15e   : > { %v905_v42 = vmul.f32 %v2820_v35, %v862_v6  ;;  %v907_v40 = vmul.f32 %v2820_v35, %v864_v19  ;;  %v2026_v38 = vsel %vm1138_vm5, %v2024_v23, %v2025_v39  ;;  %v2074_v50 = vadd.f32 %v2020_v36, %v1887_v21  ;;  %v1295_v19 = vld [vmem:[#allocation2 + $0xa8] sm:$0xfe] }
 0x15f   : > { %v909_v7 = vmul.f32 %v2820_v35, %v866_v48  ;;  %v1091_v10 = vmul.f32 %v2828_v41, %v1048_v30  ;;  %v2076_v9 = vadd.f32 %v2026_v38, %v1889_v37  ;;  %v978_v51 = vrot.slane %v903_v25, 1  ;;  %v1297_v48 = vld [vmem:[#allocation2 + $0xb8] sm:$0x1]  ;;  %v1299_v30 = vld [vmem:[#allocation2 + $0xc8] sm:$0xfe] }
 0x160   : > { %v979_v52 = vrot.slane %v905_v42, 1  ;;  %v984_v55 = vrot.slane %v907_v40, 1  ;;  %v2102_v59 = vmul.f32 %v2957_v32, %v2074_v50  ;;  %v1093_v61 = vmul.f32 %v2828_v41, %v1050_v49  ;;  %v1301_v42 = vld [vmem:[#allocation2 + $0xd8] sm:$0x1] }
 0x161   : > { %v985_v15 = vrot.slane %v909_v7, 1  ;;  %v1095_v26 = vmul.f32 %v2828_v41, %v1052_v34  ;;  %v2104_v62 = vmul.f32 %v2957_v32, %v2076_v9  ;;  %v1097_v44 = vmul.f32 %v2828_v41, %v1054_v11  ;;  %v1482_v34 = vld [vmem:[#allocation2 + $0xa8] sm:$0xfc] }
 0x162   : > { %v980_v63 = vsel %vm950_vm2, %v978_v51, %v979_v52  ;;  %v1166_v2 = vrot.slane %v1091_v10, 2  ;;  %v2130_v58 = vadd.f32 %v2969_v45, %v2102_v59  ;;  %v1167_v6 = vrot.slane %v1093_v61, 2  ;;  %v1484_v10 = vld [vmem:[#allocation2 + $0xb8] sm:$0x3]  ;;  %v1486_v9 = vld [vmem:[#allocation2 + $0xc8] sm:$0xfc] }
 0x163   : > { %v986_v12 = vsel %vm950_vm2, %v984_v55, %v985_v15  ;;  %v1024_v3 = vadd.f32 %v980_v63, %v820_v5  ;;  %v2132_v20 = vadd.f32 %v2969_v45, %v2104_v62  ;;  %v1172_v22 = vrot.slane %v1095_v26, 2  ;;  %v1488_v59 = vld [vmem:[#allocation2 + $0xd8] sm:$0x3] }
 0x164   : > { %v1026_v21 = vadd.f32 %v986_v12, %v822_v33  ;;  %v1173_v23 = vrot.slane %v1097_v44, 2  ;;  %v2146_v37 = vmax.f32 %v2130_v58, 0.0  ;;  %v1168_v39 = vsel %vm1138_vm5, %v1166_v2, %v1167_v6  ;;  %v3251_v12 = vld [vmem:[#allocation2 + $0xe8] sm:$0xff]  ;;  %v1731_v6 = vld [vmem:[#allocation2 + $0xd8] sm:$0x1] }
 0x165   : > { %v1255_v36 = vmul.f32 %v3139_v13, %v2891_v27  ;;  %v1257_v25 = vmul.f32 %v2891_v27, %v3233_v0  ;;  %v2148_v5 = vmax.f32 %v2132_v20, 0.0  ;;  %v1212_v49 = vadd.f32 %v1168_v39, %v1024_v3  ;;  %v1729_v3 = vld [vmem:[#allocation2 + $0xc8] sm:$0xfe] }
 0x166   : > { %v1174_v40 = vsel %vm1138_vm5, %v1172_v22, %v1173_v23  ;;  %v1338_v33 = vmul.f32 %v2897_v29, %v1295_v19  ;;  %v2162_v38 = vmin.f32 %v2146_v37, 6.0  ;;  %v1340_v7 = vmul.f32 %v2897_v29, %v1297_v48  ;;  %v1733_v23 = vld [vmem:[#allocation2 + $0xe8] sm:$0xfe]  ;;  %v1735_v48 = vld [vmem:[#allocation2 + $0xf8] sm:$0x1] }
 0x167   : > { %v1214_v50 = vadd.f32 %v1174_v40, %v1026_v21  ;;  %v1342_v11 = vmul.f32 %v2897_v29, %v1299_v30  ;;  %v2164_v13 = vmin.f32 %v2148_v5, 6.0  ;;  %v1271_v51 = vadd.f32 %v1255_v36, %v1212_v49 }
 0x168   : > { %v1344_v52 = vmul.f32 %v2897_v29, %v1301_v42  ;;  %v1412_v55 = vrot.slane %v1338_v33, 1  ;;  %v1413_v61 = vrot.slane %v1340_v7, 1  ;;  %v1525_v62 = vmul.f32 %v2918_v56, %v1482_v34  ;;  %v1918_v7 = vld [vmem:[#allocation2 + $0xd8] sm:$0x3] }
 0x169   : > { %v1273_v15 = vadd.f32 %v1257_v25, %v1214_v50  ;;  %v1418_v26 = vrot.slane %v1342_v11, 1  ;;  %v2176_v63 = vpack.c.bf16 %v2164_v13, %v2162_v38  ;;  %v1527_v2 = vmul.f32 %v2918_v56, %v1484_v10  ;;  %v1916_v25 = vld [vmem:[#allocation2 + $0xc8] sm:$0xfc]  ;;  %v1922_v10 = vld [vmem:[#allocation2 + $0xf8] sm:$0x3] }
 0x16a   : > { %v1419_v44 = vrot.slane %v1344_v52, 1  ;;  %v1529_v58 = vmul.f32 %v2918_v56, %v1486_v9  ;;  %v1414_v19 = vsel %vm950_vm2, %v1412_v55, %v1413_v61  ;;  %v1531_v20 = vmul.f32 %v2918_v56, %v1488_v59  ;;  %v1920_v11 = vld [vmem:[#allocation2 + $0xe8] sm:$0xfc] }
 0x16b   : > { %v1599_v21 = vrot.slane %v1525_v62, 2  ;;  %v1689_v22 = vmul.f32 %v2940_v16, %v3233_v0  ;;  %2307 = vmatmul.mubr.bf16.gmra.mxu1 %v2176_v63  ;;  %v1458_v37 = vadd.f32 %v1414_v19, %v1271_v51  ;;  %v1600_v39 = vrot.slane %v1527_v2, 2  ;;  %v859_v2 = vld [vmem:[#allocation2 + $0x80] sm:$0xfe] }
 0x16c   : > { %v1420_v30 = vsel %vm950_vm2, %v1418_v26, %v1419_v44  ;;  %v1605_v36 = vrot.slane %v1529_v58, 2  ;;  %v1606_v5 = vrot.slane %v1531_v20, 2  ;;  %v1691_v40 = vmul.f32 %v2940_v16, %v3251_v12  ;;  %v861_v20 = vld [vmem:[#allocation2 + $0x90] sm:$0x1] }
 0x16d   : > { %v1460_v42 = vadd.f32 %v1420_v30, %v1273_v15  ;;  %v1772_v49 = vmul.f32 %v2943_v17, %v1729_v3  ;;  %v1601_v33 = vsel %vm1138_vm5, %v1599_v21, %v1600_v39  ;;  %v1774_v34 = vmul.f32 %v2943_v17, %v1731_v6  ;;  %v863_v21 = vld [vmem:[#allocation2 + $0xa0] sm:$0xfe] }
 0x16e   : > { %v1776_v38 = vmul.f32 %v2943_v17, %v1733_v23  ;;  %v1778_v50 = vmul.f32 %v2943_v17, %v1735_v48  ;;  %v1607_v9 = vsel %vm1138_vm5, %v1605_v36, %v1606_v5  ;;  %v1645_v13 = vadd.f32 %v1601_v33, %v1458_v37  ;;  %v1047_v5 = vld [vmem:[#allocation2 + $0x80] sm:$0xfc] }
 0x16f   : > { %v1846_v51 = vrot.slane %v1772_v49, 1  ;;  %v1959_v52 = vmul.f32 %v2954_v31, %v1916_v25  ;;  %v1647_v55 = vadd.f32 %v1607_v9, %v1460_v42  ;;  %v1847_v59 = vrot.slane %v1774_v34, 1  ;;  %v1053_v9 = vld [vmem:[#allocation2 + $0xb0] sm:$0x3] }
 0x170   : > { %v1852_v15 = vrot.slane %v1776_v38, 1  ;;  %v1853_v61 = vrot.slane %v1778_v50, 1  ;;  %v1705_v26 = vadd.f32 %v1689_v22, %v1645_v13  ;;  %v1961_v62 = vmul.f32 %v2954_v31, %v1918_v7  ;;  %v865_v22 = vld [vmem:[#allocation2 + $0xb0] sm:$0x1]  ;;  %v1051_v50 = vld [vmem:[#allocation2 + $0xa0] sm:$0xfc] }
 0x171   : > { %v1963_v63 = vmul.f32 %v2954_v31, %v1920_v11  ;;  %v1965_v44 = vmul.f32 %v2954_v31, %v1922_v10  ;;  %v1707_v58 = vadd.f32 %v1691_v40, %v1647_v55  ;;  %v1848_v3 = vsel %vm950_vm2, %v1846_v51, %v1847_v59  ;;  %v1049_v40 = vld [vmem:[#allocation2 + $0x90] sm:$0x3] }
 0x172   : > { %v1854_v6 = vsel %vm950_vm2, %v1852_v15, %v1853_v61  ;;  %v2033_v19 = vrot.slane %v1959_v52, 2  ;;  %v1892_v23 = vadd.f32 %v1848_v3, %v1705_v26  ;;  %v2034_v48 = vrot.slane %v1961_v62, 2 }
 0x173   : > { %v2039_v30 = vrot.slane %v1963_v63, 2  ;;  %v2040_v37 = vrot.slane %v1965_v44, 2  ;;  %v1894_v39 = vadd.f32 %v1854_v6, %v1707_v58  ;;  %v819_v36 = vmul.f32 %v3176_v60, %v2878_v14 }
 0x174   : > { %v821_v25 = vmul.f32 %v3193_v8, %v2878_v14  ;;  %v902_v42 = vmul.f32 %v2847_v54, %v859_v2  ;;  %v2035_v49 = vsel %vm1138_vm5, %v2033_v19, %v2034_v48  ;;  %v904_v34 = vmul.f32 %v2847_v54, %v861_v20  ;;  %v3292_v20 = vld [vmem:[#allocation2 + $0xc0] sm:$0xff] }
 0x175   : > { %v2041_v33 = vsel %vm1138_vm5, %v2039_v30, %v2040_v37  ;;  %v906_v38 = vmul.f32 %v2847_v54, %v863_v21  ;;  %v2079_v7 = vadd.f32 %v2035_v49, %v1892_v23  ;;  %v908_v60 = vmul.f32 %v2847_v54, %v865_v22  ;;  %v1294_v21 = vld [vmem:[#allocation2 + $0xa0] sm:$0xfe]  ;;  %v1296_v23 = vld [vmem:[#allocation2 + $0xb0] sm:$0x1] }
 0x176   : > { %v2081_v11 = vadd.f32 %v2041_v33, %v1894_v39  ;;  %v975_v10 = vrot.slane %v902_v42, 1  ;;  %v976_v13 = vrot.slane %v904_v34, 1  ;;  %v1090_v52 = vmul.f32 %v2861_v1, %v1047_v5  ;;  %v1298_v49 = vld [vmem:[#allocation2 + $0xc0] sm:$0xfe]  ;;  %v1300_v33 = vld [vmem:[#allocation2 + $0xd0] sm:$0x1] }
 0x177   : > { %v981_v51 = vrot.slane %v906_v38, 1  ;;  %v1092_v55 = vmul.f32 %v2861_v1, %v1049_v40  ;;  %v2107_v59 = vmul.f32 %v2966_v43, %v2079_v7  ;;  %v982_v61 = vrot.slane %v908_v60, 1  ;;  %v1483_v7 = vld [vmem:[#allocation2 + $0xb0] sm:$0x3] }
 0x178   : > { %v2109_v15 = vmul.f32 %v2966_v43, %v2081_v11  ;;  %v1094_v26 = vmul.f32 %v2861_v1, %v1051_v50  ;;  %v977_v62 = vsel %vm950_vm2, %v975_v10, %v976_v13  ;;  %v1096_v63 = vmul.f32 %v2861_v1, %v1053_v9  ;;  %v1481_v50 = vld [vmem:[#allocation2 + $0xa0] sm:$0xfc] }
 0x179   : > { %v1163_v44 = vrot.slane %v1090_v52, 2  ;;  %v1164_v2 = vrot.slane %v1092_v55, 2  ;;  %v2135_v58 = vadd.f32 %v2972_v46, %v2107_v59  ;;  %v983_v6 = vsel %vm950_vm2, %v981_v51, %v982_v61  ;;  %v1485_v13 = vld [vmem:[#allocation2 + $0xc0] sm:$0xfc]  ;;  %v1487_v59 = vld [vmem:[#allocation2 + $0xd0] sm:$0x3] }
 0x17a   : > { %v2137_v3 = vadd.f32 %v2972_v46, %v2109_v15  ;;  %v1023_v19 = vadd.f32 %v977_v62, %v819_v36  ;;  %v1025_v48 = vadd.f32 %v983_v6, %v821_v25  ;;  %v1169_v37 = vrot.slane %v1094_v26, 2  ;;  %v1728_v6 = vld [vmem:[#allocation2 + $0xc0] sm:$0xfe] }
 0x17b   : > { %v1165_v30 = vsel %vm1138_vm5, %v1163_v44, %v1164_v2  ;;  %v1170_v22 = vrot.slane %v1096_v63, 2  ;;  %v2151_v39 = vmax.f32 %v2135_v58, 0.0  ;;  %v1254_v40 = vmul.f32 %v3193_v8, %v2886_v24  ;;  %v3306_v63 = vld [vmem:[#allocation2 + $0xe0] sm:$0xff] }
 0x17c   : > { %v2153_v42 = vmax.f32 %v2137_v3, 0.0  ;;  %v1211_v5 = vadd.f32 %v1165_v30, %v1023_v19  ;;  %v1256_v36 = vmul.f32 %v2886_v24, %v3292_v20  ;;  %v1337_v38 = vmul.f32 %v2894_v28, %v1294_v21  ;;  %v1730_v19 = vld [vmem:[#allocation2 + $0xd0] sm:$0x1] }
 0x17d   : > { %v1171_v34 = vsel %vm1138_vm5, %v1169_v37, %v1170_v22  ;;  %v1339_v25 = vmul.f32 %v2894_v28, %v1296_v23  ;;  %v2167_v11 = vmin.f32 %v2151_v39, 6.0  ;;  %v1341_v8 = vmul.f32 %v2894_v28, %v1298_v49  ;;  %v1732_v37 = vld [vmem:[#allocation2 + $0xe0] sm:$0xfe]  ;;  %v1734_v22 = vld [vmem:[#allocation2 + $0xf0] sm:$0x1] }
 0x17e   : > { %v2169_v60 = vmin.f32 %v2153_v42, 6.0  ;;  %v1213_v10 = vadd.f32 %v1171_v34, %v1025_v48  ;;  %v1270_v9 = vadd.f32 %v1254_v40, %v1211_v5  ;;  %v1343_v51 = vmul.f32 %v2894_v28, %v1300_v33  ;;  %v1915_v49 = vld [vmem:[#allocation2 + $0xc0] sm:$0xfc]  ;;  %v1917_v33 = vld [vmem:[#allocation2 + $0xd0] sm:$0x3] }
 0x17f   : > { %v1409_v52 = vrot.slane %v1337_v38, 1  ;;  %v1410_v55 = vrot.slane %v1339_v25, 1  ;;  %v1524_v26 = vmul.f32 %v2915_v53, %v1481_v50  ;;  %v1526_v62 = vmul.f32 %v2915_v53, %v1483_v7 }
 0x180   : > { %v2179_v15 = vpack.c.bf16 %v2169_v60, %v2167_v11  ;;  %v1272_v61 = vadd.f32 %v1256_v36, %v1213_v10  ;;  %v1415_v2 = vrot.slane %v1341_v8, 1  ;;  %v1416_v58 = vrot.slane %v1343_v51, 1  ;;  %v1919_v10 = vld [vmem:[#allocation2 + $0xe0] sm:$0xfc] }
 0x181   : > { %v1411_v44 = vsel %vm950_vm2, %v1409_v52, %v1410_v55  ;;  %v1528_v3 = vmul.f32 %v2915_v53, %v1485_v13  ;;  %v1530_v23 = vmul.f32 %v2915_v53, %v1487_v59  ;;  %v1596_v48 = vrot.slane %v1524_v26, 2 }
 0x182   : > { %2488 = vmatprep.mubr.msk.bf16.mxu1 %vm380_vm0, %v2179_v15  ;;  %v1457_v21 = vadd.f32 %v1411_v44, %v1270_v9  ;;  %v1597_v30 = vrot.slane %v1526_v62, 2  ;;  %v1417_v39 = vsel %vm950_vm2, %v1415_v2, %v1416_v58  ;;  %v1688_v5 = vmul.f32 %v2921_v57, %v3292_v20  ;;  %v1921_v9 = vld [vmem:[#allocation2 + $0xf0] sm:$0x3]  ;;  %v868_v58 = vld [vmem:[#allocation2 + $0xc8] sm:$0xfe] }
 0x183   : > { %v1602_v42 = vrot.slane %v1528_v3, 2  ;;  %v1690_v40 = vmul.f32 %v2921_v57, %v3306_v63  ;;  %v1459_v34 = vadd.f32 %v1417_v39, %v1272_v61  ;;  %v1603_v38 = vrot.slane %v1530_v23, 2  ;;  %v870_v23 = vld [vmem:[#allocation2 + $0xd8] sm:$0x1] }
 0x184   : > { %v1598_v36 = vsel %vm1138_vm5, %v1596_v48, %v1597_v30  ;;  %v1771_v25 = vmul.f32 %v2929_v4, %v1728_v6  ;;  %v1773_v7 = vmul.f32 %v2929_v4, %v1730_v19  ;;  %v1775_v11 = vmul.f32 %v2929_v4, %v1732_v37  ;;  %v872_v48 = vld [vmem:[#allocation2 + $0xe8] sm:$0xfe] }
 0x185   : > { %v1644_v50 = vadd.f32 %v1598_v36, %v1457_v21  ;;  %v1777_v60 = vmul.f32 %v2929_v4, %v1734_v22  ;;  %v1604_v13 = vsel %vm1138_vm5, %v1602_v42, %v1603_v38  ;;  %v1958_v51 = vmul.f32 %v2946_v18, %v1915_v49  ;;  %v874_v42 = vld [vmem:[#allocation2 + $0xf8] sm:$0x1] }
 0x186   : > { %v1843_v8 = vrot.slane %v1771_v25, 1  ;;  %v1960_v52 = vmul.f32 %v2946_v18, %v1917_v33  ;;  %v1646_v55 = vadd.f32 %v1604_v13, %v1459_v34  ;;  %v1844_v15 = vrot.slane %v1773_v7, 1  ;;  %v1058_v36 = vld [vmem:[#allocation2 + $0xd8] sm:$0x3]  ;;  %v1060_v7 = vld [vmem:[#allocation2 + $0xe8] sm:$0xfc] }
 0x187   : > { %v1704_v59 = vadd.f32 %v1688_v5, %v1644_v50  ;;  %v1849_v61 = vrot.slane %v1775_v11, 1  ;;  %v1850_v26 = vrot.slane %v1777_v60, 1  ;;  %v1962_v62 = vmul.f32 %v2946_v18, %v1919_v10  ;;  %v1056_v5 = vld [vmem:[#allocation2 + $0xc8] sm:$0xfc]  ;;  %v1062_v11 = vld [vmem:[#allocation2 + $0xf8] sm:$0x3] }
 0x188   : > { %v1964_v44 = vmul.f32 %v2946_v18, %v1921_v9  ;;  %v2030_v2 = vrot.slane %v1958_v51, 2  ;;  %v1706_v3 = vadd.f32 %v1690_v40, %v1646_v55  ;;  %v1845_v6 = vsel %vm950_vm2, %v1843_v8, %v1844_v15 }
 0x189   : > { %v2031_v19 = vrot.slane %v1960_v52, 2  ;;  %v824_v21 = vmul.f32 %v3233_v0, %v2839_v47  ;;  %v1851_v30 = vsel %vm950_vm2, %v1849_v61, %v1850_v26  ;;  %v1891_v37 = vadd.f32 %v1845_v6, %v1704_v59 }
 0x18a   : > { %v2036_v22 = vrot.slane %v1962_v62, 2  ;;  %v2037_v39 = vrot.slane %v1964_v44, 2  ;;  %v1893_v49 = vadd.f32 %v1851_v30, %v1706_v3  ;;  %v826_v40 = vmul.f32 %v3251_v12, %v2839_v47 }
 0x18b   : > { %v2032_v33 = vsel %vm1138_vm5, %v2030_v2, %v2031_v19  ;;  %v911_v34 = vmul.f32 %v2820_v35, %v868_v58  ;;  %v913_v25 = vmul.f32 %v2820_v35, %v870_v23  ;;  %v915_v50 = vmul.f32 %v2820_v35, %v872_v48  ;;  %v1234_v2 = vld [vmem:[#allocation2 + $0x108] sm:$0xff]  ;;  %v1305_v48 = vld [vmem:[#allocation2 + $0xf8] sm:$0x1] }
 0x18c   : > { %v2038_v0 = vsel %vm1138_vm5, %v2036_v22, %v2037_v39  ;;  %v2078_v38 = vadd.f32 %v2032_v33, %v1891_v37  ;;  %v917_v10 = vmul.f32 %v2820_v35, %v874_v42  ;;  %v1099_v13 = vmul.f32 %v2828_v41, %v1056_v5  ;;  %v1303_v23 = vld [vmem:[#allocation2 + $0xe8] sm:$0xfe] }
 0x18d   : > { %v2080_v60 = vadd.f32 %v2038_v0, %v1893_v49  ;;  %v990_v9 = vrot.slane %v911_v34, 1  ;;  %v991_v8 = vrot.slane %v913_v25, 1  ;;  %v996_v51 = vrot.slane %v915_v50, 1  ;;  %v1307_v39 = vld [vmem:[#allocation2 + $0x108] sm:$0xfe] }
 0x18e   : > { %v2106_v47 = vmul.f32 %v2957_v32, %v2078_v38  ;;  %v1101_v52 = vmul.f32 %v2828_v41, %v1058_v36  ;;  %v997_v59 = vrot.slane %v917_v10, 1  ;;  %v1103_v15 = vmul.f32 %v2828_v41, %v1060_v7  ;;  %v1309_v34 = vld [vmem:[#allocation2 + $0x118] sm:$0x1]  ;;  %v1490_v36 = vld [vmem:[#allocation2 + $0xe8] sm:$0xfc] }
 0x18f   : > { %v2108_v55 = vmul.f32 %v2957_v32, %v2080_v60  ;;  %v1105_v61 = vmul.f32 %v2828_v41, %v1062_v11  ;;  %v992_v35 = vsel %vm950_vm2, %v990_v9, %v991_v8  ;;  %v1178_v62 = vrot.slane %v1099_v13, 2  ;;  %v1492_v25 = vld [vmem:[#allocation2 + $0xf8] sm:$0x3]  ;;  %v1494_v10 = vld [vmem:[#allocation2 + $0x108] sm:$0xfc] }
 0x190   : > { %v2134_v26 = vadd.f32 %v2969_v45, %v2106_v47  ;;  %v1179_v44 = vrot.slane %v1101_v52, 2  ;;  %v998_v3 = vsel %vm950_vm2, %v996_v51, %v997_v59  ;;  %v1028_v6 = vadd.f32 %v992_v35, %v824_v21  ;;  %v1496_v9 = vld [vmem:[#allocation2 + $0x118] sm:$0x3]  ;;  %v1668_v59 = vld [vmem:[#allocation2 + $0x128] sm:$0xff] }
 0x191   : > { %v2136_v58 = vadd.f32 %v2969_v45, %v2108_v55  ;;  %v1184_v19 = vrot.slane %v1103_v15, 2  ;;  %v1030_v37 = vadd.f32 %v998_v3, %v826_v40  ;;  %v1185_v41 = vrot.slane %v1105_v61, 2 }
 0x192   : > { %v2150_v30 = vmax.f32 %v2134_v26, 0.0  ;;  %v1180_v22 = vsel %vm1138_vm5, %v1178_v62, %v1179_v44  ;;  %v1259_v49 = vmul.f32 %v3251_v12, %v2891_v27  ;;  %v1261_v33 = vmul.f32 %v2891_v27, %v1234_v2  ;;  %v1737_v62 = vld [vmem:[#allocation2 + $0x108] sm:$0xfe]  ;;  %v1739_v44 = vld [vmem:[#allocation2 + $0x118] sm:$0x1] }
 0x193   : > { %v2152_v42 = vmax.f32 %v2136_v58, 0.0  ;;  %v1216_v5 = vadd.f32 %v1180_v22, %v1028_v6  ;;  %v1186_v21 = vsel %vm1138_vm5, %v1184_v19, %v1185_v41  ;;  %v1346_v38 = vmul.f32 %v2897_v29, %v1303_v23  ;;  %v1741_v19 = vld [vmem:[#allocation2 + $0x128] sm:$0xfe]  ;;  %v1743_v23 = vld [vmem:[#allocation2 + $0x138] sm:$0x1] }
 0x194   : > { %v2166_v0 = vmin.f32 %v2150_v30, 6.0  ;;  %v1348_v40 = vmul.f32 %v2897_v29, %v1305_v48  ;;  %v1218_v7 = vadd.f32 %v1186_v21, %v1030_v37  ;;  %v1350_v60 = vmul.f32 %v2897_v29, %v1307_v39  ;;  %v1924_v41 = vld [vmem:[#allocation2 + $0x108] sm:$0xfc]  ;;  %v1930_v21 = vld [vmem:[#allocation2 + $0x138] sm:$0x3] }
 0x195   : > { %v2168_v50 = vmin.f32 %v2152_v42, 6.0  ;;  %v1275_v11 = vadd.f32 %v1259_v49, %v1216_v5  ;;  %v1352_v12 = vmul.f32 %v2897_v29, %v1309_v34  ;;  %v1424_v27 = vrot.slane %v1346_v38, 1  ;;  %v1926_v49 = vld [vmem:[#allocation2 + $0x118] sm:$0x3] }
 0x196   : > { %v1425_v13 = vrot.slane %v1348_v40, 1  ;;  %v1533_v47 = vmul.f32 %v2918_v56, %v1490_v36  ;;  %v1277_v51 = vadd.f32 %v1261_v33, %v1218_v7  ;;  %v1430_v52 = vrot.slane %v1350_v60, 1 }
 0x197   : > { %v2178_v8 = vpack.c.bf16 %v2168_v50, %v2166_v0  ;;  %v1535_v55 = vmul.f32 %v2918_v56, %v1492_v25  ;;  %v1431_v61 = vrot.slane %v1352_v12, 1  ;;  %v1537_v26 = vmul.f32 %v2918_v56, %v1494_v10  ;;  %v1928_v0 = vld [vmem:[#allocation2 + $0x128] sm:$0xfc] }
 0x198   : > { %v1426_v15 = vsel %vm950_vm2, %v1424_v27, %v1425_v13  ;;  %v1539_v35 = vmul.f32 %v2918_v56, %v1496_v9  ;;  %v1611_v58 = vrot.slane %v1533_v47, 2  ;;  %v1693_v6 = vmul.f32 %v2940_v16, %v1234_v2  ;;  %v869_v13 = vld [vmem:[#allocation2 + $0xd0] sm:$0x1] }
 0x199   : > { %2315 = vmatmul.mubr.bf16.gmra.mxu1 %v2178_v8  ;;  %v1462_v29 = vadd.f32 %v1426_v15, %v1275_v11  ;;  %v1612_v3 = vrot.slane %v1535_v55, 2  ;;  %v1432_v48 = vsel %vm950_vm2, %v1430_v52, %v1431_v61  ;;  %v1617_v30 = vrot.slane %v1537_v26, 2  ;;  %v871_v55 = vld [vmem:[#allocation2 + $0xe0] sm:$0xfe] }
 0x19a   : > { %v1618_v37 = vrot.slane %v1539_v35, 2  ;;  %v1695_v22 = vmul.f32 %v2940_v16, %v1668_v59  ;;  %v1464_v39 = vadd.f32 %v1432_v48, %v1277_v51  ;;  %v1780_v42 = vmul.f32 %v2943_v17, %v1737_v62  ;;  %v873_v59 = vld [vmem:[#allocation2 + $0xf0] sm:$0x1]  ;;  %v1055_v62 = vld [vmem:[#allocation2 + $0xc0] sm:$0xfc] }
 0x19b   : > { %v1613_v56 = vsel %vm1138_vm5, %v1611_v58, %v1612_v3  ;;  %v1782_v5 = vmul.f32 %v2943_v17, %v1739_v44  ;;  %v1784_v34 = vmul.f32 %v2943_v17, %v1741_v19  ;;  %v1786_v36 = vmul.f32 %v2943_v17, %v1743_v23  ;;  %v867_v17 = vld [vmem:[#allocation2 + $0xc0] sm:$0xfe]  ;;  %v1057_v3 = vld [vmem:[#allocation2 + $0xd0] sm:$0x3] }
 0x19c   : > { %v1619_v33 = vsel %vm1138_vm5, %v1617_v30, %v1618_v37  ;;  %v1649_v2 = vadd.f32 %v1613_v56, %v1462_v29  ;;  %v1858_v16 = vrot.slane %v1780_v42, 1  ;;  %v1967_v25 = vmul.f32 %v2954_v31, %v1924_v41  ;;  %v1059_v30 = vld [vmem:[#allocation2 + $0xe0] sm:$0xfc] }
 0x19d   : > { %v1651_v38 = vadd.f32 %v1619_v33, %v1464_v39  ;;  %v1859_v40 = vrot.slane %v1782_v5, 1  ;;  %v1864_v7 = vrot.slane %v1784_v34, 1  ;;  %v1865_v11 = vrot.slane %v1786_v36, 1  ;;  %v1233_v34 = vld [vmem:[#allocation2 + $0x100] sm:$0xff] }
 0x19e   : > { %v1709_v50 = vadd.f32 %v1693_v6, %v1649_v2  ;;  %v1969_v60 = vmul.f32 %v2954_v31, %v1926_v49  ;;  %v1971_v12 = vmul.f32 %v2954_v31, %v1928_v0  ;;  %v1973_v27 = vmul.f32 %v2954_v31, %v1930_v21 }
 0x19f   : > { %v1711_v10 = vadd.f32 %v1695_v22, %v1651_v38  ;;  %v1860_v9 = vsel %vm950_vm2, %v1858_v16, %v1859_v40  ;;  %v1866_v47 = vsel %vm950_vm2, %v1864_v7, %v1865_v11  ;;  %v2045_v51 = vrot.slane %v1967_v25, 2  ;;  %v1302_v16 = vld [vmem:[#allocation2 + $0xe0] sm:$0xfe]  ;;  %v1304_v40 = vld [vmem:[#allocation2 + $0xf0] sm:$0x1] }
 0x1a0   : > { %v1896_v8 = vadd.f32 %v1860_v9, %v1709_v50  ;;  %v2046_v52 = vrot.slane %v1969_v60, 2  ;;  %v2051_v61 = vrot.slane %v1971_v12, 2  ;;  %v2052_v26 = vrot.slane %v1973_v27, 2  ;;  %v1306_v11 = vld [vmem:[#allocation2 + $0x100] sm:$0xfe] }
 0x1a1   : > { %v1898_v15 = vadd.f32 %v1866_v47, %v1711_v10  ;;  %v823_v35 = vmul.f32 %v3292_v20, %v2878_v14  ;;  %v825_v31 = vmul.f32 %v3306_v63, %v2878_v14  ;;  %v910_v29 = vmul.f32 %v2847_v54, %v867_v17  ;;  %v1061_v20 = vld [vmem:[#allocation2 + $0xf0] sm:$0x3] }
 0x1a2   : > { %v2047_v44 = vsel %vm1138_vm5, %v2045_v51, %v2046_v52  ;;  %v912_v58 = vmul.f32 %v2847_v54, %v869_v13  ;;  %v2053_v6 = vsel %vm1138_vm5, %v2051_v61, %v2052_v26  ;;  %v914_v23 = vmul.f32 %v2847_v54, %v871_v55  ;;  %v1308_v12 = vld [vmem:[#allocation2 + $0x110] sm:$0x1]  ;;  %v1493_v26 = vld [vmem:[#allocation2 + $0x100] sm:$0xfc] }
 0x1a3   : > { %v2083_v19 = vadd.f32 %v2047_v44, %v1896_v8  ;;  %v916_v48 = vmul.f32 %v2847_v54, %v873_v59  ;;  %v2085_v37 = vadd.f32 %v2053_v6, %v1898_v15  ;;  %v987_v22 = vrot.slane %v910_v29, 1  ;;  %v1491_v59 = vld [vmem:[#allocation2 + $0xf0] sm:$0x3] }
 0x1a4   : > { %v988_v41 = vrot.slane %v912_v58, 1  ;;  %v1098_v39 = vmul.f32 %v2861_v1, %v1055_v62  ;;  %v993_v56 = vrot.slane %v914_v23, 1  ;;  %v1100_v5 = vmul.f32 %v2861_v1, %v1057_v3  ;;  %v1736_v23 = vld [vmem:[#allocation2 + $0x100] sm:$0xfe] }
 0x1a5   : > { %v2111_v14 = vmul.f32 %v2966_v43, %v2083_v19  ;;  %v994_v42 = vrot.slane %v916_v48, 1  ;;  %v2113_v49 = vmul.f32 %v2966_v43, %v2085_v37  ;;  %v1102_v2 = vmul.f32 %v2861_v1, %v1059_v30  ;;  %v1738_v37 = vld [vmem:[#allocation2 + $0x110] sm:$0x1] }
 0x1a6   : > { %v989_v33 = vsel %vm950_vm2, %v987_v22, %v988_v41  ;;  %v1104_v54 = vmul.f32 %v2861_v1, %v1061_v20  ;;  %v1175_v38 = vrot.slane %v1098_v39, 2  ;;  %v1176_v7 = vrot.slane %v1100_v5, 2  ;;  %v1740_v22 = vld [vmem:[#allocation2 + $0x120] sm:$0xfe] }
 0x1a7   : > { %v2139_v36 = vadd.f32 %v2972_v46, %v2111_v14  ;;  %v995_v0 = vsel %vm950_vm2, %v993_v56, %v994_v42  ;;  %v1027_v21 = vadd.f32 %v989_v33, %v823_v35  ;;  %v2141_v25 = vadd.f32 %v2972_v46, %v2113_v49  ;;  %v1489_v46 = vld [vmem:[#allocation2 + $0xe0] sm:$0xfc]  ;;  %v1495_v35 = vld [vmem:[#allocation2 + $0x110] sm:$0x3] }
 0x1a8   : > { %v1029_v50 = vadd.f32 %v995_v0, %v825_v31  ;;  %v1181_v43 = vrot.slane %v1102_v2, 2  ;;  %v1182_v10 = vrot.slane %v1104_v54, 2  ;;  %v1258_v1 = vmul.f32 %v3306_v63, %v2886_v24  ;;  %v1742_v42 = vld [vmem:[#allocation2 + $0x130] sm:$0x1]  ;;  %v1923_v5 = vld [vmem:[#allocation2 + $0x100] sm:$0xfc] }
 0x1a9   : > { %v2155_v60 = vmax.f32 %v2139_v36, 0.0  ;;  %v1260_v9 = vmul.f32 %v2886_v24, %v1233_v34  ;;  %v2157_v27 = vmax.f32 %v2141_v25, 0.0  ;;  %v1177_v17 = vsel %vm1138_vm5, %v1175_v38, %v1176_v7  ;;  %v2570_v54 = vld [vmem:[#allocation2] sm:$0xff]  ;;  %v1929_v7 = vld [vmem:[#allocation2 + $0x130] sm:$0x3] }
 0x1aa   : > { %v1345_v13 = vmul.f32 %v2894_v28, %v1302_v16  ;;  %v1347_v47 = vmul.f32 %v2894_v28, %v1304_v40  ;;  %v1183_v51 = vsel %vm1138_vm5, %v1181_v43, %v1182_v10  ;;  %v1215_v52 = vadd.f32 %v1177_v17, %v1027_v21  ;;  %v1925_v16 = vld [vmem:[#allocation2 + $0x110] sm:$0x3]  ;;  %v1927_v40 = vld [vmem:[#allocation2 + $0x120] sm:$0xfc] }
 0x1ab   : > { %v2171_v8 = vmin.f32 %v2155_v60, 6.0  ;;  %v1349_v55 = vmul.f32 %v2894_v28, %v1306_v11  ;;  %v2173_v15 = vmin.f32 %v2157_v27, 6.0  ;;  %v1217_v63 = vadd.f32 %v1183_v51, %v1029_v50 }
 0x1ac   : > { %v1351_v24 = vmul.f32 %v2894_v28, %v1308_v12  ;;  %v1421_v61 = vrot.slane %v1345_v13, 1  ;;  %v1274_v62 = vadd.f32 %v1258_v1, %v1215_v52  ;;  %v1422_v44 = vrot.slane %v1347_v47, 1 }
 0x1ad   : > { %v1427_v31 = vrot.slane %v1349_v55, 1  ;;  %v1532_v29 = vmul.f32 %v2915_v53, %v1489_v46  ;;  %v2181_v58 = vpack.c.bf16 %v2173_v15, %v2171_v8  ;;  %v1276_v3 = vadd.f32 %v1260_v9, %v1217_v63 }
 0x1ae   : > { %v1428_v6 = vrot.slane %v1351_v24, 1  ;;  %v1534_v19 = vmul.f32 %v2915_v53, %v1491_v59  ;;  %v1423_v48 = vsel %vm950_vm2, %v1421_v61, %v1422_v44  ;;  %v1536_v30 = vmul.f32 %v2915_v53, %v1493_v26 }
 0x1af   : > { %v1538_v28 = vmul.f32 %v2915_v53, %v1495_v35  ;;  %v1608_v20 = vrot.slane %v1532_v29, 2  ;;  %2489 = vmatprep.mubr.msk.bf16.mxu1 %vm380_vm0, %v2181_v58  ;;  %v1461_v39 = vadd.f32 %v1423_v48, %v1274_v62  ;;  %v1692_v56 = vmul.f32 %v2921_v57, %v1233_v34 }
 0x1b0   : > { %v1429_v41 = vsel %vm950_vm2, %v1427_v31, %v1428_v6  ;;  %v1609_v14 = vrot.slane %v1534_v19, 2  ;;  %v1614_v33 = vrot.slane %v1536_v30, 2  ;;  %v1694_v36 = vmul.f32 %v2570_v54, %v2921_v57  ;;  %v2490_v6 = vld [vmem:[%s3466_s8] ss:$0 sm:$0xff]  ;;  %v2572_v54 = vld [vmem:[%s2727_s30 + $0x8] sm:$0xff]  }
 0x1b1   : > { %v1463_v49 = vadd.f32 %v1429_v41, %v1276_v3  ;;  %v1615_v2 = vrot.slane %v1538_v28, 2  ;;  %v1779_v0 = vmul.f32 %v2929_v4, %v1736_v23  ;;  %v1781_v21 = vmul.f32 %v2929_v4, %v1738_v37 }
 0x1b2   : > { %v1610_v53 = vsel %vm1138_vm5, %v1608_v20, %v1609_v14  ;;  %v1783_v38 = vmul.f32 %v2929_v4, %v1740_v22  ;;  %v1785_v50 = vmul.f32 %v2929_v4, %v1742_v42  ;;  %v1966_v43 = vmul.f32 %v2946_v18, %v1923_v5 }
 0x1b3   : > { %v1616_v34 = vsel %vm1138_vm5, %v1614_v33, %v1615_v2  ;;  %v1648_v25 = vadd.f32 %v1610_v53, %v1461_v39  ;;  %v1855_v57 = vrot.slane %v1779_v0, 1  ;;  %v1856_v60 = vrot.slane %v1781_v21, 1 }
 0x1b4   : > { %v1650_v11 = vadd.f32 %v1616_v34, %v1463_v49  ;;  %v1861_v10 = vrot.slane %v1783_v38, 1  ;;  %v1862_v9 = vrot.slane %v1785_v50, 1  ;;  %v1968_v12 = vmul.f32 %v2946_v18, %v1925_v16 }
 0x1b5   : > { %v1708_v1 = vadd.f32 %v1692_v56, %v1648_v25  ;;  %v1970_v27 = vmul.f32 %v2946_v18, %v1927_v40  ;;  %v1857_v13 = vsel %vm950_vm2, %v1855_v57, %v1856_v60  ;;  %v1972_v47 = vmul.f32 %v2946_v18, %v1929_v7  ;;  %v2573_v57 = vld [vmem:[%s2727_s30 + $0x10] sm:$0xff]  }
 0x1b6   : > { %v1710_v17 = vadd.f32 %v1694_v36, %v1650_v11  ;;  %v2042_v46 = vrot.slane %v1966_v43, 2  ;;  %v1863_v4 = vsel %vm950_vm2, %v1861_v10, %v1862_v9  ;;  %v2043_v51 = vrot.slane %v1968_v12, 2 }
 0x1b7   : > { %v1895_v8 = vadd.f32 %v1857_v13, %v1708_v1  ;;  %v2048_v52 = vrot.slane %v1970_v27, 2  ;;  %v2049_v59 = vrot.slane %v1972_v47, 2  ;;  %v2363_v36 = vunpack.c.l.bf16 %v2572_v54 }
 0x1b8   : > { %v1897_v55 = vadd.f32 %v1863_v4, %v1710_v17  ;;  %v2044_v15 = vsel %vm1138_vm5, %v2042_v46, %v2043_v51  ;;  %v2364_v53 = vunpack.c.h.bf16 %v2572_v54  ;;  %v2365_v60 = vunpack.c.l.bf16 %v2573_v57 }
 0x1b9   : > { %v2050_v63 = vsel %vm1138_vm5, %v2048_v52, %v2049_v59  ;;  %v2082_v24 = vadd.f32 %v2044_v15, %v1895_v8  ;;  %v2366_v10 = vunpack.c.h.bf16 %v2573_v57  ;;  %v2574_v52 = vld [vmem:[%s2727_s30 + $0x18] sm:$0xff]  }
 0x1ba   : > { %v2084_v61 = vadd.f32 %v2050_v63, %v1897_v55  ;;  %v2367_v55 = vunpack.c.l.bf16 %v2574_v52  ;;  %v2368_v59 = vunpack.c.h.bf16 %v2574_v52 }
 0x1bb   : > { %v2110_v26 = vmul.f32 %v2957_v32, %v2082_v24 }
 0x1bc   : > { %v2112_v35 = vmul.f32 %v2957_v32, %v2084_v61  ;;  %v2491_v32 = vld [vmem:[%s3467_s9] ss:$0 sm:$0xff] }
 0x1bd   : > { %v2138_v18 = vadd.f32 %v2969_v45, %v2110_v26 }
 0x1be   : > { %v2140_v62 = vadd.f32 %v2969_v45, %v2112_v35  ;;  %v2571_v45 = vld [vmem:[%s2727_s30] sm:$0xff]  }
 0x1bf   : > { %v2154_v44 = vmax.f32 %v2138_v18, 0.0  ;;  %v2361_v28 = vunpack.c.l.bf16 %v2571_v45  ;;  %v2362_v20 = vunpack.c.h.bf16 %v2571_v45 }
 0x1c0   : > { %v2156_v31 = vmax.f32 %v2140_v62, 0.0 }
 0x1c1   : > { %v2170_v29 = vmin.f32 %v2154_v44, 6.0 }
 0x1c2   : > { %v2172_v58 = vmin.f32 %v2156_v31, 6.0 }
 0x1c4   : > { %v2180_v3 = vpack.c.bf16 %v2172_v58, %v2170_v29 }
 0x1c6   : > { %2323 = vmatmul.mubr.bf16.gmra.mxu1 %v2180_v3 }
 0x1fe   : > { %v2300_v19 = vpop.f32.mrf.mxu1 }
 0x1ff   : > { %v2338_v23 = vmul.f32 %v2490_v6, %v2300_v19 }
 0x200   : > { %v2302_v48 = vpop.f32.mrf.mxu1 }
 0x201   : > { %v2353_v37 = vadd.f32 %v2491_v32, %v2338_v23 }
 0x202   : > { %v2303_v30 = vpop.f32.mrf.mxu1 }
 0x203   : > { %v2339_v22 = vmul.f32 %v2490_v6, %v2303_v30  ;;  %v2369_v14 = vadd.f32 %v2361_v28, %v2353_v37 }
 0x204   : > { %v2305_v41 = vpop.f32.mrf.mxu1 }
 0x205   : > { %v2354_v39 = vadd.f32 %v2491_v32, %v2339_v22 }
 0x207   : > { %v2370_v56 = vadd.f32 %v2362_v20, %v2354_v39 }
 0x209   : > { %v2499_v42 = vpack.c.bf16 %v2370_v56, %v2369_v14 }
 0x20b   : > { %2500 = vst [vmem:[%s3446_s17] sm:$0xff] %v2499_v42  }
 0x22b   : > { %v2308_v5 = vpop.f32.mrf.mxu1 }
 0x22c   : > { %v2340_v49 = vmul.f32 %v2490_v6, %v2308_v5 }
 0x22d   : > { %v2310_v33 = vpop.f32.mrf.mxu1 }
 0x22e   : > { %v2355_v0 = vadd.f32 %v2491_v32, %v2340_v49 }
 0x22f   : > { %v2311_v2 = vpop.f32.mrf.mxu1 }
 0x230   : > { %v2341_v21 = vmul.f32 %v2490_v6, %v2311_v2  ;;  %v2371_v40 = vadd.f32 %v2363_v36, %v2355_v0 }
 0x231   : > { %v2313_v38 = vpop.f32.mrf.mxu1 }
 0x232   : > { %v2356_v16 = vadd.f32 %v2491_v32, %v2341_v21 }
 0x234   : > { %v2372_v34 = vadd.f32 %v2364_v53, %v2356_v16 }
 0x236   : > { %v2504_v25 = vpack.c.bf16 %v2372_v34, %v2371_v40 }
 0x238   : > { %2516 = vst [vmem:[%s3446_s17 + $0x8] sm:$0xff] %v2504_v25  }
 0x259   : > { %v2316_v50 = vpop.f32.mrf.mxu1 }
 0x25a   : > { %v2342_v7 = vmul.f32 %v2490_v6, %v2316_v50 }
 0x25b   : > { %v2318_v43 = vpop.f32.mrf.mxu1 }
 0x25c   : > { %v2357_v1 = vadd.f32 %v2491_v32, %v2342_v7 }
 0x25d   : > { %v2319_v11 = vpop.f32.mrf.mxu1 }
 0x25e   : > { %v2343_v9 = vmul.f32 %v2490_v6, %v2319_v11  ;;  %v2373_v17 = vadd.f32 %v2365_v60, %v2357_v1 }
 0x25f   : > { %v2321_v12 = vpop.f32.mrf.mxu1 }
 0x260   : > { %v2358_v27 = vadd.f32 %v2491_v32, %v2343_v9 }
 0x262   : > { %v2374_v13 = vadd.f32 %v2366_v10, %v2358_v27 }
 0x264   : > { %v2509_v47 = vpack.c.bf16 %v2374_v13, %v2373_v17 }
 0x266   : > { %2517 = vst [vmem:[%s3446_s17 + $0x10] sm:$0xff] %v2509_v47  }
 0x286   : > { %v2324_v46 = vpop.f32.mrf.mxu1 }
 0x287   : > { %v2344_v4 = vmul.f32 %v2490_v6, %v2324_v46 }
 0x288   : > { %v2326_v8 = vpop.f32.mrf.mxu1 }
 0x289   : > { %v2359_v15 = vadd.f32 %v2491_v32, %v2344_v4 }
 0x28a   : > { %v2327_v51 = vpop.f32.mrf.mxu1 }
 0x28b   : > { %v2345_v63 = vmul.f32 %v2490_v6, %v2327_v51  ;;  %v2375_v26 = vadd.f32 %v2367_v55, %v2359_v15 }
 0x28c   : > { %v2329_v24 = vpop.f32.mrf.mxu1 }
 0x28d   : > { %v2360_v61 = vadd.f32 %v2491_v32, %v2345_v63 }
 0x28f   : > { %v2376_v35 = vadd.f32 %v2368_v59, %v2360_v61 }
 0x291   : > { %v2514_v18 = vpack.c.bf16 %v2376_v35, %v2375_v26 }
 0x293   : > { %2518 = vst [vmem:[%s3446_s17 + $0x18] sm:$0xff] %v2514_v18  }
 0x294 PF: > { %s20_s13 = sadd.s32 1, %s2581_s13  }
 0x295   : > { %p17_p4 = scmp.ge.s32.totalorder %s20_s13, 4  }
 0x297   :  { %19 = sbr.rel (!%p17_p4) target bundleno = 1 (0x1), region = 92 }

// kernel: mobilenetv2_forward.11
= control target key start
LH: loop header
LB: loop body
LE: loop exit
PB: predicated region body
PF: predicated region fallthrough
CT: control target
= control target key end

     0   :  { %v29_v28 = vlaneseq  ;;  %v1257_v36 = vmov 1983009808   ;;  %s1548_s0 = inlined_call_operand.vmem [shape: f32[2,1280], index: 0, kind: input, shape index: {}]   ;;  %s1549_s1 = inlined_call_operand.vmem [shape: bf16[1280,128], index: 1, kind: input, shape index: {}]   ;;  %s1550_s2 = inlined_call_operand.vmem [shape: f32[1,128], index: 2, kind: input, shape index: {}]   ;;  %s1551_s3 = inlined_call_operand.vmem [shape: f32[1,128], index: 3, kind: input, shape index: {}]   ;;  %s1552_s4 = inlined_call_operand.hbm [shape: f32[2,128], index: 4, kind: output, shape index: {}]  }
   0x1   :  { %v1153_v0 = vld [vmem:[%s1549_s1 + $0x78] sm:$0xff]   ;;  %v1157_v4 = vld [vmem:[%s1549_s1 + $0x70] sm:$0xff]   ;;  %v1161_v8 = vld [vmem:[%s1549_s1 + $0x68] sm:$0xff]   ;;  %v27_v37 = vunpack.c.l.s4 %v1257_v36 }
   0x2   :  { %v1154_v1 = vld [vmem:[%s1549_s1 + $0xf8] sm:$0xff]   ;;  %1041 = vmatprep.subr.bf16.mxu0 %v1153_v0  ;;  %v1158_v5 = vld [vmem:[%s1549_s1 + $0xf0] sm:$0xff]   ;;  %v1162_v9 = vld [vmem:[%s1549_s1 + $0xe8] sm:$0xff]   ;;  %v30_v33 = vshrl.u32 %v29_v28, 7 }
   0x3   :  { %v1155_v2 = vld [vmem:[%s1549_s1 + $0x38] sm:$0xff]   ;;  %1063 = vmatprep.subr.bf16.mxu1 %v1154_v1  ;;  %v1159_v6 = vld [vmem:[%s1549_s1 + $0x30] sm:$0xff]   ;;  %v1163_v10 = vld [vmem:[%s1549_s1 + $0x28] sm:$0xff]   ;;  %v28_v38 = vunpack.c.0.s8 %v27_v37 }
   0x4   :  { %v1156_v3 = vld [vmem:[%s1549_s1 + $0xb8] sm:$0xff]   ;;  %1042 = vmatpush3.bf16.msra.mxu0 %v1155_v2  ;;  %v1160_v7 = vld [vmem:[%s1549_s1 + $0xb0] sm:$0xff]   ;;  %v1164_v11 = vld [vmem:[%s1549_s1 + $0xa8] sm:$0xff]  }
   0x5   :  { %1064 = vmatpush3.bf16.msra.mxu1 %v1156_v3  ;;  %1043 = vmatprep.subr.bf16.mxu0 %v1157_v4  ;;  %v1165_v12 = vld [vmem:[%s1549_s1 + $0x60] sm:$0xff]   ;;  %v1169_v16 = vld [vmem:[%s1549_s1 + $0x58] sm:$0xff]   ;;  %v1173_v20 = vld [vmem:[%s1549_s1 + $0x50] sm:$0xff]   ;;  %v1389_v41 = vsub.s32 %v28_v38, %v30_v33 }
   0x6   :  { %1065 = vmatprep.subr.bf16.mxu1 %v1158_v5  ;;  %v1166_v13 = vld [vmem:[%s1549_s1 + $0xe0] sm:$0xff]   ;;  %v1170_v17 = vld [vmem:[%s1549_s1 + $0xd8] sm:$0xff]   ;;  %v1174_v21 = vld [vmem:[%s1549_s1 + $0xd0] sm:$0xff]  }
   0x7   :  { %v1167_v14 = vld [vmem:[%s1549_s1 + $0x20] sm:$0xff]   ;;  %v1171_v18 = vld [vmem:[%s1549_s1 + $0x18] sm:$0xff]   ;;  %v1175_v22 = vld [vmem:[%s1549_s1 + $0x10] sm:$0xff]  }
   0x8   :  { %1044 = vmatpush3.bf16.msra.mxu0 %v1159_v6  ;;  %v1168_v15 = vld [vmem:[%s1549_s1 + $0xa0] sm:$0xff]   ;;  %v1172_v19 = vld [vmem:[%s1549_s1 + $0x98] sm:$0xff]   ;;  %v1176_v23 = vld [vmem:[%s1549_s1 + $0x90] sm:$0xff]  }
   0x9   :  { %1066 = vmatpush3.bf16.msra.mxu1 %v1160_v7  ;;  %1045 = vmatprep.subr.bf16.mxu0 %v1161_v8  ;;  %v1177_v24 = vld [vmem:[%s1549_s1 + $0x48] sm:$0xff]   ;;  %v1181_v29 = vld [vmem:[%s1549_s1 + $0x40] sm:$0xff]   ;;  %v1186_v35 = vld [vmem:[%s1549_s1 + $0x178] sm:$0xff]  }
   0xa   :  { %1067 = vmatprep.subr.bf16.mxu1 %v1162_v9  ;;  %v1178_v25 = vld [vmem:[%s1549_s1 + $0xc8] sm:$0xff]   ;;  %v1182_v30 = vld [vmem:[%s1549_s1 + $0xc0] sm:$0xff]   ;;  %v1188_v40 = vld [vmem:[%s1549_s1 + $0x1f8] sm:$0xff]  }
   0xb   :  { %v1179_v26 = vld [vmem:[%s1549_s1 + $0x8] sm:$0xff]   ;;  %v1183_v31 = vld [vmem:[%s1549_s1] sm:$0xff]   ;;  %v1187_v46 = vld [vmem:[%s1549_s1 + $0x138] sm:$0xff]  }
   0xc   :  { %1046 = vmatpush3.bf16.msra.mxu0 %v1163_v10  ;;  %v1180_v27 = vld [vmem:[%s1549_s1 + $0x88] sm:$0xff]   ;;  %v1184_v32 = vld [vmem:[%s1549_s1 + $0x80] sm:$0xff]   ;;  %v1189_v49 = vld [vmem:[%s1549_s1 + $0x1b8] sm:$0xff]  }
   0xd   :  { %1068 = vmatpush3.bf16.msra.mxu1 %v1164_v11  ;;  %1047 = vmatprep.subr.bf16.mxu0 %v1165_v12  ;;  %v19_v34 = vld [vmem:[%s1548_s0] sm:$0xff]  ;;  %v1190_v52 = vld [vmem:[%s1549_s1 + $0x170] sm:$0xff]   ;;  %v1194_v56 = vld [vmem:[%s1549_s1 + $0x168] sm:$0xff]  }
   0xe   :  { %1069 = vmatprep.subr.bf16.mxu1 %v1166_v13  ;;  %v25_v39 = vcombine.high %v19_v34, %v19_v34  ;;  %v32_v42 = vrot.slane %v19_v34, %v1389_v41  ;;  %v1192_v53 = vld [vmem:[%s1549_s1 + $0x1f0] sm:$0xff]   ;;  %v1196_v57 = vld [vmem:[%s1549_s1 + $0x1e8] sm:$0xff]   ;;  %v1198_v60 = vld [vmem:[%s1549_s1 + $0x160] sm:$0xff]  }
   0xf   :  { %v1191_v54 = vld [vmem:[%s1549_s1 + $0x130] sm:$0xff]   ;;  %v1195_v58 = vld [vmem:[%s1549_s1 + $0x128] sm:$0xff]   ;;  %v1200_v61 = vld [vmem:[%s1549_s1 + $0x1e0] sm:$0xff]  }
  0x10   :  { %1048 = vmatpush3.bf16.msra.mxu0 %v1167_v14  ;;  %v39_v43 = vrot.slane %v25_v39, %v1389_v41  ;;  %v40_v44 = vcombine.high %v32_v42, %v32_v42  ;;  %v77_v47 = vpack.c.bf16 %v32_v42, %v32_v42  ;;  %v1193_v55 = vld [vmem:[%s1549_s1 + $0x1b0] sm:$0xff]   ;;  %v1197_v59 = vld [vmem:[%s1549_s1 + $0x1a8] sm:$0xff]   ;;  %v1199_v62 = vld [vmem:[%s1549_s1 + $0x120] sm:$0xff]  }
  0x11   :  { %1070 = vmatpush3.bf16.msra.mxu1 %v1168_v15  ;;  %1049 = vmatprep.subr.bf16.mxu0 %v1169_v16  ;;  %v1201_v63 = vld [vmem:[%s1549_s1 + $0x1a0] sm:$0xff]   ;;  %v1202_v0 = vld [vmem:[%s1549_s1 + $0x158] sm:$0xff]   ;;  %v1206_v4 = vld [vmem:[%s1549_s1 + $0x150] sm:$0xff]  }
  0x12   :  { %1071 = vmatprep.subr.bf16.mxu1 %v1170_v17  ;;  %v41_v45 = vcombine.high %v39_v43, %v39_v43  ;;  %v79_v48 = vpack.c.bf16 %v39_v43, %v39_v43  ;;  %v78_v50 = vpack.c.bf16 %v40_v44, %v40_v44  ;;  %v1204_v1 = vld [vmem:[%s1549_s1 + $0x1d8] sm:$0xff]   ;;  %v1208_v5 = vld [vmem:[%s1549_s1 + $0x1d0] sm:$0xff]   ;;  %v1210_v8 = vld [vmem:[%s1549_s1 + $0x148] sm:$0xff]  }
  0x13   :  { %v1203_v2 = vld [vmem:[%s1549_s1 + $0x118] sm:$0xff]   ;;  %v1207_v6 = vld [vmem:[%s1549_s1 + $0x110] sm:$0xff]   ;;  %v20_v9 = vld [vmem:[%s1548_s0 + $0x8] sm:$0xff] }
  0x14   :  { %1050 = vmatpush3.bf16.msra.mxu0 %v1171_v18  ;;  %v80_v51 = vpack.c.bf16 %v41_v45, %v41_v45  ;;  %759 = vmatprep.mubr.bf16.mxu0 %v78_v50  ;;  %v1205_v3 = vld [vmem:[%s1549_s1 + $0x198] sm:$0xff]   ;;  %v1209_v7 = vld [vmem:[%s1549_s1 + $0x190] sm:$0xff]   ;;  %v1212_v10 = vld [vmem:[%s1549_s1 + $0x1c8] sm:$0xff]   ;;  %v49_v11 = vrot.slane %v20_v9, %v1389_v41  ;;  %v42_v12 = vcombine.high %v20_v9, %v20_v9 }
  0x15   :  { %1072 = vmatpush3.bf16.msra.mxu1 %v1172_v19  ;;  %1051 = vmatprep.subr.bf16.mxu0 %v1173_v20  ;;  %v1211_v13 = vld [vmem:[%s1549_s1 + $0x108] sm:$0xff]   ;;  %v1214_v17 = vld [vmem:[%s1549_s1 + $0x140] sm:$0xff]   ;;  %v1221_v28 = vld [vmem:[%s1549_s1 + $0x270] sm:$0xff]  }
  0x16   :  { %1073 = vmatprep.subr.bf16.mxu1 %v1174_v21  ;;  %799 = vmatprep.mubr.bf16.mxu1 %v80_v51  ;;  %v1213_v14 = vld [vmem:[%s1549_s1 + $0x188] sm:$0xff]   ;;  %v57_v15 = vcombine.high %v49_v11, %v49_v11  ;;  %v56_v16 = vrot.slane %v42_v12, %v1389_v41  ;;  %v1216_v18 = vld [vmem:[%s1549_s1 + $0x1c0] sm:$0xff]  }
  0x17   :  { %v1215_v21 = vld [vmem:[%s1549_s1 + $0x100] sm:$0xff]  }
  0x18   :  { %1052 = vmatpush3.bf16.msra.mxu0 %v1175_v22  ;;  %v82_v19 = vpack.c.bf16 %v57_v15, %v57_v15  ;;  %v58_v20 = vcombine.high %v56_v16, %v56_v16 }
  0x19   :  { %1074 = vmatpush3.bf16.msra.mxu1 %v1176_v23  ;;  %1053 = vmatprep.subr.bf16.mxu0 %v1177_v24  ;;  %v1217_v23 = vld [vmem:[%s1549_s1 + $0x180] sm:$0xff]   ;;  %v1218_v24 = vld [vmem:[%s1549_s1 + $0x278] sm:$0xff]  }
  0x1a   :  { %1075 = vmatprep.subr.bf16.mxu1 %v1178_v25  ;;  %v84_v22 = vpack.c.bf16 %v58_v20, %v58_v20  ;;  %v81_v25 = vpack.c.bf16 %v49_v11, %v49_v11 }
  0x1c   :  { %1054 = vmatpush3.bf16.msra.mxu0 %v1179_v26  ;;  %v83_v26 = vpack.c.bf16 %v56_v16, %v56_v16 }
  0x1d   :  { %1076 = vmatpush3.bf16.msra.mxu1 %v1180_v27  ;;  %1055 = vmatprep.subr.bf16.mxu0 %v1181_v29  ;;  %v1220_v27 = vld [vmem:[%s1549_s1 + $0x238] sm:$0xff]   ;;  %v1222_v29 = vld [vmem:[%s1549_s1 + $0x230] sm:$0xff]  }
  0x1e   :  { %1077 = vmatprep.subr.bf16.mxu1 %v1182_v30  ;;  %v1223_v30 = vld [vmem:[%s1549_s1 + $0x268] sm:$0xff]  }
  0x20   :  { %1056 = vmatpush3.bf16.msra.mxu0 %v1183_v31 }
  0x21   :  { %1078 = vmatpush3.bf16.msra.mxu1 %v1184_v32  ;;  %1085 = vmatprep.subr.bf16.mxu0 %v1186_v35 }
  0x22   :  { %1107 = vmatprep.subr.bf16.mxu1 %v1188_v40 }
  0x23   :  { %760 = vmatmul.mubr.bf16.vlgmr.msra.gmra.mxu0 %v77_v47 }
  0x24   :  { %800 = vmatmul.mubr.bf16.vlgmr.msra.gmra.mxu1 %v79_v48  ;;  %1086 = vmatpush3.bf16.msra.mxu0 %v1187_v46 }
  0x25   :  { %1108 = vmatpush3.bf16.msra.mxu1 %v1189_v49  ;;  %1087 = vmatprep.subr.bf16.mxu0 %v1190_v52 }
  0x26   :  { %1109 = vmatprep.subr.bf16.mxu1 %v1192_v53  ;;  %839 = vmatprep.mubr.bf16.mxu0 %v82_v19 }
  0x27   :  { %879 = vmatprep.mubr.bf16.mxu1 %v84_v22 }
  0x28   :  { %1088 = vmatpush3.bf16.msra.mxu0 %v1191_v54 }
  0x29   :  { %1110 = vmatpush3.bf16.msra.mxu1 %v1193_v55  ;;  %1089 = vmatprep.subr.bf16.mxu0 %v1194_v56 }
  0x2a   :  { %1111 = vmatprep.subr.bf16.mxu1 %v1196_v57 }
  0x2c   :  { %1090 = vmatpush3.bf16.msra.mxu0 %v1195_v58 }
  0x2d   :  { %1112 = vmatpush3.bf16.msra.mxu1 %v1197_v59  ;;  %1091 = vmatprep.subr.bf16.mxu0 %v1198_v60 }
  0x2e   :  { %1113 = vmatprep.subr.bf16.mxu1 %v1200_v61 }
  0x30   :  { %1092 = vmatpush3.bf16.msra.mxu0 %v1199_v62 }
  0x31   :  { %1114 = vmatpush3.bf16.msra.mxu1 %v1201_v63  ;;  %1093 = vmatprep.subr.bf16.mxu0 %v1202_v0 }
  0x32   :  { %1115 = vmatprep.subr.bf16.mxu1 %v1204_v1 }
  0x34   :  { %1094 = vmatpush3.bf16.msra.mxu0 %v1203_v2 }
  0x35   :  { %1116 = vmatpush3.bf16.msra.mxu1 %v1205_v3  ;;  %1095 = vmatprep.subr.bf16.mxu0 %v1206_v4 }
  0x36   :  { %1117 = vmatprep.subr.bf16.mxu1 %v1208_v5 }
  0x38   :  { %1096 = vmatpush3.bf16.msra.mxu0 %v1207_v6 }
  0x39   :  { %1118 = vmatpush3.bf16.msra.mxu1 %v1209_v7  ;;  %1097 = vmatprep.subr.bf16.mxu0 %v1210_v8 }
  0x3a   :  { %1119 = vmatprep.subr.bf16.mxu1 %v1212_v10 }
  0x3c   :  { %1098 = vmatpush3.bf16.msra.mxu0 %v1211_v13 }
  0x3d   :  { %1120 = vmatpush3.bf16.msra.mxu1 %v1213_v14  ;;  %1099 = vmatprep.subr.bf16.mxu0 %v1214_v17 }
  0x3e   :  { %1121 = vmatprep.subr.bf16.mxu1 %v1216_v18 }
  0x40   :  { %1100 = vmatpush3.bf16.msra.mxu0 %v1215_v21 }
  0x41   :  { %1122 = vmatpush3.bf16.msra.mxu1 %v1217_v23  ;;  %1129 = vmatprep.subr.bf16.mxu0 %v1218_v24 }
  0x43   :  { %840 = vmatmul.mubr.bf16.vlgmr.msra.gmra.mxu0 %v81_v25 }
  0x44   :  { %880 = vmatmul.mubr.bf16.vlgmr.msra.gmra.mxu1 %v83_v26  ;;  %1130 = vmatpush3.bf16.msra.mxu0 %v1220_v27 }
  0x45   :  { %1131 = vmatprep.subr.bf16.mxu0 %v1221_v28 }
  0x46   :  { %9 = vsyncpa [#allocation3], 0  ;;  %v958_v31 = vld.sshfl [vmem:[%s1548_s0 + $0x10] sm:$0x33 pattern:$0x76325410] }
  0x47   :  { %v66_v32 = vcombine.high %v958_v31, %v958_v31  ;;  %v1224_v33 = vld [vmem:[%s1549_s1 + $0x228] sm:$0xff]   ;;  %v1225_v34 = vld [vmem:[%s1549_s1 + $0x260] sm:$0xff]   ;;  %v1227_v37 = vld [vmem:[%s1549_s1 + $0x258] sm:$0xff]   ;;  %v85_v45 = vpack.c.bf16 %v958_v31, %v958_v31  ;;  %s1258_s27 = smov [#allocation2]  }
  0x48   :  { %1132 = vmatpush3.bf16.msra.mxu0 %v1222_v29  ;;  %v1226_v36 = vld [vmem:[%s1549_s1 + $0x220] sm:$0xff]   ;;  %v1228_v38 = vld [vmem:[%s1549_s1 + $0x218] sm:$0xff]   ;;  %v1229_v39 = vld [vmem:[%s1549_s1 + $0x250] sm:$0xff]   ;;  %s950_s28 = sshll.u32 %s1258_s27, 4  ;;  %s951_s28 = int_to_ptr.vmem [resolvable:$true] %s950_s28 }
  0x49   :  { %1133 = vmatprep.subr.bf16.mxu0 %v1223_v30  ;;  %v86_v35 = vpack.c.bf16 %v66_v32, %v66_v32  ;;  %v1230_v40 = vld [vmem:[%s1549_s1 + $0x210] sm:$0xff]   ;;  %v1231_v41 = vld [vmem:[%s1549_s1 + $0x248] sm:$0xff]   ;;  %v1233_v43 = vld [vmem:[%s1549_s1 + $0x240] sm:$0xff]   ;;  %s1235_s29 = scalar_lea.vmem %s951_s28, 32  ;;  %p1240_p1 = scmp.lt.s32.totalorder %s951_s28, %s951_s28 }
  0x4a   :  { %v1232_v42 = vld [vmem:[%s1549_s1 + $0x208] sm:$0xff]   ;;  %v1234_v44 = vld [vmem:[%s1549_s1 + $0x200] sm:$0xff]   ;;  %p1236_p0 = scmp.ne.s32.totalorder %s951_s28, %s1235_s29  ;;  %p1241_p2 = scmp.lt.s32.totalorder %s1235_s29, %s1235_s29 }
  0x4b   :  { %919 = vmatprep.mubr.bf16.mxu0 %v86_v35  ;;  %v1039_v9 = vld [vmem:[%s1550_s2] ss:$0 sm:$0xff] }
  0x4c   :  { %1134 = vmatpush3.bf16.msra.mxu0 %v1224_v33  ;;  %v1040_v12 = vld [vmem:[%s1551_s3] ss:$0 sm:$0xff]  ;;  %p1242_p3 = por %p1241_p2, %p1240_p1 }
  0x4d   :  { %1135 = vmatprep.subr.bf16.mxu0 %v1225_v34 }
  0x4e   :  { %p1243_p4 = pnand %p1242_p3, %p1236_p0 }
  0x50   :  { %1136 = vmatpush3.bf16.msra.mxu0 %v1226_v36 }
  0x51   :  { %1137 = vmatprep.subr.bf16.mxu0 %v1227_v37 }
  0x54   :  { %1138 = vmatpush3.bf16.msra.mxu0 %v1228_v38 }
  0x55   :  { %1139 = vmatprep.subr.bf16.mxu0 %v1229_v39 }
  0x58   :  { %1140 = vmatpush3.bf16.msra.mxu0 %v1230_v40 }
  0x59   :  { %1141 = vmatprep.subr.bf16.mxu0 %v1231_v41 }
  0x5c   :  { %1142 = vmatpush3.bf16.msra.mxu0 %v1232_v42 }
  0x5d   :  { %1143 = vmatprep.subr.bf16.mxu0 %v1233_v43 }
  0x60   :  { %1144 = vmatpush3.bf16.msra.mxu0 %v1234_v44 }
  0x63   :  { %920 = vmatmul.mubr.bf16.vlgmr.msra.gmra.mxu0 %v85_v45 }
  0xe3   :  { %v1057_v46 = vpop.f32.mrf.mxu0 }
  0xe4   :  { %v1079_v47 = vpop.f32.mrf.mxu1 }
  0xe5   :  { %v1058_v48 = vpop.f32.mrf.mxu0 }
  0xe6   :  { %v1080_v49 = vpop.f32.mrf.mxu1  ;;  %v1059_v62 = vadd.f32 %v1058_v48, %v1057_v46 }
  0xe7   :  { %v1060_v50 = vpop.f32.mrf.mxu0  ;;  %v1081_v63 = vadd.f32 %v1080_v49, %v1079_v47 }
  0xe8   :  { %v1082_v51 = vpop.f32.mrf.mxu1 }
  0xe9   :  { %v1061_v52 = vpop.f32.mrf.mxu0  ;;  %v802_v1 = vadd.f32 %v1081_v63, %v1059_v62 }
  0xea   :  { %v1083_v53 = vpop.f32.mrf.mxu1 }
 0x103   :  { %v1101_v54 = vpop.f32.mrf.mxu0 }
 0x104   :  { %v1123_v55 = vpop.f32.mrf.mxu1 }
 0x105   :  { %v1102_v56 = vpop.f32.mrf.mxu0 }
 0x106   :  { %v1124_v57 = vpop.f32.mrf.mxu1  ;;  %v1103_v0 = vadd.f32 %v1102_v56, %v1101_v54 }
 0x107   :  { %v1104_v58 = vpop.f32.mrf.mxu0  ;;  %v1125_v3 = vadd.f32 %v1124_v57, %v1123_v55 }
 0x108   :  { %v1126_v59 = vpop.f32.mrf.mxu1  ;;  %v842_v2 = vadd.f32 %v1103_v0, %v802_v1 }
 0x109   :  { %v1105_v60 = vpop.f32.mrf.mxu0 }
 0x10a   :  { %v1127_v61 = vpop.f32.mrf.mxu1  ;;  %v882_v6 = vadd.f32 %v1125_v3, %v842_v2 }
 0x123   :  { %v1145_v4 = vpop.f32.mrf.mxu0 }
 0x125   :  { %v1146_v5 = vpop.f32.mrf.mxu0 }
 0x126   :  { %v1147_v7 = vadd.f32 %v1146_v5, %v1145_v4 }
 0x127   :  { %v1148_v8 = vpop.f32.mrf.mxu0 }
 0x128   :  { %v922_v10 = vadd.f32 %v1147_v7, %v882_v6 }
 0x129   :  { %v1149_v11 = vpop.f32.mrf.mxu0 }
 0x12a   :  { %v934_v13 = vmul.f32 %v1039_v9, %v922_v10 }
 0x12c   :  { %v942_v14 = vadd.f32 %v1040_v12, %v934_v13 }
 0x12e   :  { %943 = vst [vmem:[#allocation2] sm:$0x3] %v942_v14 }
 0x12f   :  { %1246 = shalt.err (!%p1243_p4)
}
 0x130   :  { %953 = dma.vmem_to_hbm [thread:$0]  %s951_s28, 32, %s1552_s4, [#allocation3]  }
 0x131   :  { %1255 = dma.done.wait [#allocation3], 32  }
 0x132   :  { %1256 = vsyncadd [#allocation3], 4294967264 }
 0x133   :  { %957 = vsyncpa [#allocation3], 1 }

</bundles_post_ra>
